<compile_context>
chip_gen: v5e
topology: v5e:2x2
jax: 0.10.0
libtpu: 0.0.40
codegen_flags: <defaults>
</compile_context>

<pallas_src>
import jax
import jax.numpy as jnp
from jax import lax
from jax.experimental import pallas as pl
from jax.experimental.pallas import tpu as pltpu

LANES = 128  # TPU lane width; channel/feature axes are zero-padded to this.


def _round_up(x, m):
    return ((x + m - 1) // m) * m


def _full_spec(shape):
    # whole-array block (allowed: block_shape == full array dims)
    ndim = len(shape)
    return pl.BlockSpec(shape, lambda i, _n=ndim: (0,) * _n)


# ------------------------------ fused kernel --------------------------------

def _make_fused_kernel(N, H, W, C1, C2, F1, num_classes):
    """Build the fully fused forward kernel for static shapes."""
    P = LANES
    Ho1, Wo1 = H - 2, W - 2            # conv1 'VALID', k=3
    Hp, Wp = Ho1 // 2, Wo1 // 2        # 2x2/2 max pool (floor, like PyTorch)
    Ho2, Wo2 = Hp - 2, Wp - 2          # conv2 'VALID', k=3
    n_pos = Ho2 * Wo2                  # spatial positions feeding fc1
    S = _round_up(Hp * Wp, 8)          # per-image row stride in flat pool buffer
    XR = N * S                         # rows of conv2 im2col matrix / a2
    PR = _round_up(XR + 2 * Wp + 2, 8)  # pool rows (covers all shifted windows)
    K1 = _round_up(n_pos * C2, P)      # packed fc1 reduction dimension
    HR = _round_up(N, 8)               # rows of the packed fc1-input buffer

    def kernel(xe_ref, xo_ref, w1_ref, b1_ref, w2_ref, b2_ref,
               w1p_ref, b1f_ref, w2f_ref, b2f_ref, o_ref,
               pool_ref, a2_ref, hin_ref):
        f32 = jnp.float32

        # Zero scratch whose padding later feeds reads / matmuls (stale VMEM
        # could contain NaN/Inf otherwise).
        pool_ref[...] = jnp.zeros((PR, P), f32)
        hin_ref[...] = jnp.zeros((HR, K1), f32)

        # ------------- conv1 + bias + ReLU + 2x2/2 max-pool -----------------
        # Register-accumulated, one pooled output row at a time.  relu/bias
        # commute with max, so the 4 pre-activation accumulators are maxed
        # first and only one bias-add + relu runs per pooled row.
        for oi in range(Hp):
            xe = [xe_ref[:, 2 * oi + t, :, :] for t in range(4)]  # (N, W//2, 1)
            xo = [xo_ref[:, 2 * oi + t, :, :] for t in range(4)]
            accs = []
            for rr in range(2):          # the two conv1 rows under pooled row oi
                for par in range(2):     # even / odd conv1 output columns
                    acc = None
                    for di in range(3):
                        for dj in range(3):
                            tap = di * 3 + dj
                            if par == 0:   # output col 2m needs x col 2m+dj
                                rows, start = ((xe, 0), (xo, 0), (xe, 1))[dj]
                            else:          # output col 2m+1 needs x col 2m+1+dj
                                rows, start = ((xo, 0), (xe, 1), (xo, 1))[dj]
                            xs = rows[rr + di][:, start:start + Wp, :]  # (N,Wp,1)
                            term = xs * w1_ref[tap:tap + 1, :]          # (N,Wp,P)
                            acc = term if acc is None else acc + term
                    accs.append(acc)
            pooled = jnp.maximum(jnp.maximum(accs[0], accs[1]),
                                 jnp.maximum(accs[2], accs[3]))
            pooled = jnp.maximum(pooled + b1_ref[...], 0.0)             # (N,Wp,P)
            for n in range(N):
                r0 = n * S + oi * Wp
                pool_ref[r0:r0 + Wp, :] = pooled[n]

        # ------------- conv2: 9 taps K-packed in lanes -> ONE matmul ---------
        # pool lanes g*C1+c all hold channel c (conv1 weights are replicated),
        # so masking tap g's shifted window to lane group g builds the im2col
        # matrix.  Rows with column j >= Wo2 (and inter-image padding rows) are
        # garbage-by-design and never consumed downstream.
        lane = lax.broadcasted_iota(jnp.int32, (1, P), 1)
        x2 = None
        for di in range(3):
            for dj in range(3):
                g = di * 3 + dj
                off = di * Wp + dj
                msk = ((lane >= g * C1) & (lane < (g + 1) * C1)).astype(f32)
                term = pool_ref[off:off + XR, :] * msk
                x2 = term if x2 is None else x2 + term
        a2 = jnp.dot(x2, w2_ref[...], preferred_element_type=f32) + b2_ref[...]
        a2_ref[...] = jnp.maximum(a2, 0.0)

        # ------------- pack fc1 input: hin[n, p*C2 + c] = a2[n, pos p, c] ----
        for p_ in range(n_pos):
            i, j = p_ // Wo2, p_ % Wo2
            u = i * Wp + j
            for n in range(N):
                r = n * S + u
                hin_ref[n:n + 1, p_ * C2:(p_ + 1) * C2] = a2_ref[r:r + 1, 0:C2]

        # ------------- fc1 (single K-packed matmul, no activation) -----------
        h = jnp.dot(hin_ref[0:N, :], w1p_ref[...],
                    preferred_element_type=f32) + b1f_ref[...]

        # ------------- fc2 + log_softmax over the first num_classes lanes ----
        logits = jnp.dot(h, w2f_ref[...],
                         preferred_element_type=f32) + b2f_ref[...]
        valid = lane < num_classes
        masked = jnp.where(valid, logits, -1e30)
        m = jnp.max(masked, axis=-1, keepdims=True)
        e = jnp.where(valid, jnp.exp(masked - m), 0.0)
        lse = jnp.log(jnp.sum(e, axis=-1, keepdims=True))
        # Lane-dense (N, 128) store; the wrapper slices to num_classes.
        o_ref[...] = logits - m - lse

    return kernel, (S, XR, PR, K1, HR)


def cnn_forward(x_nchw, prepped, *, channels=(6, 16), fc1_out=84, num_classes=10):
    """Single fused Pallas forward pass. `prepped` comes from prepare_params."""
    w1, b1, w2pk, b2, w1p, b1f, w2f, b2f = prepped
    N, C, H, W = x_nchw.shape
    assert C == 1, "the module fixes conv1 in_channels to 1"
    assert H % 2 == 0 and W % 2 == 0
    C1, C2 = channels
    F1 = fc1_out
    P = LANES

    kernel, (S, XR, PR, K1, HR) = _make_fused_kernel(
        N, H, W, C1, C2, F1, num_classes)

    # Host-side glue (tiny, cheap XLA ops): NCHW with C==1 -> even/odd-column
    # planes with W on the sublane axis, so every in-kernel conv/pool access is
    # a contiguous static slice (no strided loads / compaction in the kernel).
    x2 = x_nchw.reshape(N, H, W).astype(jnp.float32)
    x_even = x2[:, :, 0::2].reshape(N, H, W // 2, 1)
    x_odd = x2[:, :, 1::2].reshape(N, H, W // 2, 1)

    # NOTE: at batch=2 everything fits one grid step; for large batches, tile
    # the batch dimension, mark it "parallel" (v7x megacore), and size the tile
    # for v7x's 64 MiB VMEM (raise vmem_limit_bytes if needed).
    out = pl.pallas_call(
        kernel,
        grid=(1,),
        in_specs=[_full_spec(x_even.shape), _full_spec(x_odd.shape),
                  _full_spec(w1.shape), _full_spec(b1.shape),
                  _full_spec(w2pk.shape), _full_spec(b2.shape),
                  _full_spec(w1p.shape), _full_spec(b1f.shape),
                  _full_spec(w2f.shape), _full_spec(b2f.shape)],
        out_specs=_full_spec((N, P)),
        out_shape=jax.ShapeDtypeStruct((N, P), jnp.float32),
        scratch_shapes=[
            pltpu.VMEM((PR, P), jnp.float32),   # flat pooled activation
            pltpu.VMEM((XR, P), jnp.float32),   # conv2 activation
            pltpu.VMEM((HR, K1), jnp.float32),  # packed fc1 input
        ],
        compiler_params=pltpu.CompilerParams(
            dimension_semantics=("arbitrary",)),
    )(x_even, x_odd, w1, b1, w2pk, b2, w1p, b1f, w2f, b2f)
    return out[:, :num_classes]


# ----------------------- one-time parameter preparation ----------------------

def prepare_params(params):
    """Convert PyTorch-layout params into padded, K-packed kernel layouts.

    conv1 weights/bias are replicated across the 9 conv2 lane groups (lanes
    g*C1+c), conv2 is folded into a single (128,128) weight, and the PyTorch
    NCHW flatten feeding fc1 is folded into a (512,128) lane-packed weight.
    Done once, outside the hot path.
    """
    cw1, cb1, cw2, cb2, fw1, fb1, fw2, fb2 = params
    P = LANES
    C1 = cw1.shape[0]
    C2 = cw2.shape[0]
    F1 = fw1.shape[0]
    OUT = fw2.shape[0]
    n_pos = fw1.shape[1] // C2                  # Ho2 * Wo2
    K1 = _round_up(n_pos * C2, P)
    assert 9 * C1 <= P and C2 <= P and F1 <= P and OUT <= P

    # conv1 (C1,1,3,3) -> (9, P); row r = di*3+dj; lanes g*C1+c = weight[c] for
    # every lane group g (replication enables the conv2 K-packing).
    w1_t = jnp.transpose(cw1[:, 0, :, :], (1, 2, 0)).reshape(9, C1)
    w1 = jnp.zeros((9, P), jnp.float32).at[:, :9 * C1].set(jnp.tile(w1_t, (1, 9)))
    b1 = jnp.zeros((1, P), jnp.float32).at[0, :9 * C1].set(jnp.tile(cb1, 9))

    # conv2 (C2,C1,3,3) folded into ONE (P,P) weight: row g*C1+c1 -> col c2.
    w2_t = jnp.transpose(cw2, (2, 3, 1, 0)).reshape(9 * C1, C2)
    w2pk = jnp.zeros((P, P), jnp.float32).at[:9 * C1, :C2].set(w2_t)
    b2 = jnp.zeros((1, P), jnp.float32).at[0, :C2].set(cb2)

    # fc1 (F1, C2*n_pos): kernel packs hin[n, p*C2+c] = a2[n, p, c], while the
    # PyTorch flatten index is c*n_pos + p -> permute columns accordingly.
    w1_r = jnp.transpose(fw1.reshape(F1, C2, n_pos), (2, 1, 0)).reshape(
        n_pos * C2, F1)
    w1p = jnp.zeros((K1, P), jnp.float32).at[:n_pos * C2, :F1].set(w1_r)
    b1f = jnp.zeros((1, P), jnp.float32).at[0, :F1].set(fb1)

    # fc2 (OUT, F1) -> (P, P)[f, out].
    w2f = jnp.zeros((P, P), jnp.float32).at[:F1, :OUT].set(fw2.T)
    b2f = jnp.zeros((1, P), jnp.float32).at[0, :OUT].set(fb2)

    # NOTE: on v5e these could be cast to bfloat16 (f32 accumulation kept) to
    # halve weight HBM DMA; kept f32 here for exact reference parity.
    return (w1, b1, w2pk, b2, w1p, b1f, w2f, b2f)


# ------------------------- parameters / reference ----------------------------

def init_params(key, image_dim=(16, 16), channels=(6, 16), output_size=10):
    H, W = image_dim
    h1, w1 = H - 2, W - 2                  # conv1 'VALID' k=3
    hp, wp = h1 // 2, w1 // 2              # max pool 2,2
    h2, w2 = hp - 2, wp - 2                # conv2 'VALID' k=3
    fc1_in = channels[1] * h2 * w2
    ks = jax.random.split(key, 8)
    cw1 = 0.2 * jax.random.normal(ks[0], (channels[0], 1, 3, 3), jnp.float32)
    cb1 = 0.1 * jax.random.normal(ks[1], (channels[0],), jnp.float32)
    cw2 = 0.1 * jax.random.normal(ks[2], (channels[1], channels[0], 3, 3), jnp.float32)
    cb2 = 0.1 * jax.random.normal(ks[3], (channels[1],), jnp.float32)
    fw1 = 0.05 * jax.random.normal(ks[4], (84, fc1_in), jnp.float32)
    fb1 = 0.1 * jax.random.normal(ks[5], (84,), jnp.float32)
    fw2 = 0.1 * jax.random.normal(ks[6], (output_size, 84), jnp.float32)
    fb2 = 0.1 * jax.random.normal(ks[7], (output_size,), jnp.float32)
    return (cw1, cb1, cw2, cb2, fw1, fb1, fw2, fb2)


def reference_forward(x, params):
    """Pure-JAX (non-Pallas) reference with PyTorch semantics, for sanity check."""
    cw1, cb1, cw2, cb2, fw1, fb1, fw2, fb2 = params
    y = jax.lax.conv_general_dilated(x, cw1, (1, 1), 'VALID',
                                     dimension_numbers=('NCHW', 'OIHW', 'NCHW'))
    y = jnp.maximum(y + cb1[None, :, None, None], 0.0)
    y = jax.lax.reduce_window(y, -jnp.inf, jax.lax.max,
                              (1, 1, 2, 2), (1, 1, 2, 2), 'VALID')
    y = jax.lax.conv_general_dilated(y, cw2, (1, 1), 'VALID',
                                     dimension_numbers=('NCHW', 'OIHW', 'NCHW'))
    y = jnp.maximum(y + cb2[None, :, None, None], 0.0)
    y = y.reshape(y.shape[0], -1)
    y = y @ fw1.T + fb1
    y = y @ fw2.T + fb2
    return jax.nn.log_softmax(y, axis=1)


# ----------------------------------- main -------------------------------------

if __name__ == "__main__":
    key = jax.random.PRNGKey(0)
    kx, kp = jax.random.split(key)

    # batch=2, 1 input channel, 16x16 image (consistent with the module).
    x = jax.random.normal(kx, (2, 1, 16, 16), jnp.float32)
    params = init_params(kp, image_dim=(16, 16))
    prepped = prepare_params(params)          # one-time, outside the hot path

    fwd = jax.jit(cnn_forward)
    out = jax.block_until_ready(fwd(x, prepped))

    ref = reference_forward(x, params)
    assert out.shape == (2, 10), out.shape
    err = float(jnp.max(jnp.abs(out - ref)))
    if not jnp.allclose(out, ref, atol=2e-2, rtol=2e-2):
        raise AssertionError(
            f"Pallas output mismatch vs reference, max abs err={err}")
    print("KERNEL_OK")
</pallas_src>

<mosaic_0001>
module attributes {stable_mosaic.version = 11 : i64} {
  func.func @kernel(%arg0: i32, %arg1: memref<2x16x8x1xf32, #tpu.memory_space<vmem>>, %arg2: memref<2x16x8x1xf32, #tpu.memory_space<vmem>>, %arg3: memref<9x128xf32, #tpu.memory_space<vmem>>, %arg4: memref<1x128xf32, #tpu.memory_space<vmem>>, %arg5: memref<128x128xf32, #tpu.memory_space<vmem>>, %arg6: memref<1x128xf32, #tpu.memory_space<vmem>>, %arg7: memref<512x128xf32, #tpu.memory_space<vmem>>, %arg8: memref<1x128xf32, #tpu.memory_space<vmem>>, %arg9: memref<128x128xf32, #tpu.memory_space<vmem>>, %arg10: memref<1x128xf32, #tpu.memory_space<vmem>>, %arg11: memref<2x128xf32, #tpu.memory_space<vmem>>, %arg12: memref<128x128xf32, #tpu.memory_space<vmem>>, %arg13: memref<112x128xf32, #tpu.memory_space<vmem>>, %arg14: memref<8x512xf32, #tpu.memory_space<vmem>>) attributes {dimension_semantics = [#tpu.dimension_semantics<arbitrary>], iteration_bounds = array<i64: 1>, scalar_prefetch = 0 : i64, scratch_operands = 3 : i64, tpu.core_type = #tpu.core_type<tc>, window_params = [{pipeline_mode = #tpu.pipeline_mode<synchronous>, transform_indices = @transform_0, window_bounds = array<i64: 2, 16, 8, 1>}, {pipeline_mode = #tpu.pipeline_mode<synchronous>, transform_indices = @transform_1, window_bounds = array<i64: 2, 16, 8, 1>}, {pipeline_mode = #tpu.pipeline_mode<synchronous>, transform_indices = @transform_2, window_bounds = array<i64: 9, 128>}, {pipeline_mode = #tpu.pipeline_mode<synchronous>, transform_indices = @transform_3, window_bounds = array<i64: 1, 128>}, {pipeline_mode = #tpu.pipeline_mode<synchronous>, transform_indices = @transform_4, window_bounds = array<i64: 128, 128>}, {pipeline_mode = #tpu.pipeline_mode<synchronous>, transform_indices = @transform_5, window_bounds = array<i64: 1, 128>}, {pipeline_mode = #tpu.pipeline_mode<synchronous>, transform_indices = @transform_6, window_bounds = array<i64: 512, 128>}, {pipeline_mode = #tpu.pipeline_mode<synchronous>, transform_indices = @transform_7, window_bounds = array<i64: 1, 128>}, {pipeline_mode = #tpu.pipeline_mode<synchronous>, transform_indices = @transform_8, window_bounds = array<i64: 128, 128>}, {pipeline_mode = #tpu.pipeline_mode<synchronous>, transform_indices = @transform_9, window_bounds = array<i64: 1, 128>}, {pipeline_mode = #tpu.pipeline_mode<synchronous>, transform_indices = @transform_10, window_bounds = array<i64: 2, 128>}]} {
    %cst = arith.constant 0.000000e+00 : f32
    %0 = vector.broadcast %cst : f32 to vector<128x128xf32>
    %c0 = arith.constant 0 : index
    %c0_0 = arith.constant 0 : index
    %1 = vector.load %arg12[%c0, %c0_0] : memref<128x128xf32, #tpu.memory_space<vmem>>, vector<128x128xf32>
    tpu.vector_store %arg12[%c0, %c0_0], %0 {strides = array<i32>} : memref<128x128xf32, #tpu.memory_space<vmem>>, vector<128x128xf32>,
    %cst_1 = arith.constant 0.000000e+00 : f32
    %2 = vector.broadcast %cst_1 : f32 to vector<8x512xf32>
    %c0_2 = arith.constant 0 : index
    %c0_3 = arith.constant 0 : index
    %3 = vector.load %arg14[%c0_2, %c0_3] : memref<8x512xf32, #tpu.memory_space<vmem>>, vector<8x512xf32>
    tpu.vector_store %arg14[%c0_2, %c0_3], %2 {strides = array<i32>} : memref<8x512xf32, #tpu.memory_space<vmem>>, vector<8x512xf32>,
    %c0_4 = arith.constant 0 : index
    %c0_5 = arith.constant 0 : index
    %c0_6 = arith.constant 0 : index
    %c0_7 = arith.constant 0 : index
    %4 = vector.load %arg1[%c0_4, %c0_5, %c0_6, %c0_7] : memref<2x16x8x1xf32, #tpu.memory_space<vmem>>, vector<2x1x8x1xf32>
    %5 = vector.shape_cast %4 : vector<2x1x8x1xf32> to vector<2x8x1xf32>
    %c0_8 = arith.constant 0 : index
    %c1 = arith.constant 1 : index
    %c0_9 = arith.constant 0 : index
    %c0_10 = arith.constant 0 : index
    %6 = vector.load %arg1[%c0_8, %c1, %c0_9, %c0_10] : memref<2x16x8x1xf32, #tpu.memory_space<vmem>>, vector<2x1x8x1xf32>
    %7 = vector.shape_cast %6 : vector<2x1x8x1xf32> to vector<2x8x1xf32>
    %c0_11 = arith.constant 0 : index
    %c2 = arith.constant 2 : index
    %c0_12 = arith.constant 0 : index
    %c0_13 = arith.constant 0 : index
    %8 = vector.load %arg1[%c0_11, %c2, %c0_12, %c0_13] : memref<2x16x8x1xf32, #tpu.memory_space<vmem>>, vector<2x1x8x1xf32>
    %9 = vector.shape_cast %8 : vector<2x1x8x1xf32> to vector<2x8x1xf32>
    %c0_14 = arith.constant 0 : index
    %c3 = arith.constant 3 : index
    %c0_15 = arith.constant 0 : index
    %c0_16 = arith.constant 0 : index
    %10 = vector.load %arg1[%c0_14, %c3, %c0_15, %c0_16] : memref<2x16x8x1xf32, #tpu.memory_space<vmem>>, vector<2x1x8x1xf32>
    %11 = vector.shape_cast %10 : vector<2x1x8x1xf32> to vector<2x8x1xf32>
    %c0_17 = arith.constant 0 : index
    %c0_18 = arith.constant 0 : index
    %c0_19 = arith.constant 0 : index
    %c0_20 = arith.constant 0 : index
    %12 = vector.load %arg2[%c0_17, %c0_18, %c0_19, %c0_20] : memref<2x16x8x1xf32, #tpu.memory_space<vmem>>, vector<2x1x8x1xf32>
    %13 = vector.shape_cast %12 : vector<2x1x8x1xf32> to vector<2x8x1xf32>
    %c0_21 = arith.constant 0 : index
    %c1_22 = arith.constant 1 : index
    %c0_23 = arith.constant 0 : index
    %c0_24 = arith.constant 0 : index
    %14 = vector.load %arg2[%c0_21, %c1_22, %c0_23, %c0_24] : memref<2x16x8x1xf32, #tpu.memory_space<vmem>>, vector<2x1x8x1xf32>
    %15 = vector.shape_cast %14 : vector<2x1x8x1xf32> to vector<2x8x1xf32>
    %c0_25 = arith.constant 0 : index
    %c2_26 = arith.constant 2 : index
    %c0_27 = arith.constant 0 : index
    %c0_28 = arith.constant 0 : index
    %16 = vector.load %arg2[%c0_25, %c2_26, %c0_27, %c0_28] : memref<2x16x8x1xf32, #tpu.memory_space<vmem>>, vector<2x1x8x1xf32>
    %17 = vector.shape_cast %16 : vector<2x1x8x1xf32> to vector<2x8x1xf32>
    %c0_29 = arith.constant 0 : index
    %c3_30 = arith.constant 3 : index
    %c0_31 = arith.constant 0 : index
    %c0_32 = arith.constant 0 : index
    %18 = vector.load %arg2[%c0_29, %c3_30, %c0_31, %c0_32] : memref<2x16x8x1xf32, #tpu.memory_space<vmem>>, vector<2x1x8x1xf32>
    %19 = vector.shape_cast %18 : vector<2x1x8x1xf32> to vector<2x8x1xf32>
    %20 = vector.extract_strided_slice %5 {offsets = [0, 0, 0], sizes = [2, 7, 1], strides = [1, 1, 1]} : vector<2x8x1xf32> to vector<2x7x1xf32>
    %c0_33 = arith.constant 0 : index
    %c0_34 = arith.constant 0 : index
    %21 = vector.load %arg3[%c0_33, %c0_34] : memref<9x128xf32, #tpu.memory_space<vmem>>, vector<1x128xf32>
    %22 = vector.shape_cast %21 : vector<1x128xf32> to vector<1x1x128xf32>
    %23 = vector.broadcast %20 : vector<2x7x1xf32> to vector<2x7x128xf32>
    %24 = vector.broadcast %22 : vector<1x1x128xf32> to vector<2x7x128xf32>
    %25 = arith.mulf %23, %24 : vector<2x7x128xf32>
    %26 = vector.extract_strided_slice %13 {offsets = [0, 0, 0], sizes = [2, 7, 1], strides = [1, 1, 1]} : vector<2x8x1xf32> to vector<2x7x1xf32>
    %c1_35 = arith.constant 1 : index
    %c0_36 = arith.constant 0 : index
    %27 = vector.load %arg3[%c1_35, %c0_36] : memref<9x128xf32, #tpu.memory_space<vmem>>, vector<1x128xf32>
    %28 = vector.shape_cast %27 : vector<1x128xf32> to vector<1x1x128xf32>
    %29 = vector.broadcast %26 : vector<2x7x1xf32> to vector<2x7x128xf32>
    %30 = vector.broadcast %28 : vector<1x1x128xf32> to vector<2x7x128xf32>
    %31 = arith.mulf %29, %30 : vector<2x7x128xf32>
    %32 = arith.addf %25, %31 : vector<2x7x128xf32>
    %33 = vector.extract_strided_slice %5 {offsets = [0, 1, 0], sizes = [2, 7, 1], strides = [1, 1, 1]} : vector<2x8x1xf32> to vector<2x7x1xf32>
    %c2_37 = arith.constant 2 : index
    %c0_38 = arith.constant 0 : index
    %34 = vector.load %arg3[%c2_37, %c0_38] : memref<9x128xf32, #tpu.memory_space<vmem>>, vector<1x128xf32>
    %35 = vector.shape_cast %34 : vector<1x128xf32> to vector<1x1x128xf32>
    %36 = vector.broadcast %33 : vector<2x7x1xf32> to vector<2x7x128xf32>
    %37 = vector.broadcast %35 : vector<1x1x128xf32> to vector<2x7x128xf32>
    %38 = arith.mulf %36, %37 : vector<2x7x128xf32>
    %39 = arith.addf %32, %38 : vector<2x7x128xf32>
    %40 = vector.extract_strided_slice %7 {offsets = [0, 0, 0], sizes = [2, 7, 1], strides = [1, 1, 1]} : vector<2x8x1xf32> to vector<2x7x1xf32>
    %c3_39 = arith.constant 3 : index
    %c0_40 = arith.constant 0 : index
    %41 = vector.load %arg3[%c3_39, %c0_40] : memref<9x128xf32, #tpu.memory_space<vmem>>, vector<1x128xf32>
    %42 = vector.shape_cast %41 : vector<1x128xf32> to vector<1x1x128xf32>
    %43 = vector.broadcast %40 : vector<2x7x1xf32> to vector<2x7x128xf32>
    %44 = vector.broadcast %42 : vector<1x1x128xf32> to vector<2x7x128xf32>
    %45 = arith.mulf %43, %44 : vector<2x7x128xf32>
    %46 = arith.addf %39, %45 : vector<2x7x128xf32>
    %47 = vector.extract_strided_slice %15 {offsets = [0, 0, 0], sizes = [2, 7, 1], strides = [1, 1, 1]} : vector<2x8x1xf32> to vector<2x7x1xf32>
    %c4 = arith.constant 4 : index
    %c0_41 = arith.constant 0 : index
    %48 = vector.load %arg3[%c4, %c0_41] : memref<9x128xf32, #tpu.memory_space<vmem>>, vector<1x128xf32>
    %49 = vector.shape_cast %48 : vector<1x128xf32> to vector<1x1x128xf32>
    %50 = vector.broadcast %47 : vector<2x7x1xf32> to vector<2x7x128xf32>
    %51 = vector.broadcast %49 : vector<1x1x128xf32> to vector<2x7x128xf32>
    %52 = arith.mulf %50, %51 : vector<2x7x128xf32>
    %53 = arith.addf %46, %52 : vector<2x7x128xf32>
    %54 = vector.extract_strided_slice %7 {offsets = [0, 1, 0], sizes = [2, 7, 1], strides = [1, 1, 1]} : vector<2x8x1xf32> to vector<2x7x1xf32>
    %c5 = arith.constant 5 : index
    %c0_42 = arith.constant 0 : index
    %55 = vector.load %arg3[%c5, %c0_42] : memref<9x128xf32, #tpu.memory_space<vmem>>, vector<1x128xf32>
    %56 = vector.shape_cast %55 : vector<1x128xf32> to vector<1x1x128xf32>
    %57 = vector.broadcast %54 : vector<2x7x1xf32> to vector<2x7x128xf32>
    %58 = vector.broadcast %56 : vector<1x1x128xf32> to vector<2x7x128xf32>
    %59 = arith.mulf %57, %58 : vector<2x7x128xf32>
    %60 = arith.addf %53, %59 : vector<2x7x128xf32>
    %61 = vector.extract_strided_slice %9 {offsets = [0, 0, 0], sizes = [2, 7, 1], strides = [1, 1, 1]} : vector<2x8x1xf32> to vector<2x7x1xf32>
    %c6 = arith.constant 6 : index
    %c0_43 = arith.constant 0 : index
    %62 = vector.load %arg3[%c6, %c0_43] : memref<9x128xf32, #tpu.memory_space<vmem>>, vector<1x128xf32>
    %63 = vector.shape_cast %62 : vector<1x128xf32> to vector<1x1x128xf32>
    %64 = vector.broadcast %61 : vector<2x7x1xf32> to vector<2x7x128xf32>
    %65 = vector.broadcast %63 : vector<1x1x128xf32> to vector<2x7x128xf32>
    %66 = arith.mulf %64, %65 : vector<2x7x128xf32>
    %67 = arith.addf %60, %66 : vector<2x7x128xf32>
    %68 = vector.extract_strided_slice %17 {offsets = [0, 0, 0], sizes = [2, 7, 1], strides = [1, 1, 1]} : vector<2x8x1xf32> to vector<2x7x1xf32>
    %c7 = arith.constant 7 : index
    %c0_44 = arith.constant 0 : index
    %69 = vector.load %arg3[%c7, %c0_44] : memref<9x128xf32, #tpu.memory_space<vmem>>, vector<1x128xf32>
    %70 = vector.shape_cast %69 : vector<1x128xf32> to vector<1x1x128xf32>
    %71 = vector.broadcast %68 : vector<2x7x1xf32> to vector<2x7x128xf32>
    %72 = vector.broadcast %70 : vector<1x1x128xf32> to vector<2x7x128xf32>
    %73 = arith.mulf %71, %72 : vector<2x7x128xf32>
    %74 = arith.addf %67, %73 : vector<2x7x128xf32>
    %75 = vector.extract_strided_slice %9 {offsets = [0, 1, 0], sizes = [2, 7, 1], strides = [1, 1, 1]} : vector<2x8x1xf32> to vector<2x7x1xf32>
    %c8 = arith.constant 8 : index
    %c0_45 = arith.constant 0 : index
    %76 = vector.load %arg3[%c8, %c0_45] : memref<9x128xf32, #tpu.memory_space<vmem>>, vector<1x128xf32>
    %77 = vector.shape_cast %76 : vector<1x128xf32> to vector<1x1x128xf32>
    %78 = vector.broadcast %75 : vector<2x7x1xf32> to vector<2x7x128xf32>
    %79 = vector.broadcast %77 : vector<1x1x128xf32> to vector<2x7x128xf32>
    %80 = arith.mulf %78, %79 : vector<2x7x128xf32>
    %81 = arith.addf %74, %80 : vector<2x7x128xf32>
    %82 = vector.extract_strided_slice %13 {offsets = [0, 0, 0], sizes = [2, 7, 1], strides = [1, 1, 1]} : vector<2x8x1xf32> to vector<2x7x1xf32>
    %c0_46 = arith.constant 0 : index
    %c0_47 = arith.constant 0 : index
    %83 = vector.load %arg3[%c0_46, %c0_47] : memref<9x128xf32, #tpu.memory_space<vmem>>, vector<1x128xf32>
    %84 = vector.shape_cast %83 : vector<1x128xf32> to vector<1x1x128xf32>
    %85 = vector.broadcast %82 : vector<2x7x1xf32> to vector<2x7x128xf32>
    %86 = vector.broadcast %84 : vector<1x1x128xf32> to vector<2x7x128xf32>
    %87 = arith.mulf %85, %86 : vector<2x7x128xf32>
    %88 = vector.extract_strided_slice %5 {offsets = [0, 1, 0], sizes = [2, 7, 1], strides = [1, 1, 1]} : vector<2x8x1xf32> to vector<2x7x1xf32>
    %c1_48 = arith.constant 1 : index
    %c0_49 = arith.constant 0 : index
    %89 = vector.load %arg3[%c1_48, %c0_49] : memref<9x128xf32, #tpu.memory_space<vmem>>, vector<1x128xf32>
    %90 = vector.shape_cast %89 : vector<1x128xf32> to vector<1x1x128xf32>
    %91 = vector.broadcast %88 : vector<2x7x1xf32> to vector<2x7x128xf32>
    %92 = vector.broadcast %90 : vector<1x1x128xf32> to vector<2x7x128xf32>
    %93 = arith.mulf %91, %92 : vector<2x7x128xf32>
    %94 = arith.addf %87, %93 : vector<2x7x128xf32>
    %95 = vector.extract_strided_slice %13 {offsets = [0, 1, 0], sizes = [2, 7, 1], strides = [1, 1, 1]} : vector<2x8x1xf32> to vector<2x7x1xf32>
    %c2_50 = arith.constant 2 : index
    %c0_51 = arith.constant 0 : index
    %96 = vector.load %arg3[%c2_50, %c0_51] : memref<9x128xf32, #tpu.memory_space<vmem>>, vector<1x128xf32>
    %97 = vector.shape_cast %96 : vector<1x128xf32> to vector<1x1x128xf32>
    %98 = vector.broadcast %95 : vector<2x7x1xf32> to vector<2x7x128xf32>
    %99 = vector.broadcast %97 : vector<1x1x128xf32> to vector<2x7x128xf32>
    %100 = arith.mulf %98, %99 : vector<2x7x128xf32>
    %101 = arith.addf %94, %100 : vector<2x7x128xf32>
    %102 = vector.extract_strided_slice %15 {offsets = [0, 0, 0], sizes = [2, 7, 1], strides = [1, 1, 1]} : vector<2x8x1xf32> to vector<2x7x1xf32>
    %c3_52 = arith.constant 3 : index
    %c0_53 = arith.constant 0 : index
    %103 = vector.load %arg3[%c3_52, %c0_53] : memref<9x128xf32, #tpu.memory_space<vmem>>, vector<1x128xf32>
    %104 = vector.shape_cast %103 : vector<1x128xf32> to vector<1x1x128xf32>
    %105 = vector.broadcast %102 : vector<2x7x1xf32> to vector<2x7x128xf32>
    %106 = vector.broadcast %104 : vector<1x1x128xf32> to vector<2x7x128xf32>
    %107 = arith.mulf %105, %106 : vector<2x7x128xf32>
    %108 = arith.addf %101, %107 : vector<2x7x128xf32>
    %109 = vector.extract_strided_slice %7 {offsets = [0, 1, 0], sizes = [2, 7, 1], strides = [1, 1, 1]} : vector<2x8x1xf32> to vector<2x7x1xf32>
    %c4_54 = arith.constant 4 : index
    %c0_55 = arith.constant 0 : index
    %110 = vector.load %arg3[%c4_54, %c0_55] : memref<9x128xf32, #tpu.memory_space<vmem>>, vector<1x128xf32>
    %111 = vector.shape_cast %110 : vector<1x128xf32> to vector<1x1x128xf32>
    %112 = vector.broadcast %109 : vector<2x7x1xf32> to vector<2x7x128xf32>
    %113 = vector.broadcast %111 : vector<1x1x128xf32> to vector<2x7x128xf32>
    %114 = arith.mulf %112, %113 : vector<2x7x128xf32>
    %115 = arith.addf %108, %114 : vector<2x7x128xf32>
    %116 = vector.extract_strided_slice %15 {offsets = [0, 1, 0], sizes = [2, 7, 1], strides = [1, 1, 1]} : vector<2x8x1xf32> to vector<2x7x1xf32>
    %c5_56 = arith.constant 5 : index
    %c0_57 = arith.constant 0 : index
    %117 = vector.load %arg3[%c5_56, %c0_57] : memref<9x128xf32, #tpu.memory_space<vmem>>, vector<1x128xf32>
    %118 = vector.shape_cast %117 : vector<1x128xf32> to vector<1x1x128xf32>
    %119 = vector.broadcast %116 : vector<2x7x1xf32> to vector<2x7x128xf32>
    %120 = vector.broadcast %118 : vector<1x1x128xf32> to vector<2x7x128xf32>
    %121 = arith.mulf %119, %120 : vector<2x7x128xf32>
    %122 = arith.addf %115, %121 : vector<2x7x128xf32>
    %123 = vector.extract_strided_slice %17 {offsets = [0, 0, 0], sizes = [2, 7, 1], strides = [1, 1, 1]} : vector<2x8x1xf32> to vector<2x7x1xf32>
    %c6_58 = arith.constant 6 : index
    %c0_59 = arith.constant 0 : index
    %124 = vector.load %arg3[%c6_58, %c0_59] : memref<9x128xf32, #tpu.memory_space<vmem>>, vector<1x128xf32>
    %125 = vector.shape_cast %124 : vector<1x128xf32> to vector<1x1x128xf32>
    %126 = vector.broadcast %123 : vector<2x7x1xf32> to vector<2x7x128xf32>
    %127 = vector.broadcast %125 : vector<1x1x128xf32> to vector<2x7x128xf32>
    %128 = arith.mulf %126, %127 : vector<2x7x128xf32>
    %129 = arith.addf %122, %128 : vector<2x7x128xf32>
    %130 = vector.extract_strided_slice %9 {offsets = [0, 1, 0], sizes = [2, 7, 1], strides = [1, 1, 1]} : vector<2x8x1xf32> to vector<2x7x1xf32>
    %c7_60 = arith.constant 7 : index
    %c0_61 = arith.constant 0 : index
    %131 = vector.load %arg3[%c7_60, %c0_61] : memref<9x128xf32, #tpu.memory_space<vmem>>, vector<1x128xf32>
    %132 = vector.shape_cast %131 : vector<1x128xf32> to vector<1x1x128xf32>
    %133 = vector.broadcast %130 : vector<2x7x1xf32> to vector<2x7x128xf32>
    %134 = vector.broadcast %132 : vector<1x1x128xf32> to vector<2x7x128xf32>
    %135 = arith.mulf %133, %134 : vector<2x7x128xf32>
    %136 = arith.addf %129, %135 : vector<2x7x128xf32>
    %137 = vector.extract_strided_slice %17 {offsets = [0, 1, 0], sizes = [2, 7, 1], strides = [1, 1, 1]} : vector<2x8x1xf32> to vector<2x7x1xf32>
    %c8_62 = arith.constant 8 : index
    %c0_63 = arith.constant 0 : index
    %138 = vector.load %arg3[%c8_62, %c0_63] : memref<9x128xf32, #tpu.memory_space<vmem>>, vector<1x128xf32>
    %139 = vector.shape_cast %138 : vector<1x128xf32> to vector<1x1x128xf32>
    %140 = vector.broadcast %137 : vector<2x7x1xf32> to vector<2x7x128xf32>
    %141 = vector.broadcast %139 : vector<1x1x128xf32> to vector<2x7x128xf32>
    %142 = arith.mulf %140, %141 : vector<2x7x128xf32>
    %143 = arith.addf %136, %142 : vector<2x7x128xf32>
    %144 = vector.extract_strided_slice %7 {offsets = [0, 0, 0], sizes = [2, 7, 1], strides = [1, 1, 1]} : vector<2x8x1xf32> to vector<2x7x1xf32>
    %c0_64 = arith.constant 0 : index
    %c0_65 = arith.constant 0 : index
    %145 = vector.load %arg3[%c0_64, %c0_65] : memref<9x128xf32, #tpu.memory_space<vmem>>, vector<1x128xf32>
    %146 = vector.shape_cast %145 : vector<1x128xf32> to vector<1x1x128xf32>
    %147 = vector.broadcast %144 : vector<2x7x1xf32> to vector<2x7x128xf32>
    %148 = vector.broadcast %146 : vector<1x1x128xf32> to vector<2x7x128xf32>
    %149 = arith.mulf %147, %148 : vector<2x7x128xf32>
    %150 = vector.extract_strided_slice %15 {offsets = [0, 0, 0], sizes = [2, 7, 1], strides = [1, 1, 1]} : vector<2x8x1xf32> to vector<2x7x1xf32>
    %c1_66 = arith.constant 1 : index
    %c0_67 = arith.constant 0 : index
    %151 = vector.load %arg3[%c1_66, %c0_67] : memref<9x128xf32, #tpu.memory_space<vmem>>, vector<1x128xf32>
    %152 = vector.shape_cast %151 : vector<1x128xf32> to vector<1x1x128xf32>
    %153 = vector.broadcast %150 : vector<2x7x1xf32> to vector<2x7x128xf32>
    %154 = vector.broadcast %152 : vector<1x1x128xf32> to vector<2x7x128xf32>
    %155 = arith.mulf %153, %154 : vector<2x7x128xf32>
    %156 = arith.addf %149, %155 : vector<2x7x128xf32>
    %157 = vector.extract_strided_slice %7 {offsets = [0, 1, 0], sizes = [2, 7, 1], strides = [1, 1, 1]} : vector<2x8x1xf32> to vector<2x7x1xf32>
    %c2_68 = arith.constant 2 : index
    %c0_69 = arith.constant 0 : index
    %158 = vector.load %arg3[%c2_68, %c0_69] : memref<9x128xf32, #tpu.memory_space<vmem>>, vector<1x128xf32>
    %159 = vector.shape_cast %158 : vector<1x128xf32> to vector<1x1x128xf32>
    %160 = vector.broadcast %157 : vector<2x7x1xf32> to vector<2x7x128xf32>
    %161 = vector.broadcast %159 : vector<1x1x128xf32> to vector<2x7x128xf32>
    %162 = arith.mulf %160, %161 : vector<2x7x128xf32>
    %163 = arith.addf %156, %162 : vector<2x7x128xf32>
    %164 = vector.extract_strided_slice %9 {offsets = [0, 0, 0], sizes = [2, 7, 1], strides = [1, 1, 1]} : vector<2x8x1xf32> to vector<2x7x1xf32>
    %c3_70 = arith.constant 3 : index
    %c0_71 = arith.constant 0 : index
    %165 = vector.load %arg3[%c3_70, %c0_71] : memref<9x128xf32, #tpu.memory_space<vmem>>, vector<1x128xf32>
    %166 = vector.shape_cast %165 : vector<1x128xf32> to vector<1x1x128xf32>
    %167 = vector.broadcast %164 : vector<2x7x1xf32> to vector<2x7x128xf32>
    %168 = vector.broadcast %166 : vector<1x1x128xf32> to vector<2x7x128xf32>
    %169 = arith.mulf %167, %168 : vector<2x7x128xf32>
    %170 = arith.addf %163, %169 : vector<2x7x128xf32>
    %171 = vector.extract_strided_slice %17 {offsets = [0, 0, 0], sizes = [2, 7, 1], strides = [1, 1, 1]} : vector<2x8x1xf32> to vector<2x7x1xf32>
    %c4_72 = arith.constant 4 : index
    %c0_73 = arith.constant 0 : index
    %172 = vector.load %arg3[%c4_72, %c0_73] : memref<9x128xf32, #tpu.memory_space<vmem>>, vector<1x128xf32>
    %173 = vector.shape_cast %172 : vector<1x128xf32> to vector<1x1x128xf32>
    %174 = vector.broadcast %171 : vector<2x7x1xf32> to vector<2x7x128xf32>
    %175 = vector.broadcast %173 : vector<1x1x128xf32> to vector<2x7x128xf32>
    %176 = arith.mulf %174, %175 : vector<2x7x128xf32>
    %177 = arith.addf %170, %176 : vector<2x7x128xf32>
    %178 = vector.extract_strided_slice %9 {offsets = [0, 1, 0], sizes = [2, 7, 1], strides = [1, 1, 1]} : vector<2x8x1xf32> to vector<2x7x1xf32>
    %c5_74 = arith.constant 5 : index
    %c0_75 = arith.constant 0 : index
    %179 = vector.load %arg3[%c5_74, %c0_75] : memref<9x128xf32, #tpu.memory_space<vmem>>, vector<1x128xf32>
    %180 = vector.shape_cast %179 : vector<1x128xf32> to vector<1x1x128xf32>
    %181 = vector.broadcast %178 : vector<2x7x1xf32> to vector<2x7x128xf32>
    %182 = vector.broadcast %180 : vector<1x1x128xf32> to vector<2x7x128xf32>
    %183 = arith.mulf %181, %182 : vector<2x7x128xf32>
    %184 = arith.addf %177, %183 : vector<2x7x128xf32>
    %185 = vector.extract_strided_slice %11 {offsets = [0, 0, 0], sizes = [2, 7, 1], strides = [1, 1, 1]} : vector<2x8x1xf32> to vector<2x7x1xf32>
    %c6_76 = arith.constant 6 : index
    %c0_77 = arith.constant 0 : index
    %186 = vector.load %arg3[%c6_76, %c0_77] : memref<9x128xf32, #tpu.memory_space<vmem>>, vector<1x128xf32>
    %187 = vector.shape_cast %186 : vector<1x128xf32> to vector<1x1x128xf32>
    %188 = vector.broadcast %185 : vector<2x7x1xf32> to vector<2x7x128xf32>
    %189 = vector.broadcast %187 : vector<1x1x128xf32> to vector<2x7x128xf32>
    %190 = arith.mulf %188, %189 : vector<2x7x128xf32>
    %191 = arith.addf %184, %190 : vector<2x7x128xf32>
    %192 = vector.extract_strided_slice %19 {offsets = [0, 0, 0], sizes = [2, 7, 1], strides = [1, 1, 1]} : vector<2x8x1xf32> to vector<2x7x1xf32>
    %c7_78 = arith.constant 7 : index
    %c0_79 = arith.constant 0 : index
    %193 = vector.load %arg3[%c7_78, %c0_79] : memref<9x128xf32, #tpu.memory_space<vmem>>, vector<1x128xf32>
    %194 = vector.shape_cast %193 : vector<1x128xf32> to vector<1x1x128xf32>
    %195 = vector.broadcast %192 : vector<2x7x1xf32> to vector<2x7x128xf32>
    %196 = vector.broadcast %194 : vector<1x1x128xf32> to vector<2x7x128xf32>
    %197 = arith.mulf %195, %196 : vector<2x7x128xf32>
    %198 = arith.addf %191, %197 : vector<2x7x128xf32>
    %199 = vector.extract_strided_slice %11 {offsets = [0, 1, 0], sizes = [2, 7, 1], strides = [1, 1, 1]} : vector<2x8x1xf32> to vector<2x7x1xf32>
    %c8_80 = arith.constant 8 : index
    %c0_81 = arith.constant 0 : index
    %200 = vector.load %arg3[%c8_80, %c0_81] : memref<9x128xf32, #tpu.memory_space<vmem>>, vector<1x128xf32>
    %201 = vector.shape_cast %200 : vector<1x128xf32> to vector<1x1x128xf32>
    %202 = vector.broadcast %199 : vector<2x7x1xf32> to vector<2x7x128xf32>
    %203 = vector.broadcast %201 : vector<1x1x128xf32> to vector<2x7x128xf32>
    %204 = arith.mulf %202, %203 : vector<2x7x128xf32>
    %205 = arith.addf %198, %204 : vector<2x7x128xf32>
    %206 = vector.extract_strided_slice %15 {offsets = [0, 0, 0], sizes = [2, 7, 1], strides = [1, 1, 1]} : vector<2x8x1xf32> to vector<2x7x1xf32>
    %c0_82 = arith.constant 0 : index
    %c0_83 = arith.constant 0 : index
    %207 = vector.load %arg3[%c0_82, %c0_83] : memref<9x128xf32, #tpu.memory_space<vmem>>, vector<1x128xf32>
    %208 = vector.shape_cast %207 : vector<1x128xf32> to vector<1x1x128xf32>
    %209 = vector.broadcast %206 : vector<2x7x1xf32> to vector<2x7x128xf32>
    %210 = vector.broadcast %208 : vector<1x1x128xf32> to vector<2x7x128xf32>
    %211 = arith.mulf %209, %210 : vector<2x7x128xf32>
    %212 = vector.extract_strided_slice %7 {offsets = [0, 1, 0], sizes = [2, 7, 1], strides = [1, 1, 1]} : vector<2x8x1xf32> to vector<2x7x1xf32>
    %c1_84 = arith.constant 1 : index
    %c0_85 = arith.constant 0 : index
    %213 = vector.load %arg3[%c1_84, %c0_85] : memref<9x128xf32, #tpu.memory_space<vmem>>, vector<1x128xf32>
    %214 = vector.shape_cast %213 : vector<1x128xf32> to vector<1x1x128xf32>
    %215 = vector.broadcast %212 : vector<2x7x1xf32> to vector<2x7x128xf32>
    %216 = vector.broadcast %214 : vector<1x1x128xf32> to vector<2x7x128xf32>
    %217 = arith.mulf %215, %216 : vector<2x7x128xf32>
    %218 = arith.addf %211, %217 : vector<2x7x128xf32>
    %219 = vector.extract_strided_slice %15 {offsets = [0, 1, 0], sizes = [2, 7, 1], strides = [1, 1, 1]} : vector<2x8x1xf32> to vector<2x7x1xf32>
    %c2_86 = arith.constant 2 : index
    %c0_87 = arith.constant 0 : index
    %220 = vector.load %arg3[%c2_86, %c0_87] : memref<9x128xf32, #tpu.memory_space<vmem>>, vector<1x128xf32>
    %221 = vector.shape_cast %220 : vector<1x128xf32> to vector<1x1x128xf32>
    %222 = vector.broadcast %219 : vector<2x7x1xf32> to vector<2x7x128xf32>
    %223 = vector.broadcast %221 : vector<1x1x128xf32> to vector<2x7x128xf32>
    %224 = arith.mulf %222, %223 : vector<2x7x128xf32>
    %225 = arith.addf %218, %224 : vector<2x7x128xf32>
    %226 = vector.extract_strided_slice %17 {offsets = [0, 0, 0], sizes = [2, 7, 1], strides = [1, 1, 1]} : vector<2x8x1xf32> to vector<2x7x1xf32>
    %c3_88 = arith.constant 3 : index
    %c0_89 = arith.constant 0 : index
    %227 = vector.load %arg3[%c3_88, %c0_89] : memref<9x128xf32, #tpu.memory_space<vmem>>, vector<1x128xf32>
    %228 = vector.shape_cast %227 : vector<1x128xf32> to vector<1x1x128xf32>
    %229 = vector.broadcast %226 : vector<2x7x1xf32> to vector<2x7x128xf32>
    %230 = vector.broadcast %228 : vector<1x1x128xf32> to vector<2x7x128xf32>
    %231 = arith.mulf %229, %230 : vector<2x7x128xf32>
    %232 = arith.addf %225, %231 : vector<2x7x128xf32>
    %233 = vector.extract_strided_slice %9 {offsets = [0, 1, 0], sizes = [2, 7, 1], strides = [1, 1, 1]} : vector<2x8x1xf32> to vector<2x7x1xf32>
    %c4_90 = arith.constant 4 : index
    %c0_91 = arith.constant 0 : index
    %234 = vector.load %arg3[%c4_90, %c0_91] : memref<9x128xf32, #tpu.memory_space<vmem>>, vector<1x128xf32>
    %235 = vector.shape_cast %234 : vector<1x128xf32> to vector<1x1x128xf32>
    %236 = vector.broadcast %233 : vector<2x7x1xf32> to vector<2x7x128xf32>
    %237 = vector.broadcast %235 : vector<1x1x128xf32> to vector<2x7x128xf32>
    %238 = arith.mulf %236, %237 : vector<2x7x128xf32>
    %239 = arith.addf %232, %238 : vector<2x7x128xf32>
    %240 = vector.extract_strided_slice %17 {offsets = [0, 1, 0], sizes = [2, 7, 1], strides = [1, 1, 1]} : vector<2x8x1xf32> to vector<2x7x1xf32>
    %c5_92 = arith.constant 5 : index
    %c0_93 = arith.constant 0 : index
    %241 = vector.load %arg3[%c5_92, %c0_93] : memref<9x128xf32, #tpu.memory_space<vmem>>, vector<1x128xf32>
    %242 = vector.shape_cast %241 : vector<1x128xf32> to vector<1x1x128xf32>
    %243 = vector.broadcast %240 : vector<2x7x1xf32> to vector<2x7x128xf32>
    %244 = vector.broadcast %242 : vector<1x1x128xf32> to vector<2x7x128xf32>
    %245 = arith.mulf %243, %244 : vector<2x7x128xf32>
    %246 = arith.addf %239, %245 : vector<2x7x128xf32>
    %247 = vector.extract_strided_slice %19 {offsets = [0, 0, 0], sizes = [2, 7, 1], strides = [1, 1, 1]} : vector<2x8x1xf32> to vector<2x7x1xf32>
    %c6_94 = arith.constant 6 : index
    %c0_95 = arith.constant 0 : index
    %248 = vector.load %arg3[%c6_94, %c0_95] : memref<9x128xf32, #tpu.memory_space<vmem>>, vector<1x128xf32>
    %249 = vector.shape_cast %248 : vector<1x128xf32> to vector<1x1x128xf32>
    %250 = vector.broadcast %247 : vector<2x7x1xf32> to vector<2x7x128xf32>
    %251 = vector.broadcast %249 : vector<1x1x128xf32> to vector<2x7x128xf32>
    %252 = arith.mulf %250, %251 : vector<2x7x128xf32>
    %253 = arith.addf %246, %252 : vector<2x7x128xf32>
    %254 = vector.extract_strided_slice %11 {offsets = [0, 1, 0], sizes = [2, 7, 1], strides = [1, 1, 1]} : vector<2x8x1xf32> to vector<2x7x1xf32>
    %c7_96 = arith.constant 7 : index
    %c0_97 = arith.constant 0 : index
    %255 = vector.load %arg3[%c7_96, %c0_97] : memref<9x128xf32, #tpu.memory_space<vmem>>, vector<1x128xf32>
    %256 = vector.shape_cast %255 : vector<1x128xf32> to vector<1x1x128xf32>
    %257 = vector.broadcast %254 : vector<2x7x1xf32> to vector<2x7x128xf32>
    %258 = vector.broadcast %256 : vector<1x1x128xf32> to vector<2x7x128xf32>
    %259 = arith.mulf %257, %258 : vector<2x7x128xf32>
    %260 = arith.addf %253, %259 : vector<2x7x128xf32>
    %261 = vector.extract_strided_slice %19 {offsets = [0, 1, 0], sizes = [2, 7, 1], strides = [1, 1, 1]} : vector<2x8x1xf32> to vector<2x7x1xf32>
    %c8_98 = arith.constant 8 : index
    %c0_99 = arith.constant 0 : index
    %262 = vector.load %arg3[%c8_98, %c0_99] : memref<9x128xf32, #tpu.memory_space<vmem>>, vector<1x128xf32>
    %263 = vector.shape_cast %262 : vector<1x128xf32> to vector<1x1x128xf32>
    %264 = vector.broadcast %261 : vector<2x7x1xf32> to vector<2x7x128xf32>
    %265 = vector.broadcast %263 : vector<1x1x128xf32> to vector<2x7x128xf32>
    %266 = arith.mulf %264, %265 : vector<2x7x128xf32>
    %267 = arith.addf %260, %266 : vector<2x7x128xf32>
    %268 = arith.maximumf %81, %143 : vector<2x7x128xf32>
    %269 = arith.maximumf %205, %267 : vector<2x7x128xf32>
    %270 = arith.maximumf %268, %269 : vector<2x7x128xf32>
    %c0_100 = arith.constant 0 : index
    %c0_101 = arith.constant 0 : index
    %271 = vector.load %arg4[%c0_100, %c0_101] : memref<1x128xf32, #tpu.memory_space<vmem>>, vector<1x128xf32>
    %272 = vector.shape_cast %271 : vector<1x128xf32> to vector<1x1x128xf32>
    %273 = vector.broadcast %272 : vector<1x1x128xf32> to vector<2x7x128xf32>
    %274 = arith.addf %270, %273 : vector<2x7x128xf32>
    %cst_102 = arith.constant 0.000000e+00 : f32
    %275 = vector.broadcast %cst_102 : f32 to vector<2x7x128xf32>
    %276 = arith.maximumf %274, %275 : vector<2x7x128xf32>
    %277 = vector.extract_strided_slice %276 {offsets = [0, 0, 0], sizes = [1, 7, 128], strides = [1, 1, 1]} : vector<2x7x128xf32> to vector<1x7x128xf32>
    %278 = vector.shape_cast %277 : vector<1x7x128xf32> to vector<7x128xf32>
    %c0_103 = arith.constant 0 : index
    %c0_104 = arith.constant 0 : index
    %279 = vector.load %arg12[%c0_103, %c0_104] : memref<128x128xf32, #tpu.memory_space<vmem>>, vector<7x128xf32>
    tpu.vector_store %arg12[%c0_103, %c0_104], %278 {strides = array<i32>} : memref<128x128xf32, #tpu.memory_space<vmem>>, vector<7x128xf32>,
    %280 = vector.extract_strided_slice %276 {offsets = [1, 0, 0], sizes = [1, 7, 128], strides = [1, 1, 1]} : vector<2x7x128xf32> to vector<1x7x128xf32>
    %281 = vector.shape_cast %280 : vector<1x7x128xf32> to vector<7x128xf32>
    %c56 = arith.constant 56 : index
    %c0_105 = arith.constant 0 : index
    %282 = vector.load %arg12[%c56, %c0_105] : memref<128x128xf32, #tpu.memory_space<vmem>>, vector<7x128xf32>
    tpu.vector_store %arg12[%c56, %c0_105], %281 {strides = array<i32>} : memref<128x128xf32, #tpu.memory_space<vmem>>, vector<7x128xf32>,
    %c0_106 = arith.constant 0 : index
    %c2_107 = arith.constant 2 : index
    %c0_108 = arith.constant 0 : index
    %c0_109 = arith.constant 0 : index
    %283 = vector.load %arg1[%c0_106, %c2_107, %c0_108, %c0_109] : memref<2x16x8x1xf32, #tpu.memory_space<vmem>>, vector<2x1x8x1xf32>
    %284 = vector.shape_cast %283 : vector<2x1x8x1xf32> to vector<2x8x1xf32>
    %c0_110 = arith.constant 0 : index
    %c3_111 = arith.constant 3 : index
    %c0_112 = arith.constant 0 : index
    %c0_113 = arith.constant 0 : index
    %285 = vector.load %arg1[%c0_110, %c3_111, %c0_112, %c0_113] : memref<2x16x8x1xf32, #tpu.memory_space<vmem>>, vector<2x1x8x1xf32>
    %286 = vector.shape_cast %285 : vector<2x1x8x1xf32> to vector<2x8x1xf32>
    %c0_114 = arith.constant 0 : index
    %c4_115 = arith.constant 4 : index
    %c0_116 = arith.constant 0 : index
    %c0_117 = arith.constant 0 : index
    %287 = vector.load %arg1[%c0_114, %c4_115, %c0_116, %c0_117] : memref<2x16x8x1xf32, #tpu.memory_space<vmem>>, vector<2x1x8x1xf32>
    %288 = vector.shape_cast %287 : vector<2x1x8x1xf32> to vector<2x8x1xf32>
    %c0_118 = arith.constant 0 : index
    %c5_119 = arith.constant 5 : index
    %c0_120 = arith.constant 0 : index
    %c0_121 = arith.constant 0 : index
    %289 = vector.load %arg1[%c0_118, %c5_119, %c0_120, %c0_121] : memref<2x16x8x1xf32, #tpu.memory_space<vmem>>, vector<2x1x8x1xf32>
    %290 = vector.shape_cast %289 : vector<2x1x8x1xf32> to vector<2x8x1xf32>
    %c0_122 = arith.constant 0 : index
    %c2_123 = arith.constant 2 : index
    %c0_124 = arith.constant 0 : index
    %c0_125 = arith.constant 0 : index
    %291 = vector.load %arg2[%c0_122, %c2_123, %c0_124, %c0_125] : memref<2x16x8x1xf32, #tpu.memory_space<vmem>>, vector<2x1x8x1xf32>
    %292 = vector.shape_cast %291 : vector<2x1x8x1xf32> to vector<2x8x1xf32>
    %c0_126 = arith.constant 0 : index
    %c3_127 = arith.constant 3 : index
    %c0_128 = arith.constant 0 : index
    %c0_129 = arith.constant 0 : index
    %293 = vector.load %arg2[%c0_126, %c3_127, %c0_128, %c0_129] : memref<2x16x8x1xf32, #tpu.memory_space<vmem>>, vector<2x1x8x1xf32>
    %294 = vector.shape_cast %293 : vector<2x1x8x1xf32> to vector<2x8x1xf32>
    %c0_130 = arith.constant 0 : index
    %c4_131 = arith.constant 4 : index
    %c0_132 = arith.constant 0 : index
    %c0_133 = arith.constant 0 : index
    %295 = vector.load %arg2[%c0_130, %c4_131, %c0_132, %c0_133] : memref<2x16x8x1xf32, #tpu.memory_space<vmem>>, vector<2x1x8x1xf32>
    %296 = vector.shape_cast %295 : vector<2x1x8x1xf32> to vector<2x8x1xf32>
    %c0_134 = arith.constant 0 : index
    %c5_135 = arith.constant 5 : index
    %c0_136 = arith.constant 0 : index
    %c0_137 = arith.constant 0 : index
    %297 = vector.load %arg2[%c0_134, %c5_135, %c0_136, %c0_137] : memref<2x16x8x1xf32, #tpu.memory_space<vmem>>, vector<2x1x8x1xf32>
    %298 = vector.shape_cast %297 : vector<2x1x8x1xf32> to vector<2x8x1xf32>
    %299 = vector.extract_strided_slice %284 {offsets = [0, 0, 0], sizes = [2, 7, 1], strides = [1, 1, 1]} : vector<2x8x1xf32> to vector<2x7x1xf32>
    %c0_138 = arith.constant 0 : index
    %c0_139 = arith.constant 0 : index
    %300 = vector.load %arg3[%c0_138, %c0_139] : memref<9x128xf32, #tpu.memory_space<vmem>>, vector<1x128xf32>
    %301 = vector.shape_cast %300 : vector<1x128xf32> to vector<1x1x128xf32>
    %302 = vector.broadcast %299 : vector<2x7x1xf32> to vector<2x7x128xf32>
    %303 = vector.broadcast %301 : vector<1x1x128xf32> to vector<2x7x128xf32>
    %304 = arith.mulf %302, %303 : vector<2x7x128xf32>
    %305 = vector.extract_strided_slice %292 {offsets = [0, 0, 0], sizes = [2, 7, 1], strides = [1, 1, 1]} : vector<2x8x1xf32> to vector<2x7x1xf32>
    %c1_140 = arith.constant 1 : index
    %c0_141 = arith.constant 0 : index
    %306 = vector.load %arg3[%c1_140, %c0_141] : memref<9x128xf32, #tpu.memory_space<vmem>>, vector<1x128xf32>
    %307 = vector.shape_cast %306 : vector<1x128xf32> to vector<1x1x128xf32>
    %308 = vector.broadcast %305 : vector<2x7x1xf32> to vector<2x7x128xf32>
    %309 = vector.broadcast %307 : vector<1x1x128xf32> to vector<2x7x128xf32>
    %310 = arith.mulf %308, %309 : vector<2x7x128xf32>
    %311 = arith.addf %304, %310 : vector<2x7x128xf32>
    %312 = vector.extract_strided_slice %284 {offsets = [0, 1, 0], sizes = [2, 7, 1], strides = [1, 1, 1]} : vector<2x8x1xf32> to vector<2x7x1xf32>
    %c2_142 = arith.constant 2 : index
    %c0_143 = arith.constant 0 : index
    %313 = vector.load %arg3[%c2_142, %c0_143] : memref<9x128xf32, #tpu.memory_space<vmem>>, vector<1x128xf32>
    %314 = vector.shape_cast %313 : vector<1x128xf32> to vector<1x1x128xf32>
    %315 = vector.broadcast %312 : vector<2x7x1xf32> to vector<2x7x128xf32>
    %316 = vector.broadcast %314 : vector<1x1x128xf32> to vector<2x7x128xf32>
    %317 = arith.mulf %315, %316 : vector<2x7x128xf32>
    %318 = arith.addf %311, %317 : vector<2x7x128xf32>
    %319 = vector.extract_strided_slice %286 {offsets = [0, 0, 0], sizes = [2, 7, 1], strides = [1, 1, 1]} : vector<2x8x1xf32> to vector<2x7x1xf32>
    %c3_144 = arith.constant 3 : index
    %c0_145 = arith.constant 0 : index
    %320 = vector.load %arg3[%c3_144, %c0_145] : memref<9x128xf32, #tpu.memory_space<vmem>>, vector<1x128xf32>
    %321 = vector.shape_cast %320 : vector<1x128xf32> to vector<1x1x128xf32>
    %322 = vector.broadcast %319 : vector<2x7x1xf32> to vector<2x7x128xf32>
    %323 = vector.broadcast %321 : vector<1x1x128xf32> to vector<2x7x128xf32>
    %324 = arith.mulf %322, %323 : vector<2x7x128xf32>
    %325 = arith.addf %318, %324 : vector<2x7x128xf32>
    %326 = vector.extract_strided_slice %294 {offsets = [0, 0, 0], sizes = [2, 7, 1], strides = [1, 1, 1]} : vector<2x8x1xf32> to vector<2x7x1xf32>
    %c4_146 = arith.constant 4 : index
    %c0_147 = arith.constant 0 : index
    %327 = vector.load %arg3[%c4_146, %c0_147] : memref<9x128xf32, #tpu.memory_space<vmem>>, vector<1x128xf32>
    %328 = vector.shape_cast %327 : vector<1x128xf32> to vector<1x1x128xf32>
    %329 = vector.broadcast %326 : vector<2x7x1xf32> to vector<2x7x128xf32>
    %330 = vector.broadcast %328 : vector<1x1x128xf32> to vector<2x7x128xf32>
    %331 = arith.mulf %329, %330 : vector<2x7x128xf32>
    %332 = arith.addf %325, %331 : vector<2x7x128xf32>
    %333 = vector.extract_strided_slice %286 {offsets = [0, 1, 0], sizes = [2, 7, 1], strides = [1, 1, 1]} : vector<2x8x1xf32> to vector<2x7x1xf32>
    %c5_148 = arith.constant 5 : index
    %c0_149 = arith.constant 0 : index
    %334 = vector.load %arg3[%c5_148, %c0_149] : memref<9x128xf32, #tpu.memory_space<vmem>>, vector<1x128xf32>
    %335 = vector.shape_cast %334 : vector<1x128xf32> to vector<1x1x128xf32>
    %336 = vector.broadcast %333 : vector<2x7x1xf32> to vector<2x7x128xf32>
    %337 = vector.broadcast %335 : vector<1x1x128xf32> to vector<2x7x128xf32>
    %338 = arith.mulf %336, %337 : vector<2x7x128xf32>
    %339 = arith.addf %332, %338 : vector<2x7x128xf32>
    %340 = vector.extract_strided_slice %288 {offsets = [0, 0, 0], sizes = [2, 7, 1], strides = [1, 1, 1]} : vector<2x8x1xf32> to vector<2x7x1xf32>
    %c6_150 = arith.constant 6 : index
    %c0_151 = arith.constant 0 : index
    %341 = vector.load %arg3[%c6_150, %c0_151] : memref<9x128xf32, #tpu.memory_space<vmem>>, vector<1x128xf32>
    %342 = vector.shape_cast %341 : vector<1x128xf32> to vector<1x1x128xf32>
    %343 = vector.broadcast %340 : vector<2x7x1xf32> to vector<2x7x128xf32>
    %344 = vector.broadcast %342 : vector<1x1x128xf32> to vector<2x7x128xf32>
    %345 = arith.mulf %343, %344 : vector<2x7x128xf32>
    %346 = arith.addf %339, %345 : vector<2x7x128xf32>
    %347 = vector.extract_strided_slice %296 {offsets = [0, 0, 0], sizes = [2, 7, 1], strides = [1, 1, 1]} : vector<2x8x1xf32> to vector<2x7x1xf32>
    %c7_152 = arith.constant 7 : index
    %c0_153 = arith.constant 0 : index
    %348 = vector.load %arg3[%c7_152, %c0_153] : memref<9x128xf32, #tpu.memory_space<vmem>>, vector<1x128xf32>
    %349 = vector.shape_cast %348 : vector<1x128xf32> to vector<1x1x128xf32>
    %350 = vector.broadcast %347 : vector<2x7x1xf32> to vector<2x7x128xf32>
    %351 = vector.broadcast %349 : vector<1x1x128xf32> to vector<2x7x128xf32>
    %352 = arith.mulf %350, %351 : vector<2x7x128xf32>
    %353 = arith.addf %346, %352 : vector<2x7x128xf32>
    %354 = vector.extract_strided_slice %288 {offsets = [0, 1, 0], sizes = [2, 7, 1], strides = [1, 1, 1]} : vector<2x8x1xf32> to vector<2x7x1xf32>
    %c8_154 = arith.constant 8 : index
    %c0_155 = arith.constant 0 : index
    %355 = vector.load %arg3[%c8_154, %c0_155] : memref<9x128xf32, #tpu.memory_space<vmem>>, vector<1x128xf32>
    %356 = vector.shape_cast %355 : vector<1x128xf32> to vector<1x1x128xf32>
    %357 = vector.broadcast %354 : vector<2x7x1xf32> to vector<2x7x128xf32>
    %358 = vector.broadcast %356 : vector<1x1x128xf32> to vector<2x7x128xf32>
    %359 = arith.mulf %357, %358 : vector<2x7x128xf32>
    %360 = arith.addf %353, %359 : vector<2x7x128xf32>
    %361 = vector.extract_strided_slice %292 {offsets = [0, 0, 0], sizes = [2, 7, 1], strides = [1, 1, 1]} : vector<2x8x1xf32> to vector<2x7x1xf32>
    %c0_156 = arith.constant 0 : index
    %c0_157 = arith.constant 0 : index
    %362 = vector.load %arg3[%c0_156, %c0_157] : memref<9x128xf32, #tpu.memory_space<vmem>>, vector<1x128xf32>
    %363 = vector.shape_cast %362 : vector<1x128xf32> to vector<1x1x128xf32>
    %364 = vector.broadcast %361 : vector<2x7x1xf32> to vector<2x7x128xf32>
    %365 = vector.broadcast %363 : vector<1x1x128xf32> to vector<2x7x128xf32>
    %366 = arith.mulf %364, %365 : vector<2x7x128xf32>
    %367 = vector.extract_strided_slice %284 {offsets = [0, 1, 0], sizes = [2, 7, 1], strides = [1, 1, 1]} : vector<2x8x1xf32> to vector<2x7x1xf32>
    %c1_158 = arith.constant 1 : index
    %c0_159 = arith.constant 0 : index
    %368 = vector.load %arg3[%c1_158, %c0_159] : memref<9x128xf32, #tpu.memory_space<vmem>>, vector<1x128xf32>
    %369 = vector.shape_cast %368 : vector<1x128xf32> to vector<1x1x128xf32>
    %370 = vector.broadcast %367 : vector<2x7x1xf32> to vector<2x7x128xf32>
    %371 = vector.broadcast %369 : vector<1x1x128xf32> to vector<2x7x128xf32>
    %372 = arith.mulf %370, %371 : vector<2x7x128xf32>
    %373 = arith.addf %366, %372 : vector<2x7x128xf32>
    %374 = vector.extract_strided_slice %292 {offsets = [0, 1, 0], sizes = [2, 7, 1], strides = [1, 1, 1]} : vector<2x8x1xf32> to vector<2x7x1xf32>
    %c2_160 = arith.constant 2 : index
    %c0_161 = arith.constant 0 : index
    %375 = vector.load %arg3[%c2_160, %c0_161] : memref<9x128xf32, #tpu.memory_space<vmem>>, vector<1x128xf32>
    %376 = vector.shape_cast %375 : vector<1x128xf32> to vector<1x1x128xf32>
    %377 = vector.broadcast %374 : vector<2x7x1xf32> to vector<2x7x128xf32>
    %378 = vector.broadcast %376 : vector<1x1x128xf32> to vector<2x7x128xf32>
    %379 = arith.mulf %377, %378 : vector<2x7x128xf32>
    %380 = arith.addf %373, %379 : vector<2x7x128xf32>
    %381 = vector.extract_strided_slice %294 {offsets = [0, 0, 0], sizes = [2, 7, 1], strides = [1, 1, 1]} : vector<2x8x1xf32> to vector<2x7x1xf32>
    %c3_162 = arith.constant 3 : index
    %c0_163 = arith.constant 0 : index
    %382 = vector.load %arg3[%c3_162, %c0_163] : memref<9x128xf32, #tpu.memory_space<vmem>>, vector<1x128xf32>
    %383 = vector.shape_cast %382 : vector<1x128xf32> to vector<1x1x128xf32>
    %384 = vector.broadcast %381 : vector<2x7x1xf32> to vector<2x7x128xf32>
    %385 = vector.broadcast %383 : vector<1x1x128xf32> to vector<2x7x128xf32>
    %386 = arith.mulf %384, %385 : vector<2x7x128xf32>
    %387 = arith.addf %380, %386 : vector<2x7x128xf32>
    %388 = vector.extract_strided_slice %286 {offsets = [0, 1, 0], sizes = [2, 7, 1], strides = [1, 1, 1]} : vector<2x8x1xf32> to vector<2x7x1xf32>
    %c4_164 = arith.constant 4 : index
    %c0_165 = arith.constant 0 : index
    %389 = vector.load %arg3[%c4_164, %c0_165] : memref<9x128xf32, #tpu.memory_space<vmem>>, vector<1x128xf32>
    %390 = vector.shape_cast %389 : vector<1x128xf32> to vector<1x1x128xf32>
    %391 = vector.broadcast %388 : vector<2x7x1xf32> to vector<2x7x128xf32>
    %392 = vector.broadcast %390 : vector<1x1x128xf32> to vector<2x7x128xf32>
    %393 = arith.mulf %391, %392 : vector<2x7x128xf32>
    %394 = arith.addf %387, %393 : vector<2x7x128xf32>
    %395 = vector.extract_strided_slice %294 {offsets = [0, 1, 0], sizes = [2, 7, 1], strides = [1, 1, 1]} : vector<2x8x1xf32> to vector<2x7x1xf32>
    %c5_166 = arith.constant 5 : index
    %c0_167 = arith.constant 0 : index
    %396 = vector.load %arg3[%c5_166, %c0_167] : memref<9x128xf32, #tpu.memory_space<vmem>>, vector<1x128xf32>
    %397 = vector.shape_cast %396 : vector<1x128xf32> to vector<1x1x128xf32>
    %398 = vector.broadcast %395 : vector<2x7x1xf32> to vector<2x7x128xf32>
    %399 = vector.broadcast %397 : vector<1x1x128xf32> to vector<2x7x128xf32>
    %400 = arith.mulf %398, %399 : vector<2x7x128xf32>
    %401 = arith.addf %394, %400 : vector<2x7x128xf32>
    %402 = vector.extract_strided_slice %296 {offsets = [0, 0, 0], sizes = [2, 7, 1], strides = [1, 1, 1]} : vector<2x8x1xf32> to vector<2x7x1xf32>
    %c6_168 = arith.constant 6 : index
    %c0_169 = arith.constant 0 : index
    %403 = vector.load %arg3[%c6_168, %c0_169] : memref<9x128xf32, #tpu.memory_space<vmem>>, vector<1x128xf32>
    %404 = vector.shape_cast %403 : vector<1x128xf32> to vector<1x1x128xf32>
    %405 = vector.broadcast %402 : vector<2x7x1xf32> to vector<2x7x128xf32>
    %406 = vector.broadcast %404 : vector<1x1x128xf32> to vector<2x7x128xf32>
    %407 = arith.mulf %405, %406 : vector<2x7x128xf32>
    %408 = arith.addf %401, %407 : vector<2x7x128xf32>
    %409 = vector.extract_strided_slice %288 {offsets = [0, 1, 0], sizes = [2, 7, 1], strides = [1, 1, 1]} : vector<2x8x1xf32> to vector<2x7x1xf32>
    %c7_170 = arith.constant 7 : index
    %c0_171 = arith.constant 0 : index
    %410 = vector.load %arg3[%c7_170, %c0_171] : memref<9x128xf32, #tpu.memory_space<vmem>>, vector<1x128xf32>
    %411 = vector.shape_cast %410 : vector<1x128xf32> to vector<1x1x128xf32>
    %412 = vector.broadcast %409 : vector<2x7x1xf32> to vector<2x7x128xf32>
    %413 = vector.broadcast %411 : vector<1x1x128xf32> to vector<2x7x128xf32>
    %414 = arith.mulf %412, %413 : vector<2x7x128xf32>
    %415 = arith.addf %408, %414 : vector<2x7x128xf32>
    %416 = vector.extract_strided_slice %296 {offsets = [0, 1, 0], sizes = [2, 7, 1], strides = [1, 1, 1]} : vector<2x8x1xf32> to vector<2x7x1xf32>
    %c8_172 = arith.constant 8 : index
    %c0_173 = arith.constant 0 : index
    %417 = vector.load %arg3[%c8_172, %c0_173] : memref<9x128xf32, #tpu.memory_space<vmem>>, vector<1x128xf32>
    %418 = vector.shape_cast %417 : vector<1x128xf32> to vector<1x1x128xf32>
    %419 = vector.broadcast %416 : vector<2x7x1xf32> to vector<2x7x128xf32>
    %420 = vector.broadcast %418 : vector<1x1x128xf32> to vector<2x7x128xf32>
    %421 = arith.mulf %419, %420 : vector<2x7x128xf32>
    %422 = arith.addf %415, %421 : vector<2x7x128xf32>
    %423 = vector.extract_strided_slice %286 {offsets = [0, 0, 0], sizes = [2, 7, 1], strides = [1, 1, 1]} : vector<2x8x1xf32> to vector<2x7x1xf32>
    %c0_174 = arith.constant 0 : index
    %c0_175 = arith.constant 0 : index
    %424 = vector.load %arg3[%c0_174, %c0_175] : memref<9x128xf32, #tpu.memory_space<vmem>>, vector<1x128xf32>
    %425 = vector.shape_cast %424 : vector<1x128xf32> to vector<1x1x128xf32>
    %426 = vector.broadcast %423 : vector<2x7x1xf32> to vector<2x7x128xf32>
    %427 = vector.broadcast %425 : vector<1x1x128xf32> to vector<2x7x128xf32>
    %428 = arith.mulf %426, %427 : vector<2x7x128xf32>
    %429 = vector.extract_strided_slice %294 {offsets = [0, 0, 0], sizes = [2, 7, 1], strides = [1, 1, 1]} : vector<2x8x1xf32> to vector<2x7x1xf32>
    %c1_176 = arith.constant 1 : index
    %c0_177 = arith.constant 0 : index
    %430 = vector.load %arg3[%c1_176, %c0_177] : memref<9x128xf32, #tpu.memory_space<vmem>>, vector<1x128xf32>
    %431 = vector.shape_cast %430 : vector<1x128xf32> to vector<1x1x128xf32>
    %432 = vector.broadcast %429 : vector<2x7x1xf32> to vector<2x7x128xf32>
    %433 = vector.broadcast %431 : vector<1x1x128xf32> to vector<2x7x128xf32>
    %434 = arith.mulf %432, %433 : vector<2x7x128xf32>
    %435 = arith.addf %428, %434 : vector<2x7x128xf32>
    %436 = vector.extract_strided_slice %286 {offsets = [0, 1, 0], sizes = [2, 7, 1], strides = [1, 1, 1]} : vector<2x8x1xf32> to vector<2x7x1xf32>
    %c2_178 = arith.constant 2 : index
    %c0_179 = arith.constant 0 : index
    %437 = vector.load %arg3[%c2_178, %c0_179] : memref<9x128xf32, #tpu.memory_space<vmem>>, vector<1x128xf32>
    %438 = vector.shape_cast %437 : vector<1x128xf32> to vector<1x1x128xf32>
    %439 = vector.broadcast %436 : vector<2x7x1xf32> to vector<2x7x128xf32>
    %440 = vector.broadcast %438 : vector<1x1x128xf32> to vector<2x7x128xf32>
    %441 = arith.mulf %439, %440 : vector<2x7x128xf32>
    %442 = arith.addf %435, %441 : vector<2x7x128xf32>
    %443 = vector.extract_strided_slice %288 {offsets = [0, 0, 0], sizes = [2, 7, 1], strides = [1, 1, 1]} : vector<2x8x1xf32> to vector<2x7x1xf32>
    %c3_180 = arith.constant 3 : index
    %c0_181 = arith.constant 0 : index
    %444 = vector.load %arg3[%c3_180, %c0_181] : memref<9x128xf32, #tpu.memory_space<vmem>>, vector<1x128xf32>
    %445 = vector.shape_cast %444 : vector<1x128xf32> to vector<1x1x128xf32>
    %446 = vector.broadcast %443 : vector<2x7x1xf32> to vector<2x7x128xf32>
    %447 = vector.broadcast %445 : vector<1x1x128xf32> to vector<2x7x128xf32>
    %448 = arith.mulf %446, %447 : vector<2x7x128xf32>
    %449 = arith.addf %442, %448 : vector<2x7x128xf32>
    %450 = vector.extract_strided_slice %296 {offsets = [0, 0, 0], sizes = [2, 7, 1], strides = [1, 1, 1]} : vector<2x8x1xf32> to vector<2x7x1xf32>
    %c4_182 = arith.constant 4 : index
    %c0_183 = arith.constant 0 : index
    %451 = vector.load %arg3[%c4_182, %c0_183] : memref<9x128xf32, #tpu.memory_space<vmem>>, vector<1x128xf32>
    %452 = vector.shape_cast %451 : vector<1x128xf32> to vector<1x1x128xf32>
    %453 = vector.broadcast %450 : vector<2x7x1xf32> to vector<2x7x128xf32>
    %454 = vector.broadcast %452 : vector<1x1x128xf32> to vector<2x7x128xf32>
    %455 = arith.mulf %453, %454 : vector<2x7x128xf32>
    %456 = arith.addf %449, %455 : vector<2x7x128xf32>
    %457 = vector.extract_strided_slice %288 {offsets = [0, 1, 0], sizes = [2, 7, 1], strides = [1, 1, 1]} : vector<2x8x1xf32> to vector<2x7x1xf32>
    %c5_184 = arith.constant 5 : index
    %c0_185 = arith.constant 0 : index
    %458 = vector.load %arg3[%c5_184, %c0_185] : memref<9x128xf32, #tpu.memory_space<vmem>>, vector<1x128xf32>
    %459 = vector.shape_cast %458 : vector<1x128xf32> to vector<1x1x128xf32>
    %460 = vector.broadcast %457 : vector<2x7x1xf32> to vector<2x7x128xf32>
    %461 = vector.broadcast %459 : vector<1x1x128xf32> to vector<2x7x128xf32>
    %462 = arith.mulf %460, %461 : vector<2x7x128xf32>
    %463 = arith.addf %456, %462 : vector<2x7x128xf32>
    %464 = vector.extract_strided_slice %290 {offsets = [0, 0, 0], sizes = [2, 7, 1], strides = [1, 1, 1]} : vector<2x8x1xf32> to vector<2x7x1xf32>
    %c6_186 = arith.constant 6 : index
    %c0_187 = arith.constant 0 : index
    %465 = vector.load %arg3[%c6_186, %c0_187] : memref<9x128xf32, #tpu.memory_space<vmem>>, vector<1x128xf32>
    %466 = vector.shape_cast %465 : vector<1x128xf32> to vector<1x1x128xf32>
    %467 = vector.broadcast %464 : vector<2x7x1xf32> to vector<2x7x128xf32>
    %468 = vector.broadcast %466 : vector<1x1x128xf32> to vector<2x7x128xf32>
    %469 = arith.mulf %467, %468 : vector<2x7x128xf32>
    %470 = arith.addf %463, %469 : vector<2x7x128xf32>
    %471 = vector.extract_strided_slice %298 {offsets = [0, 0, 0], sizes = [2, 7, 1], strides = [1, 1, 1]} : vector<2x8x1xf32> to vector<2x7x1xf32>
    %c7_188 = arith.constant 7 : index
    %c0_189 = arith.constant 0 : index
    %472 = vector.load %arg3[%c7_188, %c0_189] : memref<9x128xf32, #tpu.memory_space<vmem>>, vector<1x128xf32>
    %473 = vector.shape_cast %472 : vector<1x128xf32> to vector<1x1x128xf32>
    %474 = vector.broadcast %471 : vector<2x7x1xf32> to vector<2x7x128xf32>
    %475 = vector.broadcast %473 : vector<1x1x128xf32> to vector<2x7x128xf32>
    %476 = arith.mulf %474, %475 : vector<2x7x128xf32>
    %477 = arith.addf %470, %476 : vector<2x7x128xf32>
    %478 = vector.extract_strided_slice %290 {offsets = [0, 1, 0], sizes = [2, 7, 1], strides = [1, 1, 1]} : vector<2x8x1xf32> to vector<2x7x1xf32>
    %c8_190 = arith.constant 8 : index
    %c0_191 = arith.constant 0 : index
    %479 = vector.load %arg3[%c8_190, %c0_191] : memref<9x128xf32, #tpu.memory_space<vmem>>, vector<1x128xf32>
    %480 = vector.shape_cast %479 : vector<1x128xf32> to vector<1x1x128xf32>
    %481 = vector.broadcast %478 : vector<2x7x1xf32> to vector<2x7x128xf32>
    %482 = vector.broadcast %480 : vector<1x1x128xf32> to vector<2x7x128xf32>
    %483 = arith.mulf %481, %482 : vector<2x7x128xf32>
    %484 = arith.addf %477, %483 : vector<2x7x128xf32>
    %485 = vector.extract_strided_slice %294 {offsets = [0, 0, 0], sizes = [2, 7, 1], strides = [1, 1, 1]} : vector<2x8x1xf32> to vector<2x7x1xf32>
    %c0_192 = arith.constant 0 : index
    %c0_193 = arith.constant 0 : index
    %486 = vector.load %arg3[%c0_192, %c0_193] : memref<9x128xf32, #tpu.memory_space<vmem>>, vector<1x128xf32>
    %487 = vector.shape_cast %486 : vector<1x128xf32> to vector<1x1x128xf32>
    %488 = vector.broadcast %485 : vector<2x7x1xf32> to vector<2x7x128xf32>
    %489 = vector.broadcast %487 : vector<1x1x128xf32> to vector<2x7x128xf32>
    %490 = arith.mulf %488, %489 : vector<2x7x128xf32>
    %491 = vector.extract_strided_slice %286 {offsets = [0, 1, 0], sizes = [2, 7, 1], strides = [1, 1, 1]} : vector<2x8x1xf32> to vector<2x7x1xf32>
    %c1_194 = arith.constant 1 : index
    %c0_195 = arith.constant 0 : index
    %492 = vector.load %arg3[%c1_194, %c0_195] : memref<9x128xf32, #tpu.memory_space<vmem>>, vector<1x128xf32>
    %493 = vector.shape_cast %492 : vector<1x128xf32> to vector<1x1x128xf32>
    %494 = vector.broadcast %491 : vector<2x7x1xf32> to vector<2x7x128xf32>
    %495 = vector.broadcast %493 : vector<1x1x128xf32> to vector<2x7x128xf32>
    %496 = arith.mulf %494, %495 : vector<2x7x128xf32>
    %497 = arith.addf %490, %496 : vector<2x7x128xf32>
    %498 = vector.extract_strided_slice %294 {offsets = [0, 1, 0], sizes = [2, 7, 1], strides = [1, 1, 1]} : vector<2x8x1xf32> to vector<2x7x1xf32>
    %c2_196 = arith.constant 2 : index
    %c0_197 = arith.constant 0 : index
    %499 = vector.load %arg3[%c2_196, %c0_197] : memref<9x128xf32, #tpu.memory_space<vmem>>, vector<1x128xf32>
    %500 = vector.shape_cast %499 : vector<1x128xf32> to vector<1x1x128xf32>
    %501 = vector.broadcast %498 : vector<2x7x1xf32> to vector<2x7x128xf32>
    %502 = vector.broadcast %500 : vector<1x1x128xf32> to vector<2x7x128xf32>
    %503 = arith.mulf %501, %502 : vector<2x7x128xf32>
    %504 = arith.addf %497, %503 : vector<2x7x128xf32>
    %505 = vector.extract_strided_slice %296 {offsets = [0, 0, 0], sizes = [2, 7, 1], strides = [1, 1, 1]} : vector<2x8x1xf32> to vector<2x7x1xf32>
    %c3_198 = arith.constant 3 : index
    %c0_199 = arith.constant 0 : index
    %506 = vector.load %arg3[%c3_198, %c0_199] : memref<9x128xf32, #tpu.memory_space<vmem>>, vector<1x128xf32>
    %507 = vector.shape_cast %506 : vector<1x128xf32> to vector<1x1x128xf32>
    %508 = vector.broadcast %505 : vector<2x7x1xf32> to vector<2x7x128xf32>
    %509 = vector.broadcast %507 : vector<1x1x128xf32> to vector<2x7x128xf32>
    %510 = arith.mulf %508, %509 : vector<2x7x128xf32>
    %511 = arith.addf %504, %510 : vector<2x7x128xf32>
    %512 = vector.extract_strided_slice %288 {offsets = [0, 1, 0], sizes = [2, 7, 1], strides = [1, 1, 1]} : vector<2x8x1xf32> to vector<2x7x1xf32>
    %c4_200 = arith.constant 4 : index
    %c0_201 = arith.constant 0 : index
    %513 = vector.load %arg3[%c4_200, %c0_201] : memref<9x128xf32, #tpu.memory_space<vmem>>, vector<1x128xf32>
    %514 = vector.shape_cast %513 : vector<1x128xf32> to vector<1x1x128xf32>
    %515 = vector.broadcast %512 : vector<2x7x1xf32> to vector<2x7x128xf32>
    %516 = vector.broadcast %514 : vector<1x1x128xf32> to vector<2x7x128xf32>
    %517 = arith.mulf %515, %516 : vector<2x7x128xf32>
    %518 = arith.addf %511, %517 : vector<2x7x128xf32>
    %519 = vector.extract_strided_slice %296 {offsets = [0, 1, 0], sizes = [2, 7, 1], strides = [1, 1, 1]} : vector<2x8x1xf32> to vector<2x7x1xf32>
    %c5_202 = arith.constant 5 : index
    %c0_203 = arith.constant 0 : index
    %520 = vector.load %arg3[%c5_202, %c0_203] : memref<9x128xf32, #tpu.memory_space<vmem>>, vector<1x128xf32>
    %521 = vector.shape_cast %520 : vector<1x128xf32> to vector<1x1x128xf32>
    %522 = vector.broadcast %519 : vector<2x7x1xf32> to vector<2x7x128xf32>
    %523 = vector.broadcast %521 : vector<1x1x128xf32> to vector<2x7x128xf32>
    %524 = arith.mulf %522, %523 : vector<2x7x128xf32>
    %525 = arith.addf %518, %524 : vector<2x7x128xf32>
    %526 = vector.extract_strided_slice %298 {offsets = [0, 0, 0], sizes = [2, 7, 1], strides = [1, 1, 1]} : vector<2x8x1xf32> to vector<2x7x1xf32>
    %c6_204 = arith.constant 6 : index
    %c0_205 = arith.constant 0 : index
    %527 = vector.load %arg3[%c6_204, %c0_205] : memref<9x128xf32, #tpu.memory_space<vmem>>, vector<1x128xf32>
    %528 = vector.shape_cast %527 : vector<1x128xf32> to vector<1x1x128xf32>
    %529 = vector.broadcast %526 : vector<2x7x1xf32> to vector<2x7x128xf32>
    %530 = vector.broadcast %528 : vector<1x1x128xf32> to vector<2x7x128xf32>
    %531 = arith.mulf %529, %530 : vector<2x7x128xf32>
    %532 = arith.addf %525, %531 : vector<2x7x128xf32>
    %533 = vector.extract_strided_slice %290 {offsets = [0, 1, 0], sizes = [2, 7, 1], strides = [1, 1, 1]} : vector<2x8x1xf32> to vector<2x7x1xf32>
    %c7_206 = arith.constant 7 : index
    %c0_207 = arith.constant 0 : index
    %534 = vector.load %arg3[%c7_206, %c0_207] : memref<9x128xf32, #tpu.memory_space<vmem>>, vector<1x128xf32>
    %535 = vector.shape_cast %534 : vector<1x128xf32> to vector<1x1x128xf32>
    %536 = vector.broadcast %533 : vector<2x7x1xf32> to vector<2x7x128xf32>
    %537 = vector.broadcast %535 : vector<1x1x128xf32> to vector<2x7x128xf32>
    %538 = arith.mulf %536, %537 : vector<2x7x128xf32>
    %539 = arith.addf %532, %538 : vector<2x7x128xf32>
    %540 = vector.extract_strided_slice %298 {offsets = [0, 1, 0], sizes = [2, 7, 1], strides = [1, 1, 1]} : vector<2x8x1xf32> to vector<2x7x1xf32>
    %c8_208 = arith.constant 8 : index
    %c0_209 = arith.constant 0 : index
    %541 = vector.load %arg3[%c8_208, %c0_209] : memref<9x128xf32, #tpu.memory_space<vmem>>, vector<1x128xf32>
    %542 = vector.shape_cast %541 : vector<1x128xf32> to vector<1x1x128xf32>
    %543 = vector.broadcast %540 : vector<2x7x1xf32> to vector<2x7x128xf32>
    %544 = vector.broadcast %542 : vector<1x1x128xf32> to vector<2x7x128xf32>
    %545 = arith.mulf %543, %544 : vector<2x7x128xf32>
    %546 = arith.addf %539, %545 : vector<2x7x128xf32>
    %547 = arith.maximumf %360, %422 : vector<2x7x128xf32>
    %548 = arith.maximumf %484, %546 : vector<2x7x128xf32>
    %549 = arith.maximumf %547, %548 : vector<2x7x128xf32>
    %c0_210 = arith.constant 0 : index
    %c0_211 = arith.constant 0 : index
    %550 = vector.load %arg4[%c0_210, %c0_211] : memref<1x128xf32, #tpu.memory_space<vmem>>, vector<1x128xf32>
    %551 = vector.shape_cast %550 : vector<1x128xf32> to vector<1x1x128xf32>
    %552 = vector.broadcast %551 : vector<1x1x128xf32> to vector<2x7x128xf32>
    %553 = arith.addf %549, %552 : vector<2x7x128xf32>
    %cst_212 = arith.constant 0.000000e+00 : f32
    %554 = vector.broadcast %cst_212 : f32 to vector<2x7x128xf32>
    %555 = arith.maximumf %553, %554 : vector<2x7x128xf32>
    %556 = vector.extract_strided_slice %555 {offsets = [0, 0, 0], sizes = [1, 7, 128], strides = [1, 1, 1]} : vector<2x7x128xf32> to vector<1x7x128xf32>
    %557 = vector.shape_cast %556 : vector<1x7x128xf32> to vector<7x128xf32>
    %c7_213 = arith.constant 7 : index
    %c0_214 = arith.constant 0 : index
    %558 = vector.load %arg12[%c7_213, %c0_214] : memref<128x128xf32, #tpu.memory_space<vmem>>, vector<7x128xf32>
    tpu.vector_store %arg12[%c7_213, %c0_214], %557 {strides = array<i32>} : memref<128x128xf32, #tpu.memory_space<vmem>>, vector<7x128xf32>,
    %559 = vector.extract_strided_slice %555 {offsets = [1, 0, 0], sizes = [1, 7, 128], strides = [1, 1, 1]} : vector<2x7x128xf32> to vector<1x7x128xf32>
    %560 = vector.shape_cast %559 : vector<1x7x128xf32> to vector<7x128xf32>
    %c63 = arith.constant 63 : index
    %c0_215 = arith.constant 0 : index
    %561 = vector.load %arg12[%c63, %c0_215] : memref<128x128xf32, #tpu.memory_space<vmem>>, vector<7x128xf32>
    tpu.vector_store %arg12[%c63, %c0_215], %560 {strides = array<i32>} : memref<128x128xf32, #tpu.memory_space<vmem>>, vector<7x128xf32>,
    %c0_216 = arith.constant 0 : index
    %c4_217 = arith.constant 4 : index
    %c0_218 = arith.constant 0 : index
    %c0_219 = arith.constant 0 : index
    %562 = vector.load %arg1[%c0_216, %c4_217, %c0_218, %c0_219] : memref<2x16x8x1xf32, #tpu.memory_space<vmem>>, vector<2x1x8x1xf32>
    %563 = vector.shape_cast %562 : vector<2x1x8x1xf32> to vector<2x8x1xf32>
    %c0_220 = arith.constant 0 : index
    %c5_221 = arith.constant 5 : index
    %c0_222 = arith.constant 0 : index
    %c0_223 = arith.constant 0 : index
    %564 = vector.load %arg1[%c0_220, %c5_221, %c0_222, %c0_223] : memref<2x16x8x1xf32, #tpu.memory_space<vmem>>, vector<2x1x8x1xf32>
    %565 = vector.shape_cast %564 : vector<2x1x8x1xf32> to vector<2x8x1xf32>
    %c0_224 = arith.constant 0 : index
    %c6_225 = arith.constant 6 : index
    %c0_226 = arith.constant 0 : index
    %c0_227 = arith.constant 0 : index
    %566 = vector.load %arg1[%c0_224, %c6_225, %c0_226, %c0_227] : memref<2x16x8x1xf32, #tpu.memory_space<vmem>>, vector<2x1x8x1xf32>
    %567 = vector.shape_cast %566 : vector<2x1x8x1xf32> to vector<2x8x1xf32>
    %c0_228 = arith.constant 0 : index
    %c7_229 = arith.constant 7 : index
    %c0_230 = arith.constant 0 : index
    %c0_231 = arith.constant 0 : index
    %568 = vector.load %arg1[%c0_228, %c7_229, %c0_230, %c0_231] : memref<2x16x8x1xf32, #tpu.memory_space<vmem>>, vector<2x1x8x1xf32>
    %569 = vector.shape_cast %568 : vector<2x1x8x1xf32> to vector<2x8x1xf32>
    %c0_232 = arith.constant 0 : index
    %c4_233 = arith.constant 4 : index
    %c0_234 = arith.constant 0 : index
    %c0_235 = arith.constant 0 : index
    %570 = vector.load %arg2[%c0_232, %c4_233, %c0_234, %c0_235] : memref<2x16x8x1xf32, #tpu.memory_space<vmem>>, vector<2x1x8x1xf32>
    %571 = vector.shape_cast %570 : vector<2x1x8x1xf32> to vector<2x8x1xf32>
    %c0_236 = arith.constant 0 : index
    %c5_237 = arith.constant 5 : index
    %c0_238 = arith.constant 0 : index
    %c0_239 = arith.constant 0 : index
    %572 = vector.load %arg2[%c0_236, %c5_237, %c0_238, %c0_239] : memref<2x16x8x1xf32, #tpu.memory_space<vmem>>, vector<2x1x8x1xf32>
    %573 = vector.shape_cast %572 : vector<2x1x8x1xf32> to vector<2x8x1xf32>
    %c0_240 = arith.constant 0 : index
    %c6_241 = arith.constant 6 : index
    %c0_242 = arith.constant 0 : index
    %c0_243 = arith.constant 0 : index
    %574 = vector.load %arg2[%c0_240, %c6_241, %c0_242, %c0_243] : memref<2x16x8x1xf32, #tpu.memory_space<vmem>>, vector<2x1x8x1xf32>
    %575 = vector.shape_cast %574 : vector<2x1x8x1xf32> to vector<2x8x1xf32>
    %c0_244 = arith.constant 0 : index
    %c7_245 = arith.constant 7 : index
    %c0_246 = arith.constant 0 : index
    %c0_247 = arith.constant 0 : index
    %576 = vector.load %arg2[%c0_244, %c7_245, %c0_246, %c0_247] : memref<2x16x8x1xf32, #tpu.memory_space<vmem>>, vector<2x1x8x1xf32>
    %577 = vector.shape_cast %576 : vector<2x1x8x1xf32> to vector<2x8x1xf32>
    %578 = vector.extract_strided_slice %563 {offsets = [0, 0, 0], sizes = [2, 7, 1], strides = [1, 1, 1]} : vector<2x8x1xf32> to vector<2x7x1xf32>
    %c0_248 = arith.constant 0 : index
    %c0_249 = arith.constant 0 : index
    %579 = vector.load %arg3[%c0_248, %c0_249] : memref<9x128xf32, #tpu.memory_space<vmem>>, vector<1x128xf32>
    %580 = vector.shape_cast %579 : vector<1x128xf32> to vector<1x1x128xf32>
    %581 = vector.broadcast %578 : vector<2x7x1xf32> to vector<2x7x128xf32>
    %582 = vector.broadcast %580 : vector<1x1x128xf32> to vector<2x7x128xf32>
    %583 = arith.mulf %581, %582 : vector<2x7x128xf32>
    %584 = vector.extract_strided_slice %571 {offsets = [0, 0, 0], sizes = [2, 7, 1], strides = [1, 1, 1]} : vector<2x8x1xf32> to vector<2x7x1xf32>
    %c1_250 = arith.constant 1 : index
    %c0_251 = arith.constant 0 : index
    %585 = vector.load %arg3[%c1_250, %c0_251] : memref<9x128xf32, #tpu.memory_space<vmem>>, vector<1x128xf32>
    %586 = vector.shape_cast %585 : vector<1x128xf32> to vector<1x1x128xf32>
    %587 = vector.broadcast %584 : vector<2x7x1xf32> to vector<2x7x128xf32>
    %588 = vector.broadcast %586 : vector<1x1x128xf32> to vector<2x7x128xf32>
    %589 = arith.mulf %587, %588 : vector<2x7x128xf32>
    %590 = arith.addf %583, %589 : vector<2x7x128xf32>
    %591 = vector.extract_strided_slice %563 {offsets = [0, 1, 0], sizes = [2, 7, 1], strides = [1, 1, 1]} : vector<2x8x1xf32> to vector<2x7x1xf32>
    %c2_252 = arith.constant 2 : index
    %c0_253 = arith.constant 0 : index
    %592 = vector.load %arg3[%c2_252, %c0_253] : memref<9x128xf32, #tpu.memory_space<vmem>>, vector<1x128xf32>
    %593 = vector.shape_cast %592 : vector<1x128xf32> to vector<1x1x128xf32>
    %594 = vector.broadcast %591 : vector<2x7x1xf32> to vector<2x7x128xf32>
    %595 = vector.broadcast %593 : vector<1x1x128xf32> to vector<2x7x128xf32>
    %596 = arith.mulf %594, %595 : vector<2x7x128xf32>
    %597 = arith.addf %590, %596 : vector<2x7x128xf32>
    %598 = vector.extract_strided_slice %565 {offsets = [0, 0, 0], sizes = [2, 7, 1], strides = [1, 1, 1]} : vector<2x8x1xf32> to vector<2x7x1xf32>
    %c3_254 = arith.constant 3 : index
    %c0_255 = arith.constant 0 : index
    %599 = vector.load %arg3[%c3_254, %c0_255] : memref<9x128xf32, #tpu.memory_space<vmem>>, vector<1x128xf32>
    %600 = vector.shape_cast %599 : vector<1x128xf32> to vector<1x1x128xf32>
    %601 = vector.broadcast %598 : vector<2x7x1xf32> to vector<2x7x128xf32>
    %602 = vector.broadcast %600 : vector<1x1x128xf32> to vector<2x7x128xf32>
    %603 = arith.mulf %601, %602 : vector<2x7x128xf32>
    %604 = arith.addf %597, %603 : vector<2x7x128xf32>
    %605 = vector.extract_strided_slice %573 {offsets = [0, 0, 0], sizes = [2, 7, 1], strides = [1, 1, 1]} : vector<2x8x1xf32> to vector<2x7x1xf32>
    %c4_256 = arith.constant 4 : index
    %c0_257 = arith.constant 0 : index
    %606 = vector.load %arg3[%c4_256, %c0_257] : memref<9x128xf32, #tpu.memory_space<vmem>>, vector<1x128xf32>
    %607 = vector.shape_cast %606 : vector<1x128xf32> to vector<1x1x128xf32>
    %608 = vector.broadcast %605 : vector<2x7x1xf32> to vector<2x7x128xf32>
    %609 = vector.broadcast %607 : vector<1x1x128xf32> to vector<2x7x128xf32>
    %610 = arith.mulf %608, %609 : vector<2x7x128xf32>
    %611 = arith.addf %604, %610 : vector<2x7x128xf32>
    %612 = vector.extract_strided_slice %565 {offsets = [0, 1, 0], sizes = [2, 7, 1], strides = [1, 1, 1]} : vector<2x8x1xf32> to vector<2x7x1xf32>
    %c5_258 = arith.constant 5 : index
    %c0_259 = arith.constant 0 : index
    %613 = vector.load %arg3[%c5_258, %c0_259] : memref<9x128xf32, #tpu.memory_space<vmem>>, vector<1x128xf32>
    %614 = vector.shape_cast %613 : vector<1x128xf32> to vector<1x1x128xf32>
    %615 = vector.broadcast %612 : vector<2x7x1xf32> to vector<2x7x128xf32>
    %616 = vector.broadcast %614 : vector<1x1x128xf32> to vector<2x7x128xf32>
    %617 = arith.mulf %615, %616 : vector<2x7x128xf32>
    %618 = arith.addf %611, %617 : vector<2x7x128xf32>
    %619 = vector.extract_strided_slice %567 {offsets = [0, 0, 0], sizes = [2, 7, 1], strides = [1, 1, 1]} : vector<2x8x1xf32> to vector<2x7x1xf32>
    %c6_260 = arith.constant 6 : index
    %c0_261 = arith.constant 0 : index
    %620 = vector.load %arg3[%c6_260, %c0_261] : memref<9x128xf32, #tpu.memory_space<vmem>>, vector<1x128xf32>
    %621 = vector.shape_cast %620 : vector<1x128xf32> to vector<1x1x128xf32>
    %622 = vector.broadcast %619 : vector<2x7x1xf32> to vector<2x7x128xf32>
    %623 = vector.broadcast %621 : vector<1x1x128xf32> to vector<2x7x128xf32>
    %624 = arith.mulf %622, %623 : vector<2x7x128xf32>
    %625 = arith.addf %618, %624 : vector<2x7x128xf32>
    %626 = vector.extract_strided_slice %575 {offsets = [0, 0, 0], sizes = [2, 7, 1], strides = [1, 1, 1]} : vector<2x8x1xf32> to vector<2x7x1xf32>
    %c7_262 = arith.constant 7 : index
    %c0_263 = arith.constant 0 : index
    %627 = vector.load %arg3[%c7_262, %c0_263] : memref<9x128xf32, #tpu.memory_space<vmem>>, vector<1x128xf32>
    %628 = vector.shape_cast %627 : vector<1x128xf32> to vector<1x1x128xf32>
    %629 = vector.broadcast %626 : vector<2x7x1xf32> to vector<2x7x128xf32>
    %630 = vector.broadcast %628 : vector<1x1x128xf32> to vector<2x7x128xf32>
    %631 = arith.mulf %629, %630 : vector<2x7x128xf32>
    %632 = arith.addf %625, %631 : vector<2x7x128xf32>
    %633 = vector.extract_strided_slice %567 {offsets = [0, 1, 0], sizes = [2, 7, 1], strides = [1, 1, 1]} : vector<2x8x1xf32> to vector<2x7x1xf32>
    %c8_264 = arith.constant 8 : index
    %c0_265 = arith.constant 0 : index
    %634 = vector.load %arg3[%c8_264, %c0_265] : memref<9x128xf32, #tpu.memory_space<vmem>>, vector<1x128xf32>
    %635 = vector.shape_cast %634 : vector<1x128xf32> to vector<1x1x128xf32>
    %636 = vector.broadcast %633 : vector<2x7x1xf32> to vector<2x7x128xf32>
    %637 = vector.broadcast %635 : vector<1x1x128xf32> to vector<2x7x128xf32>
    %638 = arith.mulf %636, %637 : vector<2x7x128xf32>
    %639 = arith.addf %632, %638 : vector<2x7x128xf32>
    %640 = vector.extract_strided_slice %571 {offsets = [0, 0, 0], sizes = [2, 7, 1], strides = [1, 1, 1]} : vector<2x8x1xf32> to vector<2x7x1xf32>
    %c0_266 = arith.constant 0 : index
    %c0_267 = arith.constant 0 : index
    %641 = vector.load %arg3[%c0_266, %c0_267] : memref<9x128xf32, #tpu.memory_space<vmem>>, vector<1x128xf32>
    %642 = vector.shape_cast %641 : vector<1x128xf32> to vector<1x1x128xf32>
    %643 = vector.broadcast %640 : vector<2x7x1xf32> to vector<2x7x128xf32>
    %644 = vector.broadcast %642 : vector<1x1x128xf32> to vector<2x7x128xf32>
    %645 = arith.mulf %643, %644 : vector<2x7x128xf32>
    %646 = vector.extract_strided_slice %563 {offsets = [0, 1, 0], sizes = [2, 7, 1], strides = [1, 1, 1]} : vector<2x8x1xf32> to vector<2x7x1xf32>
    %c1_268 = arith.constant 1 : index
    %c0_269 = arith.constant 0 : index
    %647 = vector.load %arg3[%c1_268, %c0_269] : memref<9x128xf32, #tpu.memory_space<vmem>>, vector<1x128xf32>
    %648 = vector.shape_cast %647 : vector<1x128xf32> to vector<1x1x128xf32>
    %649 = vector.broadcast %646 : vector<2x7x1xf32> to vector<2x7x128xf32>
    %650 = vector.broadcast %648 : vector<1x1x128xf32> to vector<2x7x128xf32>
    %651 = arith.mulf %649, %650 : vector<2x7x128xf32>
    %652 = arith.addf %645, %651 : vector<2x7x128xf32>
    %653 = vector.extract_strided_slice %571 {offsets = [0, 1, 0], sizes = [2, 7, 1], strides = [1, 1, 1]} : vector<2x8x1xf32> to vector<2x7x1xf32>
    %c2_270 = arith.constant 2 : index
    %c0_271 = arith.constant 0 : index
    %654 = vector.load %arg3[%c2_270, %c0_271] : memref<9x128xf32, #tpu.memory_space<vmem>>, vector<1x128xf32>
    %655 = vector.shape_cast %654 : vector<1x128xf32> to vector<1x1x128xf32>
    %656 = vector.broadcast %653 : vector<2x7x1xf32> to vector<2x7x128xf32>
    %657 = vector.broadcast %655 : vector<1x1x128xf32> to vector<2x7x128xf32>
    %658 = arith.mulf %656, %657 : vector<2x7x128xf32>
    %659 = arith.addf %652, %658 : vector<2x7x128xf32>
    %660 = vector.extract_strided_slice %573 {offsets = [0, 0, 0], sizes = [2, 7, 1], strides = [1, 1, 1]} : vector<2x8x1xf32> to vector<2x7x1xf32>
    %c3_272 = arith.constant 3 : index
    %c0_273 = arith.constant 0 : index
    %661 = vector.load %arg3[%c3_272, %c0_273] : memref<9x128xf32, #tpu.memory_space<vmem>>, vector<1x128xf32>
    %662 = vector.shape_cast %661 : vector<1x128xf32> to vector<1x1x128xf32>
    %663 = vector.broadcast %660 : vector<2x7x1xf32> to vector<2x7x128xf32>
    %664 = vector.broadcast %662 : vector<1x1x128xf32> to vector<2x7x128xf32>
    %665 = arith.mulf %663, %664 : vector<2x7x128xf32>
    %666 = arith.addf %659, %665 : vector<2x7x128xf32>
    %667 = vector.extract_strided_slice %565 {offsets = [0, 1, 0], sizes = [2, 7, 1], strides = [1, 1, 1]} : vector<2x8x1xf32> to vector<2x7x1xf32>
    %c4_274 = arith.constant 4 : index
    %c0_275 = arith.constant 0 : index
    %668 = vector.load %arg3[%c4_274, %c0_275] : memref<9x128xf32, #tpu.memory_space<vmem>>, vector<1x128xf32>
    %669 = vector.shape_cast %668 : vector<1x128xf32> to vector<1x1x128xf32>
    %670 = vector.broadcast %667 : vector<2x7x1xf32> to vector<2x7x128xf32>
    %671 = vector.broadcast %669 : vector<1x1x128xf32> to vector<2x7x128xf32>
    %672 = arith.mulf %670, %671 : vector<2x7x128xf32>
    %673 = arith.addf %666, %672 : vector<2x7x128xf32>
    %674 = vector.extract_strided_slice %573 {offsets = [0, 1, 0], sizes = [2, 7, 1], strides = [1, 1, 1]} : vector<2x8x1xf32> to vector<2x7x1xf32>
    %c5_276 = arith.constant 5 : index
    %c0_277 = arith.constant 0 : index
    %675 = vector.load %arg3[%c5_276, %c0_277] : memref<9x128xf32, #tpu.memory_space<vmem>>, vector<1x128xf32>
    %676 = vector.shape_cast %675 : vector<1x128xf32> to vector<1x1x128xf32>
    %677 = vector.broadcast %674 : vector<2x7x1xf32> to vector<2x7x128xf32>
    %678 = vector.broadcast %676 : vector<1x1x128xf32> to vector<2x7x128xf32>
    %679 = arith.mulf %677, %678 : vector<2x7x128xf32>
    %680 = arith.addf %673, %679 : vector<2x7x128xf32>
    %681 = vector.extract_strided_slice %575 {offsets = [0, 0, 0], sizes = [2, 7, 1], strides = [1, 1, 1]} : vector<2x8x1xf32> to vector<2x7x1xf32>
    %c6_278 = arith.constant 6 : index
    %c0_279 = arith.constant 0 : index
    %682 = vector.load %arg3[%c6_278, %c0_279] : memref<9x128xf32, #tpu.memory_space<vmem>>, vector<1x128xf32>
    %683 = vector.shape_cast %682 : vector<1x128xf32> to vector<1x1x128xf32>
    %684 = vector.broadcast %681 : vector<2x7x1xf32> to vector<2x7x128xf32>
    %685 = vector.broadcast %683 : vector<1x1x128xf32> to vector<2x7x128xf32>
    %686 = arith.mulf %684, %685 : vector<2x7x128xf32>
    %687 = arith.addf %680, %686 : vector<2x7x128xf32>
    %688 = vector.extract_strided_slice %567 {offsets = [0, 1, 0], sizes = [2, 7, 1], strides = [1, 1, 1]} : vector<2x8x1xf32> to vector<2x7x1xf32>
    %c7_280 = arith.constant 7 : index
    %c0_281 = arith.constant 0 : index
    %689 = vector.load %arg3[%c7_280, %c0_281] : memref<9x128xf32, #tpu.memory_space<vmem>>, vector<1x128xf32>
    %690 = vector.shape_cast %689 : vector<1x128xf32> to vector<1x1x128xf32>
    %691 = vector.broadcast %688 : vector<2x7x1xf32> to vector<2x7x128xf32>
    %692 = vector.broadcast %690 : vector<1x1x128xf32> to vector<2x7x128xf32>
    %693 = arith.mulf %691, %692 : vector<2x7x128xf32>
    %694 = arith.addf %687, %693 : vector<2x7x128xf32>
    %695 = vector.extract_strided_slice %575 {offsets = [0, 1, 0], sizes = [2, 7, 1], strides = [1, 1, 1]} : vector<2x8x1xf32> to vector<2x7x1xf32>
    %c8_282 = arith.constant 8 : index
    %c0_283 = arith.constant 0 : index
    %696 = vector.load %arg3[%c8_282, %c0_283] : memref<9x128xf32, #tpu.memory_space<vmem>>, vector<1x128xf32>
    %697 = vector.shape_cast %696 : vector<1x128xf32> to vector<1x1x128xf32>
    %698 = vector.broadcast %695 : vector<2x7x1xf32> to vector<2x7x128xf32>
    %699 = vector.broadcast %697 : vector<1x1x128xf32> to vector<2x7x128xf32>
    %700 = arith.mulf %698, %699 : vector<2x7x128xf32>
    %701 = arith.addf %694, %700 : vector<2x7x128xf32>
    %702 = vector.extract_strided_slice %565 {offsets = [0, 0, 0], sizes = [2, 7, 1], strides = [1, 1, 1]} : vector<2x8x1xf32> to vector<2x7x1xf32>
    %c0_284 = arith.constant 0 : index
    %c0_285 = arith.constant 0 : index
    %703 = vector.load %arg3[%c0_284, %c0_285] : memref<9x128xf32, #tpu.memory_space<vmem>>, vector<1x128xf32>
    %704 = vector.shape_cast %703 : vector<1x128xf32> to vector<1x1x128xf32>
    %705 = vector.broadcast %702 : vector<2x7x1xf32> to vector<2x7x128xf32>
    %706 = vector.broadcast %704 : vector<1x1x128xf32> to vector<2x7x128xf32>
    %707 = arith.mulf %705, %706 : vector<2x7x128xf32>
    %708 = vector.extract_strided_slice %573 {offsets = [0, 0, 0], sizes = [2, 7, 1], strides = [1, 1, 1]} : vector<2x8x1xf32> to vector<2x7x1xf32>
    %c1_286 = arith.constant 1 : index
    %c0_287 = arith.constant 0 : index
    %709 = vector.load %arg3[%c1_286, %c0_287] : memref<9x128xf32, #tpu.memory_space<vmem>>, vector<1x128xf32>
    %710 = vector.shape_cast %709 : vector<1x128xf32> to vector<1x1x128xf32>
    %711 = vector.broadcast %708 : vector<2x7x1xf32> to vector<2x7x128xf32>
    %712 = vector.broadcast %710 : vector<1x1x128xf32> to vector<2x7x128xf32>
    %713 = arith.mulf %711, %712 : vector<2x7x128xf32>
    %714 = arith.addf %707, %713 : vector<2x7x128xf32>
    %715 = vector.extract_strided_slice %565 {offsets = [0, 1, 0], sizes = [2, 7, 1], strides = [1, 1, 1]} : vector<2x8x1xf32> to vector<2x7x1xf32>
    %c2_288 = arith.constant 2 : index
    %c0_289 = arith.constant 0 : index
    %716 = vector.load %arg3[%c2_288, %c0_289] : memref<9x128xf32, #tpu.memory_space<vmem>>, vector<1x128xf32>
    %717 = vector.shape_cast %716 : vector<1x128xf32> to vector<1x1x128xf32>
    %718 = vector.broadcast %715 : vector<2x7x1xf32> to vector<2x7x128xf32>
    %719 = vector.broadcast %717 : vector<1x1x128xf32> to vector<2x7x128xf32>
    %720 = arith.mulf %718, %719 : vector<2x7x128xf32>
    %721 = arith.addf %714, %720 : vector<2x7x128xf32>
    %722 = vector.extract_strided_slice %567 {offsets = [0, 0, 0], sizes = [2, 7, 1], strides = [1, 1, 1]} : vector<2x8x1xf32> to vector<2x7x1xf32>
    %c3_290 = arith.constant 3 : index
    %c0_291 = arith.constant 0 : index
    %723 = vector.load %arg3[%c3_290, %c0_291] : memref<9x128xf32, #tpu.memory_space<vmem>>, vector<1x128xf32>
    %724 = vector.shape_cast %723 : vector<1x128xf32> to vector<1x1x128xf32>
    %725 = vector.broadcast %722 : vector<2x7x1xf32> to vector<2x7x128xf32>
    %726 = vector.broadcast %724 : vector<1x1x128xf32> to vector<2x7x128xf32>
    %727 = arith.mulf %725, %726 : vector<2x7x128xf32>
    %728 = arith.addf %721, %727 : vector<2x7x128xf32>
    %729 = vector.extract_strided_slice %575 {offsets = [0, 0, 0], sizes = [2, 7, 1], strides = [1, 1, 1]} : vector<2x8x1xf32> to vector<2x7x1xf32>
    %c4_292 = arith.constant 4 : index
    %c0_293 = arith.constant 0 : index
    %730 = vector.load %arg3[%c4_292, %c0_293] : memref<9x128xf32, #tpu.memory_space<vmem>>, vector<1x128xf32>
    %731 = vector.shape_cast %730 : vector<1x128xf32> to vector<1x1x128xf32>
    %732 = vector.broadcast %729 : vector<2x7x1xf32> to vector<2x7x128xf32>
    %733 = vector.broadcast %731 : vector<1x1x128xf32> to vector<2x7x128xf32>
    %734 = arith.mulf %732, %733 : vector<2x7x128xf32>
    %735 = arith.addf %728, %734 : vector<2x7x128xf32>
    %736 = vector.extract_strided_slice %567 {offsets = [0, 1, 0], sizes = [2, 7, 1], strides = [1, 1, 1]} : vector<2x8x1xf32> to vector<2x7x1xf32>
    %c5_294 = arith.constant 5 : index
    %c0_295 = arith.constant 0 : index
    %737 = vector.load %arg3[%c5_294, %c0_295] : memref<9x128xf32, #tpu.memory_space<vmem>>, vector<1x128xf32>
    %738 = vector.shape_cast %737 : vector<1x128xf32> to vector<1x1x128xf32>
    %739 = vector.broadcast %736 : vector<2x7x1xf32> to vector<2x7x128xf32>
    %740 = vector.broadcast %738 : vector<1x1x128xf32> to vector<2x7x128xf32>
    %741 = arith.mulf %739, %740 : vector<2x7x128xf32>
    %742 = arith.addf %735, %741 : vector<2x7x128xf32>
    %743 = vector.extract_strided_slice %569 {offsets = [0, 0, 0], sizes = [2, 7, 1], strides = [1, 1, 1]} : vector<2x8x1xf32> to vector<2x7x1xf32>
    %c6_296 = arith.constant 6 : index
    %c0_297 = arith.constant 0 : index
    %744 = vector.load %arg3[%c6_296, %c0_297] : memref<9x128xf32, #tpu.memory_space<vmem>>, vector<1x128xf32>
    %745 = vector.shape_cast %744 : vector<1x128xf32> to vector<1x1x128xf32>
    %746 = vector.broadcast %743 : vector<2x7x1xf32> to vector<2x7x128xf32>
    %747 = vector.broadcast %745 : vector<1x1x128xf32> to vector<2x7x128xf32>
    %748 = arith.mulf %746, %747 : vector<2x7x128xf32>
    %749 = arith.addf %742, %748 : vector<2x7x128xf32>
    %750 = vector.extract_strided_slice %577 {offsets = [0, 0, 0], sizes = [2, 7, 1], strides = [1, 1, 1]} : vector<2x8x1xf32> to vector<2x7x1xf32>
    %c7_298 = arith.constant 7 : index
    %c0_299 = arith.constant 0 : index
    %751 = vector.load %arg3[%c7_298, %c0_299] : memref<9x128xf32, #tpu.memory_space<vmem>>, vector<1x128xf32>
    %752 = vector.shape_cast %751 : vector<1x128xf32> to vector<1x1x128xf32>
    %753 = vector.broadcast %750 : vector<2x7x1xf32> to vector<2x7x128xf32>
    %754 = vector.broadcast %752 : vector<1x1x128xf32> to vector<2x7x128xf32>
    %755 = arith.mulf %753, %754 : vector<2x7x128xf32>
    %756 = arith.addf %749, %755 : vector<2x7x128xf32>
    %757 = vector.extract_strided_slice %569 {offsets = [0, 1, 0], sizes = [2, 7, 1], strides = [1, 1, 1]} : vector<2x8x1xf32> to vector<2x7x1xf32>
    %c8_300 = arith.constant 8 : index
    %c0_301 = arith.constant 0 : index
    %758 = vector.load %arg3[%c8_300, %c0_301] : memref<9x128xf32, #tpu.memory_space<vmem>>, vector<1x128xf32>
    %759 = vector.shape_cast %758 : vector<1x128xf32> to vector<1x1x128xf32>
    %760 = vector.broadcast %757 : vector<2x7x1xf32> to vector<2x7x128xf32>
    %761 = vector.broadcast %759 : vector<1x1x128xf32> to vector<2x7x128xf32>
    %762 = arith.mulf %760, %761 : vector<2x7x128xf32>
    %763 = arith.addf %756, %762 : vector<2x7x128xf32>
    %764 = vector.extract_strided_slice %573 {offsets = [0, 0, 0], sizes = [2, 7, 1], strides = [1, 1, 1]} : vector<2x8x1xf32> to vector<2x7x1xf32>
    %c0_302 = arith.constant 0 : index
    %c0_303 = arith.constant 0 : index
    %765 = vector.load %arg3[%c0_302, %c0_303] : memref<9x128xf32, #tpu.memory_space<vmem>>, vector<1x128xf32>
    %766 = vector.shape_cast %765 : vector<1x128xf32> to vector<1x1x128xf32>
    %767 = vector.broadcast %764 : vector<2x7x1xf32> to vector<2x7x128xf32>
    %768 = vector.broadcast %766 : vector<1x1x128xf32> to vector<2x7x128xf32>
    %769 = arith.mulf %767, %768 : vector<2x7x128xf32>
    %770 = vector.extract_strided_slice %565 {offsets = [0, 1, 0], sizes = [2, 7, 1], strides = [1, 1, 1]} : vector<2x8x1xf32> to vector<2x7x1xf32>
    %c1_304 = arith.constant 1 : index
    %c0_305 = arith.constant 0 : index
    %771 = vector.load %arg3[%c1_304, %c0_305] : memref<9x128xf32, #tpu.memory_space<vmem>>, vector<1x128xf32>
    %772 = vector.shape_cast %771 : vector<1x128xf32> to vector<1x1x128xf32>
    %773 = vector.broadcast %770 : vector<2x7x1xf32> to vector<2x7x128xf32>
    %774 = vector.broadcast %772 : vector<1x1x128xf32> to vector<2x7x128xf32>
    %775 = arith.mulf %773, %774 : vector<2x7x128xf32>
    %776 = arith.addf %769, %775 : vector<2x7x128xf32>
    %777 = vector.extract_strided_slice %573 {offsets = [0, 1, 0], sizes = [2, 7, 1], strides = [1, 1, 1]} : vector<2x8x1xf32> to vector<2x7x1xf32>
    %c2_306 = arith.constant 2 : index
    %c0_307 = arith.constant 0 : index
    %778 = vector.load %arg3[%c2_306, %c0_307] : memref<9x128xf32, #tpu.memory_space<vmem>>, vector<1x128xf32>
    %779 = vector.shape_cast %778 : vector<1x128xf32> to vector<1x1x128xf32>
    %780 = vector.broadcast %777 : vector<2x7x1xf32> to vector<2x7x128xf32>
    %781 = vector.broadcast %779 : vector<1x1x128xf32> to vector<2x7x128xf32>
    %782 = arith.mulf %780, %781 : vector<2x7x128xf32>
    %783 = arith.addf %776, %782 : vector<2x7x128xf32>
    %784 = vector.extract_strided_slice %575 {offsets = [0, 0, 0], sizes = [2, 7, 1], strides = [1, 1, 1]} : vector<2x8x1xf32> to vector<2x7x1xf32>
    %c3_308 = arith.constant 3 : index
    %c0_309 = arith.constant 0 : index
    %785 = vector.load %arg3[%c3_308, %c0_309] : memref<9x128xf32, #tpu.memory_space<vmem>>, vector<1x128xf32>
    %786 = vector.shape_cast %785 : vector<1x128xf32> to vector<1x1x128xf32>
    %787 = vector.broadcast %784 : vector<2x7x1xf32> to vector<2x7x128xf32>
    %788 = vector.broadcast %786 : vector<1x1x128xf32> to vector<2x7x128xf32>
    %789 = arith.mulf %787, %788 : vector<2x7x128xf32>
    %790 = arith.addf %783, %789 : vector<2x7x128xf32>
    %791 = vector.extract_strided_slice %567 {offsets = [0, 1, 0], sizes = [2, 7, 1], strides = [1, 1, 1]} : vector<2x8x1xf32> to vector<2x7x1xf32>
    %c4_310 = arith.constant 4 : index
    %c0_311 = arith.constant 0 : index
    %792 = vector.load %arg3[%c4_310, %c0_311] : memref<9x128xf32, #tpu.memory_space<vmem>>, vector<1x128xf32>
    %793 = vector.shape_cast %792 : vector<1x128xf32> to vector<1x1x128xf32>
    %794 = vector.broadcast %791 : vector<2x7x1xf32> to vector<2x7x128xf32>
    %795 = vector.broadcast %793 : vector<1x1x128xf32> to vector<2x7x128xf32>
    %796 = arith.mulf %794, %795 : vector<2x7x128xf32>
    %797 = arith.addf %790, %796 : vector<2x7x128xf32>
    %798 = vector.extract_strided_slice %575 {offsets = [0, 1, 0], sizes = [2, 7, 1], strides = [1, 1, 1]} : vector<2x8x1xf32> to vector<2x7x1xf32>
    %c5_312 = arith.constant 5 : index
    %c0_313 = arith.constant 0 : index
    %799 = vector.load %arg3[%c5_312, %c0_313] : memref<9x128xf32, #tpu.memory_space<vmem>>, vector<1x128xf32>
    %800 = vector.shape_cast %799 : vector<1x128xf32> to vector<1x1x128xf32>
    %801 = vector.broadcast %798 : vector<2x7x1xf32> to vector<2x7x128xf32>
    %802 = vector.broadcast %800 : vector<1x1x128xf32> to vector<2x7x128xf32>
    %803 = arith.mulf %801, %802 : vector<2x7x128xf32>
    %804 = arith.addf %797, %803 : vector<2x7x128xf32>
    %805 = vector.extract_strided_slice %577 {offsets = [0, 0, 0], sizes = [2, 7, 1], strides = [1, 1, 1]} : vector<2x8x1xf32> to vector<2x7x1xf32>
    %c6_314 = arith.constant 6 : index
    %c0_315 = arith.constant 0 : index
    %806 = vector.load %arg3[%c6_314, %c0_315] : memref<9x128xf32, #tpu.memory_space<vmem>>, vector<1x128xf32>
    %807 = vector.shape_cast %806 : vector<1x128xf32> to vector<1x1x128xf32>
    %808 = vector.broadcast %805 : vector<2x7x1xf32> to vector<2x7x128xf32>
    %809 = vector.broadcast %807 : vector<1x1x128xf32> to vector<2x7x128xf32>
    %810 = arith.mulf %808, %809 : vector<2x7x128xf32>
    %811 = arith.addf %804, %810 : vector<2x7x128xf32>
    %812 = vector.extract_strided_slice %569 {offsets = [0, 1, 0], sizes = [2, 7, 1], strides = [1, 1, 1]} : vector<2x8x1xf32> to vector<2x7x1xf32>
    %c7_316 = arith.constant 7 : index
    %c0_317 = arith.constant 0 : index
    %813 = vector.load %arg3[%c7_316, %c0_317] : memref<9x128xf32, #tpu.memory_space<vmem>>, vector<1x128xf32>
    %814 = vector.shape_cast %813 : vector<1x128xf32> to vector<1x1x128xf32>
    %815 = vector.broadcast %812 : vector<2x7x1xf32> to vector<2x7x128xf32>
    %816 = vector.broadcast %814 : vector<1x1x128xf32> to vector<2x7x128xf32>
    %817 = arith.mulf %815, %816 : vector<2x7x128xf32>
    %818 = arith.addf %811, %817 : vector<2x7x128xf32>
    %819 = vector.extract_strided_slice %577 {offsets = [0, 1, 0], sizes = [2, 7, 1], strides = [1, 1, 1]} : vector<2x8x1xf32> to vector<2x7x1xf32>
    %c8_318 = arith.constant 8 : index
    %c0_319 = arith.constant 0 : index
    %820 = vector.load %arg3[%c8_318, %c0_319] : memref<9x128xf32, #tpu.memory_space<vmem>>, vector<1x128xf32>
    %821 = vector.shape_cast %820 : vector<1x128xf32> to vector<1x1x128xf32>
    %822 = vector.broadcast %819 : vector<2x7x1xf32> to vector<2x7x128xf32>
    %823 = vector.broadcast %821 : vector<1x1x128xf32> to vector<2x7x128xf32>
    %824 = arith.mulf %822, %823 : vector<2x7x128xf32>
    %825 = arith.addf %818, %824 : vector<2x7x128xf32>
    %826 = arith.maximumf %639, %701 : vector<2x7x128xf32>
    %827 = arith.maximumf %763, %825 : vector<2x7x128xf32>
    %828 = arith.maximumf %826, %827 : vector<2x7x128xf32>
    %c0_320 = arith.constant 0 : index
    %c0_321 = arith.constant 0 : index
    %829 = vector.load %arg4[%c0_320, %c0_321] : memref<1x128xf32, #tpu.memory_space<vmem>>, vector<1x128xf32>
    %830 = vector.shape_cast %829 : vector<1x128xf32> to vector<1x1x128xf32>
    %831 = vector.broadcast %830 : vector<1x1x128xf32> to vector<2x7x128xf32>
    %832 = arith.addf %828, %831 : vector<2x7x128xf32>
    %cst_322 = arith.constant 0.000000e+00 : f32
    %833 = vector.broadcast %cst_322 : f32 to vector<2x7x128xf32>
    %834 = arith.maximumf %832, %833 : vector<2x7x128xf32>
    %835 = vector.extract_strided_slice %834 {offsets = [0, 0, 0], sizes = [1, 7, 128], strides = [1, 1, 1]} : vector<2x7x128xf32> to vector<1x7x128xf32>
    %836 = vector.shape_cast %835 : vector<1x7x128xf32> to vector<7x128xf32>
    %c14 = arith.constant 14 : index
    %c0_323 = arith.constant 0 : index
    %837 = vector.load %arg12[%c14, %c0_323] : memref<128x128xf32, #tpu.memory_space<vmem>>, vector<7x128xf32>
    tpu.vector_store %arg12[%c14, %c0_323], %836 {strides = array<i32>} : memref<128x128xf32, #tpu.memory_space<vmem>>, vector<7x128xf32>,
    %838 = vector.extract_strided_slice %834 {offsets = [1, 0, 0], sizes = [1, 7, 128], strides = [1, 1, 1]} : vector<2x7x128xf32> to vector<1x7x128xf32>
    %839 = vector.shape_cast %838 : vector<1x7x128xf32> to vector<7x128xf32>
    %c70 = arith.constant 70 : index
    %c0_324 = arith.constant 0 : index
    %840 = vector.load %arg12[%c70, %c0_324] : memref<128x128xf32, #tpu.memory_space<vmem>>, vector<7x128xf32>
    tpu.vector_store %arg12[%c70, %c0_324], %839 {strides = array<i32>} : memref<128x128xf32, #tpu.memory_space<vmem>>, vector<7x128xf32>,
    %c0_325 = arith.constant 0 : index
    %c6_326 = arith.constant 6 : index
    %c0_327 = arith.constant 0 : index
    %c0_328 = arith.constant 0 : index
    %841 = vector.load %arg1[%c0_325, %c6_326, %c0_327, %c0_328] : memref<2x16x8x1xf32, #tpu.memory_space<vmem>>, vector<2x1x8x1xf32>
    %842 = vector.shape_cast %841 : vector<2x1x8x1xf32> to vector<2x8x1xf32>
    %c0_329 = arith.constant 0 : index
    %c7_330 = arith.constant 7 : index
    %c0_331 = arith.constant 0 : index
    %c0_332 = arith.constant 0 : index
    %843 = vector.load %arg1[%c0_329, %c7_330, %c0_331, %c0_332] : memref<2x16x8x1xf32, #tpu.memory_space<vmem>>, vector<2x1x8x1xf32>
    %844 = vector.shape_cast %843 : vector<2x1x8x1xf32> to vector<2x8x1xf32>
    %c0_333 = arith.constant 0 : index
    %c8_334 = arith.constant 8 : index
    %c0_335 = arith.constant 0 : index
    %c0_336 = arith.constant 0 : index
    %845 = vector.load %arg1[%c0_333, %c8_334, %c0_335, %c0_336] : memref<2x16x8x1xf32, #tpu.memory_space<vmem>>, vector<2x1x8x1xf32>
    %846 = vector.shape_cast %845 : vector<2x1x8x1xf32> to vector<2x8x1xf32>
    %c0_337 = arith.constant 0 : index
    %c9 = arith.constant 9 : index
    %c0_338 = arith.constant 0 : index
    %c0_339 = arith.constant 0 : index
    %847 = vector.load %arg1[%c0_337, %c9, %c0_338, %c0_339] : memref<2x16x8x1xf32, #tpu.memory_space<vmem>>, vector<2x1x8x1xf32>
    %848 = vector.shape_cast %847 : vector<2x1x8x1xf32> to vector<2x8x1xf32>
    %c0_340 = arith.constant 0 : index
    %c6_341 = arith.constant 6 : index
    %c0_342 = arith.constant 0 : index
    %c0_343 = arith.constant 0 : index
    %849 = vector.load %arg2[%c0_340, %c6_341, %c0_342, %c0_343] : memref<2x16x8x1xf32, #tpu.memory_space<vmem>>, vector<2x1x8x1xf32>
    %850 = vector.shape_cast %849 : vector<2x1x8x1xf32> to vector<2x8x1xf32>
    %c0_344 = arith.constant 0 : index
    %c7_345 = arith.constant 7 : index
    %c0_346 = arith.constant 0 : index
    %c0_347 = arith.constant 0 : index
    %851 = vector.load %arg2[%c0_344, %c7_345, %c0_346, %c0_347] : memref<2x16x8x1xf32, #tpu.memory_space<vmem>>, vector<2x1x8x1xf32>
    %852 = vector.shape_cast %851 : vector<2x1x8x1xf32> to vector<2x8x1xf32>
    %c0_348 = arith.constant 0 : index
    %c8_349 = arith.constant 8 : index
    %c0_350 = arith.constant 0 : index
    %c0_351 = arith.constant 0 : index
    %853 = vector.load %arg2[%c0_348, %c8_349, %c0_350, %c0_351] : memref<2x16x8x1xf32, #tpu.memory_space<vmem>>, vector<2x1x8x1xf32>
    %854 = vector.shape_cast %853 : vector<2x1x8x1xf32> to vector<2x8x1xf32>
    %c0_352 = arith.constant 0 : index
    %c9_353 = arith.constant 9 : index
    %c0_354 = arith.constant 0 : index
    %c0_355 = arith.constant 0 : index
    %855 = vector.load %arg2[%c0_352, %c9_353, %c0_354, %c0_355] : memref<2x16x8x1xf32, #tpu.memory_space<vmem>>, vector<2x1x8x1xf32>
    %856 = vector.shape_cast %855 : vector<2x1x8x1xf32> to vector<2x8x1xf32>
    %857 = vector.extract_strided_slice %842 {offsets = [0, 0, 0], sizes = [2, 7, 1], strides = [1, 1, 1]} : vector<2x8x1xf32> to vector<2x7x1xf32>
    %c0_356 = arith.constant 0 : index
    %c0_357 = arith.constant 0 : index
    %858 = vector.load %arg3[%c0_356, %c0_357] : memref<9x128xf32, #tpu.memory_space<vmem>>, vector<1x128xf32>
    %859 = vector.shape_cast %858 : vector<1x128xf32> to vector<1x1x128xf32>
    %860 = vector.broadcast %857 : vector<2x7x1xf32> to vector<2x7x128xf32>
    %861 = vector.broadcast %859 : vector<1x1x128xf32> to vector<2x7x128xf32>
    %862 = arith.mulf %860, %861 : vector<2x7x128xf32>
    %863 = vector.extract_strided_slice %850 {offsets = [0, 0, 0], sizes = [2, 7, 1], strides = [1, 1, 1]} : vector<2x8x1xf32> to vector<2x7x1xf32>
    %c1_358 = arith.constant 1 : index
    %c0_359 = arith.constant 0 : index
    %864 = vector.load %arg3[%c1_358, %c0_359] : memref<9x128xf32, #tpu.memory_space<vmem>>, vector<1x128xf32>
    %865 = vector.shape_cast %864 : vector<1x128xf32> to vector<1x1x128xf32>
    %866 = vector.broadcast %863 : vector<2x7x1xf32> to vector<2x7x128xf32>
    %867 = vector.broadcast %865 : vector<1x1x128xf32> to vector<2x7x128xf32>
    %868 = arith.mulf %866, %867 : vector<2x7x128xf32>
    %869 = arith.addf %862, %868 : vector<2x7x128xf32>
    %870 = vector.extract_strided_slice %842 {offsets = [0, 1, 0], sizes = [2, 7, 1], strides = [1, 1, 1]} : vector<2x8x1xf32> to vector<2x7x1xf32>
    %c2_360 = arith.constant 2 : index
    %c0_361 = arith.constant 0 : index
    %871 = vector.load %arg3[%c2_360, %c0_361] : memref<9x128xf32, #tpu.memory_space<vmem>>, vector<1x128xf32>
    %872 = vector.shape_cast %871 : vector<1x128xf32> to vector<1x1x128xf32>
    %873 = vector.broadcast %870 : vector<2x7x1xf32> to vector<2x7x128xf32>
    %874 = vector.broadcast %872 : vector<1x1x128xf32> to vector<2x7x128xf32>
    %875 = arith.mulf %873, %874 : vector<2x7x128xf32>
    %876 = arith.addf %869, %875 : vector<2x7x128xf32>
    %877 = vector.extract_strided_slice %844 {offsets = [0, 0, 0], sizes = [2, 7, 1], strides = [1, 1, 1]} : vector<2x8x1xf32> to vector<2x7x1xf32>
    %c3_362 = arith.constant 3 : index
    %c0_363 = arith.constant 0 : index
    %878 = vector.load %arg3[%c3_362, %c0_363] : memref<9x128xf32, #tpu.memory_space<vmem>>, vector<1x128xf32>
    %879 = vector.shape_cast %878 : vector<1x128xf32> to vector<1x1x128xf32>
    %880 = vector.broadcast %877 : vector<2x7x1xf32> to vector<2x7x128xf32>
    %881 = vector.broadcast %879 : vector<1x1x128xf32> to vector<2x7x128xf32>
    %882 = arith.mulf %880, %881 : vector<2x7x128xf32>
    %883 = arith.addf %876, %882 : vector<2x7x128xf32>
    %884 = vector.extract_strided_slice %852 {offsets = [0, 0, 0], sizes = [2, 7, 1], strides = [1, 1, 1]} : vector<2x8x1xf32> to vector<2x7x1xf32>
    %c4_364 = arith.constant 4 : index
    %c0_365 = arith.constant 0 : index
    %885 = vector.load %arg3[%c4_364, %c0_365] : memref<9x128xf32, #tpu.memory_space<vmem>>, vector<1x128xf32>
    %886 = vector.shape_cast %885 : vector<1x128xf32> to vector<1x1x128xf32>
    %887 = vector.broadcast %884 : vector<2x7x1xf32> to vector<2x7x128xf32>
    %888 = vector.broadcast %886 : vector<1x1x128xf32> to vector<2x7x128xf32>
    %889 = arith.mulf %887, %888 : vector<2x7x128xf32>
    %890 = arith.addf %883, %889 : vector<2x7x128xf32>
    %891 = vector.extract_strided_slice %844 {offsets = [0, 1, 0], sizes = [2, 7, 1], strides = [1, 1, 1]} : vector<2x8x1xf32> to vector<2x7x1xf32>
    %c5_366 = arith.constant 5 : index
    %c0_367 = arith.constant 0 : index
    %892 = vector.load %arg3[%c5_366, %c0_367] : memref<9x128xf32, #tpu.memory_space<vmem>>, vector<1x128xf32>
    %893 = vector.shape_cast %892 : vector<1x128xf32> to vector<1x1x128xf32>
    %894 = vector.broadcast %891 : vector<2x7x1xf32> to vector<2x7x128xf32>
    %895 = vector.broadcast %893 : vector<1x1x128xf32> to vector<2x7x128xf32>
    %896 = arith.mulf %894, %895 : vector<2x7x128xf32>
    %897 = arith.addf %890, %896 : vector<2x7x128xf32>
    %898 = vector.extract_strided_slice %846 {offsets = [0, 0, 0], sizes = [2, 7, 1], strides = [1, 1, 1]} : vector<2x8x1xf32> to vector<2x7x1xf32>
    %c6_368 = arith.constant 6 : index
    %c0_369 = arith.constant 0 : index
    %899 = vector.load %arg3[%c6_368, %c0_369] : memref<9x128xf32, #tpu.memory_space<vmem>>, vector<1x128xf32>
    %900 = vector.shape_cast %899 : vector<1x128xf32> to vector<1x1x128xf32>
    %901 = vector.broadcast %898 : vector<2x7x1xf32> to vector<2x7x128xf32>
    %902 = vector.broadcast %900 : vector<1x1x128xf32> to vector<2x7x128xf32>
    %903 = arith.mulf %901, %902 : vector<2x7x128xf32>
    %904 = arith.addf %897, %903 : vector<2x7x128xf32>
    %905 = vector.extract_strided_slice %854 {offsets = [0, 0, 0], sizes = [2, 7, 1], strides = [1, 1, 1]} : vector<2x8x1xf32> to vector<2x7x1xf32>
    %c7_370 = arith.constant 7 : index
    %c0_371 = arith.constant 0 : index
    %906 = vector.load %arg3[%c7_370, %c0_371] : memref<9x128xf32, #tpu.memory_space<vmem>>, vector<1x128xf32>
    %907 = vector.shape_cast %906 : vector<1x128xf32> to vector<1x1x128xf32>
    %908 = vector.broadcast %905 : vector<2x7x1xf32> to vector<2x7x128xf32>
    %909 = vector.broadcast %907 : vector<1x1x128xf32> to vector<2x7x128xf32>
    %910 = arith.mulf %908, %909 : vector<2x7x128xf32>
    %911 = arith.addf %904, %910 : vector<2x7x128xf32>
    %912 = vector.extract_strided_slice %846 {offsets = [0, 1, 0], sizes = [2, 7, 1], strides = [1, 1, 1]} : vector<2x8x1xf32> to vector<2x7x1xf32>
    %c8_372 = arith.constant 8 : index
    %c0_373 = arith.constant 0 : index
    %913 = vector.load %arg3[%c8_372, %c0_373] : memref<9x128xf32, #tpu.memory_space<vmem>>, vector<1x128xf32>
    %914 = vector.shape_cast %913 : vector<1x128xf32> to vector<1x1x128xf32>
    %915 = vector.broadcast %912 : vector<2x7x1xf32> to vector<2x7x128xf32>
    %916 = vector.broadcast %914 : vector<1x1x128xf32> to vector<2x7x128xf32>
    %917 = arith.mulf %915, %916 : vector<2x7x128xf32>
    %918 = arith.addf %911, %917 : vector<2x7x128xf32>
    %919 = vector.extract_strided_slice %850 {offsets = [0, 0, 0], sizes = [2, 7, 1], strides = [1, 1, 1]} : vector<2x8x1xf32> to vector<2x7x1xf32>
    %c0_374 = arith.constant 0 : index
    %c0_375 = arith.constant 0 : index
    %920 = vector.load %arg3[%c0_374, %c0_375] : memref<9x128xf32, #tpu.memory_space<vmem>>, vector<1x128xf32>
    %921 = vector.shape_cast %920 : vector<1x128xf32> to vector<1x1x128xf32>
    %922 = vector.broadcast %919 : vector<2x7x1xf32> to vector<2x7x128xf32>
    %923 = vector.broadcast %921 : vector<1x1x128xf32> to vector<2x7x128xf32>
    %924 = arith.mulf %922, %923 : vector<2x7x128xf32>
    %925 = vector.extract_strided_slice %842 {offsets = [0, 1, 0], sizes = [2, 7, 1], strides = [1, 1, 1]} : vector<2x8x1xf32> to vector<2x7x1xf32>
    %c1_376 = arith.constant 1 : index
    %c0_377 = arith.constant 0 : index
    %926 = vector.load %arg3[%c1_376, %c0_377] : memref<9x128xf32, #tpu.memory_space<vmem>>, vector<1x128xf32>
    %927 = vector.shape_cast %926 : vector<1x128xf32> to vector<1x1x128xf32>
    %928 = vector.broadcast %925 : vector<2x7x1xf32> to vector<2x7x128xf32>
    %929 = vector.broadcast %927 : vector<1x1x128xf32> to vector<2x7x128xf32>
    %930 = arith.mulf %928, %929 : vector<2x7x128xf32>
    %931 = arith.addf %924, %930 : vector<2x7x128xf32>
    %932 = vector.extract_strided_slice %850 {offsets = [0, 1, 0], sizes = [2, 7, 1], strides = [1, 1, 1]} : vector<2x8x1xf32> to vector<2x7x1xf32>
    %c2_378 = arith.constant 2 : index
    %c0_379 = arith.constant 0 : index
    %933 = vector.load %arg3[%c2_378, %c0_379] : memref<9x128xf32, #tpu.memory_space<vmem>>, vector<1x128xf32>
    %934 = vector.shape_cast %933 : vector<1x128xf32> to vector<1x1x128xf32>
    %935 = vector.broadcast %932 : vector<2x7x1xf32> to vector<2x7x128xf32>
    %936 = vector.broadcast %934 : vector<1x1x128xf32> to vector<2x7x128xf32>
    %937 = arith.mulf %935, %936 : vector<2x7x128xf32>
    %938 = arith.addf %931, %937 : vector<2x7x128xf32>
    %939 = vector.extract_strided_slice %852 {offsets = [0, 0, 0], sizes = [2, 7, 1], strides = [1, 1, 1]} : vector<2x8x1xf32> to vector<2x7x1xf32>
    %c3_380 = arith.constant 3 : index
    %c0_381 = arith.constant 0 : index
    %940 = vector.load %arg3[%c3_380, %c0_381] : memref<9x128xf32, #tpu.memory_space<vmem>>, vector<1x128xf32>
    %941 = vector.shape_cast %940 : vector<1x128xf32> to vector<1x1x128xf32>
    %942 = vector.broadcast %939 : vector<2x7x1xf32> to vector<2x7x128xf32>
    %943 = vector.broadcast %941 : vector<1x1x128xf32> to vector<2x7x128xf32>
    %944 = arith.mulf %942, %943 : vector<2x7x128xf32>
    %945 = arith.addf %938, %944 : vector<2x7x128xf32>
    %946 = vector.extract_strided_slice %844 {offsets = [0, 1, 0], sizes = [2, 7, 1], strides = [1, 1, 1]} : vector<2x8x1xf32> to vector<2x7x1xf32>
    %c4_382 = arith.constant 4 : index
    %c0_383 = arith.constant 0 : index
    %947 = vector.load %arg3[%c4_382, %c0_383] : memref<9x128xf32, #tpu.memory_space<vmem>>, vector<1x128xf32>
    %948 = vector.shape_cast %947 : vector<1x128xf32> to vector<1x1x128xf32>
    %949 = vector.broadcast %946 : vector<2x7x1xf32> to vector<2x7x128xf32>
    %950 = vector.broadcast %948 : vector<1x1x128xf32> to vector<2x7x128xf32>
    %951 = arith.mulf %949, %950 : vector<2x7x128xf32>
    %952 = arith.addf %945, %951 : vector<2x7x128xf32>
    %953 = vector.extract_strided_slice %852 {offsets = [0, 1, 0], sizes = [2, 7, 1], strides = [1, 1, 1]} : vector<2x8x1xf32> to vector<2x7x1xf32>
    %c5_384 = arith.constant 5 : index
    %c0_385 = arith.constant 0 : index
    %954 = vector.load %arg3[%c5_384, %c0_385] : memref<9x128xf32, #tpu.memory_space<vmem>>, vector<1x128xf32>
    %955 = vector.shape_cast %954 : vector<1x128xf32> to vector<1x1x128xf32>
    %956 = vector.broadcast %953 : vector<2x7x1xf32> to vector<2x7x128xf32>
    %957 = vector.broadcast %955 : vector<1x1x128xf32> to vector<2x7x128xf32>
    %958 = arith.mulf %956, %957 : vector<2x7x128xf32>
    %959 = arith.addf %952, %958 : vector<2x7x128xf32>
    %960 = vector.extract_strided_slice %854 {offsets = [0, 0, 0], sizes = [2, 7, 1], strides = [1, 1, 1]} : vector<2x8x1xf32> to vector<2x7x1xf32>
    %c6_386 = arith.constant 6 : index
    %c0_387 = arith.constant 0 : index
    %961 = vector.load %arg3[%c6_386, %c0_387] : memref<9x128xf32, #tpu.memory_space<vmem>>, vector<1x128xf32>
    %962 = vector.shape_cast %961 : vector<1x128xf32> to vector<1x1x128xf32>
    %963 = vector.broadcast %960 : vector<2x7x1xf32> to vector<2x7x128xf32>
    %964 = vector.broadcast %962 : vector<1x1x128xf32> to vector<2x7x128xf32>
    %965 = arith.mulf %963, %964 : vector<2x7x128xf32>
    %966 = arith.addf %959, %965 : vector<2x7x128xf32>
    %967 = vector.extract_strided_slice %846 {offsets = [0, 1, 0], sizes = [2, 7, 1], strides = [1, 1, 1]} : vector<2x8x1xf32> to vector<2x7x1xf32>
    %c7_388 = arith.constant 7 : index
    %c0_389 = arith.constant 0 : index
    %968 = vector.load %arg3[%c7_388, %c0_389] : memref<9x128xf32, #tpu.memory_space<vmem>>, vector<1x128xf32>
    %969 = vector.shape_cast %968 : vector<1x128xf32> to vector<1x1x128xf32>
    %970 = vector.broadcast %967 : vector<2x7x1xf32> to vector<2x7x128xf32>
    %971 = vector.broadcast %969 : vector<1x1x128xf32> to vector<2x7x128xf32>
    %972 = arith.mulf %970, %971 : vector<2x7x128xf32>
    %973 = arith.addf %966, %972 : vector<2x7x128xf32>
    %974 = vector.extract_strided_slice %854 {offsets = [0, 1, 0], sizes = [2, 7, 1], strides = [1, 1, 1]} : vector<2x8x1xf32> to vector<2x7x1xf32>
    %c8_390 = arith.constant 8 : index
    %c0_391 = arith.constant 0 : index
    %975 = vector.load %arg3[%c8_390, %c0_391] : memref<9x128xf32, #tpu.memory_space<vmem>>, vector<1x128xf32>
    %976 = vector.shape_cast %975 : vector<1x128xf32> to vector<1x1x128xf32>
    %977 = vector.broadcast %974 : vector<2x7x1xf32> to vector<2x7x128xf32>
    %978 = vector.broadcast %976 : vector<1x1x128xf32> to vector<2x7x128xf32>
    %979 = arith.mulf %977, %978 : vector<2x7x128xf32>
    %980 = arith.addf %973, %979 : vector<2x7x128xf32>
    %981 = vector.extract_strided_slice %844 {offsets = [0, 0, 0], sizes = [2, 7, 1], strides = [1, 1, 1]} : vector<2x8x1xf32> to vector<2x7x1xf32>
    %c0_392 = arith.constant 0 : index
    %c0_393 = arith.constant 0 : index
    %982 = vector.load %arg3[%c0_392, %c0_393] : memref<9x128xf32, #tpu.memory_space<vmem>>, vector<1x128xf32>
    %983 = vector.shape_cast %982 : vector<1x128xf32> to vector<1x1x128xf32>
    %984 = vector.broadcast %981 : vector<2x7x1xf32> to vector<2x7x128xf32>
    %985 = vector.broadcast %983 : vector<1x1x128xf32> to vector<2x7x128xf32>
    %986 = arith.mulf %984, %985 : vector<2x7x128xf32>
    %987 = vector.extract_strided_slice %852 {offsets = [0, 0, 0], sizes = [2, 7, 1], strides = [1, 1, 1]} : vector<2x8x1xf32> to vector<2x7x1xf32>
    %c1_394 = arith.constant 1 : index
    %c0_395 = arith.constant 0 : index
    %988 = vector.load %arg3[%c1_394, %c0_395] : memref<9x128xf32, #tpu.memory_space<vmem>>, vector<1x128xf32>
    %989 = vector.shape_cast %988 : vector<1x128xf32> to vector<1x1x128xf32>
    %990 = vector.broadcast %987 : vector<2x7x1xf32> to vector<2x7x128xf32>
    %991 = vector.broadcast %989 : vector<1x1x128xf32> to vector<2x7x128xf32>
    %992 = arith.mulf %990, %991 : vector<2x7x128xf32>
    %993 = arith.addf %986, %992 : vector<2x7x128xf32>
    %994 = vector.extract_strided_slice %844 {offsets = [0, 1, 0], sizes = [2, 7, 1], strides = [1, 1, 1]} : vector<2x8x1xf32> to vector<2x7x1xf32>
    %c2_396 = arith.constant 2 : index
    %c0_397 = arith.constant 0 : index
    %995 = vector.load %arg3[%c2_396, %c0_397] : memref<9x128xf32, #tpu.memory_space<vmem>>, vector<1x128xf32>
    %996 = vector.shape_cast %995 : vector<1x128xf32> to vector<1x1x128xf32>
    %997 = vector.broadcast %994 : vector<2x7x1xf32> to vector<2x7x128xf32>
    %998 = vector.broadcast %996 : vector<1x1x128xf32> to vector<2x7x128xf32>
    %999 = arith.mulf %997, %998 : vector<2x7x128xf32>
    %1000 = arith.addf %993, %999 : vector<2x7x128xf32>
    %1001 = vector.extract_strided_slice %846 {offsets = [0, 0, 0], sizes = [2, 7, 1], strides = [1, 1, 1]} : vector<2x8x1xf32> to vector<2x7x1xf32>
    %c3_398 = arith.constant 3 : index
    %c0_399 = arith.constant 0 : index
    %1002 = vector.load %arg3[%c3_398, %c0_399] : memref<9x128xf32, #tpu.memory_space<vmem>>, vector<1x128xf32>
    %1003 = vector.shape_cast %1002 : vector<1x128xf32> to vector<1x1x128xf32>
    %1004 = vector.broadcast %1001 : vector<2x7x1xf32> to vector<2x7x128xf32>
    %1005 = vector.broadcast %1003 : vector<1x1x128xf32> to vector<2x7x128xf32>
    %1006 = arith.mulf %1004, %1005 : vector<2x7x128xf32>
    %1007 = arith.addf %1000, %1006 : vector<2x7x128xf32>
    %1008 = vector.extract_strided_slice %854 {offsets = [0, 0, 0], sizes = [2, 7, 1], strides = [1, 1, 1]} : vector<2x8x1xf32> to vector<2x7x1xf32>
    %c4_400 = arith.constant 4 : index
    %c0_401 = arith.constant 0 : index
    %1009 = vector.load %arg3[%c4_400, %c0_401] : memref<9x128xf32, #tpu.memory_space<vmem>>, vector<1x128xf32>
    %1010 = vector.shape_cast %1009 : vector<1x128xf32> to vector<1x1x128xf32>
    %1011 = vector.broadcast %1008 : vector<2x7x1xf32> to vector<2x7x128xf32>
    %1012 = vector.broadcast %1010 : vector<1x1x128xf32> to vector<2x7x128xf32>
    %1013 = arith.mulf %1011, %1012 : vector<2x7x128xf32>
    %1014 = arith.addf %1007, %1013 : vector<2x7x128xf32>
    %1015 = vector.extract_strided_slice %846 {offsets = [0, 1, 0], sizes = [2, 7, 1], strides = [1, 1, 1]} : vector<2x8x1xf32> to vector<2x7x1xf32>
    %c5_402 = arith.constant 5 : index
    %c0_403 = arith.constant 0 : index
    %1016 = vector.load %arg3[%c5_402, %c0_403] : memref<9x128xf32, #tpu.memory_space<vmem>>, vector<1x128xf32>
    %1017 = vector.shape_cast %1016 : vector<1x128xf32> to vector<1x1x128xf32>
    %1018 = vector.broadcast %1015 : vector<2x7x1xf32> to vector<2x7x128xf32>
    %1019 = vector.broadcast %1017 : vector<1x1x128xf32> to vector<2x7x128xf32>
    %1020 = arith.mulf %1018, %1019 : vector<2x7x128xf32>
    %1021 = arith.addf %1014, %1020 : vector<2x7x128xf32>
    %1022 = vector.extract_strided_slice %848 {offsets = [0, 0, 0], sizes = [2, 7, 1], strides = [1, 1, 1]} : vector<2x8x1xf32> to vector<2x7x1xf32>
    %c6_404 = arith.constant 6 : index
    %c0_405 = arith.constant 0 : index
    %1023 = vector.load %arg3[%c6_404, %c0_405] : memref<9x128xf32, #tpu.memory_space<vmem>>, vector<1x128xf32>
    %1024 = vector.shape_cast %1023 : vector<1x128xf32> to vector<1x1x128xf32>
    %1025 = vector.broadcast %1022 : vector<2x7x1xf32> to vector<2x7x128xf32>
    %1026 = vector.broadcast %1024 : vector<1x1x128xf32> to vector<2x7x128xf32>
    %1027 = arith.mulf %1025, %1026 : vector<2x7x128xf32>
    %1028 = arith.addf %1021, %1027 : vector<2x7x128xf32>
    %1029 = vector.extract_strided_slice %856 {offsets = [0, 0, 0], sizes = [2, 7, 1], strides = [1, 1, 1]} : vector<2x8x1xf32> to vector<2x7x1xf32>
    %c7_406 = arith.constant 7 : index
    %c0_407 = arith.constant 0 : index
    %1030 = vector.load %arg3[%c7_406, %c0_407] : memref<9x128xf32, #tpu.memory_space<vmem>>, vector<1x128xf32>
    %1031 = vector.shape_cast %1030 : vector<1x128xf32> to vector<1x1x128xf32>
    %1032 = vector.broadcast %1029 : vector<2x7x1xf32> to vector<2x7x128xf32>
    %1033 = vector.broadcast %1031 : vector<1x1x128xf32> to vector<2x7x128xf32>
    %1034 = arith.mulf %1032, %1033 : vector<2x7x128xf32>
    %1035 = arith.addf %1028, %1034 : vector<2x7x128xf32>
    %1036 = vector.extract_strided_slice %848 {offsets = [0, 1, 0], sizes = [2, 7, 1], strides = [1, 1, 1]} : vector<2x8x1xf32> to vector<2x7x1xf32>
    %c8_408 = arith.constant 8 : index
    %c0_409 = arith.constant 0 : index
    %1037 = vector.load %arg3[%c8_408, %c0_409] : memref<9x128xf32, #tpu.memory_space<vmem>>, vector<1x128xf32>
    %1038 = vector.shape_cast %1037 : vector<1x128xf32> to vector<1x1x128xf32>
    %1039 = vector.broadcast %1036 : vector<2x7x1xf32> to vector<2x7x128xf32>
    %1040 = vector.broadcast %1038 : vector<1x1x128xf32> to vector<2x7x128xf32>
    %1041 = arith.mulf %1039, %1040 : vector<2x7x128xf32>
    %1042 = arith.addf %1035, %1041 : vector<2x7x128xf32>
    %1043 = vector.extract_strided_slice %852 {offsets = [0, 0, 0], sizes = [2, 7, 1], strides = [1, 1, 1]} : vector<2x8x1xf32> to vector<2x7x1xf32>
    %c0_410 = arith.constant 0 : index
    %c0_411 = arith.constant 0 : index
    %1044 = vector.load %arg3[%c0_410, %c0_411] : memref<9x128xf32, #tpu.memory_space<vmem>>, vector<1x128xf32>
    %1045 = vector.shape_cast %1044 : vector<1x128xf32> to vector<1x1x128xf32>
    %1046 = vector.broadcast %1043 : vector<2x7x1xf32> to vector<2x7x128xf32>
    %1047 = vector.broadcast %1045 : vector<1x1x128xf32> to vector<2x7x128xf32>
    %1048 = arith.mulf %1046, %1047 : vector<2x7x128xf32>
    %1049 = vector.extract_strided_slice %844 {offsets = [0, 1, 0], sizes = [2, 7, 1], strides = [1, 1, 1]} : vector<2x8x1xf32> to vector<2x7x1xf32>
    %c1_412 = arith.constant 1 : index
    %c0_413 = arith.constant 0 : index
    %1050 = vector.load %arg3[%c1_412, %c0_413] : memref<9x128xf32, #tpu.memory_space<vmem>>, vector<1x128xf32>
    %1051 = vector.shape_cast %1050 : vector<1x128xf32> to vector<1x1x128xf32>
    %1052 = vector.broadcast %1049 : vector<2x7x1xf32> to vector<2x7x128xf32>
    %1053 = vector.broadcast %1051 : vector<1x1x128xf32> to vector<2x7x128xf32>
    %1054 = arith.mulf %1052, %1053 : vector<2x7x128xf32>
    %1055 = arith.addf %1048, %1054 : vector<2x7x128xf32>
    %1056 = vector.extract_strided_slice %852 {offsets = [0, 1, 0], sizes = [2, 7, 1], strides = [1, 1, 1]} : vector<2x8x1xf32> to vector<2x7x1xf32>
    %c2_414 = arith.constant 2 : index
    %c0_415 = arith.constant 0 : index
    %1057 = vector.load %arg3[%c2_414, %c0_415] : memref<9x128xf32, #tpu.memory_space<vmem>>, vector<1x128xf32>
    %1058 = vector.shape_cast %1057 : vector<1x128xf32> to vector<1x1x128xf32>
    %1059 = vector.broadcast %1056 : vector<2x7x1xf32> to vector<2x7x128xf32>
    %1060 = vector.broadcast %1058 : vector<1x1x128xf32> to vector<2x7x128xf32>
    %1061 = arith.mulf %1059, %1060 : vector<2x7x128xf32>
    %1062 = arith.addf %1055, %1061 : vector<2x7x128xf32>
    %1063 = vector.extract_strided_slice %854 {offsets = [0, 0, 0], sizes = [2, 7, 1], strides = [1, 1, 1]} : vector<2x8x1xf32> to vector<2x7x1xf32>
    %c3_416 = arith.constant 3 : index
    %c0_417 = arith.constant 0 : index
    %1064 = vector.load %arg3[%c3_416, %c0_417] : memref<9x128xf32, #tpu.memory_space<vmem>>, vector<1x128xf32>
    %1065 = vector.shape_cast %1064 : vector<1x128xf32> to vector<1x1x128xf32>
    %1066 = vector.broadcast %1063 : vector<2x7x1xf32> to vector<2x7x128xf32>
    %1067 = vector.broadcast %1065 : vector<1x1x128xf32> to vector<2x7x128xf32>
    %1068 = arith.mulf %1066, %1067 : vector<2x7x128xf32>
    %1069 = arith.addf %1062, %1068 : vector<2x7x128xf32>
    %1070 = vector.extract_strided_slice %846 {offsets = [0, 1, 0], sizes = [2, 7, 1], strides = [1, 1, 1]} : vector<2x8x1xf32> to vector<2x7x1xf32>
    %c4_418 = arith.constant 4 : index
    %c0_419 = arith.constant 0 : index
    %1071 = vector.load %arg3[%c4_418, %c0_419] : memref<9x128xf32, #tpu.memory_space<vmem>>, vector<1x128xf32>
    %1072 = vector.shape_cast %1071 : vector<1x128xf32> to vector<1x1x128xf32>
    %1073 = vector.broadcast %1070 : vector<2x7x1xf32> to vector<2x7x128xf32>
    %1074 = vector.broadcast %1072 : vector<1x1x128xf32> to vector<2x7x128xf32>
    %1075 = arith.mulf %1073, %1074 : vector<2x7x128xf32>
    %1076 = arith.addf %1069, %1075 : vector<2x7x128xf32>
    %1077 = vector.extract_strided_slice %854 {offsets = [0, 1, 0], sizes = [2, 7, 1], strides = [1, 1, 1]} : vector<2x8x1xf32> to vector<2x7x1xf32>
    %c5_420 = arith.constant 5 : index
    %c0_421 = arith.constant 0 : index
    %1078 = vector.load %arg3[%c5_420, %c0_421] : memref<9x128xf32, #tpu.memory_space<vmem>>, vector<1x128xf32>
    %1079 = vector.shape_cast %1078 : vector<1x128xf32> to vector<1x1x128xf32>
    %1080 = vector.broadcast %1077 : vector<2x7x1xf32> to vector<2x7x128xf32>
    %1081 = vector.broadcast %1079 : vector<1x1x128xf32> to vector<2x7x128xf32>
    %1082 = arith.mulf %1080, %1081 : vector<2x7x128xf32>
    %1083 = arith.addf %1076, %1082 : vector<2x7x128xf32>
    %1084 = vector.extract_strided_slice %856 {offsets = [0, 0, 0], sizes = [2, 7, 1], strides = [1, 1, 1]} : vector<2x8x1xf32> to vector<2x7x1xf32>
    %c6_422 = arith.constant 6 : index
    %c0_423 = arith.constant 0 : index
    %1085 = vector.load %arg3[%c6_422, %c0_423] : memref<9x128xf32, #tpu.memory_space<vmem>>, vector<1x128xf32>
    %1086 = vector.shape_cast %1085 : vector<1x128xf32> to vector<1x1x128xf32>
    %1087 = vector.broadcast %1084 : vector<2x7x1xf32> to vector<2x7x128xf32>
    %1088 = vector.broadcast %1086 : vector<1x1x128xf32> to vector<2x7x128xf32>
    %1089 = arith.mulf %1087, %1088 : vector<2x7x128xf32>
    %1090 = arith.addf %1083, %1089 : vector<2x7x128xf32>
    %1091 = vector.extract_strided_slice %848 {offsets = [0, 1, 0], sizes = [2, 7, 1], strides = [1, 1, 1]} : vector<2x8x1xf32> to vector<2x7x1xf32>
    %c7_424 = arith.constant 7 : index
    %c0_425 = arith.constant 0 : index
    %1092 = vector.load %arg3[%c7_424, %c0_425] : memref<9x128xf32, #tpu.memory_space<vmem>>, vector<1x128xf32>
    %1093 = vector.shape_cast %1092 : vector<1x128xf32> to vector<1x1x128xf32>
    %1094 = vector.broadcast %1091 : vector<2x7x1xf32> to vector<2x7x128xf32>
    %1095 = vector.broadcast %1093 : vector<1x1x128xf32> to vector<2x7x128xf32>
    %1096 = arith.mulf %1094, %1095 : vector<2x7x128xf32>
    %1097 = arith.addf %1090, %1096 : vector<2x7x128xf32>
    %1098 = vector.extract_strided_slice %856 {offsets = [0, 1, 0], sizes = [2, 7, 1], strides = [1, 1, 1]} : vector<2x8x1xf32> to vector<2x7x1xf32>
    %c8_426 = arith.constant 8 : index
    %c0_427 = arith.constant 0 : index
    %1099 = vector.load %arg3[%c8_426, %c0_427] : memref<9x128xf32, #tpu.memory_space<vmem>>, vector<1x128xf32>
    %1100 = vector.shape_cast %1099 : vector<1x128xf32> to vector<1x1x128xf32>
    %1101 = vector.broadcast %1098 : vector<2x7x1xf32> to vector<2x7x128xf32>
    %1102 = vector.broadcast %1100 : vector<1x1x128xf32> to vector<2x7x128xf32>
    %1103 = arith.mulf %1101, %1102 : vector<2x7x128xf32>
    %1104 = arith.addf %1097, %1103 : vector<2x7x128xf32>
    %1105 = arith.maximumf %918, %980 : vector<2x7x128xf32>
    %1106 = arith.maximumf %1042, %1104 : vector<2x7x128xf32>
    %1107 = arith.maximumf %1105, %1106 : vector<2x7x128xf32>
    %c0_428 = arith.constant 0 : index
    %c0_429 = arith.constant 0 : index
    %1108 = vector.load %arg4[%c0_428, %c0_429] : memref<1x128xf32, #tpu.memory_space<vmem>>, vector<1x128xf32>
    %1109 = vector.shape_cast %1108 : vector<1x128xf32> to vector<1x1x128xf32>
    %1110 = vector.broadcast %1109 : vector<1x1x128xf32> to vector<2x7x128xf32>
    %1111 = arith.addf %1107, %1110 : vector<2x7x128xf32>
    %cst_430 = arith.constant 0.000000e+00 : f32
    %1112 = vector.broadcast %cst_430 : f32 to vector<2x7x128xf32>
    %1113 = arith.maximumf %1111, %1112 : vector<2x7x128xf32>
    %1114 = vector.extract_strided_slice %1113 {offsets = [0, 0, 0], sizes = [1, 7, 128], strides = [1, 1, 1]} : vector<2x7x128xf32> to vector<1x7x128xf32>
    %1115 = vector.shape_cast %1114 : vector<1x7x128xf32> to vector<7x128xf32>
    %c21 = arith.constant 21 : index
    %c0_431 = arith.constant 0 : index
    %1116 = vector.load %arg12[%c21, %c0_431] : memref<128x128xf32, #tpu.memory_space<vmem>>, vector<7x128xf32>
    tpu.vector_store %arg12[%c21, %c0_431], %1115 {strides = array<i32>} : memref<128x128xf32, #tpu.memory_space<vmem>>, vector<7x128xf32>,
    %1117 = vector.extract_strided_slice %1113 {offsets = [1, 0, 0], sizes = [1, 7, 128], strides = [1, 1, 1]} : vector<2x7x128xf32> to vector<1x7x128xf32>
    %1118 = vector.shape_cast %1117 : vector<1x7x128xf32> to vector<7x128xf32>
    %c77 = arith.constant 77 : index
    %c0_432 = arith.constant 0 : index
    %1119 = vector.load %arg12[%c77, %c0_432] : memref<128x128xf32, #tpu.memory_space<vmem>>, vector<7x128xf32>
    tpu.vector_store %arg12[%c77, %c0_432], %1118 {strides = array<i32>} : memref<128x128xf32, #tpu.memory_space<vmem>>, vector<7x128xf32>,
    %c0_433 = arith.constant 0 : index
    %c8_434 = arith.constant 8 : index
    %c0_435 = arith.constant 0 : index
    %c0_436 = arith.constant 0 : index
    %1120 = vector.load %arg1[%c0_433, %c8_434, %c0_435, %c0_436] : memref<2x16x8x1xf32, #tpu.memory_space<vmem>>, vector<2x1x8x1xf32>
    %1121 = vector.shape_cast %1120 : vector<2x1x8x1xf32> to vector<2x8x1xf32>
    %c0_437 = arith.constant 0 : index
    %c9_438 = arith.constant 9 : index
    %c0_439 = arith.constant 0 : index
    %c0_440 = arith.constant 0 : index
    %1122 = vector.load %arg1[%c0_437, %c9_438, %c0_439, %c0_440] : memref<2x16x8x1xf32, #tpu.memory_space<vmem>>, vector<2x1x8x1xf32>
    %1123 = vector.shape_cast %1122 : vector<2x1x8x1xf32> to vector<2x8x1xf32>
    %c0_441 = arith.constant 0 : index
    %c10 = arith.constant 10 : index
    %c0_442 = arith.constant 0 : index
    %c0_443 = arith.constant 0 : index
    %1124 = vector.load %arg1[%c0_441, %c10, %c0_442, %c0_443] : memref<2x16x8x1xf32, #tpu.memory_space<vmem>>, vector<2x1x8x1xf32>
    %1125 = vector.shape_cast %1124 : vector<2x1x8x1xf32> to vector<2x8x1xf32>
    %c0_444 = arith.constant 0 : index
    %c11 = arith.constant 11 : index
    %c0_445 = arith.constant 0 : index
    %c0_446 = arith.constant 0 : index
    %1126 = vector.load %arg1[%c0_444, %c11, %c0_445, %c0_446] : memref<2x16x8x1xf32, #tpu.memory_space<vmem>>, vector<2x1x8x1xf32>
    %1127 = vector.shape_cast %1126 : vector<2x1x8x1xf32> to vector<2x8x1xf32>
    %c0_447 = arith.constant 0 : index
    %c8_448 = arith.constant 8 : index
    %c0_449 = arith.constant 0 : index
    %c0_450 = arith.constant 0 : index
    %1128 = vector.load %arg2[%c0_447, %c8_448, %c0_449, %c0_450] : memref<2x16x8x1xf32, #tpu.memory_space<vmem>>, vector<2x1x8x1xf32>
    %1129 = vector.shape_cast %1128 : vector<2x1x8x1xf32> to vector<2x8x1xf32>
    %c0_451 = arith.constant 0 : index
    %c9_452 = arith.constant 9 : index
    %c0_453 = arith.constant 0 : index
    %c0_454 = arith.constant 0 : index
    %1130 = vector.load %arg2[%c0_451, %c9_452, %c0_453, %c0_454] : memref<2x16x8x1xf32, #tpu.memory_space<vmem>>, vector<2x1x8x1xf32>
    %1131 = vector.shape_cast %1130 : vector<2x1x8x1xf32> to vector<2x8x1xf32>
    %c0_455 = arith.constant 0 : index
    %c10_456 = arith.constant 10 : index
    %c0_457 = arith.constant 0 : index
    %c0_458 = arith.constant 0 : index
    %1132 = vector.load %arg2[%c0_455, %c10_456, %c0_457, %c0_458] : memref<2x16x8x1xf32, #tpu.memory_space<vmem>>, vector<2x1x8x1xf32>
    %1133 = vector.shape_cast %1132 : vector<2x1x8x1xf32> to vector<2x8x1xf32>
    %c0_459 = arith.constant 0 : index
    %c11_460 = arith.constant 11 : index
    %c0_461 = arith.constant 0 : index
    %c0_462 = arith.constant 0 : index
    %1134 = vector.load %arg2[%c0_459, %c11_460, %c0_461, %c0_462] : memref<2x16x8x1xf32, #tpu.memory_space<vmem>>, vector<2x1x8x1xf32>
    %1135 = vector.shape_cast %1134 : vector<2x1x8x1xf32> to vector<2x8x1xf32>
    %1136 = vector.extract_strided_slice %1121 {offsets = [0, 0, 0], sizes = [2, 7, 1], strides = [1, 1, 1]} : vector<2x8x1xf32> to vector<2x7x1xf32>
    %c0_463 = arith.constant 0 : index
    %c0_464 = arith.constant 0 : index
    %1137 = vector.load %arg3[%c0_463, %c0_464] : memref<9x128xf32, #tpu.memory_space<vmem>>, vector<1x128xf32>
    %1138 = vector.shape_cast %1137 : vector<1x128xf32> to vector<1x1x128xf32>
    %1139 = vector.broadcast %1136 : vector<2x7x1xf32> to vector<2x7x128xf32>
    %1140 = vector.broadcast %1138 : vector<1x1x128xf32> to vector<2x7x128xf32>
    %1141 = arith.mulf %1139, %1140 : vector<2x7x128xf32>
    %1142 = vector.extract_strided_slice %1129 {offsets = [0, 0, 0], sizes = [2, 7, 1], strides = [1, 1, 1]} : vector<2x8x1xf32> to vector<2x7x1xf32>
    %c1_465 = arith.constant 1 : index
    %c0_466 = arith.constant 0 : index
    %1143 = vector.load %arg3[%c1_465, %c0_466] : memref<9x128xf32, #tpu.memory_space<vmem>>, vector<1x128xf32>
    %1144 = vector.shape_cast %1143 : vector<1x128xf32> to vector<1x1x128xf32>
    %1145 = vector.broadcast %1142 : vector<2x7x1xf32> to vector<2x7x128xf32>
    %1146 = vector.broadcast %1144 : vector<1x1x128xf32> to vector<2x7x128xf32>
    %1147 = arith.mulf %1145, %1146 : vector<2x7x128xf32>
    %1148 = arith.addf %1141, %1147 : vector<2x7x128xf32>
    %1149 = vector.extract_strided_slice %1121 {offsets = [0, 1, 0], sizes = [2, 7, 1], strides = [1, 1, 1]} : vector<2x8x1xf32> to vector<2x7x1xf32>
    %c2_467 = arith.constant 2 : index
    %c0_468 = arith.constant 0 : index
    %1150 = vector.load %arg3[%c2_467, %c0_468] : memref<9x128xf32, #tpu.memory_space<vmem>>, vector<1x128xf32>
    %1151 = vector.shape_cast %1150 : vector<1x128xf32> to vector<1x1x128xf32>
    %1152 = vector.broadcast %1149 : vector<2x7x1xf32> to vector<2x7x128xf32>
    %1153 = vector.broadcast %1151 : vector<1x1x128xf32> to vector<2x7x128xf32>
    %1154 = arith.mulf %1152, %1153 : vector<2x7x128xf32>
    %1155 = arith.addf %1148, %1154 : vector<2x7x128xf32>
    %1156 = vector.extract_strided_slice %1123 {offsets = [0, 0, 0], sizes = [2, 7, 1], strides = [1, 1, 1]} : vector<2x8x1xf32> to vector<2x7x1xf32>
    %c3_469 = arith.constant 3 : index
    %c0_470 = arith.constant 0 : index
    %1157 = vector.load %arg3[%c3_469, %c0_470] : memref<9x128xf32, #tpu.memory_space<vmem>>, vector<1x128xf32>
    %1158 = vector.shape_cast %1157 : vector<1x128xf32> to vector<1x1x128xf32>
    %1159 = vector.broadcast %1156 : vector<2x7x1xf32> to vector<2x7x128xf32>
    %1160 = vector.broadcast %1158 : vector<1x1x128xf32> to vector<2x7x128xf32>
    %1161 = arith.mulf %1159, %1160 : vector<2x7x128xf32>
    %1162 = arith.addf %1155, %1161 : vector<2x7x128xf32>
    %1163 = vector.extract_strided_slice %1131 {offsets = [0, 0, 0], sizes = [2, 7, 1], strides = [1, 1, 1]} : vector<2x8x1xf32> to vector<2x7x1xf32>
    %c4_471 = arith.constant 4 : index
    %c0_472 = arith.constant 0 : index
    %1164 = vector.load %arg3[%c4_471, %c0_472] : memref<9x128xf32, #tpu.memory_space<vmem>>, vector<1x128xf32>
    %1165 = vector.shape_cast %1164 : vector<1x128xf32> to vector<1x1x128xf32>
    %1166 = vector.broadcast %1163 : vector<2x7x1xf32> to vector<2x7x128xf32>
    %1167 = vector.broadcast %1165 : vector<1x1x128xf32> to vector<2x7x128xf32>
    %1168 = arith.mulf %1166, %1167 : vector<2x7x128xf32>
    %1169 = arith.addf %1162, %1168 : vector<2x7x128xf32>
    %1170 = vector.extract_strided_slice %1123 {offsets = [0, 1, 0], sizes = [2, 7, 1], strides = [1, 1, 1]} : vector<2x8x1xf32> to vector<2x7x1xf32>
    %c5_473 = arith.constant 5 : index
    %c0_474 = arith.constant 0 : index
    %1171 = vector.load %arg3[%c5_473, %c0_474] : memref<9x128xf32, #tpu.memory_space<vmem>>, vector<1x128xf32>
    %1172 = vector.shape_cast %1171 : vector<1x128xf32> to vector<1x1x128xf32>
    %1173 = vector.broadcast %1170 : vector<2x7x1xf32> to vector<2x7x128xf32>
    %1174 = vector.broadcast %1172 : vector<1x1x128xf32> to vector<2x7x128xf32>
    %1175 = arith.mulf %1173, %1174 : vector<2x7x128xf32>
    %1176 = arith.addf %1169, %1175 : vector<2x7x128xf32>
    %1177 = vector.extract_strided_slice %1125 {offsets = [0, 0, 0], sizes = [2, 7, 1], strides = [1, 1, 1]} : vector<2x8x1xf32> to vector<2x7x1xf32>
    %c6_475 = arith.constant 6 : index
    %c0_476 = arith.constant 0 : index
    %1178 = vector.load %arg3[%c6_475, %c0_476] : memref<9x128xf32, #tpu.memory_space<vmem>>, vector<1x128xf32>
    %1179 = vector.shape_cast %1178 : vector<1x128xf32> to vector<1x1x128xf32>
    %1180 = vector.broadcast %1177 : vector<2x7x1xf32> to vector<2x7x128xf32>
    %1181 = vector.broadcast %1179 : vector<1x1x128xf32> to vector<2x7x128xf32>
    %1182 = arith.mulf %1180, %1181 : vector<2x7x128xf32>
    %1183 = arith.addf %1176, %1182 : vector<2x7x128xf32>
    %1184 = vector.extract_strided_slice %1133 {offsets = [0, 0, 0], sizes = [2, 7, 1], strides = [1, 1, 1]} : vector<2x8x1xf32> to vector<2x7x1xf32>
    %c7_477 = arith.constant 7 : index
    %c0_478 = arith.constant 0 : index
    %1185 = vector.load %arg3[%c7_477, %c0_478] : memref<9x128xf32, #tpu.memory_space<vmem>>, vector<1x128xf32>
    %1186 = vector.shape_cast %1185 : vector<1x128xf32> to vector<1x1x128xf32>
    %1187 = vector.broadcast %1184 : vector<2x7x1xf32> to vector<2x7x128xf32>
    %1188 = vector.broadcast %1186 : vector<1x1x128xf32> to vector<2x7x128xf32>
    %1189 = arith.mulf %1187, %1188 : vector<2x7x128xf32>
    %1190 = arith.addf %1183, %1189 : vector<2x7x128xf32>
    %1191 = vector.extract_strided_slice %1125 {offsets = [0, 1, 0], sizes = [2, 7, 1], strides = [1, 1, 1]} : vector<2x8x1xf32> to vector<2x7x1xf32>
    %c8_479 = arith.constant 8 : index
    %c0_480 = arith.constant 0 : index
    %1192 = vector.load %arg3[%c8_479, %c0_480] : memref<9x128xf32, #tpu.memory_space<vmem>>, vector<1x128xf32>
    %1193 = vector.shape_cast %1192 : vector<1x128xf32> to vector<1x1x128xf32>
    %1194 = vector.broadcast %1191 : vector<2x7x1xf32> to vector<2x7x128xf32>
    %1195 = vector.broadcast %1193 : vector<1x1x128xf32> to vector<2x7x128xf32>
    %1196 = arith.mulf %1194, %1195 : vector<2x7x128xf32>
    %1197 = arith.addf %1190, %1196 : vector<2x7x128xf32>
    %1198 = vector.extract_strided_slice %1129 {offsets = [0, 0, 0], sizes = [2, 7, 1], strides = [1, 1, 1]} : vector<2x8x1xf32> to vector<2x7x1xf32>
    %c0_481 = arith.constant 0 : index
    %c0_482 = arith.constant 0 : index
    %1199 = vector.load %arg3[%c0_481, %c0_482] : memref<9x128xf32, #tpu.memory_space<vmem>>, vector<1x128xf32>
    %1200 = vector.shape_cast %1199 : vector<1x128xf32> to vector<1x1x128xf32>
    %1201 = vector.broadcast %1198 : vector<2x7x1xf32> to vector<2x7x128xf32>
    %1202 = vector.broadcast %1200 : vector<1x1x128xf32> to vector<2x7x128xf32>
    %1203 = arith.mulf %1201, %1202 : vector<2x7x128xf32>
    %1204 = vector.extract_strided_slice %1121 {offsets = [0, 1, 0], sizes = [2, 7, 1], strides = [1, 1, 1]} : vector<2x8x1xf32> to vector<2x7x1xf32>
    %c1_483 = arith.constant 1 : index
    %c0_484 = arith.constant 0 : index
    %1205 = vector.load %arg3[%c1_483, %c0_484] : memref<9x128xf32, #tpu.memory_space<vmem>>, vector<1x128xf32>
    %1206 = vector.shape_cast %1205 : vector<1x128xf32> to vector<1x1x128xf32>
    %1207 = vector.broadcast %1204 : vector<2x7x1xf32> to vector<2x7x128xf32>
    %1208 = vector.broadcast %1206 : vector<1x1x128xf32> to vector<2x7x128xf32>
    %1209 = arith.mulf %1207, %1208 : vector<2x7x128xf32>
    %1210 = arith.addf %1203, %1209 : vector<2x7x128xf32>
    %1211 = vector.extract_strided_slice %1129 {offsets = [0, 1, 0], sizes = [2, 7, 1], strides = [1, 1, 1]} : vector<2x8x1xf32> to vector<2x7x1xf32>
    %c2_485 = arith.constant 2 : index
    %c0_486 = arith.constant 0 : index
    %1212 = vector.load %arg3[%c2_485, %c0_486] : memref<9x128xf32, #tpu.memory_space<vmem>>, vector<1x128xf32>
    %1213 = vector.shape_cast %1212 : vector<1x128xf32> to vector<1x1x128xf32>
    %1214 = vector.broadcast %1211 : vector<2x7x1xf32> to vector<2x7x128xf32>
    %1215 = vector.broadcast %1213 : vector<1x1x128xf32> to vector<2x7x128xf32>
    %1216 = arith.mulf %1214, %1215 : vector<2x7x128xf32>
    %1217 = arith.addf %1210, %1216 : vector<2x7x128xf32>
    %1218 = vector.extract_strided_slice %1131 {offsets = [0, 0, 0], sizes = [2, 7, 1], strides = [1, 1, 1]} : vector<2x8x1xf32> to vector<2x7x1xf32>
    %c3_487 = arith.constant 3 : index
    %c0_488 = arith.constant 0 : index
    %1219 = vector.load %arg3[%c3_487, %c0_488] : memref<9x128xf32, #tpu.memory_space<vmem>>, vector<1x128xf32>
    %1220 = vector.shape_cast %1219 : vector<1x128xf32> to vector<1x1x128xf32>
    %1221 = vector.broadcast %1218 : vector<2x7x1xf32> to vector<2x7x128xf32>
    %1222 = vector.broadcast %1220 : vector<1x1x128xf32> to vector<2x7x128xf32>
    %1223 = arith.mulf %1221, %1222 : vector<2x7x128xf32>
    %1224 = arith.addf %1217, %1223 : vector<2x7x128xf32>
    %1225 = vector.extract_strided_slice %1123 {offsets = [0, 1, 0], sizes = [2, 7, 1], strides = [1, 1, 1]} : vector<2x8x1xf32> to vector<2x7x1xf32>
    %c4_489 = arith.constant 4 : index
    %c0_490 = arith.constant 0 : index
    %1226 = vector.load %arg3[%c4_489, %c0_490] : memref<9x128xf32, #tpu.memory_space<vmem>>, vector<1x128xf32>
    %1227 = vector.shape_cast %1226 : vector<1x128xf32> to vector<1x1x128xf32>
    %1228 = vector.broadcast %1225 : vector<2x7x1xf32> to vector<2x7x128xf32>
    %1229 = vector.broadcast %1227 : vector<1x1x128xf32> to vector<2x7x128xf32>
    %1230 = arith.mulf %1228, %1229 : vector<2x7x128xf32>
    %1231 = arith.addf %1224, %1230 : vector<2x7x128xf32>
    %1232 = vector.extract_strided_slice %1131 {offsets = [0, 1, 0], sizes = [2, 7, 1], strides = [1, 1, 1]} : vector<2x8x1xf32> to vector<2x7x1xf32>
    %c5_491 = arith.constant 5 : index
    %c0_492 = arith.constant 0 : index
    %1233 = vector.load %arg3[%c5_491, %c0_492] : memref<9x128xf32, #tpu.memory_space<vmem>>, vector<1x128xf32>
    %1234 = vector.shape_cast %1233 : vector<1x128xf32> to vector<1x1x128xf32>
    %1235 = vector.broadcast %1232 : vector<2x7x1xf32> to vector<2x7x128xf32>
    %1236 = vector.broadcast %1234 : vector<1x1x128xf32> to vector<2x7x128xf32>
    %1237 = arith.mulf %1235, %1236 : vector<2x7x128xf32>
    %1238 = arith.addf %1231, %1237 : vector<2x7x128xf32>
    %1239 = vector.extract_strided_slice %1133 {offsets = [0, 0, 0], sizes = [2, 7, 1], strides = [1, 1, 1]} : vector<2x8x1xf32> to vector<2x7x1xf32>
    %c6_493 = arith.constant 6 : index
    %c0_494 = arith.constant 0 : index
    %1240 = vector.load %arg3[%c6_493, %c0_494] : memref<9x128xf32, #tpu.memory_space<vmem>>, vector<1x128xf32>
    %1241 = vector.shape_cast %1240 : vector<1x128xf32> to vector<1x1x128xf32>
    %1242 = vector.broadcast %1239 : vector<2x7x1xf32> to vector<2x7x128xf32>
    %1243 = vector.broadcast %1241 : vector<1x1x128xf32> to vector<2x7x128xf32>
    %1244 = arith.mulf %1242, %1243 : vector<2x7x128xf32>
    %1245 = arith.addf %1238, %1244 : vector<2x7x128xf32>
    %1246 = vector.extract_strided_slice %1125 {offsets = [0, 1, 0], sizes = [2, 7, 1], strides = [1, 1, 1]} : vector<2x8x1xf32> to vector<2x7x1xf32>
    %c7_495 = arith.constant 7 : index
    %c0_496 = arith.constant 0 : index
    %1247 = vector.load %arg3[%c7_495, %c0_496] : memref<9x128xf32, #tpu.memory_space<vmem>>, vector<1x128xf32>
    %1248 = vector.shape_cast %1247 : vector<1x128xf32> to vector<1x1x128xf32>
    %1249 = vector.broadcast %1246 : vector<2x7x1xf32> to vector<2x7x128xf32>
    %1250 = vector.broadcast %1248 : vector<1x1x128xf32> to vector<2x7x128xf32>
    %1251 = arith.mulf %1249, %1250 : vector<2x7x128xf32>
    %1252 = arith.addf %1245, %1251 : vector<2x7x128xf32>
    %1253 = vector.extract_strided_slice %1133 {offsets = [0, 1, 0], sizes = [2, 7, 1], strides = [1, 1, 1]} : vector<2x8x1xf32> to vector<2x7x1xf32>
    %c8_497 = arith.constant 8 : index
    %c0_498 = arith.constant 0 : index
    %1254 = vector.load %arg3[%c8_497, %c0_498] : memref<9x128xf32, #tpu.memory_space<vmem>>, vector<1x128xf32>
    %1255 = vector.shape_cast %1254 : vector<1x128xf32> to vector<1x1x128xf32>
    %1256 = vector.broadcast %1253 : vector<2x7x1xf32> to vector<2x7x128xf32>
    %1257 = vector.broadcast %1255 : vector<1x1x128xf32> to vector<2x7x128xf32>
    %1258 = arith.mulf %1256, %1257 : vector<2x7x128xf32>
    %1259 = arith.addf %1252, %1258 : vector<2x7x128xf32>
    %1260 = vector.extract_strided_slice %1123 {offsets = [0, 0, 0], sizes = [2, 7, 1], strides = [1, 1, 1]} : vector<2x8x1xf32> to vector<2x7x1xf32>
    %c0_499 = arith.constant 0 : index
    %c0_500 = arith.constant 0 : index
    %1261 = vector.load %arg3[%c0_499, %c0_500] : memref<9x128xf32, #tpu.memory_space<vmem>>, vector<1x128xf32>
    %1262 = vector.shape_cast %1261 : vector<1x128xf32> to vector<1x1x128xf32>
    %1263 = vector.broadcast %1260 : vector<2x7x1xf32> to vector<2x7x128xf32>
    %1264 = vector.broadcast %1262 : vector<1x1x128xf32> to vector<2x7x128xf32>
    %1265 = arith.mulf %1263, %1264 : vector<2x7x128xf32>
    %1266 = vector.extract_strided_slice %1131 {offsets = [0, 0, 0], sizes = [2, 7, 1], strides = [1, 1, 1]} : vector<2x8x1xf32> to vector<2x7x1xf32>
    %c1_501 = arith.constant 1 : index
    %c0_502 = arith.constant 0 : index
    %1267 = vector.load %arg3[%c1_501, %c0_502] : memref<9x128xf32, #tpu.memory_space<vmem>>, vector<1x128xf32>
    %1268 = vector.shape_cast %1267 : vector<1x128xf32> to vector<1x1x128xf32>
    %1269 = vector.broadcast %1266 : vector<2x7x1xf32> to vector<2x7x128xf32>
    %1270 = vector.broadcast %1268 : vector<1x1x128xf32> to vector<2x7x128xf32>
    %1271 = arith.mulf %1269, %1270 : vector<2x7x128xf32>
    %1272 = arith.addf %1265, %1271 : vector<2x7x128xf32>
    %1273 = vector.extract_strided_slice %1123 {offsets = [0, 1, 0], sizes = [2, 7, 1], strides = [1, 1, 1]} : vector<2x8x1xf32> to vector<2x7x1xf32>
    %c2_503 = arith.constant 2 : index
    %c0_504 = arith.constant 0 : index
    %1274 = vector.load %arg3[%c2_503, %c0_504] : memref<9x128xf32, #tpu.memory_space<vmem>>, vector<1x128xf32>
    %1275 = vector.shape_cast %1274 : vector<1x128xf32> to vector<1x1x128xf32>
    %1276 = vector.broadcast %1273 : vector<2x7x1xf32> to vector<2x7x128xf32>
    %1277 = vector.broadcast %1275 : vector<1x1x128xf32> to vector<2x7x128xf32>
    %1278 = arith.mulf %1276, %1277 : vector<2x7x128xf32>
    %1279 = arith.addf %1272, %1278 : vector<2x7x128xf32>
    %1280 = vector.extract_strided_slice %1125 {offsets = [0, 0, 0], sizes = [2, 7, 1], strides = [1, 1, 1]} : vector<2x8x1xf32> to vector<2x7x1xf32>
    %c3_505 = arith.constant 3 : index
    %c0_506 = arith.constant 0 : index
    %1281 = vector.load %arg3[%c3_505, %c0_506] : memref<9x128xf32, #tpu.memory_space<vmem>>, vector<1x128xf32>
    %1282 = vector.shape_cast %1281 : vector<1x128xf32> to vector<1x1x128xf32>
    %1283 = vector.broadcast %1280 : vector<2x7x1xf32> to vector<2x7x128xf32>
    %1284 = vector.broadcast %1282 : vector<1x1x128xf32> to vector<2x7x128xf32>
    %1285 = arith.mulf %1283, %1284 : vector<2x7x128xf32>
    %1286 = arith.addf %1279, %1285 : vector<2x7x128xf32>
    %1287 = vector.extract_strided_slice %1133 {offsets = [0, 0, 0], sizes = [2, 7, 1], strides = [1, 1, 1]} : vector<2x8x1xf32> to vector<2x7x1xf32>
    %c4_507 = arith.constant 4 : index
    %c0_508 = arith.constant 0 : index
    %1288 = vector.load %arg3[%c4_507, %c0_508] : memref<9x128xf32, #tpu.memory_space<vmem>>, vector<1x128xf32>
    %1289 = vector.shape_cast %1288 : vector<1x128xf32> to vector<1x1x128xf32>
    %1290 = vector.broadcast %1287 : vector<2x7x1xf32> to vector<2x7x128xf32>
    %1291 = vector.broadcast %1289 : vector<1x1x128xf32> to vector<2x7x128xf32>
    %1292 = arith.mulf %1290, %1291 : vector<2x7x128xf32>
    %1293 = arith.addf %1286, %1292 : vector<2x7x128xf32>
    %1294 = vector.extract_strided_slice %1125 {offsets = [0, 1, 0], sizes = [2, 7, 1], strides = [1, 1, 1]} : vector<2x8x1xf32> to vector<2x7x1xf32>
    %c5_509 = arith.constant 5 : index
    %c0_510 = arith.constant 0 : index
    %1295 = vector.load %arg3[%c5_509, %c0_510] : memref<9x128xf32, #tpu.memory_space<vmem>>, vector<1x128xf32>
    %1296 = vector.shape_cast %1295 : vector<1x128xf32> to vector<1x1x128xf32>
    %1297 = vector.broadcast %1294 : vector<2x7x1xf32> to vector<2x7x128xf32>
    %1298 = vector.broadcast %1296 : vector<1x1x128xf32> to vector<2x7x128xf32>
    %1299 = arith.mulf %1297, %1298 : vector<2x7x128xf32>
    %1300 = arith.addf %1293, %1299 : vector<2x7x128xf32>
    %1301 = vector.extract_strided_slice %1127 {offsets = [0, 0, 0], sizes = [2, 7, 1], strides = [1, 1, 1]} : vector<2x8x1xf32> to vector<2x7x1xf32>
    %c6_511 = arith.constant 6 : index
    %c0_512 = arith.constant 0 : index
    %1302 = vector.load %arg3[%c6_511, %c0_512] : memref<9x128xf32, #tpu.memory_space<vmem>>, vector<1x128xf32>
    %1303 = vector.shape_cast %1302 : vector<1x128xf32> to vector<1x1x128xf32>
    %1304 = vector.broadcast %1301 : vector<2x7x1xf32> to vector<2x7x128xf32>
    %1305 = vector.broadcast %1303 : vector<1x1x128xf32> to vector<2x7x128xf32>
    %1306 = arith.mulf %1304, %1305 : vector<2x7x128xf32>
    %1307 = arith.addf %1300, %1306 : vector<2x7x128xf32>
    %1308 = vector.extract_strided_slice %1135 {offsets = [0, 0, 0], sizes = [2, 7, 1], strides = [1, 1, 1]} : vector<2x8x1xf32> to vector<2x7x1xf32>
    %c7_513 = arith.constant 7 : index
    %c0_514 = arith.constant 0 : index
    %1309 = vector.load %arg3[%c7_513, %c0_514] : memref<9x128xf32, #tpu.memory_space<vmem>>, vector<1x128xf32>
    %1310 = vector.shape_cast %1309 : vector<1x128xf32> to vector<1x1x128xf32>
    %1311 = vector.broadcast %1308 : vector<2x7x1xf32> to vector<2x7x128xf32>
    %1312 = vector.broadcast %1310 : vector<1x1x128xf32> to vector<2x7x128xf32>
    %1313 = arith.mulf %1311, %1312 : vector<2x7x128xf32>
    %1314 = arith.addf %1307, %1313 : vector<2x7x128xf32>
    %1315 = vector.extract_strided_slice %1127 {offsets = [0, 1, 0], sizes = [2, 7, 1], strides = [1, 1, 1]} : vector<2x8x1xf32> to vector<2x7x1xf32>
    %c8_515 = arith.constant 8 : index
    %c0_516 = arith.constant 0 : index
    %1316 = vector.load %arg3[%c8_515, %c0_516] : memref<9x128xf32, #tpu.memory_space<vmem>>, vector<1x128xf32>
    %1317 = vector.shape_cast %1316 : vector<1x128xf32> to vector<1x1x128xf32>
    %1318 = vector.broadcast %1315 : vector<2x7x1xf32> to vector<2x7x128xf32>
    %1319 = vector.broadcast %1317 : vector<1x1x128xf32> to vector<2x7x128xf32>
    %1320 = arith.mulf %1318, %1319 : vector<2x7x128xf32>
    %1321 = arith.addf %1314, %1320 : vector<2x7x128xf32>
    %1322 = vector.extract_strided_slice %1131 {offsets = [0, 0, 0], sizes = [2, 7, 1], strides = [1, 1, 1]} : vector<2x8x1xf32> to vector<2x7x1xf32>
    %c0_517 = arith.constant 0 : index
    %c0_518 = arith.constant 0 : index
    %1323 = vector.load %arg3[%c0_517, %c0_518] : memref<9x128xf32, #tpu.memory_space<vmem>>, vector<1x128xf32>
    %1324 = vector.shape_cast %1323 : vector<1x128xf32> to vector<1x1x128xf32>
    %1325 = vector.broadcast %1322 : vector<2x7x1xf32> to vector<2x7x128xf32>
    %1326 = vector.broadcast %1324 : vector<1x1x128xf32> to vector<2x7x128xf32>
    %1327 = arith.mulf %1325, %1326 : vector<2x7x128xf32>
    %1328 = vector.extract_strided_slice %1123 {offsets = [0, 1, 0], sizes = [2, 7, 1], strides = [1, 1, 1]} : vector<2x8x1xf32> to vector<2x7x1xf32>
    %c1_519 = arith.constant 1 : index
    %c0_520 = arith.constant 0 : index
    %1329 = vector.load %arg3[%c1_519, %c0_520] : memref<9x128xf32, #tpu.memory_space<vmem>>, vector<1x128xf32>
    %1330 = vector.shape_cast %1329 : vector<1x128xf32> to vector<1x1x128xf32>
    %1331 = vector.broadcast %1328 : vector<2x7x1xf32> to vector<2x7x128xf32>
    %1332 = vector.broadcast %1330 : vector<1x1x128xf32> to vector<2x7x128xf32>
    %1333 = arith.mulf %1331, %1332 : vector<2x7x128xf32>
    %1334 = arith.addf %1327, %1333 : vector<2x7x128xf32>
    %1335 = vector.extract_strided_slice %1131 {offsets = [0, 1, 0], sizes = [2, 7, 1], strides = [1, 1, 1]} : vector<2x8x1xf32> to vector<2x7x1xf32>
    %c2_521 = arith.constant 2 : index
    %c0_522 = arith.constant 0 : index
    %1336 = vector.load %arg3[%c2_521, %c0_522] : memref<9x128xf32, #tpu.memory_space<vmem>>, vector<1x128xf32>
    %1337 = vector.shape_cast %1336 : vector<1x128xf32> to vector<1x1x128xf32>
    %1338 = vector.broadcast %1335 : vector<2x7x1xf32> to vector<2x7x128xf32>
    %1339 = vector.broadcast %1337 : vector<1x1x128xf32> to vector<2x7x128xf32>
    %1340 = arith.mulf %1338, %1339 : vector<2x7x128xf32>
    %1341 = arith.addf %1334, %1340 : vector<2x7x128xf32>
    %1342 = vector.extract_strided_slice %1133 {offsets = [0, 0, 0], sizes = [2, 7, 1], strides = [1, 1, 1]} : vector<2x8x1xf32> to vector<2x7x1xf32>
    %c3_523 = arith.constant 3 : index
    %c0_524 = arith.constant 0 : index
    %1343 = vector.load %arg3[%c3_523, %c0_524] : memref<9x128xf32, #tpu.memory_space<vmem>>, vector<1x128xf32>
    %1344 = vector.shape_cast %1343 : vector<1x128xf32> to vector<1x1x128xf32>
    %1345 = vector.broadcast %1342 : vector<2x7x1xf32> to vector<2x7x128xf32>
    %1346 = vector.broadcast %1344 : vector<1x1x128xf32> to vector<2x7x128xf32>
    %1347 = arith.mulf %1345, %1346 : vector<2x7x128xf32>
    %1348 = arith.addf %1341, %1347 : vector<2x7x128xf32>
    %1349 = vector.extract_strided_slice %1125 {offsets = [0, 1, 0], sizes = [2, 7, 1], strides = [1, 1, 1]} : vector<2x8x1xf32> to vector<2x7x1xf32>
    %c4_525 = arith.constant 4 : index
    %c0_526 = arith.constant 0 : index
    %1350 = vector.load %arg3[%c4_525, %c0_526] : memref<9x128xf32, #tpu.memory_space<vmem>>, vector<1x128xf32>
    %1351 = vector.shape_cast %1350 : vector<1x128xf32> to vector<1x1x128xf32>
    %1352 = vector.broadcast %1349 : vector<2x7x1xf32> to vector<2x7x128xf32>
    %1353 = vector.broadcast %1351 : vector<1x1x128xf32> to vector<2x7x128xf32>
    %1354 = arith.mulf %1352, %1353 : vector<2x7x128xf32>
    %1355 = arith.addf %1348, %1354 : vector<2x7x128xf32>
    %1356 = vector.extract_strided_slice %1133 {offsets = [0, 1, 0], sizes = [2, 7, 1], strides = [1, 1, 1]} : vector<2x8x1xf32> to vector<2x7x1xf32>
    %c5_527 = arith.constant 5 : index
    %c0_528 = arith.constant 0 : index
    %1357 = vector.load %arg3[%c5_527, %c0_528] : memref<9x128xf32, #tpu.memory_space<vmem>>, vector<1x128xf32>
    %1358 = vector.shape_cast %1357 : vector<1x128xf32> to vector<1x1x128xf32>
    %1359 = vector.broadcast %1356 : vector<2x7x1xf32> to vector<2x7x128xf32>
    %1360 = vector.broadcast %1358 : vector<1x1x128xf32> to vector<2x7x128xf32>
    %1361 = arith.mulf %1359, %1360 : vector<2x7x128xf32>
    %1362 = arith.addf %1355, %1361 : vector<2x7x128xf32>
    %1363 = vector.extract_strided_slice %1135 {offsets = [0, 0, 0], sizes = [2, 7, 1], strides = [1, 1, 1]} : vector<2x8x1xf32> to vector<2x7x1xf32>
    %c6_529 = arith.constant 6 : index
    %c0_530 = arith.constant 0 : index
    %1364 = vector.load %arg3[%c6_529, %c0_530] : memref<9x128xf32, #tpu.memory_space<vmem>>, vector<1x128xf32>
    %1365 = vector.shape_cast %1364 : vector<1x128xf32> to vector<1x1x128xf32>
    %1366 = vector.broadcast %1363 : vector<2x7x1xf32> to vector<2x7x128xf32>
    %1367 = vector.broadcast %1365 : vector<1x1x128xf32> to vector<2x7x128xf32>
    %1368 = arith.mulf %1366, %1367 : vector<2x7x128xf32>
    %1369 = arith.addf %1362, %1368 : vector<2x7x128xf32>
    %1370 = vector.extract_strided_slice %1127 {offsets = [0, 1, 0], sizes = [2, 7, 1], strides = [1, 1, 1]} : vector<2x8x1xf32> to vector<2x7x1xf32>
    %c7_531 = arith.constant 7 : index
    %c0_532 = arith.constant 0 : index
    %1371 = vector.load %arg3[%c7_531, %c0_532] : memref<9x128xf32, #tpu.memory_space<vmem>>, vector<1x128xf32>
    %1372 = vector.shape_cast %1371 : vector<1x128xf32> to vector<1x1x128xf32>
    %1373 = vector.broadcast %1370 : vector<2x7x1xf32> to vector<2x7x128xf32>
    %1374 = vector.broadcast %1372 : vector<1x1x128xf32> to vector<2x7x128xf32>
    %1375 = arith.mulf %1373, %1374 : vector<2x7x128xf32>
    %1376 = arith.addf %1369, %1375 : vector<2x7x128xf32>
    %1377 = vector.extract_strided_slice %1135 {offsets = [0, 1, 0], sizes = [2, 7, 1], strides = [1, 1, 1]} : vector<2x8x1xf32> to vector<2x7x1xf32>
    %c8_533 = arith.constant 8 : index
    %c0_534 = arith.constant 0 : index
    %1378 = vector.load %arg3[%c8_533, %c0_534] : memref<9x128xf32, #tpu.memory_space<vmem>>, vector<1x128xf32>
    %1379 = vector.shape_cast %1378 : vector<1x128xf32> to vector<1x1x128xf32>
    %1380 = vector.broadcast %1377 : vector<2x7x1xf32> to vector<2x7x128xf32>
    %1381 = vector.broadcast %1379 : vector<1x1x128xf32> to vector<2x7x128xf32>
    %1382 = arith.mulf %1380, %1381 : vector<2x7x128xf32>
    %1383 = arith.addf %1376, %1382 : vector<2x7x128xf32>
    %1384 = arith.maximumf %1197, %1259 : vector<2x7x128xf32>
    %1385 = arith.maximumf %1321, %1383 : vector<2x7x128xf32>
    %1386 = arith.maximumf %1384, %1385 : vector<2x7x128xf32>
    %c0_535 = arith.constant 0 : index
    %c0_536 = arith.constant 0 : index
    %1387 = vector.load %arg4[%c0_535, %c0_536] : memref<1x128xf32, #tpu.memory_space<vmem>>, vector<1x128xf32>
    %1388 = vector.shape_cast %1387 : vector<1x128xf32> to vector<1x1x128xf32>
    %1389 = vector.broadcast %1388 : vector<1x1x128xf32> to vector<2x7x128xf32>
    %1390 = arith.addf %1386, %1389 : vector<2x7x128xf32>
    %cst_537 = arith.constant 0.000000e+00 : f32
    %1391 = vector.broadcast %cst_537 : f32 to vector<2x7x128xf32>
    %1392 = arith.maximumf %1390, %1391 : vector<2x7x128xf32>
    %1393 = vector.extract_strided_slice %1392 {offsets = [0, 0, 0], sizes = [1, 7, 128], strides = [1, 1, 1]} : vector<2x7x128xf32> to vector<1x7x128xf32>
    %1394 = vector.shape_cast %1393 : vector<1x7x128xf32> to vector<7x128xf32>
    %c28 = arith.constant 28 : index
    %c0_538 = arith.constant 0 : index
    %1395 = vector.load %arg12[%c28, %c0_538] : memref<128x128xf32, #tpu.memory_space<vmem>>, vector<7x128xf32>
    tpu.vector_store %arg12[%c28, %c0_538], %1394 {strides = array<i32>} : memref<128x128xf32, #tpu.memory_space<vmem>>, vector<7x128xf32>,
    %1396 = vector.extract_strided_slice %1392 {offsets = [1, 0, 0], sizes = [1, 7, 128], strides = [1, 1, 1]} : vector<2x7x128xf32> to vector<1x7x128xf32>
    %1397 = vector.shape_cast %1396 : vector<1x7x128xf32> to vector<7x128xf32>
    %c84 = arith.constant 84 : index
    %c0_539 = arith.constant 0 : index
    %1398 = vector.load %arg12[%c84, %c0_539] : memref<128x128xf32, #tpu.memory_space<vmem>>, vector<7x128xf32>
    tpu.vector_store %arg12[%c84, %c0_539], %1397 {strides = array<i32>} : memref<128x128xf32, #tpu.memory_space<vmem>>, vector<7x128xf32>,
    %c0_540 = arith.constant 0 : index
    %c10_541 = arith.constant 10 : index
    %c0_542 = arith.constant 0 : index
    %c0_543 = arith.constant 0 : index
    %1399 = vector.load %arg1[%c0_540, %c10_541, %c0_542, %c0_543] : memref<2x16x8x1xf32, #tpu.memory_space<vmem>>, vector<2x1x8x1xf32>
    %1400 = vector.shape_cast %1399 : vector<2x1x8x1xf32> to vector<2x8x1xf32>
    %c0_544 = arith.constant 0 : index
    %c11_545 = arith.constant 11 : index
    %c0_546 = arith.constant 0 : index
    %c0_547 = arith.constant 0 : index
    %1401 = vector.load %arg1[%c0_544, %c11_545, %c0_546, %c0_547] : memref<2x16x8x1xf32, #tpu.memory_space<vmem>>, vector<2x1x8x1xf32>
    %1402 = vector.shape_cast %1401 : vector<2x1x8x1xf32> to vector<2x8x1xf32>
    %c0_548 = arith.constant 0 : index
    %c12 = arith.constant 12 : index
    %c0_549 = arith.constant 0 : index
    %c0_550 = arith.constant 0 : index
    %1403 = vector.load %arg1[%c0_548, %c12, %c0_549, %c0_550] : memref<2x16x8x1xf32, #tpu.memory_space<vmem>>, vector<2x1x8x1xf32>
    %1404 = vector.shape_cast %1403 : vector<2x1x8x1xf32> to vector<2x8x1xf32>
    %c0_551 = arith.constant 0 : index
    %c13 = arith.constant 13 : index
    %c0_552 = arith.constant 0 : index
    %c0_553 = arith.constant 0 : index
    %1405 = vector.load %arg1[%c0_551, %c13, %c0_552, %c0_553] : memref<2x16x8x1xf32, #tpu.memory_space<vmem>>, vector<2x1x8x1xf32>
    %1406 = vector.shape_cast %1405 : vector<2x1x8x1xf32> to vector<2x8x1xf32>
    %c0_554 = arith.constant 0 : index
    %c10_555 = arith.constant 10 : index
    %c0_556 = arith.constant 0 : index
    %c0_557 = arith.constant 0 : index
    %1407 = vector.load %arg2[%c0_554, %c10_555, %c0_556, %c0_557] : memref<2x16x8x1xf32, #tpu.memory_space<vmem>>, vector<2x1x8x1xf32>
    %1408 = vector.shape_cast %1407 : vector<2x1x8x1xf32> to vector<2x8x1xf32>
    %c0_558 = arith.constant 0 : index
    %c11_559 = arith.constant 11 : index
    %c0_560 = arith.constant 0 : index
    %c0_561 = arith.constant 0 : index
    %1409 = vector.load %arg2[%c0_558, %c11_559, %c0_560, %c0_561] : memref<2x16x8x1xf32, #tpu.memory_space<vmem>>, vector<2x1x8x1xf32>
    %1410 = vector.shape_cast %1409 : vector<2x1x8x1xf32> to vector<2x8x1xf32>
    %c0_562 = arith.constant 0 : index
    %c12_563 = arith.constant 12 : index
    %c0_564 = arith.constant 0 : index
    %c0_565 = arith.constant 0 : index
    %1411 = vector.load %arg2[%c0_562, %c12_563, %c0_564, %c0_565] : memref<2x16x8x1xf32, #tpu.memory_space<vmem>>, vector<2x1x8x1xf32>
    %1412 = vector.shape_cast %1411 : vector<2x1x8x1xf32> to vector<2x8x1xf32>
    %c0_566 = arith.constant 0 : index
    %c13_567 = arith.constant 13 : index
    %c0_568 = arith.constant 0 : index
    %c0_569 = arith.constant 0 : index
    %1413 = vector.load %arg2[%c0_566, %c13_567, %c0_568, %c0_569] : memref<2x16x8x1xf32, #tpu.memory_space<vmem>>, vector<2x1x8x1xf32>
    %1414 = vector.shape_cast %1413 : vector<2x1x8x1xf32> to vector<2x8x1xf32>
    %1415 = vector.extract_strided_slice %1400 {offsets = [0, 0, 0], sizes = [2, 7, 1], strides = [1, 1, 1]} : vector<2x8x1xf32> to vector<2x7x1xf32>
    %c0_570 = arith.constant 0 : index
    %c0_571 = arith.constant 0 : index
    %1416 = vector.load %arg3[%c0_570, %c0_571] : memref<9x128xf32, #tpu.memory_space<vmem>>, vector<1x128xf32>
    %1417 = vector.shape_cast %1416 : vector<1x128xf32> to vector<1x1x128xf32>
    %1418 = vector.broadcast %1415 : vector<2x7x1xf32> to vector<2x7x128xf32>
    %1419 = vector.broadcast %1417 : vector<1x1x128xf32> to vector<2x7x128xf32>
    %1420 = arith.mulf %1418, %1419 : vector<2x7x128xf32>
    %1421 = vector.extract_strided_slice %1408 {offsets = [0, 0, 0], sizes = [2, 7, 1], strides = [1, 1, 1]} : vector<2x8x1xf32> to vector<2x7x1xf32>
    %c1_572 = arith.constant 1 : index
    %c0_573 = arith.constant 0 : index
    %1422 = vector.load %arg3[%c1_572, %c0_573] : memref<9x128xf32, #tpu.memory_space<vmem>>, vector<1x128xf32>
    %1423 = vector.shape_cast %1422 : vector<1x128xf32> to vector<1x1x128xf32>
    %1424 = vector.broadcast %1421 : vector<2x7x1xf32> to vector<2x7x128xf32>
    %1425 = vector.broadcast %1423 : vector<1x1x128xf32> to vector<2x7x128xf32>
    %1426 = arith.mulf %1424, %1425 : vector<2x7x128xf32>
    %1427 = arith.addf %1420, %1426 : vector<2x7x128xf32>
    %1428 = vector.extract_strided_slice %1400 {offsets = [0, 1, 0], sizes = [2, 7, 1], strides = [1, 1, 1]} : vector<2x8x1xf32> to vector<2x7x1xf32>
    %c2_574 = arith.constant 2 : index
    %c0_575 = arith.constant 0 : index
    %1429 = vector.load %arg3[%c2_574, %c0_575] : memref<9x128xf32, #tpu.memory_space<vmem>>, vector<1x128xf32>
    %1430 = vector.shape_cast %1429 : vector<1x128xf32> to vector<1x1x128xf32>
    %1431 = vector.broadcast %1428 : vector<2x7x1xf32> to vector<2x7x128xf32>
    %1432 = vector.broadcast %1430 : vector<1x1x128xf32> to vector<2x7x128xf32>
    %1433 = arith.mulf %1431, %1432 : vector<2x7x128xf32>
    %1434 = arith.addf %1427, %1433 : vector<2x7x128xf32>
    %1435 = vector.extract_strided_slice %1402 {offsets = [0, 0, 0], sizes = [2, 7, 1], strides = [1, 1, 1]} : vector<2x8x1xf32> to vector<2x7x1xf32>
    %c3_576 = arith.constant 3 : index
    %c0_577 = arith.constant 0 : index
    %1436 = vector.load %arg3[%c3_576, %c0_577] : memref<9x128xf32, #tpu.memory_space<vmem>>, vector<1x128xf32>
    %1437 = vector.shape_cast %1436 : vector<1x128xf32> to vector<1x1x128xf32>
    %1438 = vector.broadcast %1435 : vector<2x7x1xf32> to vector<2x7x128xf32>
    %1439 = vector.broadcast %1437 : vector<1x1x128xf32> to vector<2x7x128xf32>
    %1440 = arith.mulf %1438, %1439 : vector<2x7x128xf32>
    %1441 = arith.addf %1434, %1440 : vector<2x7x128xf32>
    %1442 = vector.extract_strided_slice %1410 {offsets = [0, 0, 0], sizes = [2, 7, 1], strides = [1, 1, 1]} : vector<2x8x1xf32> to vector<2x7x1xf32>
    %c4_578 = arith.constant 4 : index
    %c0_579 = arith.constant 0 : index
    %1443 = vector.load %arg3[%c4_578, %c0_579] : memref<9x128xf32, #tpu.memory_space<vmem>>, vector<1x128xf32>
    %1444 = vector.shape_cast %1443 : vector<1x128xf32> to vector<1x1x128xf32>
    %1445 = vector.broadcast %1442 : vector<2x7x1xf32> to vector<2x7x128xf32>
    %1446 = vector.broadcast %1444 : vector<1x1x128xf32> to vector<2x7x128xf32>
    %1447 = arith.mulf %1445, %1446 : vector<2x7x128xf32>
    %1448 = arith.addf %1441, %1447 : vector<2x7x128xf32>
    %1449 = vector.extract_strided_slice %1402 {offsets = [0, 1, 0], sizes = [2, 7, 1], strides = [1, 1, 1]} : vector<2x8x1xf32> to vector<2x7x1xf32>
    %c5_580 = arith.constant 5 : index
    %c0_581 = arith.constant 0 : index
    %1450 = vector.load %arg3[%c5_580, %c0_581] : memref<9x128xf32, #tpu.memory_space<vmem>>, vector<1x128xf32>
    %1451 = vector.shape_cast %1450 : vector<1x128xf32> to vector<1x1x128xf32>
    %1452 = vector.broadcast %1449 : vector<2x7x1xf32> to vector<2x7x128xf32>
    %1453 = vector.broadcast %1451 : vector<1x1x128xf32> to vector<2x7x128xf32>
    %1454 = arith.mulf %1452, %1453 : vector<2x7x128xf32>
    %1455 = arith.addf %1448, %1454 : vector<2x7x128xf32>
    %1456 = vector.extract_strided_slice %1404 {offsets = [0, 0, 0], sizes = [2, 7, 1], strides = [1, 1, 1]} : vector<2x8x1xf32> to vector<2x7x1xf32>
    %c6_582 = arith.constant 6 : index
    %c0_583 = arith.constant 0 : index
    %1457 = vector.load %arg3[%c6_582, %c0_583] : memref<9x128xf32, #tpu.memory_space<vmem>>, vector<1x128xf32>
    %1458 = vector.shape_cast %1457 : vector<1x128xf32> to vector<1x1x128xf32>
    %1459 = vector.broadcast %1456 : vector<2x7x1xf32> to vector<2x7x128xf32>
    %1460 = vector.broadcast %1458 : vector<1x1x128xf32> to vector<2x7x128xf32>
    %1461 = arith.mulf %1459, %1460 : vector<2x7x128xf32>
    %1462 = arith.addf %1455, %1461 : vector<2x7x128xf32>
    %1463 = vector.extract_strided_slice %1412 {offsets = [0, 0, 0], sizes = [2, 7, 1], strides = [1, 1, 1]} : vector<2x8x1xf32> to vector<2x7x1xf32>
    %c7_584 = arith.constant 7 : index
    %c0_585 = arith.constant 0 : index
    %1464 = vector.load %arg3[%c7_584, %c0_585] : memref<9x128xf32, #tpu.memory_space<vmem>>, vector<1x128xf32>
    %1465 = vector.shape_cast %1464 : vector<1x128xf32> to vector<1x1x128xf32>
    %1466 = vector.broadcast %1463 : vector<2x7x1xf32> to vector<2x7x128xf32>
    %1467 = vector.broadcast %1465 : vector<1x1x128xf32> to vector<2x7x128xf32>
    %1468 = arith.mulf %1466, %1467 : vector<2x7x128xf32>
    %1469 = arith.addf %1462, %1468 : vector<2x7x128xf32>
    %1470 = vector.extract_strided_slice %1404 {offsets = [0, 1, 0], sizes = [2, 7, 1], strides = [1, 1, 1]} : vector<2x8x1xf32> to vector<2x7x1xf32>
    %c8_586 = arith.constant 8 : index
    %c0_587 = arith.constant 0 : index
    %1471 = vector.load %arg3[%c8_586, %c0_587] : memref<9x128xf32, #tpu.memory_space<vmem>>, vector<1x128xf32>
    %1472 = vector.shape_cast %1471 : vector<1x128xf32> to vector<1x1x128xf32>
    %1473 = vector.broadcast %1470 : vector<2x7x1xf32> to vector<2x7x128xf32>
    %1474 = vector.broadcast %1472 : vector<1x1x128xf32> to vector<2x7x128xf32>
    %1475 = arith.mulf %1473, %1474 : vector<2x7x128xf32>
    %1476 = arith.addf %1469, %1475 : vector<2x7x128xf32>
    %1477 = vector.extract_strided_slice %1408 {offsets = [0, 0, 0], sizes = [2, 7, 1], strides = [1, 1, 1]} : vector<2x8x1xf32> to vector<2x7x1xf32>
    %c0_588 = arith.constant 0 : index
    %c0_589 = arith.constant 0 : index
    %1478 = vector.load %arg3[%c0_588, %c0_589] : memref<9x128xf32, #tpu.memory_space<vmem>>, vector<1x128xf32>
    %1479 = vector.shape_cast %1478 : vector<1x128xf32> to vector<1x1x128xf32>
    %1480 = vector.broadcast %1477 : vector<2x7x1xf32> to vector<2x7x128xf32>
    %1481 = vector.broadcast %1479 : vector<1x1x128xf32> to vector<2x7x128xf32>
    %1482 = arith.mulf %1480, %1481 : vector<2x7x128xf32>
    %1483 = vector.extract_strided_slice %1400 {offsets = [0, 1, 0], sizes = [2, 7, 1], strides = [1, 1, 1]} : vector<2x8x1xf32> to vector<2x7x1xf32>
    %c1_590 = arith.constant 1 : index
    %c0_591 = arith.constant 0 : index
    %1484 = vector.load %arg3[%c1_590, %c0_591] : memref<9x128xf32, #tpu.memory_space<vmem>>, vector<1x128xf32>
    %1485 = vector.shape_cast %1484 : vector<1x128xf32> to vector<1x1x128xf32>
    %1486 = vector.broadcast %1483 : vector<2x7x1xf32> to vector<2x7x128xf32>
    %1487 = vector.broadcast %1485 : vector<1x1x128xf32> to vector<2x7x128xf32>
    %1488 = arith.mulf %1486, %1487 : vector<2x7x128xf32>
    %1489 = arith.addf %1482, %1488 : vector<2x7x128xf32>
    %1490 = vector.extract_strided_slice %1408 {offsets = [0, 1, 0], sizes = [2, 7, 1], strides = [1, 1, 1]} : vector<2x8x1xf32> to vector<2x7x1xf32>
    %c2_592 = arith.constant 2 : index
    %c0_593 = arith.constant 0 : index
    %1491 = vector.load %arg3[%c2_592, %c0_593] : memref<9x128xf32, #tpu.memory_space<vmem>>, vector<1x128xf32>
    %1492 = vector.shape_cast %1491 : vector<1x128xf32> to vector<1x1x128xf32>
    %1493 = vector.broadcast %1490 : vector<2x7x1xf32> to vector<2x7x128xf32>
    %1494 = vector.broadcast %1492 : vector<1x1x128xf32> to vector<2x7x128xf32>
    %1495 = arith.mulf %1493, %1494 : vector<2x7x128xf32>
    %1496 = arith.addf %1489, %1495 : vector<2x7x128xf32>
    %1497 = vector.extract_strided_slice %1410 {offsets = [0, 0, 0], sizes = [2, 7, 1], strides = [1, 1, 1]} : vector<2x8x1xf32> to vector<2x7x1xf32>
    %c3_594 = arith.constant 3 : index
    %c0_595 = arith.constant 0 : index
    %1498 = vector.load %arg3[%c3_594, %c0_595] : memref<9x128xf32, #tpu.memory_space<vmem>>, vector<1x128xf32>
    %1499 = vector.shape_cast %1498 : vector<1x128xf32> to vector<1x1x128xf32>
    %1500 = vector.broadcast %1497 : vector<2x7x1xf32> to vector<2x7x128xf32>
    %1501 = vector.broadcast %1499 : vector<1x1x128xf32> to vector<2x7x128xf32>
    %1502 = arith.mulf %1500, %1501 : vector<2x7x128xf32>
    %1503 = arith.addf %1496, %1502 : vector<2x7x128xf32>
    %1504 = vector.extract_strided_slice %1402 {offsets = [0, 1, 0], sizes = [2, 7, 1], strides = [1, 1, 1]} : vector<2x8x1xf32> to vector<2x7x1xf32>
    %c4_596 = arith.constant 4 : index
    %c0_597 = arith.constant 0 : index
    %1505 = vector.load %arg3[%c4_596, %c0_597] : memref<9x128xf32, #tpu.memory_space<vmem>>, vector<1x128xf32>
    %1506 = vector.shape_cast %1505 : vector<1x128xf32> to vector<1x1x128xf32>
    %1507 = vector.broadcast %1504 : vector<2x7x1xf32> to vector<2x7x128xf32>
    %1508 = vector.broadcast %1506 : vector<1x1x128xf32> to vector<2x7x128xf32>
    %1509 = arith.mulf %1507, %1508 : vector<2x7x128xf32>
    %1510 = arith.addf %1503, %1509 : vector<2x7x128xf32>
    %1511 = vector.extract_strided_slice %1410 {offsets = [0, 1, 0], sizes = [2, 7, 1], strides = [1, 1, 1]} : vector<2x8x1xf32> to vector<2x7x1xf32>
    %c5_598 = arith.constant 5 : index
    %c0_599 = arith.constant 0 : index
    %1512 = vector.load %arg3[%c5_598, %c0_599] : memref<9x128xf32, #tpu.memory_space<vmem>>, vector<1x128xf32>
    %1513 = vector.shape_cast %1512 : vector<1x128xf32> to vector<1x1x128xf32>
    %1514 = vector.broadcast %1511 : vector<2x7x1xf32> to vector<2x7x128xf32>
    %1515 = vector.broadcast %1513 : vector<1x1x128xf32> to vector<2x7x128xf32>
    %1516 = arith.mulf %1514, %1515 : vector<2x7x128xf32>
    %1517 = arith.addf %1510, %1516 : vector<2x7x128xf32>
    %1518 = vector.extract_strided_slice %1412 {offsets = [0, 0, 0], sizes = [2, 7, 1], strides = [1, 1, 1]} : vector<2x8x1xf32> to vector<2x7x1xf32>
    %c6_600 = arith.constant 6 : index
    %c0_601 = arith.constant 0 : index
    %1519 = vector.load %arg3[%c6_600, %c0_601] : memref<9x128xf32, #tpu.memory_space<vmem>>, vector<1x128xf32>
    %1520 = vector.shape_cast %1519 : vector<1x128xf32> to vector<1x1x128xf32>
    %1521 = vector.broadcast %1518 : vector<2x7x1xf32> to vector<2x7x128xf32>
    %1522 = vector.broadcast %1520 : vector<1x1x128xf32> to vector<2x7x128xf32>
    %1523 = arith.mulf %1521, %1522 : vector<2x7x128xf32>
    %1524 = arith.addf %1517, %1523 : vector<2x7x128xf32>
    %1525 = vector.extract_strided_slice %1404 {offsets = [0, 1, 0], sizes = [2, 7, 1], strides = [1, 1, 1]} : vector<2x8x1xf32> to vector<2x7x1xf32>
    %c7_602 = arith.constant 7 : index
    %c0_603 = arith.constant 0 : index
    %1526 = vector.load %arg3[%c7_602, %c0_603] : memref<9x128xf32, #tpu.memory_space<vmem>>, vector<1x128xf32>
    %1527 = vector.shape_cast %1526 : vector<1x128xf32> to vector<1x1x128xf32>
    %1528 = vector.broadcast %1525 : vector<2x7x1xf32> to vector<2x7x128xf32>
    %1529 = vector.broadcast %1527 : vector<1x1x128xf32> to vector<2x7x128xf32>
    %1530 = arith.mulf %1528, %1529 : vector<2x7x128xf32>
    %1531 = arith.addf %1524, %1530 : vector<2x7x128xf32>
    %1532 = vector.extract_strided_slice %1412 {offsets = [0, 1, 0], sizes = [2, 7, 1], strides = [1, 1, 1]} : vector<2x8x1xf32> to vector<2x7x1xf32>
    %c8_604 = arith.constant 8 : index
    %c0_605 = arith.constant 0 : index
    %1533 = vector.load %arg3[%c8_604, %c0_605] : memref<9x128xf32, #tpu.memory_space<vmem>>, vector<1x128xf32>
    %1534 = vector.shape_cast %1533 : vector<1x128xf32> to vector<1x1x128xf32>
    %1535 = vector.broadcast %1532 : vector<2x7x1xf32> to vector<2x7x128xf32>
    %1536 = vector.broadcast %1534 : vector<1x1x128xf32> to vector<2x7x128xf32>
    %1537 = arith.mulf %1535, %1536 : vector<2x7x128xf32>
    %1538 = arith.addf %1531, %1537 : vector<2x7x128xf32>
    %1539 = vector.extract_strided_slice %1402 {offsets = [0, 0, 0], sizes = [2, 7, 1], strides = [1, 1, 1]} : vector<2x8x1xf32> to vector<2x7x1xf32>
    %c0_606 = arith.constant 0 : index
    %c0_607 = arith.constant 0 : index
    %1540 = vector.load %arg3[%c0_606, %c0_607] : memref<9x128xf32, #tpu.memory_space<vmem>>, vector<1x128xf32>
    %1541 = vector.shape_cast %1540 : vector<1x128xf32> to vector<1x1x128xf32>
    %1542 = vector.broadcast %1539 : vector<2x7x1xf32> to vector<2x7x128xf32>
    %1543 = vector.broadcast %1541 : vector<1x1x128xf32> to vector<2x7x128xf32>
    %1544 = arith.mulf %1542, %1543 : vector<2x7x128xf32>
    %1545 = vector.extract_strided_slice %1410 {offsets = [0, 0, 0], sizes = [2, 7, 1], strides = [1, 1, 1]} : vector<2x8x1xf32> to vector<2x7x1xf32>
    %c1_608 = arith.constant 1 : index
    %c0_609 = arith.constant 0 : index
    %1546 = vector.load %arg3[%c1_608, %c0_609] : memref<9x128xf32, #tpu.memory_space<vmem>>, vector<1x128xf32>
    %1547 = vector.shape_cast %1546 : vector<1x128xf32> to vector<1x1x128xf32>
    %1548 = vector.broadcast %1545 : vector<2x7x1xf32> to vector<2x7x128xf32>
    %1549 = vector.broadcast %1547 : vector<1x1x128xf32> to vector<2x7x128xf32>
    %1550 = arith.mulf %1548, %1549 : vector<2x7x128xf32>
    %1551 = arith.addf %1544, %1550 : vector<2x7x128xf32>
    %1552 = vector.extract_strided_slice %1402 {offsets = [0, 1, 0], sizes = [2, 7, 1], strides = [1, 1, 1]} : vector<2x8x1xf32> to vector<2x7x1xf32>
    %c2_610 = arith.constant 2 : index
    %c0_611 = arith.constant 0 : index
    %1553 = vector.load %arg3[%c2_610, %c0_611] : memref<9x128xf32, #tpu.memory_space<vmem>>, vector<1x128xf32>
    %1554 = vector.shape_cast %1553 : vector<1x128xf32> to vector<1x1x128xf32>
    %1555 = vector.broadcast %1552 : vector<2x7x1xf32> to vector<2x7x128xf32>
    %1556 = vector.broadcast %1554 : vector<1x1x128xf32> to vector<2x7x128xf32>
    %1557 = arith.mulf %1555, %1556 : vector<2x7x128xf32>
    %1558 = arith.addf %1551, %1557 : vector<2x7x128xf32>
    %1559 = vector.extract_strided_slice %1404 {offsets = [0, 0, 0], sizes = [2, 7, 1], strides = [1, 1, 1]} : vector<2x8x1xf32> to vector<2x7x1xf32>
    %c3_612 = arith.constant 3 : index
    %c0_613 = arith.constant 0 : index
    %1560 = vector.load %arg3[%c3_612, %c0_613] : memref<9x128xf32, #tpu.memory_space<vmem>>, vector<1x128xf32>
    %1561 = vector.shape_cast %1560 : vector<1x128xf32> to vector<1x1x128xf32>
    %1562 = vector.broadcast %1559 : vector<2x7x1xf32> to vector<2x7x128xf32>
    %1563 = vector.broadcast %1561 : vector<1x1x128xf32> to vector<2x7x128xf32>
    %1564 = arith.mulf %1562, %1563 : vector<2x7x128xf32>
    %1565 = arith.addf %1558, %1564 : vector<2x7x128xf32>
    %1566 = vector.extract_strided_slice %1412 {offsets = [0, 0, 0], sizes = [2, 7, 1], strides = [1, 1, 1]} : vector<2x8x1xf32> to vector<2x7x1xf32>
    %c4_614 = arith.constant 4 : index
    %c0_615 = arith.constant 0 : index
    %1567 = vector.load %arg3[%c4_614, %c0_615] : memref<9x128xf32, #tpu.memory_space<vmem>>, vector<1x128xf32>
    %1568 = vector.shape_cast %1567 : vector<1x128xf32> to vector<1x1x128xf32>
    %1569 = vector.broadcast %1566 : vector<2x7x1xf32> to vector<2x7x128xf32>
    %1570 = vector.broadcast %1568 : vector<1x1x128xf32> to vector<2x7x128xf32>
    %1571 = arith.mulf %1569, %1570 : vector<2x7x128xf32>
    %1572 = arith.addf %1565, %1571 : vector<2x7x128xf32>
    %1573 = vector.extract_strided_slice %1404 {offsets = [0, 1, 0], sizes = [2, 7, 1], strides = [1, 1, 1]} : vector<2x8x1xf32> to vector<2x7x1xf32>
    %c5_616 = arith.constant 5 : index
    %c0_617 = arith.constant 0 : index
    %1574 = vector.load %arg3[%c5_616, %c0_617] : memref<9x128xf32, #tpu.memory_space<vmem>>, vector<1x128xf32>
    %1575 = vector.shape_cast %1574 : vector<1x128xf32> to vector<1x1x128xf32>
    %1576 = vector.broadcast %1573 : vector<2x7x1xf32> to vector<2x7x128xf32>
    %1577 = vector.broadcast %1575 : vector<1x1x128xf32> to vector<2x7x128xf32>
    %1578 = arith.mulf %1576, %1577 : vector<2x7x128xf32>
    %1579 = arith.addf %1572, %1578 : vector<2x7x128xf32>
    %1580 = vector.extract_strided_slice %1406 {offsets = [0, 0, 0], sizes = [2, 7, 1], strides = [1, 1, 1]} : vector<2x8x1xf32> to vector<2x7x1xf32>
    %c6_618 = arith.constant 6 : index
    %c0_619 = arith.constant 0 : index
    %1581 = vector.load %arg3[%c6_618, %c0_619] : memref<9x128xf32, #tpu.memory_space<vmem>>, vector<1x128xf32>
    %1582 = vector.shape_cast %1581 : vector<1x128xf32> to vector<1x1x128xf32>
    %1583 = vector.broadcast %1580 : vector<2x7x1xf32> to vector<2x7x128xf32>
    %1584 = vector.broadcast %1582 : vector<1x1x128xf32> to vector<2x7x128xf32>
    %1585 = arith.mulf %1583, %1584 : vector<2x7x128xf32>
    %1586 = arith.addf %1579, %1585 : vector<2x7x128xf32>
    %1587 = vector.extract_strided_slice %1414 {offsets = [0, 0, 0], sizes = [2, 7, 1], strides = [1, 1, 1]} : vector<2x8x1xf32> to vector<2x7x1xf32>
    %c7_620 = arith.constant 7 : index
    %c0_621 = arith.constant 0 : index
    %1588 = vector.load %arg3[%c7_620, %c0_621] : memref<9x128xf32, #tpu.memory_space<vmem>>, vector<1x128xf32>
    %1589 = vector.shape_cast %1588 : vector<1x128xf32> to vector<1x1x128xf32>
    %1590 = vector.broadcast %1587 : vector<2x7x1xf32> to vector<2x7x128xf32>
    %1591 = vector.broadcast %1589 : vector<1x1x128xf32> to vector<2x7x128xf32>
    %1592 = arith.mulf %1590, %1591 : vector<2x7x128xf32>
    %1593 = arith.addf %1586, %1592 : vector<2x7x128xf32>
    %1594 = vector.extract_strided_slice %1406 {offsets = [0, 1, 0], sizes = [2, 7, 1], strides = [1, 1, 1]} : vector<2x8x1xf32> to vector<2x7x1xf32>
    %c8_622 = arith.constant 8 : index
    %c0_623 = arith.constant 0 : index
    %1595 = vector.load %arg3[%c8_622, %c0_623] : memref<9x128xf32, #tpu.memory_space<vmem>>, vector<1x128xf32>
    %1596 = vector.shape_cast %1595 : vector<1x128xf32> to vector<1x1x128xf32>
    %1597 = vector.broadcast %1594 : vector<2x7x1xf32> to vector<2x7x128xf32>
    %1598 = vector.broadcast %1596 : vector<1x1x128xf32> to vector<2x7x128xf32>
    %1599 = arith.mulf %1597, %1598 : vector<2x7x128xf32>
    %1600 = arith.addf %1593, %1599 : vector<2x7x128xf32>
    %1601 = vector.extract_strided_slice %1410 {offsets = [0, 0, 0], sizes = [2, 7, 1], strides = [1, 1, 1]} : vector<2x8x1xf32> to vector<2x7x1xf32>
    %c0_624 = arith.constant 0 : index
    %c0_625 = arith.constant 0 : index
    %1602 = vector.load %arg3[%c0_624, %c0_625] : memref<9x128xf32, #tpu.memory_space<vmem>>, vector<1x128xf32>
    %1603 = vector.shape_cast %1602 : vector<1x128xf32> to vector<1x1x128xf32>
    %1604 = vector.broadcast %1601 : vector<2x7x1xf32> to vector<2x7x128xf32>
    %1605 = vector.broadcast %1603 : vector<1x1x128xf32> to vector<2x7x128xf32>
    %1606 = arith.mulf %1604, %1605 : vector<2x7x128xf32>
    %1607 = vector.extract_strided_slice %1402 {offsets = [0, 1, 0], sizes = [2, 7, 1], strides = [1, 1, 1]} : vector<2x8x1xf32> to vector<2x7x1xf32>
    %c1_626 = arith.constant 1 : index
    %c0_627 = arith.constant 0 : index
    %1608 = vector.load %arg3[%c1_626, %c0_627] : memref<9x128xf32, #tpu.memory_space<vmem>>, vector<1x128xf32>
    %1609 = vector.shape_cast %1608 : vector<1x128xf32> to vector<1x1x128xf32>
    %1610 = vector.broadcast %1607 : vector<2x7x1xf32> to vector<2x7x128xf32>
    %1611 = vector.broadcast %1609 : vector<1x1x128xf32> to vector<2x7x128xf32>
    %1612 = arith.mulf %1610, %1611 : vector<2x7x128xf32>
    %1613 = arith.addf %1606, %1612 : vector<2x7x128xf32>
    %1614 = vector.extract_strided_slice %1410 {offsets = [0, 1, 0], sizes = [2, 7, 1], strides = [1, 1, 1]} : vector<2x8x1xf32> to vector<2x7x1xf32>
    %c2_628 = arith.constant 2 : index
    %c0_629 = arith.constant 0 : index
    %1615 = vector.load %arg3[%c2_628, %c0_629] : memref<9x128xf32, #tpu.memory_space<vmem>>, vector<1x128xf32>
    %1616 = vector.shape_cast %1615 : vector<1x128xf32> to vector<1x1x128xf32>
    %1617 = vector.broadcast %1614 : vector<2x7x1xf32> to vector<2x7x128xf32>
    %1618 = vector.broadcast %1616 : vector<1x1x128xf32> to vector<2x7x128xf32>
    %1619 = arith.mulf %1617, %1618 : vector<2x7x128xf32>
    %1620 = arith.addf %1613, %1619 : vector<2x7x128xf32>
    %1621 = vector.extract_strided_slice %1412 {offsets = [0, 0, 0], sizes = [2, 7, 1], strides = [1, 1, 1]} : vector<2x8x1xf32> to vector<2x7x1xf32>
    %c3_630 = arith.constant 3 : index
    %c0_631 = arith.constant 0 : index
    %1622 = vector.load %arg3[%c3_630, %c0_631] : memref<9x128xf32, #tpu.memory_space<vmem>>, vector<1x128xf32>
    %1623 = vector.shape_cast %1622 : vector<1x128xf32> to vector<1x1x128xf32>
    %1624 = vector.broadcast %1621 : vector<2x7x1xf32> to vector<2x7x128xf32>
    %1625 = vector.broadcast %1623 : vector<1x1x128xf32> to vector<2x7x128xf32>
    %1626 = arith.mulf %1624, %1625 : vector<2x7x128xf32>
    %1627 = arith.addf %1620, %1626 : vector<2x7x128xf32>
    %1628 = vector.extract_strided_slice %1404 {offsets = [0, 1, 0], sizes = [2, 7, 1], strides = [1, 1, 1]} : vector<2x8x1xf32> to vector<2x7x1xf32>
    %c4_632 = arith.constant 4 : index
    %c0_633 = arith.constant 0 : index
    %1629 = vector.load %arg3[%c4_632, %c0_633] : memref<9x128xf32, #tpu.memory_space<vmem>>, vector<1x128xf32>
    %1630 = vector.shape_cast %1629 : vector<1x128xf32> to vector<1x1x128xf32>
    %1631 = vector.broadcast %1628 : vector<2x7x1xf32> to vector<2x7x128xf32>
    %1632 = vector.broadcast %1630 : vector<1x1x128xf32> to vector<2x7x128xf32>
    %1633 = arith.mulf %1631, %1632 : vector<2x7x128xf32>
    %1634 = arith.addf %1627, %1633 : vector<2x7x128xf32>
    %1635 = vector.extract_strided_slice %1412 {offsets = [0, 1, 0], sizes = [2, 7, 1], strides = [1, 1, 1]} : vector<2x8x1xf32> to vector<2x7x1xf32>
    %c5_634 = arith.constant 5 : index
    %c0_635 = arith.constant 0 : index
    %1636 = vector.load %arg3[%c5_634, %c0_635] : memref<9x128xf32, #tpu.memory_space<vmem>>, vector<1x128xf32>
    %1637 = vector.shape_cast %1636 : vector<1x128xf32> to vector<1x1x128xf32>
    %1638 = vector.broadcast %1635 : vector<2x7x1xf32> to vector<2x7x128xf32>
    %1639 = vector.broadcast %1637 : vector<1x1x128xf32> to vector<2x7x128xf32>
    %1640 = arith.mulf %1638, %1639 : vector<2x7x128xf32>
    %1641 = arith.addf %1634, %1640 : vector<2x7x128xf32>
    %1642 = vector.extract_strided_slice %1414 {offsets = [0, 0, 0], sizes = [2, 7, 1], strides = [1, 1, 1]} : vector<2x8x1xf32> to vector<2x7x1xf32>
    %c6_636 = arith.constant 6 : index
    %c0_637 = arith.constant 0 : index
    %1643 = vector.load %arg3[%c6_636, %c0_637] : memref<9x128xf32, #tpu.memory_space<vmem>>, vector<1x128xf32>
    %1644 = vector.shape_cast %1643 : vector<1x128xf32> to vector<1x1x128xf32>
    %1645 = vector.broadcast %1642 : vector<2x7x1xf32> to vector<2x7x128xf32>
    %1646 = vector.broadcast %1644 : vector<1x1x128xf32> to vector<2x7x128xf32>
    %1647 = arith.mulf %1645, %1646 : vector<2x7x128xf32>
    %1648 = arith.addf %1641, %1647 : vector<2x7x128xf32>
    %1649 = vector.extract_strided_slice %1406 {offsets = [0, 1, 0], sizes = [2, 7, 1], strides = [1, 1, 1]} : vector<2x8x1xf32> to vector<2x7x1xf32>
    %c7_638 = arith.constant 7 : index
    %c0_639 = arith.constant 0 : index
    %1650 = vector.load %arg3[%c7_638, %c0_639] : memref<9x128xf32, #tpu.memory_space<vmem>>, vector<1x128xf32>
    %1651 = vector.shape_cast %1650 : vector<1x128xf32> to vector<1x1x128xf32>
    %1652 = vector.broadcast %1649 : vector<2x7x1xf32> to vector<2x7x128xf32>
    %1653 = vector.broadcast %1651 : vector<1x1x128xf32> to vector<2x7x128xf32>
    %1654 = arith.mulf %1652, %1653 : vector<2x7x128xf32>
    %1655 = arith.addf %1648, %1654 : vector<2x7x128xf32>
    %1656 = vector.extract_strided_slice %1414 {offsets = [0, 1, 0], sizes = [2, 7, 1], strides = [1, 1, 1]} : vector<2x8x1xf32> to vector<2x7x1xf32>
    %c8_640 = arith.constant 8 : index
    %c0_641 = arith.constant 0 : index
    %1657 = vector.load %arg3[%c8_640, %c0_641] : memref<9x128xf32, #tpu.memory_space<vmem>>, vector<1x128xf32>
    %1658 = vector.shape_cast %1657 : vector<1x128xf32> to vector<1x1x128xf32>
    %1659 = vector.broadcast %1656 : vector<2x7x1xf32> to vector<2x7x128xf32>
    %1660 = vector.broadcast %1658 : vector<1x1x128xf32> to vector<2x7x128xf32>
    %1661 = arith.mulf %1659, %1660 : vector<2x7x128xf32>
    %1662 = arith.addf %1655, %1661 : vector<2x7x128xf32>
    %1663 = arith.maximumf %1476, %1538 : vector<2x7x128xf32>
    %1664 = arith.maximumf %1600, %1662 : vector<2x7x128xf32>
    %1665 = arith.maximumf %1663, %1664 : vector<2x7x128xf32>
    %c0_642 = arith.constant 0 : index
    %c0_643 = arith.constant 0 : index
    %1666 = vector.load %arg4[%c0_642, %c0_643] : memref<1x128xf32, #tpu.memory_space<vmem>>, vector<1x128xf32>
    %1667 = vector.shape_cast %1666 : vector<1x128xf32> to vector<1x1x128xf32>
    %1668 = vector.broadcast %1667 : vector<1x1x128xf32> to vector<2x7x128xf32>
    %1669 = arith.addf %1665, %1668 : vector<2x7x128xf32>
    %cst_644 = arith.constant 0.000000e+00 : f32
    %1670 = vector.broadcast %cst_644 : f32 to vector<2x7x128xf32>
    %1671 = arith.maximumf %1669, %1670 : vector<2x7x128xf32>
    %1672 = vector.extract_strided_slice %1671 {offsets = [0, 0, 0], sizes = [1, 7, 128], strides = [1, 1, 1]} : vector<2x7x128xf32> to vector<1x7x128xf32>
    %1673 = vector.shape_cast %1672 : vector<1x7x128xf32> to vector<7x128xf32>
    %c35 = arith.constant 35 : index
    %c0_645 = arith.constant 0 : index
    %1674 = vector.load %arg12[%c35, %c0_645] : memref<128x128xf32, #tpu.memory_space<vmem>>, vector<7x128xf32>
    tpu.vector_store %arg12[%c35, %c0_645], %1673 {strides = array<i32>} : memref<128x128xf32, #tpu.memory_space<vmem>>, vector<7x128xf32>,
    %1675 = vector.extract_strided_slice %1671 {offsets = [1, 0, 0], sizes = [1, 7, 128], strides = [1, 1, 1]} : vector<2x7x128xf32> to vector<1x7x128xf32>
    %1676 = vector.shape_cast %1675 : vector<1x7x128xf32> to vector<7x128xf32>
    %c91 = arith.constant 91 : index
    %c0_646 = arith.constant 0 : index
    %1677 = vector.load %arg12[%c91, %c0_646] : memref<128x128xf32, #tpu.memory_space<vmem>>, vector<7x128xf32>
    tpu.vector_store %arg12[%c91, %c0_646], %1676 {strides = array<i32>} : memref<128x128xf32, #tpu.memory_space<vmem>>, vector<7x128xf32>,
    %c0_647 = arith.constant 0 : index
    %c12_648 = arith.constant 12 : index
    %c0_649 = arith.constant 0 : index
    %c0_650 = arith.constant 0 : index
    %1678 = vector.load %arg1[%c0_647, %c12_648, %c0_649, %c0_650] : memref<2x16x8x1xf32, #tpu.memory_space<vmem>>, vector<2x1x8x1xf32>
    %1679 = vector.shape_cast %1678 : vector<2x1x8x1xf32> to vector<2x8x1xf32>
    %c0_651 = arith.constant 0 : index
    %c13_652 = arith.constant 13 : index
    %c0_653 = arith.constant 0 : index
    %c0_654 = arith.constant 0 : index
    %1680 = vector.load %arg1[%c0_651, %c13_652, %c0_653, %c0_654] : memref<2x16x8x1xf32, #tpu.memory_space<vmem>>, vector<2x1x8x1xf32>
    %1681 = vector.shape_cast %1680 : vector<2x1x8x1xf32> to vector<2x8x1xf32>
    %c0_655 = arith.constant 0 : index
    %c14_656 = arith.constant 14 : index
    %c0_657 = arith.constant 0 : index
    %c0_658 = arith.constant 0 : index
    %1682 = vector.load %arg1[%c0_655, %c14_656, %c0_657, %c0_658] : memref<2x16x8x1xf32, #tpu.memory_space<vmem>>, vector<2x1x8x1xf32>
    %1683 = vector.shape_cast %1682 : vector<2x1x8x1xf32> to vector<2x8x1xf32>
    %c0_659 = arith.constant 0 : index
    %c15 = arith.constant 15 : index
    %c0_660 = arith.constant 0 : index
    %c0_661 = arith.constant 0 : index
    %1684 = vector.load %arg1[%c0_659, %c15, %c0_660, %c0_661] : memref<2x16x8x1xf32, #tpu.memory_space<vmem>>, vector<2x1x8x1xf32>
    %1685 = vector.shape_cast %1684 : vector<2x1x8x1xf32> to vector<2x8x1xf32>
    %c0_662 = arith.constant 0 : index
    %c12_663 = arith.constant 12 : index
    %c0_664 = arith.constant 0 : index
    %c0_665 = arith.constant 0 : index
    %1686 = vector.load %arg2[%c0_662, %c12_663, %c0_664, %c0_665] : memref<2x16x8x1xf32, #tpu.memory_space<vmem>>, vector<2x1x8x1xf32>
    %1687 = vector.shape_cast %1686 : vector<2x1x8x1xf32> to vector<2x8x1xf32>
    %c0_666 = arith.constant 0 : index
    %c13_667 = arith.constant 13 : index
    %c0_668 = arith.constant 0 : index
    %c0_669 = arith.constant 0 : index
    %1688 = vector.load %arg2[%c0_666, %c13_667, %c0_668, %c0_669] : memref<2x16x8x1xf32, #tpu.memory_space<vmem>>, vector<2x1x8x1xf32>
    %1689 = vector.shape_cast %1688 : vector<2x1x8x1xf32> to vector<2x8x1xf32>
    %c0_670 = arith.constant 0 : index
    %c14_671 = arith.constant 14 : index
    %c0_672 = arith.constant 0 : index
    %c0_673 = arith.constant 0 : index
    %1690 = vector.load %arg2[%c0_670, %c14_671, %c0_672, %c0_673] : memref<2x16x8x1xf32, #tpu.memory_space<vmem>>, vector<2x1x8x1xf32>
    %1691 = vector.shape_cast %1690 : vector<2x1x8x1xf32> to vector<2x8x1xf32>
    %c0_674 = arith.constant 0 : index
    %c15_675 = arith.constant 15 : index
    %c0_676 = arith.constant 0 : index
    %c0_677 = arith.constant 0 : index
    %1692 = vector.load %arg2[%c0_674, %c15_675, %c0_676, %c0_677] : memref<2x16x8x1xf32, #tpu.memory_space<vmem>>, vector<2x1x8x1xf32>
    %1693 = vector.shape_cast %1692 : vector<2x1x8x1xf32> to vector<2x8x1xf32>
    %1694 = vector.extract_strided_slice %1679 {offsets = [0, 0, 0], sizes = [2, 7, 1], strides = [1, 1, 1]} : vector<2x8x1xf32> to vector<2x7x1xf32>
    %c0_678 = arith.constant 0 : index
    %c0_679 = arith.constant 0 : index
    %1695 = vector.load %arg3[%c0_678, %c0_679] : memref<9x128xf32, #tpu.memory_space<vmem>>, vector<1x128xf32>
    %1696 = vector.shape_cast %1695 : vector<1x128xf32> to vector<1x1x128xf32>
    %1697 = vector.broadcast %1694 : vector<2x7x1xf32> to vector<2x7x128xf32>
    %1698 = vector.broadcast %1696 : vector<1x1x128xf32> to vector<2x7x128xf32>
    %1699 = arith.mulf %1697, %1698 : vector<2x7x128xf32>
    %1700 = vector.extract_strided_slice %1687 {offsets = [0, 0, 0], sizes = [2, 7, 1], strides = [1, 1, 1]} : vector<2x8x1xf32> to vector<2x7x1xf32>
    %c1_680 = arith.constant 1 : index
    %c0_681 = arith.constant 0 : index
    %1701 = vector.load %arg3[%c1_680, %c0_681] : memref<9x128xf32, #tpu.memory_space<vmem>>, vector<1x128xf32>
    %1702 = vector.shape_cast %1701 : vector<1x128xf32> to vector<1x1x128xf32>
    %1703 = vector.broadcast %1700 : vector<2x7x1xf32> to vector<2x7x128xf32>
    %1704 = vector.broadcast %1702 : vector<1x1x128xf32> to vector<2x7x128xf32>
    %1705 = arith.mulf %1703, %1704 : vector<2x7x128xf32>
    %1706 = arith.addf %1699, %1705 : vector<2x7x128xf32>
    %1707 = vector.extract_strided_slice %1679 {offsets = [0, 1, 0], sizes = [2, 7, 1], strides = [1, 1, 1]} : vector<2x8x1xf32> to vector<2x7x1xf32>
    %c2_682 = arith.constant 2 : index
    %c0_683 = arith.constant 0 : index
    %1708 = vector.load %arg3[%c2_682, %c0_683] : memref<9x128xf32, #tpu.memory_space<vmem>>, vector<1x128xf32>
    %1709 = vector.shape_cast %1708 : vector<1x128xf32> to vector<1x1x128xf32>
    %1710 = vector.broadcast %1707 : vector<2x7x1xf32> to vector<2x7x128xf32>
    %1711 = vector.broadcast %1709 : vector<1x1x128xf32> to vector<2x7x128xf32>
    %1712 = arith.mulf %1710, %1711 : vector<2x7x128xf32>
    %1713 = arith.addf %1706, %1712 : vector<2x7x128xf32>
    %1714 = vector.extract_strided_slice %1681 {offsets = [0, 0, 0], sizes = [2, 7, 1], strides = [1, 1, 1]} : vector<2x8x1xf32> to vector<2x7x1xf32>
    %c3_684 = arith.constant 3 : index
    %c0_685 = arith.constant 0 : index
    %1715 = vector.load %arg3[%c3_684, %c0_685] : memref<9x128xf32, #tpu.memory_space<vmem>>, vector<1x128xf32>
    %1716 = vector.shape_cast %1715 : vector<1x128xf32> to vector<1x1x128xf32>
    %1717 = vector.broadcast %1714 : vector<2x7x1xf32> to vector<2x7x128xf32>
    %1718 = vector.broadcast %1716 : vector<1x1x128xf32> to vector<2x7x128xf32>
    %1719 = arith.mulf %1717, %1718 : vector<2x7x128xf32>
    %1720 = arith.addf %1713, %1719 : vector<2x7x128xf32>
    %1721 = vector.extract_strided_slice %1689 {offsets = [0, 0, 0], sizes = [2, 7, 1], strides = [1, 1, 1]} : vector<2x8x1xf32> to vector<2x7x1xf32>
    %c4_686 = arith.constant 4 : index
    %c0_687 = arith.constant 0 : index
    %1722 = vector.load %arg3[%c4_686, %c0_687] : memref<9x128xf32, #tpu.memory_space<vmem>>, vector<1x128xf32>
    %1723 = vector.shape_cast %1722 : vector<1x128xf32> to vector<1x1x128xf32>
    %1724 = vector.broadcast %1721 : vector<2x7x1xf32> to vector<2x7x128xf32>
    %1725 = vector.broadcast %1723 : vector<1x1x128xf32> to vector<2x7x128xf32>
    %1726 = arith.mulf %1724, %1725 : vector<2x7x128xf32>
    %1727 = arith.addf %1720, %1726 : vector<2x7x128xf32>
    %1728 = vector.extract_strided_slice %1681 {offsets = [0, 1, 0], sizes = [2, 7, 1], strides = [1, 1, 1]} : vector<2x8x1xf32> to vector<2x7x1xf32>
    %c5_688 = arith.constant 5 : index
    %c0_689 = arith.constant 0 : index
    %1729 = vector.load %arg3[%c5_688, %c0_689] : memref<9x128xf32, #tpu.memory_space<vmem>>, vector<1x128xf32>
    %1730 = vector.shape_cast %1729 : vector<1x128xf32> to vector<1x1x128xf32>
    %1731 = vector.broadcast %1728 : vector<2x7x1xf32> to vector<2x7x128xf32>
    %1732 = vector.broadcast %1730 : vector<1x1x128xf32> to vector<2x7x128xf32>
    %1733 = arith.mulf %1731, %1732 : vector<2x7x128xf32>
    %1734 = arith.addf %1727, %1733 : vector<2x7x128xf32>
    %1735 = vector.extract_strided_slice %1683 {offsets = [0, 0, 0], sizes = [2, 7, 1], strides = [1, 1, 1]} : vector<2x8x1xf32> to vector<2x7x1xf32>
    %c6_690 = arith.constant 6 : index
    %c0_691 = arith.constant 0 : index
    %1736 = vector.load %arg3[%c6_690, %c0_691] : memref<9x128xf32, #tpu.memory_space<vmem>>, vector<1x128xf32>
    %1737 = vector.shape_cast %1736 : vector<1x128xf32> to vector<1x1x128xf32>
    %1738 = vector.broadcast %1735 : vector<2x7x1xf32> to vector<2x7x128xf32>
    %1739 = vector.broadcast %1737 : vector<1x1x128xf32> to vector<2x7x128xf32>
    %1740 = arith.mulf %1738, %1739 : vector<2x7x128xf32>
    %1741 = arith.addf %1734, %1740 : vector<2x7x128xf32>
    %1742 = vector.extract_strided_slice %1691 {offsets = [0, 0, 0], sizes = [2, 7, 1], strides = [1, 1, 1]} : vector<2x8x1xf32> to vector<2x7x1xf32>
    %c7_692 = arith.constant 7 : index
    %c0_693 = arith.constant 0 : index
    %1743 = vector.load %arg3[%c7_692, %c0_693] : memref<9x128xf32, #tpu.memory_space<vmem>>, vector<1x128xf32>
    %1744 = vector.shape_cast %1743 : vector<1x128xf32> to vector<1x1x128xf32>
    %1745 = vector.broadcast %1742 : vector<2x7x1xf32> to vector<2x7x128xf32>
    %1746 = vector.broadcast %1744 : vector<1x1x128xf32> to vector<2x7x128xf32>
    %1747 = arith.mulf %1745, %1746 : vector<2x7x128xf32>
    %1748 = arith.addf %1741, %1747 : vector<2x7x128xf32>
    %1749 = vector.extract_strided_slice %1683 {offsets = [0, 1, 0], sizes = [2, 7, 1], strides = [1, 1, 1]} : vector<2x8x1xf32> to vector<2x7x1xf32>
    %c8_694 = arith.constant 8 : index
    %c0_695 = arith.constant 0 : index
    %1750 = vector.load %arg3[%c8_694, %c0_695] : memref<9x128xf32, #tpu.memory_space<vmem>>, vector<1x128xf32>
    %1751 = vector.shape_cast %1750 : vector<1x128xf32> to vector<1x1x128xf32>
    %1752 = vector.broadcast %1749 : vector<2x7x1xf32> to vector<2x7x128xf32>
    %1753 = vector.broadcast %1751 : vector<1x1x128xf32> to vector<2x7x128xf32>
    %1754 = arith.mulf %1752, %1753 : vector<2x7x128xf32>
    %1755 = arith.addf %1748, %1754 : vector<2x7x128xf32>
    %1756 = vector.extract_strided_slice %1687 {offsets = [0, 0, 0], sizes = [2, 7, 1], strides = [1, 1, 1]} : vector<2x8x1xf32> to vector<2x7x1xf32>
    %c0_696 = arith.constant 0 : index
    %c0_697 = arith.constant 0 : index
    %1757 = vector.load %arg3[%c0_696, %c0_697] : memref<9x128xf32, #tpu.memory_space<vmem>>, vector<1x128xf32>
    %1758 = vector.shape_cast %1757 : vector<1x128xf32> to vector<1x1x128xf32>
    %1759 = vector.broadcast %1756 : vector<2x7x1xf32> to vector<2x7x128xf32>
    %1760 = vector.broadcast %1758 : vector<1x1x128xf32> to vector<2x7x128xf32>
    %1761 = arith.mulf %1759, %1760 : vector<2x7x128xf32>
    %1762 = vector.extract_strided_slice %1679 {offsets = [0, 1, 0], sizes = [2, 7, 1], strides = [1, 1, 1]} : vector<2x8x1xf32> to vector<2x7x1xf32>
    %c1_698 = arith.constant 1 : index
    %c0_699 = arith.constant 0 : index
    %1763 = vector.load %arg3[%c1_698, %c0_699] : memref<9x128xf32, #tpu.memory_space<vmem>>, vector<1x128xf32>
    %1764 = vector.shape_cast %1763 : vector<1x128xf32> to vector<1x1x128xf32>
    %1765 = vector.broadcast %1762 : vector<2x7x1xf32> to vector<2x7x128xf32>
    %1766 = vector.broadcast %1764 : vector<1x1x128xf32> to vector<2x7x128xf32>
    %1767 = arith.mulf %1765, %1766 : vector<2x7x128xf32>
    %1768 = arith.addf %1761, %1767 : vector<2x7x128xf32>
    %1769 = vector.extract_strided_slice %1687 {offsets = [0, 1, 0], sizes = [2, 7, 1], strides = [1, 1, 1]} : vector<2x8x1xf32> to vector<2x7x1xf32>
    %c2_700 = arith.constant 2 : index
    %c0_701 = arith.constant 0 : index
    %1770 = vector.load %arg3[%c2_700, %c0_701] : memref<9x128xf32, #tpu.memory_space<vmem>>, vector<1x128xf32>
    %1771 = vector.shape_cast %1770 : vector<1x128xf32> to vector<1x1x128xf32>
    %1772 = vector.broadcast %1769 : vector<2x7x1xf32> to vector<2x7x128xf32>
    %1773 = vector.broadcast %1771 : vector<1x1x128xf32> to vector<2x7x128xf32>
    %1774 = arith.mulf %1772, %1773 : vector<2x7x128xf32>
    %1775 = arith.addf %1768, %1774 : vector<2x7x128xf32>
    %1776 = vector.extract_strided_slice %1689 {offsets = [0, 0, 0], sizes = [2, 7, 1], strides = [1, 1, 1]} : vector<2x8x1xf32> to vector<2x7x1xf32>
    %c3_702 = arith.constant 3 : index
    %c0_703 = arith.constant 0 : index
    %1777 = vector.load %arg3[%c3_702, %c0_703] : memref<9x128xf32, #tpu.memory_space<vmem>>, vector<1x128xf32>
    %1778 = vector.shape_cast %1777 : vector<1x128xf32> to vector<1x1x128xf32>
    %1779 = vector.broadcast %1776 : vector<2x7x1xf32> to vector<2x7x128xf32>
    %1780 = vector.broadcast %1778 : vector<1x1x128xf32> to vector<2x7x128xf32>
    %1781 = arith.mulf %1779, %1780 : vector<2x7x128xf32>
    %1782 = arith.addf %1775, %1781 : vector<2x7x128xf32>
    %1783 = vector.extract_strided_slice %1681 {offsets = [0, 1, 0], sizes = [2, 7, 1], strides = [1, 1, 1]} : vector<2x8x1xf32> to vector<2x7x1xf32>
    %c4_704 = arith.constant 4 : index
    %c0_705 = arith.constant 0 : index
    %1784 = vector.load %arg3[%c4_704, %c0_705] : memref<9x128xf32, #tpu.memory_space<vmem>>, vector<1x128xf32>
    %1785 = vector.shape_cast %1784 : vector<1x128xf32> to vector<1x1x128xf32>
    %1786 = vector.broadcast %1783 : vector<2x7x1xf32> to vector<2x7x128xf32>
    %1787 = vector.broadcast %1785 : vector<1x1x128xf32> to vector<2x7x128xf32>
    %1788 = arith.mulf %1786, %1787 : vector<2x7x128xf32>
    %1789 = arith.addf %1782, %1788 : vector<2x7x128xf32>
    %1790 = vector.extract_strided_slice %1689 {offsets = [0, 1, 0], sizes = [2, 7, 1], strides = [1, 1, 1]} : vector<2x8x1xf32> to vector<2x7x1xf32>
    %c5_706 = arith.constant 5 : index
    %c0_707 = arith.constant 0 : index
    %1791 = vector.load %arg3[%c5_706, %c0_707] : memref<9x128xf32, #tpu.memory_space<vmem>>, vector<1x128xf32>
    %1792 = vector.shape_cast %1791 : vector<1x128xf32> to vector<1x1x128xf32>
    %1793 = vector.broadcast %1790 : vector<2x7x1xf32> to vector<2x7x128xf32>
    %1794 = vector.broadcast %1792 : vector<1x1x128xf32> to vector<2x7x128xf32>
    %1795 = arith.mulf %1793, %1794 : vector<2x7x128xf32>
    %1796 = arith.addf %1789, %1795 : vector<2x7x128xf32>
    %1797 = vector.extract_strided_slice %1691 {offsets = [0, 0, 0], sizes = [2, 7, 1], strides = [1, 1, 1]} : vector<2x8x1xf32> to vector<2x7x1xf32>
    %c6_708 = arith.constant 6 : index
    %c0_709 = arith.constant 0 : index
    %1798 = vector.load %arg3[%c6_708, %c0_709] : memref<9x128xf32, #tpu.memory_space<vmem>>, vector<1x128xf32>
    %1799 = vector.shape_cast %1798 : vector<1x128xf32> to vector<1x1x128xf32>
    %1800 = vector.broadcast %1797 : vector<2x7x1xf32> to vector<2x7x128xf32>
    %1801 = vector.broadcast %1799 : vector<1x1x128xf32> to vector<2x7x128xf32>
    %1802 = arith.mulf %1800, %1801 : vector<2x7x128xf32>
    %1803 = arith.addf %1796, %1802 : vector<2x7x128xf32>
    %1804 = vector.extract_strided_slice %1683 {offsets = [0, 1, 0], sizes = [2, 7, 1], strides = [1, 1, 1]} : vector<2x8x1xf32> to vector<2x7x1xf32>
    %c7_710 = arith.constant 7 : index
    %c0_711 = arith.constant 0 : index
    %1805 = vector.load %arg3[%c7_710, %c0_711] : memref<9x128xf32, #tpu.memory_space<vmem>>, vector<1x128xf32>
    %1806 = vector.shape_cast %1805 : vector<1x128xf32> to vector<1x1x128xf32>
    %1807 = vector.broadcast %1804 : vector<2x7x1xf32> to vector<2x7x128xf32>
    %1808 = vector.broadcast %1806 : vector<1x1x128xf32> to vector<2x7x128xf32>
    %1809 = arith.mulf %1807, %1808 : vector<2x7x128xf32>
    %1810 = arith.addf %1803, %1809 : vector<2x7x128xf32>
    %1811 = vector.extract_strided_slice %1691 {offsets = [0, 1, 0], sizes = [2, 7, 1], strides = [1, 1, 1]} : vector<2x8x1xf32> to vector<2x7x1xf32>
    %c8_712 = arith.constant 8 : index
    %c0_713 = arith.constant 0 : index
    %1812 = vector.load %arg3[%c8_712, %c0_713] : memref<9x128xf32, #tpu.memory_space<vmem>>, vector<1x128xf32>
    %1813 = vector.shape_cast %1812 : vector<1x128xf32> to vector<1x1x128xf32>
    %1814 = vector.broadcast %1811 : vector<2x7x1xf32> to vector<2x7x128xf32>
    %1815 = vector.broadcast %1813 : vector<1x1x128xf32> to vector<2x7x128xf32>
    %1816 = arith.mulf %1814, %1815 : vector<2x7x128xf32>
    %1817 = arith.addf %1810, %1816 : vector<2x7x128xf32>
    %1818 = vector.extract_strided_slice %1681 {offsets = [0, 0, 0], sizes = [2, 7, 1], strides = [1, 1, 1]} : vector<2x8x1xf32> to vector<2x7x1xf32>
    %c0_714 = arith.constant 0 : index
    %c0_715 = arith.constant 0 : index
    %1819 = vector.load %arg3[%c0_714, %c0_715] : memref<9x128xf32, #tpu.memory_space<vmem>>, vector<1x128xf32>
    %1820 = vector.shape_cast %1819 : vector<1x128xf32> to vector<1x1x128xf32>
    %1821 = vector.broadcast %1818 : vector<2x7x1xf32> to vector<2x7x128xf32>
    %1822 = vector.broadcast %1820 : vector<1x1x128xf32> to vector<2x7x128xf32>
    %1823 = arith.mulf %1821, %1822 : vector<2x7x128xf32>
    %1824 = vector.extract_strided_slice %1689 {offsets = [0, 0, 0], sizes = [2, 7, 1], strides = [1, 1, 1]} : vector<2x8x1xf32> to vector<2x7x1xf32>
    %c1_716 = arith.constant 1 : index
    %c0_717 = arith.constant 0 : index
    %1825 = vector.load %arg3[%c1_716, %c0_717] : memref<9x128xf32, #tpu.memory_space<vmem>>, vector<1x128xf32>
    %1826 = vector.shape_cast %1825 : vector<1x128xf32> to vector<1x1x128xf32>
    %1827 = vector.broadcast %1824 : vector<2x7x1xf32> to vector<2x7x128xf32>
    %1828 = vector.broadcast %1826 : vector<1x1x128xf32> to vector<2x7x128xf32>
    %1829 = arith.mulf %1827, %1828 : vector<2x7x128xf32>
    %1830 = arith.addf %1823, %1829 : vector<2x7x128xf32>
    %1831 = vector.extract_strided_slice %1681 {offsets = [0, 1, 0], sizes = [2, 7, 1], strides = [1, 1, 1]} : vector<2x8x1xf32> to vector<2x7x1xf32>
    %c2_718 = arith.constant 2 : index
    %c0_719 = arith.constant 0 : index
    %1832 = vector.load %arg3[%c2_718, %c0_719] : memref<9x128xf32, #tpu.memory_space<vmem>>, vector<1x128xf32>
    %1833 = vector.shape_cast %1832 : vector<1x128xf32> to vector<1x1x128xf32>
    %1834 = vector.broadcast %1831 : vector<2x7x1xf32> to vector<2x7x128xf32>
    %1835 = vector.broadcast %1833 : vector<1x1x128xf32> to vector<2x7x128xf32>
    %1836 = arith.mulf %1834, %1835 : vector<2x7x128xf32>
    %1837 = arith.addf %1830, %1836 : vector<2x7x128xf32>
    %1838 = vector.extract_strided_slice %1683 {offsets = [0, 0, 0], sizes = [2, 7, 1], strides = [1, 1, 1]} : vector<2x8x1xf32> to vector<2x7x1xf32>
    %c3_720 = arith.constant 3 : index
    %c0_721 = arith.constant 0 : index
    %1839 = vector.load %arg3[%c3_720, %c0_721] : memref<9x128xf32, #tpu.memory_space<vmem>>, vector<1x128xf32>
    %1840 = vector.shape_cast %1839 : vector<1x128xf32> to vector<1x1x128xf32>
    %1841 = vector.broadcast %1838 : vector<2x7x1xf32> to vector<2x7x128xf32>
    %1842 = vector.broadcast %1840 : vector<1x1x128xf32> to vector<2x7x128xf32>
    %1843 = arith.mulf %1841, %1842 : vector<2x7x128xf32>
    %1844 = arith.addf %1837, %1843 : vector<2x7x128xf32>
    %1845 = vector.extract_strided_slice %1691 {offsets = [0, 0, 0], sizes = [2, 7, 1], strides = [1, 1, 1]} : vector<2x8x1xf32> to vector<2x7x1xf32>
    %c4_722 = arith.constant 4 : index
    %c0_723 = arith.constant 0 : index
    %1846 = vector.load %arg3[%c4_722, %c0_723] : memref<9x128xf32, #tpu.memory_space<vmem>>, vector<1x128xf32>
    %1847 = vector.shape_cast %1846 : vector<1x128xf32> to vector<1x1x128xf32>
    %1848 = vector.broadcast %1845 : vector<2x7x1xf32> to vector<2x7x128xf32>
    %1849 = vector.broadcast %1847 : vector<1x1x128xf32> to vector<2x7x128xf32>
    %1850 = arith.mulf %1848, %1849 : vector<2x7x128xf32>
    %1851 = arith.addf %1844, %1850 : vector<2x7x128xf32>
    %1852 = vector.extract_strided_slice %1683 {offsets = [0, 1, 0], sizes = [2, 7, 1], strides = [1, 1, 1]} : vector<2x8x1xf32> to vector<2x7x1xf32>
    %c5_724 = arith.constant 5 : index
    %c0_725 = arith.constant 0 : index
    %1853 = vector.load %arg3[%c5_724, %c0_725] : memref<9x128xf32, #tpu.memory_space<vmem>>, vector<1x128xf32>
    %1854 = vector.shape_cast %1853 : vector<1x128xf32> to vector<1x1x128xf32>
    %1855 = vector.broadcast %1852 : vector<2x7x1xf32> to vector<2x7x128xf32>
    %1856 = vector.broadcast %1854 : vector<1x1x128xf32> to vector<2x7x128xf32>
    %1857 = arith.mulf %1855, %1856 : vector<2x7x128xf32>
    %1858 = arith.addf %1851, %1857 : vector<2x7x128xf32>
    %1859 = vector.extract_strided_slice %1685 {offsets = [0, 0, 0], sizes = [2, 7, 1], strides = [1, 1, 1]} : vector<2x8x1xf32> to vector<2x7x1xf32>
    %c6_726 = arith.constant 6 : index
    %c0_727 = arith.constant 0 : index
    %1860 = vector.load %arg3[%c6_726, %c0_727] : memref<9x128xf32, #tpu.memory_space<vmem>>, vector<1x128xf32>
    %1861 = vector.shape_cast %1860 : vector<1x128xf32> to vector<1x1x128xf32>
    %1862 = vector.broadcast %1859 : vector<2x7x1xf32> to vector<2x7x128xf32>
    %1863 = vector.broadcast %1861 : vector<1x1x128xf32> to vector<2x7x128xf32>
    %1864 = arith.mulf %1862, %1863 : vector<2x7x128xf32>
    %1865 = arith.addf %1858, %1864 : vector<2x7x128xf32>
    %1866 = vector.extract_strided_slice %1693 {offsets = [0, 0, 0], sizes = [2, 7, 1], strides = [1, 1, 1]} : vector<2x8x1xf32> to vector<2x7x1xf32>
    %c7_728 = arith.constant 7 : index
    %c0_729 = arith.constant 0 : index
    %1867 = vector.load %arg3[%c7_728, %c0_729] : memref<9x128xf32, #tpu.memory_space<vmem>>, vector<1x128xf32>
    %1868 = vector.shape_cast %1867 : vector<1x128xf32> to vector<1x1x128xf32>
    %1869 = vector.broadcast %1866 : vector<2x7x1xf32> to vector<2x7x128xf32>
    %1870 = vector.broadcast %1868 : vector<1x1x128xf32> to vector<2x7x128xf32>
    %1871 = arith.mulf %1869, %1870 : vector<2x7x128xf32>
    %1872 = arith.addf %1865, %1871 : vector<2x7x128xf32>
    %1873 = vector.extract_strided_slice %1685 {offsets = [0, 1, 0], sizes = [2, 7, 1], strides = [1, 1, 1]} : vector<2x8x1xf32> to vector<2x7x1xf32>
    %c8_730 = arith.constant 8 : index
    %c0_731 = arith.constant 0 : index
    %1874 = vector.load %arg3[%c8_730, %c0_731] : memref<9x128xf32, #tpu.memory_space<vmem>>, vector<1x128xf32>
    %1875 = vector.shape_cast %1874 : vector<1x128xf32> to vector<1x1x128xf32>
    %1876 = vector.broadcast %1873 : vector<2x7x1xf32> to vector<2x7x128xf32>
    %1877 = vector.broadcast %1875 : vector<1x1x128xf32> to vector<2x7x128xf32>
    %1878 = arith.mulf %1876, %1877 : vector<2x7x128xf32>
    %1879 = arith.addf %1872, %1878 : vector<2x7x128xf32>
    %1880 = vector.extract_strided_slice %1689 {offsets = [0, 0, 0], sizes = [2, 7, 1], strides = [1, 1, 1]} : vector<2x8x1xf32> to vector<2x7x1xf32>
    %c0_732 = arith.constant 0 : index
    %c0_733 = arith.constant 0 : index
    %1881 = vector.load %arg3[%c0_732, %c0_733] : memref<9x128xf32, #tpu.memory_space<vmem>>, vector<1x128xf32>
    %1882 = vector.shape_cast %1881 : vector<1x128xf32> to vector<1x1x128xf32>
    %1883 = vector.broadcast %1880 : vector<2x7x1xf32> to vector<2x7x128xf32>
    %1884 = vector.broadcast %1882 : vector<1x1x128xf32> to vector<2x7x128xf32>
    %1885 = arith.mulf %1883, %1884 : vector<2x7x128xf32>
    %1886 = vector.extract_strided_slice %1681 {offsets = [0, 1, 0], sizes = [2, 7, 1], strides = [1, 1, 1]} : vector<2x8x1xf32> to vector<2x7x1xf32>
    %c1_734 = arith.constant 1 : index
    %c0_735 = arith.constant 0 : index
    %1887 = vector.load %arg3[%c1_734, %c0_735] : memref<9x128xf32, #tpu.memory_space<vmem>>, vector<1x128xf32>
    %1888 = vector.shape_cast %1887 : vector<1x128xf32> to vector<1x1x128xf32>
    %1889 = vector.broadcast %1886 : vector<2x7x1xf32> to vector<2x7x128xf32>
    %1890 = vector.broadcast %1888 : vector<1x1x128xf32> to vector<2x7x128xf32>
    %1891 = arith.mulf %1889, %1890 : vector<2x7x128xf32>
    %1892 = arith.addf %1885, %1891 : vector<2x7x128xf32>
    %1893 = vector.extract_strided_slice %1689 {offsets = [0, 1, 0], sizes = [2, 7, 1], strides = [1, 1, 1]} : vector<2x8x1xf32> to vector<2x7x1xf32>
    %c2_736 = arith.constant 2 : index
    %c0_737 = arith.constant 0 : index
    %1894 = vector.load %arg3[%c2_736, %c0_737] : memref<9x128xf32, #tpu.memory_space<vmem>>, vector<1x128xf32>
    %1895 = vector.shape_cast %1894 : vector<1x128xf32> to vector<1x1x128xf32>
    %1896 = vector.broadcast %1893 : vector<2x7x1xf32> to vector<2x7x128xf32>
    %1897 = vector.broadcast %1895 : vector<1x1x128xf32> to vector<2x7x128xf32>
    %1898 = arith.mulf %1896, %1897 : vector<2x7x128xf32>
    %1899 = arith.addf %1892, %1898 : vector<2x7x128xf32>
    %1900 = vector.extract_strided_slice %1691 {offsets = [0, 0, 0], sizes = [2, 7, 1], strides = [1, 1, 1]} : vector<2x8x1xf32> to vector<2x7x1xf32>
    %c3_738 = arith.constant 3 : index
    %c0_739 = arith.constant 0 : index
    %1901 = vector.load %arg3[%c3_738, %c0_739] : memref<9x128xf32, #tpu.memory_space<vmem>>, vector<1x128xf32>
    %1902 = vector.shape_cast %1901 : vector<1x128xf32> to vector<1x1x128xf32>
    %1903 = vector.broadcast %1900 : vector<2x7x1xf32> to vector<2x7x128xf32>
    %1904 = vector.broadcast %1902 : vector<1x1x128xf32> to vector<2x7x128xf32>
    %1905 = arith.mulf %1903, %1904 : vector<2x7x128xf32>
    %1906 = arith.addf %1899, %1905 : vector<2x7x128xf32>
    %1907 = vector.extract_strided_slice %1683 {offsets = [0, 1, 0], sizes = [2, 7, 1], strides = [1, 1, 1]} : vector<2x8x1xf32> to vector<2x7x1xf32>
    %c4_740 = arith.constant 4 : index
    %c0_741 = arith.constant 0 : index
    %1908 = vector.load %arg3[%c4_740, %c0_741] : memref<9x128xf32, #tpu.memory_space<vmem>>, vector<1x128xf32>
    %1909 = vector.shape_cast %1908 : vector<1x128xf32> to vector<1x1x128xf32>
    %1910 = vector.broadcast %1907 : vector<2x7x1xf32> to vector<2x7x128xf32>
    %1911 = vector.broadcast %1909 : vector<1x1x128xf32> to vector<2x7x128xf32>
    %1912 = arith.mulf %1910, %1911 : vector<2x7x128xf32>
    %1913 = arith.addf %1906, %1912 : vector<2x7x128xf32>
    %1914 = vector.extract_strided_slice %1691 {offsets = [0, 1, 0], sizes = [2, 7, 1], strides = [1, 1, 1]} : vector<2x8x1xf32> to vector<2x7x1xf32>
    %c5_742 = arith.constant 5 : index
    %c0_743 = arith.constant 0 : index
    %1915 = vector.load %arg3[%c5_742, %c0_743] : memref<9x128xf32, #tpu.memory_space<vmem>>, vector<1x128xf32>
    %1916 = vector.shape_cast %1915 : vector<1x128xf32> to vector<1x1x128xf32>
    %1917 = vector.broadcast %1914 : vector<2x7x1xf32> to vector<2x7x128xf32>
    %1918 = vector.broadcast %1916 : vector<1x1x128xf32> to vector<2x7x128xf32>
    %1919 = arith.mulf %1917, %1918 : vector<2x7x128xf32>
    %1920 = arith.addf %1913, %1919 : vector<2x7x128xf32>
    %1921 = vector.extract_strided_slice %1693 {offsets = [0, 0, 0], sizes = [2, 7, 1], strides = [1, 1, 1]} : vector<2x8x1xf32> to vector<2x7x1xf32>
    %c6_744 = arith.constant 6 : index
    %c0_745 = arith.constant 0 : index
    %1922 = vector.load %arg3[%c6_744, %c0_745] : memref<9x128xf32, #tpu.memory_space<vmem>>, vector<1x128xf32>
    %1923 = vector.shape_cast %1922 : vector<1x128xf32> to vector<1x1x128xf32>
    %1924 = vector.broadcast %1921 : vector<2x7x1xf32> to vector<2x7x128xf32>
    %1925 = vector.broadcast %1923 : vector<1x1x128xf32> to vector<2x7x128xf32>
    %1926 = arith.mulf %1924, %1925 : vector<2x7x128xf32>
    %1927 = arith.addf %1920, %1926 : vector<2x7x128xf32>
    %1928 = vector.extract_strided_slice %1685 {offsets = [0, 1, 0], sizes = [2, 7, 1], strides = [1, 1, 1]} : vector<2x8x1xf32> to vector<2x7x1xf32>
    %c7_746 = arith.constant 7 : index
    %c0_747 = arith.constant 0 : index
    %1929 = vector.load %arg3[%c7_746, %c0_747] : memref<9x128xf32, #tpu.memory_space<vmem>>, vector<1x128xf32>
    %1930 = vector.shape_cast %1929 : vector<1x128xf32> to vector<1x1x128xf32>
    %1931 = vector.broadcast %1928 : vector<2x7x1xf32> to vector<2x7x128xf32>
    %1932 = vector.broadcast %1930 : vector<1x1x128xf32> to vector<2x7x128xf32>
    %1933 = arith.mulf %1931, %1932 : vector<2x7x128xf32>
    %1934 = arith.addf %1927, %1933 : vector<2x7x128xf32>
    %1935 = vector.extract_strided_slice %1693 {offsets = [0, 1, 0], sizes = [2, 7, 1], strides = [1, 1, 1]} : vector<2x8x1xf32> to vector<2x7x1xf32>
    %c8_748 = arith.constant 8 : index
    %c0_749 = arith.constant 0 : index
    %1936 = vector.load %arg3[%c8_748, %c0_749] : memref<9x128xf32, #tpu.memory_space<vmem>>, vector<1x128xf32>
    %1937 = vector.shape_cast %1936 : vector<1x128xf32> to vector<1x1x128xf32>
    %1938 = vector.broadcast %1935 : vector<2x7x1xf32> to vector<2x7x128xf32>
    %1939 = vector.broadcast %1937 : vector<1x1x128xf32> to vector<2x7x128xf32>
    %1940 = arith.mulf %1938, %1939 : vector<2x7x128xf32>
    %1941 = arith.addf %1934, %1940 : vector<2x7x128xf32>
    %1942 = arith.maximumf %1755, %1817 : vector<2x7x128xf32>
    %1943 = arith.maximumf %1879, %1941 : vector<2x7x128xf32>
    %1944 = arith.maximumf %1942, %1943 : vector<2x7x128xf32>
    %c0_750 = arith.constant 0 : index
    %c0_751 = arith.constant 0 : index
    %1945 = vector.load %arg4[%c0_750, %c0_751] : memref<1x128xf32, #tpu.memory_space<vmem>>, vector<1x128xf32>
    %1946 = vector.shape_cast %1945 : vector<1x128xf32> to vector<1x1x128xf32>
    %1947 = vector.broadcast %1946 : vector<1x1x128xf32> to vector<2x7x128xf32>
    %1948 = arith.addf %1944, %1947 : vector<2x7x128xf32>
    %cst_752 = arith.constant 0.000000e+00 : f32
    %1949 = vector.broadcast %cst_752 : f32 to vector<2x7x128xf32>
    %1950 = arith.maximumf %1948, %1949 : vector<2x7x128xf32>
    %1951 = vector.extract_strided_slice %1950 {offsets = [0, 0, 0], sizes = [1, 7, 128], strides = [1, 1, 1]} : vector<2x7x128xf32> to vector<1x7x128xf32>
    %1952 = vector.shape_cast %1951 : vector<1x7x128xf32> to vector<7x128xf32>
    %c42 = arith.constant 42 : index
    %c0_753 = arith.constant 0 : index
    %1953 = vector.load %arg12[%c42, %c0_753] : memref<128x128xf32, #tpu.memory_space<vmem>>, vector<7x128xf32>
    tpu.vector_store %arg12[%c42, %c0_753], %1952 {strides = array<i32>} : memref<128x128xf32, #tpu.memory_space<vmem>>, vector<7x128xf32>,
    %1954 = vector.extract_strided_slice %1950 {offsets = [1, 0, 0], sizes = [1, 7, 128], strides = [1, 1, 1]} : vector<2x7x128xf32> to vector<1x7x128xf32>
    %1955 = vector.shape_cast %1954 : vector<1x7x128xf32> to vector<7x128xf32>
    %c98 = arith.constant 98 : index
    %c0_754 = arith.constant 0 : index
    %1956 = vector.load %arg12[%c98, %c0_754] : memref<128x128xf32, #tpu.memory_space<vmem>>, vector<7x128xf32>
    tpu.vector_store %arg12[%c98, %c0_754], %1955 {strides = array<i32>} : memref<128x128xf32, #tpu.memory_space<vmem>>, vector<7x128xf32>,
    %1957 = tpu.iota {dimensions = array<i32: 1>} : vector<1x128xi32>
    %c0_i32 = arith.constant 0 : i32
    %1958 = vector.broadcast %c0_i32 : i32 to vector<1x128xi32>
    %1959 = arith.cmpi sge, %1957, %1958 : vector<1x128xi32>
    %c6_i32 = arith.constant 6 : i32
    %1960 = vector.broadcast %c6_i32 : i32 to vector<1x128xi32>
    %1961 = arith.cmpi slt, %1957, %1960 : vector<1x128xi32>
    %1962 = arith.andi %1959, %1961 : vector<1x128xi1>
    %1963 = arith.extui %1962 : vector<1x128xi1> to vector<1x128xi32>
    %1964 = arith.sitofp %1963 : vector<1x128xi32> to vector<1x128xf32>
    %c0_755 = arith.constant 0 : index
    %c0_756 = arith.constant 0 : index
    %1965 = vector.load %arg12[%c0_755, %c0_756] : memref<128x128xf32, #tpu.memory_space<vmem>>, vector<112x128xf32>
    %1966 = vector.broadcast %1964 : vector<1x128xf32> to vector<112x128xf32>
    %1967 = arith.mulf %1965, %1966 : vector<112x128xf32>
    %c6_i32_757 = arith.constant 6 : i32
    %1968 = vector.broadcast %c6_i32_757 : i32 to vector<1x128xi32>
    %1969 = arith.cmpi sge, %1957, %1968 : vector<1x128xi32>
    %c12_i32 = arith.constant 12 : i32
    %1970 = vector.broadcast %c12_i32 : i32 to vector<1x128xi32>
    %1971 = arith.cmpi slt, %1957, %1970 : vector<1x128xi32>
    %1972 = arith.andi %1969, %1971 : vector<1x128xi1>
    %1973 = arith.extui %1972 : vector<1x128xi1> to vector<1x128xi32>
    %1974 = arith.sitofp %1973 : vector<1x128xi32> to vector<1x128xf32>
    %c1_758 = arith.constant 1 : index
    %c0_759 = arith.constant 0 : index
    %1975 = vector.load %arg12[%c1_758, %c0_759] : memref<128x128xf32, #tpu.memory_space<vmem>>, vector<112x128xf32>
    %1976 = vector.broadcast %1974 : vector<1x128xf32> to vector<112x128xf32>
    %1977 = arith.mulf %1975, %1976 : vector<112x128xf32>
    %1978 = arith.addf %1967, %1977 : vector<112x128xf32>
    %c12_i32_760 = arith.constant 12 : i32
    %1979 = vector.broadcast %c12_i32_760 : i32 to vector<1x128xi32>
    %1980 = arith.cmpi sge, %1957, %1979 : vector<1x128xi32>
    %c18_i32 = arith.constant 18 : i32
    %1981 = vector.broadcast %c18_i32 : i32 to vector<1x128xi32>
    %1982 = arith.cmpi slt, %1957, %1981 : vector<1x128xi32>
    %1983 = arith.andi %1980, %1982 : vector<1x128xi1>
    %1984 = arith.extui %1983 : vector<1x128xi1> to vector<1x128xi32>
    %1985 = arith.sitofp %1984 : vector<1x128xi32> to vector<1x128xf32>
    %c2_761 = arith.constant 2 : index
    %c0_762 = arith.constant 0 : index
    %1986 = vector.load %arg12[%c2_761, %c0_762] : memref<128x128xf32, #tpu.memory_space<vmem>>, vector<112x128xf32>
    %1987 = vector.broadcast %1985 : vector<1x128xf32> to vector<112x128xf32>
    %1988 = arith.mulf %1986, %1987 : vector<112x128xf32>
    %1989 = arith.addf %1978, %1988 : vector<112x128xf32>
    %c18_i32_763 = arith.constant 18 : i32
    %1990 = vector.broadcast %c18_i32_763 : i32 to vector<1x128xi32>
    %1991 = arith.cmpi sge, %1957, %1990 : vector<1x128xi32>
    %c24_i32 = arith.constant 24 : i32
    %1992 = vector.broadcast %c24_i32 : i32 to vector<1x128xi32>
    %1993 = arith.cmpi slt, %1957, %1992 : vector<1x128xi32>
    %1994 = arith.andi %1991, %1993 : vector<1x128xi1>
    %1995 = arith.extui %1994 : vector<1x128xi1> to vector<1x128xi32>
    %1996 = arith.sitofp %1995 : vector<1x128xi32> to vector<1x128xf32>
    %c7_764 = arith.constant 7 : index
    %c0_765 = arith.constant 0 : index
    %1997 = vector.load %arg12[%c7_764, %c0_765] : memref<128x128xf32, #tpu.memory_space<vmem>>, vector<112x128xf32>
    %1998 = vector.broadcast %1996 : vector<1x128xf32> to vector<112x128xf32>
    %1999 = arith.mulf %1997, %1998 : vector<112x128xf32>
    %2000 = arith.addf %1989, %1999 : vector<112x128xf32>
    %c24_i32_766 = arith.constant 24 : i32
    %2001 = vector.broadcast %c24_i32_766 : i32 to vector<1x128xi32>
    %2002 = arith.cmpi sge, %1957, %2001 : vector<1x128xi32>
    %c30_i32 = arith.constant 30 : i32
    %2003 = vector.broadcast %c30_i32 : i32 to vector<1x128xi32>
    %2004 = arith.cmpi slt, %1957, %2003 : vector<1x128xi32>
    %2005 = arith.andi %2002, %2004 : vector<1x128xi1>
    %2006 = arith.extui %2005 : vector<1x128xi1> to vector<1x128xi32>
    %2007 = arith.sitofp %2006 : vector<1x128xi32> to vector<1x128xf32>
    %c8_767 = arith.constant 8 : index
    %c0_768 = arith.constant 0 : index
    %2008 = vector.load %arg12[%c8_767, %c0_768] : memref<128x128xf32, #tpu.memory_space<vmem>>, vector<112x128xf32>
    %2009 = vector.broadcast %2007 : vector<1x128xf32> to vector<112x128xf32>
    %2010 = arith.mulf %2008, %2009 : vector<112x128xf32>
    %2011 = arith.addf %2000, %2010 : vector<112x128xf32>
    %c30_i32_769 = arith.constant 30 : i32
    %2012 = vector.broadcast %c30_i32_769 : i32 to vector<1x128xi32>
    %2013 = arith.cmpi sge, %1957, %2012 : vector<1x128xi32>
    %c36_i32 = arith.constant 36 : i32
    %2014 = vector.broadcast %c36_i32 : i32 to vector<1x128xi32>
    %2015 = arith.cmpi slt, %1957, %2014 : vector<1x128xi32>
    %2016 = arith.andi %2013, %2015 : vector<1x128xi1>
    %2017 = arith.extui %2016 : vector<1x128xi1> to vector<1x128xi32>
    %2018 = arith.sitofp %2017 : vector<1x128xi32> to vector<1x128xf32>
    %c9_770 = arith.constant 9 : index
    %c0_771 = arith.constant 0 : index
    %2019 = vector.load %arg12[%c9_770, %c0_771] : memref<128x128xf32, #tpu.memory_space<vmem>>, vector<112x128xf32>
    %2020 = vector.broadcast %2018 : vector<1x128xf32> to vector<112x128xf32>
    %2021 = arith.mulf %2019, %2020 : vector<112x128xf32>
    %2022 = arith.addf %2011, %2021 : vector<112x128xf32>
    %c36_i32_772 = arith.constant 36 : i32
    %2023 = vector.broadcast %c36_i32_772 : i32 to vector<1x128xi32>
    %2024 = arith.cmpi sge, %1957, %2023 : vector<1x128xi32>
    %c42_i32 = arith.constant 42 : i32
    %2025 = vector.broadcast %c42_i32 : i32 to vector<1x128xi32>
    %2026 = arith.cmpi slt, %1957, %2025 : vector<1x128xi32>
    %2027 = arith.andi %2024, %2026 : vector<1x128xi1>
    %2028 = arith.extui %2027 : vector<1x128xi1> to vector<1x128xi32>
    %2029 = arith.sitofp %2028 : vector<1x128xi32> to vector<1x128xf32>
    %c14_773 = arith.constant 14 : index
    %c0_774 = arith.constant 0 : index
    %2030 = vector.load %arg12[%c14_773, %c0_774] : memref<128x128xf32, #tpu.memory_space<vmem>>, vector<112x128xf32>
    %2031 = vector.broadcast %2029 : vector<1x128xf32> to vector<112x128xf32>
    %2032 = arith.mulf %2030, %2031 : vector<112x128xf32>
    %2033 = arith.addf %2022, %2032 : vector<112x128xf32>
    %c42_i32_775 = arith.constant 42 : i32
    %2034 = vector.broadcast %c42_i32_775 : i32 to vector<1x128xi32>
    %2035 = arith.cmpi sge, %1957, %2034 : vector<1x128xi32>
    %c48_i32 = arith.constant 48 : i32
    %2036 = vector.broadcast %c48_i32 : i32 to vector<1x128xi32>
    %2037 = arith.cmpi slt, %1957, %2036 : vector<1x128xi32>
    %2038 = arith.andi %2035, %2037 : vector<1x128xi1>
    %2039 = arith.extui %2038 : vector<1x128xi1> to vector<1x128xi32>
    %2040 = arith.sitofp %2039 : vector<1x128xi32> to vector<1x128xf32>
    %c15_776 = arith.constant 15 : index
    %c0_777 = arith.constant 0 : index
    %2041 = vector.load %arg12[%c15_776, %c0_777] : memref<128x128xf32, #tpu.memory_space<vmem>>, vector<112x128xf32>
    %2042 = vector.broadcast %2040 : vector<1x128xf32> to vector<112x128xf32>
    %2043 = arith.mulf %2041, %2042 : vector<112x128xf32>
    %2044 = arith.addf %2033, %2043 : vector<112x128xf32>
    %c48_i32_778 = arith.constant 48 : i32
    %2045 = vector.broadcast %c48_i32_778 : i32 to vector<1x128xi32>
    %2046 = arith.cmpi sge, %1957, %2045 : vector<1x128xi32>
    %c54_i32 = arith.constant 54 : i32
    %2047 = vector.broadcast %c54_i32 : i32 to vector<1x128xi32>
    %2048 = arith.cmpi slt, %1957, %2047 : vector<1x128xi32>
    %2049 = arith.andi %2046, %2048 : vector<1x128xi1>
    %2050 = arith.extui %2049 : vector<1x128xi1> to vector<1x128xi32>
    %2051 = arith.sitofp %2050 : vector<1x128xi32> to vector<1x128xf32>
    %c16 = arith.constant 16 : index
    %c0_779 = arith.constant 0 : index
    %2052 = vector.load %arg12[%c16, %c0_779] : memref<128x128xf32, #tpu.memory_space<vmem>>, vector<112x128xf32>
    %2053 = vector.broadcast %2051 : vector<1x128xf32> to vector<112x128xf32>
    %2054 = arith.mulf %2052, %2053 : vector<112x128xf32>
    %2055 = arith.addf %2044, %2054 : vector<112x128xf32>
    %c0_780 = arith.constant 0 : index
    %c0_781 = arith.constant 0 : index
    %2056 = vector.load %arg5[%c0_780, %c0_781] : memref<128x128xf32, #tpu.memory_space<vmem>>, vector<128x128xf32>
    %cst_782 = arith.constant dense<0.000000e+00> : vector<112x128xf32>
    %2057 = tpu.matmul %2055, %2056, %cst_782 {dimension_numbers = #tpu.dot_dimension_numbers<[1], [0], [0], [1], [0, 0, 1, 1], [], []>} : vector<112x128xf32>, vector<128x128xf32>, vector<112x128xf32> -> vector<112x128xf32>
    %c0_783 = arith.constant 0 : index
    %c0_784 = arith.constant 0 : index
    %2058 = vector.load %arg6[%c0_783, %c0_784] : memref<1x128xf32, #tpu.memory_space<vmem>>, vector<1x128xf32>
    %2059 = vector.broadcast %2058 : vector<1x128xf32> to vector<112x128xf32>
    %2060 = arith.addf %2057, %2059 : vector<112x128xf32>
    %cst_785 = arith.constant 0.000000e+00 : f32
    %2061 = vector.broadcast %cst_785 : f32 to vector<112x128xf32>
    %2062 = arith.maximumf %2060, %2061 : vector<112x128xf32>
    %c0_786 = arith.constant 0 : index
    %c0_787 = arith.constant 0 : index
    %2063 = vector.load %arg13[%c0_786, %c0_787] : memref<112x128xf32, #tpu.memory_space<vmem>>, vector<112x128xf32>
    tpu.vector_store %arg13[%c0_786, %c0_787], %2062 {strides = array<i32>} : memref<112x128xf32, #tpu.memory_space<vmem>>, vector<112x128xf32>,
    %c0_788 = arith.constant 0 : index
    %c0_789 = arith.constant 0 : index
    %2064 = vector.load %arg13[%c0_788, %c0_789] : memref<112x128xf32, #tpu.memory_space<vmem>>, vector<1x16xf32>
    %c0_790 = arith.constant 0 : index
    %c0_791 = arith.constant 0 : index
    %2065 = vector.load %arg14[%c0_790, %c0_791] : memref<8x512xf32, #tpu.memory_space<vmem>>, vector<1x16xf32>
    tpu.vector_store %arg14[%c0_790, %c0_791], %2064 {strides = array<i32>} : memref<8x512xf32, #tpu.memory_space<vmem>>, vector<1x16xf32>,
    %c56_792 = arith.constant 56 : index
    %c0_793 = arith.constant 0 : index
    %2066 = vector.load %arg13[%c56_792, %c0_793] : memref<112x128xf32, #tpu.memory_space<vmem>>, vector<1x16xf32>
    %c1_794 = arith.constant 1 : index
    %c0_795 = arith.constant 0 : index
    %2067 = vector.load %arg14[%c1_794, %c0_795] : memref<8x512xf32, #tpu.memory_space<vmem>>, vector<1x16xf32>
    tpu.vector_store %arg14[%c1_794, %c0_795], %2066 {strides = array<i32>} : memref<8x512xf32, #tpu.memory_space<vmem>>, vector<1x16xf32>,
    %c1_796 = arith.constant 1 : index
    %c0_797 = arith.constant 0 : index
    %2068 = vector.load %arg13[%c1_796, %c0_797] : memref<112x128xf32, #tpu.memory_space<vmem>>, vector<1x16xf32>
    %c0_798 = arith.constant 0 : index
    %c16_799 = arith.constant 16 : index
    %2069 = vector.load %arg14[%c0_798, %c16_799] : memref<8x512xf32, #tpu.memory_space<vmem>>, vector<1x16xf32>
    tpu.vector_store %arg14[%c0_798, %c16_799], %2068 {strides = array<i32>} : memref<8x512xf32, #tpu.memory_space<vmem>>, vector<1x16xf32>,
    %c57 = arith.constant 57 : index
    %c0_800 = arith.constant 0 : index
    %2070 = vector.load %arg13[%c57, %c0_800] : memref<112x128xf32, #tpu.memory_space<vmem>>, vector<1x16xf32>
    %c1_801 = arith.constant 1 : index
    %c16_802 = arith.constant 16 : index
    %2071 = vector.load %arg14[%c1_801, %c16_802] : memref<8x512xf32, #tpu.memory_space<vmem>>, vector<1x16xf32>
    tpu.vector_store %arg14[%c1_801, %c16_802], %2070 {strides = array<i32>} : memref<8x512xf32, #tpu.memory_space<vmem>>, vector<1x16xf32>,
    %c2_803 = arith.constant 2 : index
    %c0_804 = arith.constant 0 : index
    %2072 = vector.load %arg13[%c2_803, %c0_804] : memref<112x128xf32, #tpu.memory_space<vmem>>, vector<1x16xf32>
    %c0_805 = arith.constant 0 : index
    %c32 = arith.constant 32 : index
    %2073 = vector.load %arg14[%c0_805, %c32] : memref<8x512xf32, #tpu.memory_space<vmem>>, vector<1x16xf32>
    tpu.vector_store %arg14[%c0_805, %c32], %2072 {strides = array<i32>} : memref<8x512xf32, #tpu.memory_space<vmem>>, vector<1x16xf32>,
    %c58 = arith.constant 58 : index
    %c0_806 = arith.constant 0 : index
    %2074 = vector.load %arg13[%c58, %c0_806] : memref<112x128xf32, #tpu.memory_space<vmem>>, vector<1x16xf32>
    %c1_807 = arith.constant 1 : index
    %c32_808 = arith.constant 32 : index
    %2075 = vector.load %arg14[%c1_807, %c32_808] : memref<8x512xf32, #tpu.memory_space<vmem>>, vector<1x16xf32>
    tpu.vector_store %arg14[%c1_807, %c32_808], %2074 {strides = array<i32>} : memref<8x512xf32, #tpu.memory_space<vmem>>, vector<1x16xf32>,
    %c3_809 = arith.constant 3 : index
    %c0_810 = arith.constant 0 : index
    %2076 = vector.load %arg13[%c3_809, %c0_810] : memref<112x128xf32, #tpu.memory_space<vmem>>, vector<1x16xf32>
    %c0_811 = arith.constant 0 : index
    %c48 = arith.constant 48 : index
    %2077 = vector.load %arg14[%c0_811, %c48] : memref<8x512xf32, #tpu.memory_space<vmem>>, vector<1x16xf32>
    tpu.vector_store %arg14[%c0_811, %c48], %2076 {strides = array<i32>} : memref<8x512xf32, #tpu.memory_space<vmem>>, vector<1x16xf32>,
    %c59 = arith.constant 59 : index
    %c0_812 = arith.constant 0 : index
    %2078 = vector.load %arg13[%c59, %c0_812] : memref<112x128xf32, #tpu.memory_space<vmem>>, vector<1x16xf32>
    %c1_813 = arith.constant 1 : index
    %c48_814 = arith.constant 48 : index
    %2079 = vector.load %arg14[%c1_813, %c48_814] : memref<8x512xf32, #tpu.memory_space<vmem>>, vector<1x16xf32>
    tpu.vector_store %arg14[%c1_813, %c48_814], %2078 {strides = array<i32>} : memref<8x512xf32, #tpu.memory_space<vmem>>, vector<1x16xf32>,
    %c4_815 = arith.constant 4 : index
    %c0_816 = arith.constant 0 : index
    %2080 = vector.load %arg13[%c4_815, %c0_816] : memref<112x128xf32, #tpu.memory_space<vmem>>, vector<1x16xf32>
    %c0_817 = arith.constant 0 : index
    %c64 = arith.constant 64 : index
    %2081 = vector.load %arg14[%c0_817, %c64] : memref<8x512xf32, #tpu.memory_space<vmem>>, vector<1x16xf32>
    tpu.vector_store %arg14[%c0_817, %c64], %2080 {strides = array<i32>} : memref<8x512xf32, #tpu.memory_space<vmem>>, vector<1x16xf32>,
    %c60 = arith.constant 60 : index
    %c0_818 = arith.constant 0 : index
    %2082 = vector.load %arg13[%c60, %c0_818] : memref<112x128xf32, #tpu.memory_space<vmem>>, vector<1x16xf32>
    %c1_819 = arith.constant 1 : index
    %c64_820 = arith.constant 64 : index
    %2083 = vector.load %arg14[%c1_819, %c64_820] : memref<8x512xf32, #tpu.memory_space<vmem>>, vector<1x16xf32>
    tpu.vector_store %arg14[%c1_819, %c64_820], %2082 {strides = array<i32>} : memref<8x512xf32, #tpu.memory_space<vmem>>, vector<1x16xf32>,
    %c7_821 = arith.constant 7 : index
    %c0_822 = arith.constant 0 : index
    %2084 = vector.load %arg13[%c7_821, %c0_822] : memref<112x128xf32, #tpu.memory_space<vmem>>, vector<1x16xf32>
    %c0_823 = arith.constant 0 : index
    %c80 = arith.constant 80 : index
    %2085 = vector.load %arg14[%c0_823, %c80] : memref<8x512xf32, #tpu.memory_space<vmem>>, vector<1x16xf32>
    tpu.vector_store %arg14[%c0_823, %c80], %2084 {strides = array<i32>} : memref<8x512xf32, #tpu.memory_space<vmem>>, vector<1x16xf32>,
    %c63_824 = arith.constant 63 : index
    %c0_825 = arith.constant 0 : index
    %2086 = vector.load %arg13[%c63_824, %c0_825] : memref<112x128xf32, #tpu.memory_space<vmem>>, vector<1x16xf32>
    %c1_826 = arith.constant 1 : index
    %c80_827 = arith.constant 80 : index
    %2087 = vector.load %arg14[%c1_826, %c80_827] : memref<8x512xf32, #tpu.memory_space<vmem>>, vector<1x16xf32>
    tpu.vector_store %arg14[%c1_826, %c80_827], %2086 {strides = array<i32>} : memref<8x512xf32, #tpu.memory_space<vmem>>, vector<1x16xf32>,
    %c8_828 = arith.constant 8 : index
    %c0_829 = arith.constant 0 : index
    %2088 = vector.load %arg13[%c8_828, %c0_829] : memref<112x128xf32, #tpu.memory_space<vmem>>, vector<1x16xf32>
    %c0_830 = arith.constant 0 : index
    %c96 = arith.constant 96 : index
    %2089 = vector.load %arg14[%c0_830, %c96] : memref<8x512xf32, #tpu.memory_space<vmem>>, vector<1x16xf32>
    tpu.vector_store %arg14[%c0_830, %c96], %2088 {strides = array<i32>} : memref<8x512xf32, #tpu.memory_space<vmem>>, vector<1x16xf32>,
    %c64_831 = arith.constant 64 : index
    %c0_832 = arith.constant 0 : index
    %2090 = vector.load %arg13[%c64_831, %c0_832] : memref<112x128xf32, #tpu.memory_space<vmem>>, vector<1x16xf32>
    %c1_833 = arith.constant 1 : index
    %c96_834 = arith.constant 96 : index
    %2091 = vector.load %arg14[%c1_833, %c96_834] : memref<8x512xf32, #tpu.memory_space<vmem>>, vector<1x16xf32>
    tpu.vector_store %arg14[%c1_833, %c96_834], %2090 {strides = array<i32>} : memref<8x512xf32, #tpu.memory_space<vmem>>, vector<1x16xf32>,
    %c9_835 = arith.constant 9 : index
    %c0_836 = arith.constant 0 : index
    %2092 = vector.load %arg13[%c9_835, %c0_836] : memref<112x128xf32, #tpu.memory_space<vmem>>, vector<1x16xf32>
    %c0_837 = arith.constant 0 : index
    %c112 = arith.constant 112 : index
    %2093 = vector.load %arg14[%c0_837, %c112] : memref<8x512xf32, #tpu.memory_space<vmem>>, vector<1x16xf32>
    tpu.vector_store %arg14[%c0_837, %c112], %2092 {strides = array<i32>} : memref<8x512xf32, #tpu.memory_space<vmem>>, vector<1x16xf32>,
    %c65 = arith.constant 65 : index
    %c0_838 = arith.constant 0 : index
    %2094 = vector.load %arg13[%c65, %c0_838] : memref<112x128xf32, #tpu.memory_space<vmem>>, vector<1x16xf32>
    %c1_839 = arith.constant 1 : index
    %c112_840 = arith.constant 112 : index
    %2095 = vector.load %arg14[%c1_839, %c112_840] : memref<8x512xf32, #tpu.memory_space<vmem>>, vector<1x16xf32>
    tpu.vector_store %arg14[%c1_839, %c112_840], %2094 {strides = array<i32>} : memref<8x512xf32, #tpu.memory_space<vmem>>, vector<1x16xf32>,
    %c10_841 = arith.constant 10 : index
    %c0_842 = arith.constant 0 : index
    %2096 = vector.load %arg13[%c10_841, %c0_842] : memref<112x128xf32, #tpu.memory_space<vmem>>, vector<1x16xf32>
    %c0_843 = arith.constant 0 : index
    %c128 = arith.constant 128 : index
    %2097 = vector.load %arg14[%c0_843, %c128] : memref<8x512xf32, #tpu.memory_space<vmem>>, vector<1x16xf32>
    tpu.vector_store %arg14[%c0_843, %c128], %2096 {strides = array<i32>} : memref<8x512xf32, #tpu.memory_space<vmem>>, vector<1x16xf32>,
    %c66 = arith.constant 66 : index
    %c0_844 = arith.constant 0 : index
    %2098 = vector.load %arg13[%c66, %c0_844] : memref<112x128xf32, #tpu.memory_space<vmem>>, vector<1x16xf32>
    %c1_845 = arith.constant 1 : index
    %c128_846 = arith.constant 128 : index
    %2099 = vector.load %arg14[%c1_845, %c128_846] : memref<8x512xf32, #tpu.memory_space<vmem>>, vector<1x16xf32>
    tpu.vector_store %arg14[%c1_845, %c128_846], %2098 {strides = array<i32>} : memref<8x512xf32, #tpu.memory_space<vmem>>, vector<1x16xf32>,
    %c11_847 = arith.constant 11 : index
    %c0_848 = arith.constant 0 : index
    %2100 = vector.load %arg13[%c11_847, %c0_848] : memref<112x128xf32, #tpu.memory_space<vmem>>, vector<1x16xf32>
    %c0_849 = arith.constant 0 : index
    %c144 = arith.constant 144 : index
    %2101 = vector.load %arg14[%c0_849, %c144] : memref<8x512xf32, #tpu.memory_space<vmem>>, vector<1x16xf32>
    tpu.vector_store %arg14[%c0_849, %c144], %2100 {strides = array<i32>} : memref<8x512xf32, #tpu.memory_space<vmem>>, vector<1x16xf32>,
    %c67 = arith.constant 67 : index
    %c0_850 = arith.constant 0 : index
    %2102 = vector.load %arg13[%c67, %c0_850] : memref<112x128xf32, #tpu.memory_space<vmem>>, vector<1x16xf32>
    %c1_851 = arith.constant 1 : index
    %c144_852 = arith.constant 144 : index
    %2103 = vector.load %arg14[%c1_851, %c144_852] : memref<8x512xf32, #tpu.memory_space<vmem>>, vector<1x16xf32>
    tpu.vector_store %arg14[%c1_851, %c144_852], %2102 {strides = array<i32>} : memref<8x512xf32, #tpu.memory_space<vmem>>, vector<1x16xf32>,
    %c14_853 = arith.constant 14 : index
    %c0_854 = arith.constant 0 : index
    %2104 = vector.load %arg13[%c14_853, %c0_854] : memref<112x128xf32, #tpu.memory_space<vmem>>, vector<1x16xf32>
    %c0_855 = arith.constant 0 : index
    %c160 = arith.constant 160 : index
    %2105 = vector.load %arg14[%c0_855, %c160] : memref<8x512xf32, #tpu.memory_space<vmem>>, vector<1x16xf32>
    tpu.vector_store %arg14[%c0_855, %c160], %2104 {strides = array<i32>} : memref<8x512xf32, #tpu.memory_space<vmem>>, vector<1x16xf32>,
    %c70_856 = arith.constant 70 : index
    %c0_857 = arith.constant 0 : index
    %2106 = vector.load %arg13[%c70_856, %c0_857] : memref<112x128xf32, #tpu.memory_space<vmem>>, vector<1x16xf32>
    %c1_858 = arith.constant 1 : index
    %c160_859 = arith.constant 160 : index
    %2107 = vector.load %arg14[%c1_858, %c160_859] : memref<8x512xf32, #tpu.memory_space<vmem>>, vector<1x16xf32>
    tpu.vector_store %arg14[%c1_858, %c160_859], %2106 {strides = array<i32>} : memref<8x512xf32, #tpu.memory_space<vmem>>, vector<1x16xf32>,
    %c15_860 = arith.constant 15 : index
    %c0_861 = arith.constant 0 : index
    %2108 = vector.load %arg13[%c15_860, %c0_861] : memref<112x128xf32, #tpu.memory_space<vmem>>, vector<1x16xf32>
    %c0_862 = arith.constant 0 : index
    %c176 = arith.constant 176 : index
    %2109 = vector.load %arg14[%c0_862, %c176] : memref<8x512xf32, #tpu.memory_space<vmem>>, vector<1x16xf32>
    tpu.vector_store %arg14[%c0_862, %c176], %2108 {strides = array<i32>} : memref<8x512xf32, #tpu.memory_space<vmem>>, vector<1x16xf32>,
    %c71 = arith.constant 71 : index
    %c0_863 = arith.constant 0 : index
    %2110 = vector.load %arg13[%c71, %c0_863] : memref<112x128xf32, #tpu.memory_space<vmem>>, vector<1x16xf32>
    %c1_864 = arith.constant 1 : index
    %c176_865 = arith.constant 176 : index
    %2111 = vector.load %arg14[%c1_864, %c176_865] : memref<8x512xf32, #tpu.memory_space<vmem>>, vector<1x16xf32>
    tpu.vector_store %arg14[%c1_864, %c176_865], %2110 {strides = array<i32>} : memref<8x512xf32, #tpu.memory_space<vmem>>, vector<1x16xf32>,
    %c16_866 = arith.constant 16 : index
    %c0_867 = arith.constant 0 : index
    %2112 = vector.load %arg13[%c16_866, %c0_867] : memref<112x128xf32, #tpu.memory_space<vmem>>, vector<1x16xf32>
    %c0_868 = arith.constant 0 : index
    %c192 = arith.constant 192 : index
    %2113 = vector.load %arg14[%c0_868, %c192] : memref<8x512xf32, #tpu.memory_space<vmem>>, vector<1x16xf32>
    tpu.vector_store %arg14[%c0_868, %c192], %2112 {strides = array<i32>} : memref<8x512xf32, #tpu.memory_space<vmem>>, vector<1x16xf32>,
    %c72 = arith.constant 72 : index
    %c0_869 = arith.constant 0 : index
    %2114 = vector.load %arg13[%c72, %c0_869] : memref<112x128xf32, #tpu.memory_space<vmem>>, vector<1x16xf32>
    %c1_870 = arith.constant 1 : index
    %c192_871 = arith.constant 192 : index
    %2115 = vector.load %arg14[%c1_870, %c192_871] : memref<8x512xf32, #tpu.memory_space<vmem>>, vector<1x16xf32>
    tpu.vector_store %arg14[%c1_870, %c192_871], %2114 {strides = array<i32>} : memref<8x512xf32, #tpu.memory_space<vmem>>, vector<1x16xf32>,
    %c17 = arith.constant 17 : index
    %c0_872 = arith.constant 0 : index
    %2116 = vector.load %arg13[%c17, %c0_872] : memref<112x128xf32, #tpu.memory_space<vmem>>, vector<1x16xf32>
    %c0_873 = arith.constant 0 : index
    %c208 = arith.constant 208 : index
    %2117 = vector.load %arg14[%c0_873, %c208] : memref<8x512xf32, #tpu.memory_space<vmem>>, vector<1x16xf32>
    tpu.vector_store %arg14[%c0_873, %c208], %2116 {strides = array<i32>} : memref<8x512xf32, #tpu.memory_space<vmem>>, vector<1x16xf32>,
    %c73 = arith.constant 73 : index
    %c0_874 = arith.constant 0 : index
    %2118 = vector.load %arg13[%c73, %c0_874] : memref<112x128xf32, #tpu.memory_space<vmem>>, vector<1x16xf32>
    %c1_875 = arith.constant 1 : index
    %c208_876 = arith.constant 208 : index
    %2119 = vector.load %arg14[%c1_875, %c208_876] : memref<8x512xf32, #tpu.memory_space<vmem>>, vector<1x16xf32>
    tpu.vector_store %arg14[%c1_875, %c208_876], %2118 {strides = array<i32>} : memref<8x512xf32, #tpu.memory_space<vmem>>, vector<1x16xf32>,
    %c18 = arith.constant 18 : index
    %c0_877 = arith.constant 0 : index
    %2120 = vector.load %arg13[%c18, %c0_877] : memref<112x128xf32, #tpu.memory_space<vmem>>, vector<1x16xf32>
    %c0_878 = arith.constant 0 : index
    %c224 = arith.constant 224 : index
    %2121 = vector.load %arg14[%c0_878, %c224] : memref<8x512xf32, #tpu.memory_space<vmem>>, vector<1x16xf32>
    tpu.vector_store %arg14[%c0_878, %c224], %2120 {strides = array<i32>} : memref<8x512xf32, #tpu.memory_space<vmem>>, vector<1x16xf32>,
    %c74 = arith.constant 74 : index
    %c0_879 = arith.constant 0 : index
    %2122 = vector.load %arg13[%c74, %c0_879] : memref<112x128xf32, #tpu.memory_space<vmem>>, vector<1x16xf32>
    %c1_880 = arith.constant 1 : index
    %c224_881 = arith.constant 224 : index
    %2123 = vector.load %arg14[%c1_880, %c224_881] : memref<8x512xf32, #tpu.memory_space<vmem>>, vector<1x16xf32>
    tpu.vector_store %arg14[%c1_880, %c224_881], %2122 {strides = array<i32>} : memref<8x512xf32, #tpu.memory_space<vmem>>, vector<1x16xf32>,
    %c21_882 = arith.constant 21 : index
    %c0_883 = arith.constant 0 : index
    %2124 = vector.load %arg13[%c21_882, %c0_883] : memref<112x128xf32, #tpu.memory_space<vmem>>, vector<1x16xf32>
    %c0_884 = arith.constant 0 : index
    %c240 = arith.constant 240 : index
    %2125 = vector.load %arg14[%c0_884, %c240] : memref<8x512xf32, #tpu.memory_space<vmem>>, vector<1x16xf32>
    tpu.vector_store %arg14[%c0_884, %c240], %2124 {strides = array<i32>} : memref<8x512xf32, #tpu.memory_space<vmem>>, vector<1x16xf32>,
    %c77_885 = arith.constant 77 : index
    %c0_886 = arith.constant 0 : index
    %2126 = vector.load %arg13[%c77_885, %c0_886] : memref<112x128xf32, #tpu.memory_space<vmem>>, vector<1x16xf32>
    %c1_887 = arith.constant 1 : index
    %c240_888 = arith.constant 240 : index
    %2127 = vector.load %arg14[%c1_887, %c240_888] : memref<8x512xf32, #tpu.memory_space<vmem>>, vector<1x16xf32>
    tpu.vector_store %arg14[%c1_887, %c240_888], %2126 {strides = array<i32>} : memref<8x512xf32, #tpu.memory_space<vmem>>, vector<1x16xf32>,
    %c22 = arith.constant 22 : index
    %c0_889 = arith.constant 0 : index
    %2128 = vector.load %arg13[%c22, %c0_889] : memref<112x128xf32, #tpu.memory_space<vmem>>, vector<1x16xf32>
    %c0_890 = arith.constant 0 : index
    %c256 = arith.constant 256 : index
    %2129 = vector.load %arg14[%c0_890, %c256] : memref<8x512xf32, #tpu.memory_space<vmem>>, vector<1x16xf32>
    tpu.vector_store %arg14[%c0_890, %c256], %2128 {strides = array<i32>} : memref<8x512xf32, #tpu.memory_space<vmem>>, vector<1x16xf32>,
    %c78 = arith.constant 78 : index
    %c0_891 = arith.constant 0 : index
    %2130 = vector.load %arg13[%c78, %c0_891] : memref<112x128xf32, #tpu.memory_space<vmem>>, vector<1x16xf32>
    %c1_892 = arith.constant 1 : index
    %c256_893 = arith.constant 256 : index
    %2131 = vector.load %arg14[%c1_892, %c256_893] : memref<8x512xf32, #tpu.memory_space<vmem>>, vector<1x16xf32>
    tpu.vector_store %arg14[%c1_892, %c256_893], %2130 {strides = array<i32>} : memref<8x512xf32, #tpu.memory_space<vmem>>, vector<1x16xf32>,
    %c23 = arith.constant 23 : index
    %c0_894 = arith.constant 0 : index
    %2132 = vector.load %arg13[%c23, %c0_894] : memref<112x128xf32, #tpu.memory_space<vmem>>, vector<1x16xf32>
    %c0_895 = arith.constant 0 : index
    %c272 = arith.constant 272 : index
    %2133 = vector.load %arg14[%c0_895, %c272] : memref<8x512xf32, #tpu.memory_space<vmem>>, vector<1x16xf32>
    tpu.vector_store %arg14[%c0_895, %c272], %2132 {strides = array<i32>} : memref<8x512xf32, #tpu.memory_space<vmem>>, vector<1x16xf32>,
    %c79 = arith.constant 79 : index
    %c0_896 = arith.constant 0 : index
    %2134 = vector.load %arg13[%c79, %c0_896] : memref<112x128xf32, #tpu.memory_space<vmem>>, vector<1x16xf32>
    %c1_897 = arith.constant 1 : index
    %c272_898 = arith.constant 272 : index
    %2135 = vector.load %arg14[%c1_897, %c272_898] : memref<8x512xf32, #tpu.memory_space<vmem>>, vector<1x16xf32>
    tpu.vector_store %arg14[%c1_897, %c272_898], %2134 {strides = array<i32>} : memref<8x512xf32, #tpu.memory_space<vmem>>, vector<1x16xf32>,
    %c24 = arith.constant 24 : index
    %c0_899 = arith.constant 0 : index
    %2136 = vector.load %arg13[%c24, %c0_899] : memref<112x128xf32, #tpu.memory_space<vmem>>, vector<1x16xf32>
    %c0_900 = arith.constant 0 : index
    %c288 = arith.constant 288 : index
    %2137 = vector.load %arg14[%c0_900, %c288] : memref<8x512xf32, #tpu.memory_space<vmem>>, vector<1x16xf32>
    tpu.vector_store %arg14[%c0_900, %c288], %2136 {strides = array<i32>} : memref<8x512xf32, #tpu.memory_space<vmem>>, vector<1x16xf32>,
    %c80_901 = arith.constant 80 : index
    %c0_902 = arith.constant 0 : index
    %2138 = vector.load %arg13[%c80_901, %c0_902] : memref<112x128xf32, #tpu.memory_space<vmem>>, vector<1x16xf32>
    %c1_903 = arith.constant 1 : index
    %c288_904 = arith.constant 288 : index
    %2139 = vector.load %arg14[%c1_903, %c288_904] : memref<8x512xf32, #tpu.memory_space<vmem>>, vector<1x16xf32>
    tpu.vector_store %arg14[%c1_903, %c288_904], %2138 {strides = array<i32>} : memref<8x512xf32, #tpu.memory_space<vmem>>, vector<1x16xf32>,
    %c25 = arith.constant 25 : index
    %c0_905 = arith.constant 0 : index
    %2140 = vector.load %arg13[%c25, %c0_905] : memref<112x128xf32, #tpu.memory_space<vmem>>, vector<1x16xf32>
    %c0_906 = arith.constant 0 : index
    %c304 = arith.constant 304 : index
    %2141 = vector.load %arg14[%c0_906, %c304] : memref<8x512xf32, #tpu.memory_space<vmem>>, vector<1x16xf32>
    tpu.vector_store %arg14[%c0_906, %c304], %2140 {strides = array<i32>} : memref<8x512xf32, #tpu.memory_space<vmem>>, vector<1x16xf32>,
    %c81 = arith.constant 81 : index
    %c0_907 = arith.constant 0 : index
    %2142 = vector.load %arg13[%c81, %c0_907] : memref<112x128xf32, #tpu.memory_space<vmem>>, vector<1x16xf32>
    %c1_908 = arith.constant 1 : index
    %c304_909 = arith.constant 304 : index
    %2143 = vector.load %arg14[%c1_908, %c304_909] : memref<8x512xf32, #tpu.memory_space<vmem>>, vector<1x16xf32>
    tpu.vector_store %arg14[%c1_908, %c304_909], %2142 {strides = array<i32>} : memref<8x512xf32, #tpu.memory_space<vmem>>, vector<1x16xf32>,
    %c28_910 = arith.constant 28 : index
    %c0_911 = arith.constant 0 : index
    %2144 = vector.load %arg13[%c28_910, %c0_911] : memref<112x128xf32, #tpu.memory_space<vmem>>, vector<1x16xf32>
    %c0_912 = arith.constant 0 : index
    %c320 = arith.constant 320 : index
    %2145 = vector.load %arg14[%c0_912, %c320] : memref<8x512xf32, #tpu.memory_space<vmem>>, vector<1x16xf32>
    tpu.vector_store %arg14[%c0_912, %c320], %2144 {strides = array<i32>} : memref<8x512xf32, #tpu.memory_space<vmem>>, vector<1x16xf32>,
    %c84_913 = arith.constant 84 : index
    %c0_914 = arith.constant 0 : index
    %2146 = vector.load %arg13[%c84_913, %c0_914] : memref<112x128xf32, #tpu.memory_space<vmem>>, vector<1x16xf32>
    %c1_915 = arith.constant 1 : index
    %c320_916 = arith.constant 320 : index
    %2147 = vector.load %arg14[%c1_915, %c320_916] : memref<8x512xf32, #tpu.memory_space<vmem>>, vector<1x16xf32>
    tpu.vector_store %arg14[%c1_915, %c320_916], %2146 {strides = array<i32>} : memref<8x512xf32, #tpu.memory_space<vmem>>, vector<1x16xf32>,
    %c29 = arith.constant 29 : index
    %c0_917 = arith.constant 0 : index
    %2148 = vector.load %arg13[%c29, %c0_917] : memref<112x128xf32, #tpu.memory_space<vmem>>, vector<1x16xf32>
    %c0_918 = arith.constant 0 : index
    %c336 = arith.constant 336 : index
    %2149 = vector.load %arg14[%c0_918, %c336] : memref<8x512xf32, #tpu.memory_space<vmem>>, vector<1x16xf32>
    tpu.vector_store %arg14[%c0_918, %c336], %2148 {strides = array<i32>} : memref<8x512xf32, #tpu.memory_space<vmem>>, vector<1x16xf32>,
    %c85 = arith.constant 85 : index
    %c0_919 = arith.constant 0 : index
    %2150 = vector.load %arg13[%c85, %c0_919] : memref<112x128xf32, #tpu.memory_space<vmem>>, vector<1x16xf32>
    %c1_920 = arith.constant 1 : index
    %c336_921 = arith.constant 336 : index
    %2151 = vector.load %arg14[%c1_920, %c336_921] : memref<8x512xf32, #tpu.memory_space<vmem>>, vector<1x16xf32>
    tpu.vector_store %arg14[%c1_920, %c336_921], %2150 {strides = array<i32>} : memref<8x512xf32, #tpu.memory_space<vmem>>, vector<1x16xf32>,
    %c30 = arith.constant 30 : index
    %c0_922 = arith.constant 0 : index
    %2152 = vector.load %arg13[%c30, %c0_922] : memref<112x128xf32, #tpu.memory_space<vmem>>, vector<1x16xf32>
    %c0_923 = arith.constant 0 : index
    %c352 = arith.constant 352 : index
    %2153 = vector.load %arg14[%c0_923, %c352] : memref<8x512xf32, #tpu.memory_space<vmem>>, vector<1x16xf32>
    tpu.vector_store %arg14[%c0_923, %c352], %2152 {strides = array<i32>} : memref<8x512xf32, #tpu.memory_space<vmem>>, vector<1x16xf32>,
    %c86 = arith.constant 86 : index
    %c0_924 = arith.constant 0 : index
    %2154 = vector.load %arg13[%c86, %c0_924] : memref<112x128xf32, #tpu.memory_space<vmem>>, vector<1x16xf32>
    %c1_925 = arith.constant 1 : index
    %c352_926 = arith.constant 352 : index
    %2155 = vector.load %arg14[%c1_925, %c352_926] : memref<8x512xf32, #tpu.memory_space<vmem>>, vector<1x16xf32>
    tpu.vector_store %arg14[%c1_925, %c352_926], %2154 {strides = array<i32>} : memref<8x512xf32, #tpu.memory_space<vmem>>, vector<1x16xf32>,
    %c31 = arith.constant 31 : index
    %c0_927 = arith.constant 0 : index
    %2156 = vector.load %arg13[%c31, %c0_927] : memref<112x128xf32, #tpu.memory_space<vmem>>, vector<1x16xf32>
    %c0_928 = arith.constant 0 : index
    %c368 = arith.constant 368 : index
    %2157 = vector.load %arg14[%c0_928, %c368] : memref<8x512xf32, #tpu.memory_space<vmem>>, vector<1x16xf32>
    tpu.vector_store %arg14[%c0_928, %c368], %2156 {strides = array<i32>} : memref<8x512xf32, #tpu.memory_space<vmem>>, vector<1x16xf32>,
    %c87 = arith.constant 87 : index
    %c0_929 = arith.constant 0 : index
    %2158 = vector.load %arg13[%c87, %c0_929] : memref<112x128xf32, #tpu.memory_space<vmem>>, vector<1x16xf32>
    %c1_930 = arith.constant 1 : index
    %c368_931 = arith.constant 368 : index
    %2159 = vector.load %arg14[%c1_930, %c368_931] : memref<8x512xf32, #tpu.memory_space<vmem>>, vector<1x16xf32>
    tpu.vector_store %arg14[%c1_930, %c368_931], %2158 {strides = array<i32>} : memref<8x512xf32, #tpu.memory_space<vmem>>, vector<1x16xf32>,
    %c32_932 = arith.constant 32 : index
    %c0_933 = arith.constant 0 : index
    %2160 = vector.load %arg13[%c32_932, %c0_933] : memref<112x128xf32, #tpu.memory_space<vmem>>, vector<1x16xf32>
    %c0_934 = arith.constant 0 : index
    %c384 = arith.constant 384 : index
    %2161 = vector.load %arg14[%c0_934, %c384] : memref<8x512xf32, #tpu.memory_space<vmem>>, vector<1x16xf32>
    tpu.vector_store %arg14[%c0_934, %c384], %2160 {strides = array<i32>} : memref<8x512xf32, #tpu.memory_space<vmem>>, vector<1x16xf32>,
    %c88 = arith.constant 88 : index
    %c0_935 = arith.constant 0 : index
    %2162 = vector.load %arg13[%c88, %c0_935] : memref<112x128xf32, #tpu.memory_space<vmem>>, vector<1x16xf32>
    %c1_936 = arith.constant 1 : index
    %c384_937 = arith.constant 384 : index
    %2163 = vector.load %arg14[%c1_936, %c384_937] : memref<8x512xf32, #tpu.memory_space<vmem>>, vector<1x16xf32>
    tpu.vector_store %arg14[%c1_936, %c384_937], %2162 {strides = array<i32>} : memref<8x512xf32, #tpu.memory_space<vmem>>, vector<1x16xf32>,
    %c0_938 = arith.constant 0 : index
    %c0_939 = arith.constant 0 : index
    %2164 = vector.load %arg14[%c0_938, %c0_939] : memref<8x512xf32, #tpu.memory_space<vmem>>, vector<2x512xf32>
    %c0_940 = arith.constant 0 : index
    %c0_941 = arith.constant 0 : index
    %2165 = vector.load %arg7[%c0_940, %c0_941] : memref<512x128xf32, #tpu.memory_space<vmem>>, vector<512x128xf32>
    %cst_942 = arith.constant dense<0.000000e+00> : vector<2x128xf32>
    %2166 = tpu.matmul %2164, %2165, %cst_942 {dimension_numbers = #tpu.dot_dimension_numbers<[1], [0], [0], [1], [0, 0, 1, 1], [], []>} : vector<2x512xf32>, vector<512x128xf32>, vector<2x128xf32> -> vector<2x128xf32>
    %c0_943 = arith.constant 0 : index
    %c0_944 = arith.constant 0 : index
    %2167 = vector.load %arg8[%c0_943, %c0_944] : memref<1x128xf32, #tpu.memory_space<vmem>>, vector<1x128xf32>
    %2168 = vector.broadcast %2167 : vector<1x128xf32> to vector<2x128xf32>
    %2169 = arith.addf %2166, %2168 : vector<2x128xf32>
    %c0_945 = arith.constant 0 : index
    %c0_946 = arith.constant 0 : index
    %2170 = vector.load %arg9[%c0_945, %c0_946] : memref<128x128xf32, #tpu.memory_space<vmem>>, vector<128x128xf32>
    %cst_947 = arith.constant dense<0.000000e+00> : vector<2x128xf32>
    %2171 = tpu.matmul %2169, %2170, %cst_947 {dimension_numbers = #tpu.dot_dimension_numbers<[1], [0], [0], [1], [0, 0, 1, 1], [], []>} : vector<2x128xf32>, vector<128x128xf32>, vector<2x128xf32> -> vector<2x128xf32>
    %c0_948 = arith.constant 0 : index
    %c0_949 = arith.constant 0 : index
    %2172 = vector.load %arg10[%c0_948, %c0_949] : memref<1x128xf32, #tpu.memory_space<vmem>>, vector<1x128xf32>
    %2173 = vector.broadcast %2172 : vector<1x128xf32> to vector<2x128xf32>
    %2174 = arith.addf %2171, %2173 : vector<2x128xf32>
    %c10_i32 = arith.constant 10 : i32
    %2175 = vector.broadcast %c10_i32 : i32 to vector<1x128xi32>
    %2176 = arith.cmpi slt, %1957, %2175 : vector<1x128xi32>
    %cst_950 = arith.constant -1.000000e+30 : f32
    %2177 = vector.shape_cast %2176 : vector<1x128xi1> to vector<1x128xi1>
    %2178 = vector.broadcast %2177 : vector<1x128xi1> to vector<2x128xi1>
    %2179 = vector.broadcast %cst_950 : f32 to vector<2x128xf32>
    %2180 = arith.select %2178, %2174, %2179 : vector<2x128xi1>, vector<2x128xf32>
    %cst_951 = arith.constant dense<0xFF800000> : vector<2xf32>
    %2181 = vector.multi_reduction <maximumf>, %2180, %cst_951 [1] : vector<2x128xf32> to vector<2xf32>
    %2182 = vector.shape_cast %2181 : vector<2xf32> to vector<2x1xf32>
    %2183 = vector.broadcast %2182 : vector<2x1xf32> to vector<2x128xf32>
    %2184 = arith.subf %2180, %2183 : vector<2x128xf32>
    %2185 = math.exp %2184 : vector<2x128xf32>
    %cst_952 = arith.constant 0.000000e+00 : f32
    %2186 = vector.shape_cast %2176 : vector<1x128xi1> to vector<1x128xi1>
    %2187 = vector.broadcast %2186 : vector<1x128xi1> to vector<2x128xi1>
    %2188 = vector.broadcast %cst_952 : f32 to vector<2x128xf32>
    %2189 = arith.select %2187, %2185, %2188 : vector<2x128xi1>, vector<2x128xf32>
    %cst_953 = arith.constant dense<0.000000e+00> : vector<2xf32>
    %2190 = vector.multi_reduction <add>, %2189, %cst_953 [1] : vector<2x128xf32> to vector<2xf32>
    %2191 = vector.shape_cast %2190 : vector<2xf32> to vector<2x1xf32>
    %2192 = math.log %2191 : vector<2x1xf32>
    %2193 = vector.broadcast %2182 : vector<2x1xf32> to vector<2x128xf32>
    %2194 = arith.subf %2174, %2193 : vector<2x128xf32>
    %2195 = vector.broadcast %2192 : vector<2x1xf32> to vector<2x128xf32>
    %2196 = arith.subf %2194, %2195 : vector<2x128xf32>
    %c0_954 = arith.constant 0 : index
    %c0_955 = arith.constant 0 : index
    %2197 = vector.load %arg11[%c0_954, %c0_955] : memref<2x128xf32, #tpu.memory_space<vmem>>, vector<2x128xf32>
    tpu.vector_store %arg11[%c0_954, %c0_955], %2196 {strides = array<i32>} : memref<2x128xf32, #tpu.memory_space<vmem>>, vector<2x128xf32>,
    return
  }
  func.func @transform_0(%arg0: i32) -> (i32, i32, i32, i32) {
    %c0_i32 = arith.constant 0 : i32
    %c0_i32_0 = arith.constant 0 : i32
    %c0_i32_1 = arith.constant 0 : i32
    %c0_i32_2 = arith.constant 0 : i32
    %c0_i32_3 = arith.constant 0 : i32
    return %c0_i32, %c0_i32_0, %c0_i32_1, %c0_i32_2 : i32, i32, i32, i32
  }
  func.func @transform_1(%arg0: i32) -> (i32, i32, i32, i32) {
    %c0_i32 = arith.constant 0 : i32
    %c0_i32_0 = arith.constant 0 : i32
    %c0_i32_1 = arith.constant 0 : i32
    %c0_i32_2 = arith.constant 0 : i32
    %c0_i32_3 = arith.constant 0 : i32
    return %c0_i32, %c0_i32_0, %c0_i32_1, %c0_i32_2 : i32, i32, i32, i32
  }
  func.func @transform_2(%arg0: i32) -> (i32, i32) {
    %c0_i32 = arith.constant 0 : i32
    %c0_i32_0 = arith.constant 0 : i32
    %c0_i32_1 = arith.constant 0 : i32
    return %c0_i32, %c0_i32_0 : i32, i32
  }
  func.func @transform_3(%arg0: i32) -> (i32, i32) {
    %c0_i32 = arith.constant 0 : i32
    %c0_i32_0 = arith.constant 0 : i32
    %c0_i32_1 = arith.constant 0 : i32
    return %c0_i32, %c0_i32_0 : i32, i32
  }
  func.func @transform_4(%arg0: i32) -> (i32, i32) {
    %c0_i32 = arith.constant 0 : i32
    %c0_i32_0 = arith.constant 0 : i32
    %c0_i32_1 = arith.constant 0 : i32
    return %c0_i32, %c0_i32_0 : i32, i32
  }
  func.func @transform_5(%arg0: i32) -> (i32, i32) {
    %c0_i32 = arith.constant 0 : i32
    %c0_i32_0 = arith.constant 0 : i32
    %c0_i32_1 = arith.constant 0 : i32
    return %c0_i32, %c0_i32_0 : i32, i32
  }
  func.func @transform_6(%arg0: i32) -> (i32, i32) {
    %c0_i32 = arith.constant 0 : i32
    %c0_i32_0 = arith.constant 0 : i32
    %c0_i32_1 = arith.constant 0 : i32
    return %c0_i32, %c0_i32_0 : i32, i32
  }
  func.func @transform_7(%arg0: i32) -> (i32, i32) {
    %c0_i32 = arith.constant 0 : i32
    %c0_i32_0 = arith.constant 0 : i32
    %c0_i32_1 = arith.constant 0 : i32
    return %c0_i32, %c0_i32_0 : i32, i32
  }
  func.func @transform_8(%arg0: i32) -> (i32, i32) {
    %c0_i32 = arith.constant 0 : i32
    %c0_i32_0 = arith.constant 0 : i32
    %c0_i32_1 = arith.constant 0 : i32
    return %c0_i32, %c0_i32_0 : i32, i32
  }
  func.func @transform_9(%arg0: i32) -> (i32, i32) {
    %c0_i32 = arith.constant 0 : i32
    %c0_i32_0 = arith.constant 0 : i32
    %c0_i32_1 = arith.constant 0 : i32
    return %c0_i32, %c0_i32_0 : i32, i32
  }
  func.func @transform_10(%arg0: i32) -> (i32, i32) {
    %c0_i32 = arith.constant 0 : i32
    %c0_i32_0 = arith.constant 0 : i32
    %c0_i32_1 = arith.constant 0 : i32
    return %c0_i32, %c0_i32_0 : i32, i32
  }
}

</mosaic_0001>

<bundles_post_ra>
// kernel: cnn_forward.1
= control target key start
LH: loop header
LB: loop body
LE: loop exit
PB: predicated region body
PF: predicated region fallthrough
CT: control target
= control target key end

     0   :  { %15 = vsyncpa [#allocation6], 0  ;;  %s7518_s0 = inlined_call_operand.vmem [shape: f32[2,16,8,1], index: 0, kind: input, shape index: {}]   ;;  %s7519_s1 = inlined_call_operand.vmem [shape: f32[2,16,8,1], index: 1, kind: input, shape index: {}]   ;;  %s7520_s2 = inlined_call_operand.vmem [shape: f32[9,128], index: 2, kind: input, shape index: {}]   ;;  %s7521_s3 = inlined_call_operand.vmem [shape: f32[1,128], index: 3, kind: input, shape index: {}]   ;;  %s7522_s4 = inlined_call_operand.vmem [shape: f32[128,128], index: 4, kind: input, shape index: {}]   ;;  %s7523_s5 = inlined_call_operand.vmem [shape: f32[1,128], index: 5, kind: input, shape index: {}]   ;;  %s7524_s6 = inlined_call_operand.vmem [shape: f32[512,128], index: 6, kind: input, shape index: {}]   ;;  %s7525_s7 = inlined_call_operand.vmem [shape: f32[1,128], index: 7, kind: input, shape index: {}]   ;;  %s7526_s8 = inlined_call_operand.hbm [shape: f32[128,128], index: 8, kind: input, shape index: {}]   ;;  %s7527_s9 = inlined_call_operand.vmem [shape: f32[1,128], index: 9, kind: input, shape index: {}]   ;;  %s7528_s10 = inlined_call_operand.hbm [shape: f32[2,128], index: 10, kind: output, shape index: {}]  }
   0x1   :  { %16 = vsyncpa [#allocation7], 0  ;;  %s37_s15 = sshll.u32 %s7526_s8, 4  ;;  %s4008_s16 = smov [#allocation5]   ;;  %s38_s15 = int_to_ptr.hbm [resolvable:$true] %s37_s15 }
   0x2   :  { %s39_s17 = sshll.u32 %s4008_s16, 4  ;;  %s4009_s18 = smov 128   ;;  %s40_s17 = int_to_ptr.vmem [resolvable:$true] %s39_s17 }
   0x3   :  { %s4010_s19 = smov 8  }
   0x4   :  { %45 = dma.hbm_to_vmem [thread:$0]  %s38_s15, 2048, %s40_s17, [#allocation6], %s4009_s18, %s4009_s18, %s4010_s19  }
   0x5   :  { %4004 = dma.done.wait [#allocation6], 2048  }
   0x6   :  { %4005 = vsyncadd [#allocation6], 4294965248  ;;  %v4011_v0 = vmov 0   ;;  %v83_v1 = vld [vmem:[%s7519_s1] sm:$0xff]  ;;  %v3704_v2 = vld [vmem:[%s7518_s0 + $0x8] sm:$0xff]  ;;  %s4014_s15 = smov 32  }
   0x7   :  { %3852 = vset.pattern.permute.xlu2 %v4011_v0  ;;  %3851 = vset.pattern.permute.xlu1 %v4011_v0  ;;  %v72_v3 = vld [vmem:[%s7518_s0] sm:$0xff]  ;;  %v3705_v5 = vld [vmem:[%s7518_s0 + $0x88] sm:$0xff]  ;;  %v3706_v8 = vld [vmem:[%s7518_s0 + $0x10] sm:$0xff]  ;;  %s4016_s16 = smov 64   ;;  %s4017_s17 = smov 80  }
   0x8   :  { %3850 = vset.pattern.permute.xlu0 %v4011_v0  ;;  %111 = vperm.xlu1 %3851, %v83_v1   ;;  %v84_v4 = vld [vmem:[%s7519_s1 + $0x80] sm:$0xff]  ;;  %v3711_v7 = vld [vmem:[%s7519_s1 + $0x88] sm:$0xff]  ;;  %v3712_v10 = vld [vmem:[%s7519_s1 + $0x10] sm:$0xff]  ;;  %s4018_s18 = smov 96   ;;  %s4019_s19 = smov 112  }
   0x9   :  { %139 = vperm.xlu2 %3852, %v3704_v2   ;;  %97 = vperm.xlu0 %3850, %v72_v3   ;;  %v73_v6 = vld [vmem:[%s7518_s0 + $0x80] sm:$0xff]  ;;  %v3710_v9 = vld [vmem:[%s7519_s1 + $0x8] sm:$0xff]  ;;  %v3713_v11 = vld [vmem:[%s7519_s1 + $0x90] sm:$0xff] }
   0xa   :  { %v3707_v12 = vld [vmem:[%s7518_s0 + $0x90] sm:$0xff]  ;;  %v3709_v13 = vld [vmem:[%s7518_s0 + $0x98] sm:$0xff]  ;;  %v3733_v17 = vld [vmem:[%s7518_s0 + $0xa0] sm:$0xff] }
   0xb   :  { %v3714_v14 = vld [vmem:[%s7519_s1 + $0x18] sm:$0xff]  ;;  %v3729_v18 = vld [vmem:[%s7519_s1 + $0xa0] sm:$0xff]  ;;  %v3735_v19 = vld [vmem:[%s7518_s0 + $0xa8] sm:$0xff] }
   0xc   :  { %v3708_v15 = vld [vmem:[%s7518_s0 + $0x18] sm:$0xff]  ;;  %v3743_v20 = vld [vmem:[%s7519_s1 + $0xa8] sm:$0xff]  ;;  %v3737_v22 = vld [vmem:[%s7518_s0 + $0xb0] sm:$0xff] }
   0xd   :  { %v3715_v16 = vld [vmem:[%s7519_s1 + $0x98] sm:$0xff]  ;;  %v4142_v21 = vld [vmem:[%s7518_s0 + $0x28] sm:$0xff]  ;;  %v3732_v23 = vld [vmem:[%s7518_s0 + $0x20] sm:$0xff] }
   0xe   :  { %v3751_v24 = vld [vmem:[%s7518_s0 + $0xb8] sm:$0xff]  ;;  %v3745_v25 = vld [vmem:[%s7519_s1 + $0xb0] sm:$0xff]  ;;  %v3728_v27 = vld [vmem:[%s7519_s1 + $0x20] sm:$0xff] }
   0xf   :  { %v4163_v29 = vld [vmem:[%s7519_s1 + $0x28] sm:$0xff]  ;;  %v3759_v31 = vld [vmem:[%s7519_s1 + $0xb8] sm:$0xff]  ;;  %v4174_v32 = vld [vmem:[%s7518_s0 + $0x30] sm:$0xff] }
  0x10   :  { %116 = vperm.xlu1 %3851, %v84_v4   ;;  %v4179_v33 = vld [vmem:[%s7520_s2 + $0x5] ss:$0 sm:$0xff]  ;;  %v4184_v34 = vld [vmem:[%s7520_s2 + $0x4] ss:$0 sm:$0xff]  ;;  %v4190_v35 = vld [vmem:[%s7520_s2 + $0x1] ss:$0 sm:$0xff] }
  0x11   :  { %144 = vperm.xlu2 %3852, %v3705_v5   ;;  %102 = vperm.xlu0 %3850, %v73_v6   ;;  %v4198_v38 = vld [vmem:[%s7520_s2 + $0x3] ss:$0 sm:$0xff]  ;;  %v4205_v40 = vld [vmem:[%s7520_s2] ss:$0 sm:$0xff]  ;;  %v4210_v41 = vld [vmem:[%s7520_s2 + $0x2] ss:$0 sm:$0xff] }
  0x12   :  { %v4240_v52 = vld [vmem:[%s7520_s2 + $0x7] ss:$0 sm:$0xff]  ;;  %v4245_v53 = vld [vmem:[%s7520_s2 + $0x8] ss:$0 sm:$0xff]  ;;  %v4253_v55 = vld [vmem:[%s7519_s1 + $0x30] sm:$0xff] }
  0x13   :  { %v4275_v4 = vld [vmem:[%s7520_s2 + $0x6] ss:$0 sm:$0xff]  ;;  %v4404_v3 = vld [vmem:[%s7520_s2 + $0x1] ss:$0 sm:$0xff] }
  0x18   :  { %160 = vperm.xlu1 %3851, %v3711_v7  }
  0x19   :  { %183 = vperm.xlu2 %3852, %v3706_v8   ;;  %155 = vperm.xlu0 %3850, %v3710_v9  }
  0x20   :  { %199 = vperm.xlu1 %3851, %v3712_v10  }
  0x21   :  { %204 = vperm.xlu2 %3852, %v3713_v11   ;;  %188 = vperm.xlu0 %3850, %v3707_v12  }
  0x28   :  { %335 = vperm.xlu1 %3851, %v3709_v13  }
  0x29   :  { %344 = vperm.xlu2 %3852, %v3714_v14   ;;  %330 = vperm.xlu0 %3850, %v3708_v15  }
  0x30   :  { %475 = vperm.xlu1 %3851, %v3706_v8  }
  0x31   :  { %480 = vperm.xlu2 %3852, %v3707_v12   ;;  %349 = vperm.xlu0 %3850, %v3715_v16  }
  0x38   :  { %494 = vperm.xlu1 %3851, %v3713_v11  }
  0x39   :  { %517 = vperm.xlu2 %3852, %v3708_v15   ;;  %489 = vperm.xlu0 %3850, %v3712_v10  }
  0x40   :  { %538 = vperm.xlu1 %3851, %v3715_v16  }
  0x41   :  { %858 = vperm.xlu2 %3852, %v3733_v17   ;;  %522 = vperm.xlu0 %3850, %v3709_v13  }
  0x48   :  { %566 = vperm.xlu1 %3851, %v3733_v17  }
  0x49   :  { %582 = vperm.xlu2 %3852, %v3729_v18   ;;  %900 = vperm.xlu0 %3850, %v3735_v19  }
  0x50   :  { %916 = vperm.xlu1 %3851, %v3743_v20  }
  0x51   :  { %533 = vperm.xlu2 %3852, %v3714_v14   ;;  %872 = vperm.xlu0 %3850, %v3729_v18  }
  0x58   :  { %895 = vperm.xlu1 %3851, %v4142_v21  }
  0x59   :  { %944 = vperm.xlu2 %3852, %v3737_v22   ;;  %853 = vperm.xlu0 %3850, %v3732_v23  }
  0x60   :  { %1236 = vperm.xlu1 %3851, %v3737_v22  }
  0x61   :  { %1278 = vperm.xlu2 %3852, %v3751_v24   ;;  %960 = vperm.xlu0 %3850, %v3745_v25  }
  0x63   :  { %v140_v26 = vpop.permute.xlu2 %139 }
  0x64   :  { %v4193_v36 = vmul.f32 %v4179_v33, %v140_v26  ;;  %v4213_v42 = vmul.f32 %v4184_v34, %v140_v26  ;;  %v4216_v44 = vmul.f32 %v4190_v35, %v140_v26  ;;  %v4232_v50 = vmul.f32 %v4205_v40, %v140_v26 }
  0x65   :  { %v4235_v51 = vmul.f32 %v4210_v41, %v140_v26  ;;  %v4248_v54 = vmul.f32 %v4198_v38, %v140_v26 }
  0x68   :  { %577 = vperm.xlu1 %3851, %v3728_v27  }
  0x69   :  { %713 = vperm.xlu2 %3852, %v3735_v19   ;;  %561 = vperm.xlu0 %3850, %v3732_v23  }
  0x6b   :  { %v145_v28 = vpop.permute.xlu2 %144 }
  0x6c   :  { %v4219_v45 = vmul.f32 %v4179_v33, %v145_v28  ;;  %v4222_v46 = vmul.f32 %v4184_v34, %v145_v28  ;;  %v4225_v47 = vmul.f32 %v4210_v41, %v145_v28  ;;  %v4228_v48 = vmul.f32 %v4190_v35, %v145_v28 }
  0x6d   :  { %v4257_v57 = vmul.f32 %v4205_v40, %v145_v28  ;;  %v4265_v63 = vmul.f32 %v4198_v38, %v145_v28 }
  0x70   :  { %867 = vperm.xlu1 %3851, %v3728_v27  }
  0x71   :  { %911 = vperm.xlu2 %3852, %v4163_v29   ;;  %727 = vperm.xlu0 %3850, %v3743_v20  }
  0x73   :  { %v4166_v30 = vpop.permute.xlu2 %183 }
  0x74   :  { %v4279_v5 = vmul.f32 %v4245_v53, %v4166_v30  ;;  %v4283_v6 = vmul.f32 %v4240_v52, %v4166_v30  ;;  %v4287_v9 = vmul.f32 %v4179_v33, %v4166_v30  ;;  %v4291_v10 = vmul.f32 %v4184_v34, %v4166_v30 }
  0x75   :  { %v4313_v26 = vmul.f32 %v4275_v4, %v4166_v30 }
  0x78   :  { %1294 = vperm.xlu1 %3851, %v3759_v31  }
  0x79   :  { %939 = vperm.xlu2 %3852, %v4174_v32   ;;  %1250 = vperm.xlu0 %3850, %v3745_v25   ;;  %v4309_v25 = vld [vmem:[%s7518_s0 + $0xc0] sm:$0xff] }
  0x7a   :  { %v112_v37 = vpop.permute.xlu1 %111 }
  0x7b   :  { %v4200_v39 = vpop.permute.xlu2 %204  ;;  %v98_v43 = vpop.permute.xlu0 %97  ;;  %v120_v58 = vmul.f32 %v4190_v35, %v112_v37  ;;  %v224_v11 = vmul.f32 %v4205_v40, %v112_v37  ;;  %v236_v12 = vmul.f32 %v4210_v41, %v112_v37  ;;  %v7529_v37 = vmov 0.0  }
  0x7c   :  { %v106_v59 = vmul.f32 %v4205_v40, %v98_v43  ;;  %v126_v61 = vmul.f32 %v4210_v41, %v98_v43  ;;  %v226_v62 = vmul.f32 %v4190_v35, %v98_v43  ;;  %v4318_v28 = vmul.f32 %v4245_v53, %v4200_v39  ;;  %52 = vst [vmem:[#allocation2] sm:$0xff] %v7529_v37 }
  0x7d   :  { %53 = vst [vmem:[#allocation2 + $0x8] sm:$0xff] %v7529_v37  ;;  %v4357_v2 = vmul.f32 %v4184_v34, %v4200_v39 }
  0x7e   :  { %v122_v13 = vadd.f32 %v120_v58, %v106_v59  ;;  %v130_v16 = vrot.slane %v126_v61, 1  ;;  %v230_v17 = vrot.slane %v226_v62, 1  ;;  %v240_v62 = vrot.slane %v236_v12, 1  ;;  %54 = vst [vmem:[#allocation2 + $0x10] sm:$0xff] %v7529_v37 }
  0x7f   :  { %55 = vst [vmem:[#allocation2 + $0x18] sm:$0xff] %v7529_v37  ;;  %v4341_v12 = vmul.f32 %v4275_v4, %v4200_v39 }
  0x80   :  { %1091 = vperm.xlu1 %3851, %v3751_v24   ;;  %v4304_v24 = vld [vmem:[%s7518_s0 + $0x38] sm:$0xff]  ;;  %56 = vst [vmem:[#allocation2 + $0x20] sm:$0xff] %v7529_v37 }
  0x81   :  { %1105 = vperm.xlu2 %3852, %v3759_v31   ;;  %955 = vperm.xlu0 %3850, %v4253_v55   ;;  %7641 = vst [vmem:[#allocation11_spill] sm:$0xff] %v4304_v24  ;;  %v4322_v31 = vmul.f32 %v4198_v38, %v4166_v30 }
  0x82   :  { %v117_v7 = vpop.permute.xlu1 %116  ;;  %57 = vst [vmem:[#allocation2 + $0x28] sm:$0xff] %v7529_v37 }
  0x83   :  { %v345_v8 = vpop.permute.xlu2 %344  ;;  %v121_v14 = vmul.f32 %v4190_v35, %v117_v7  ;;  %v103_v15 = vpop.permute.xlu0 %102  ;;  %v225_v18 = vmul.f32 %v4205_v40, %v117_v7  ;;  %v237_v19 = vmul.f32 %v4210_v41, %v117_v7  ;;  %v134_v7 = vadd.f32 %v130_v16, %v122_v13  ;;  %58 = vst [vmem:[#allocation2 + $0x30] sm:$0xff] %v7529_v37 }
  0x84   :  { %v107_v20 = vmul.f32 %v4205_v40, %v103_v15  ;;  %v127_v22 = vmul.f32 %v4210_v41, %v103_v15  ;;  %v227_v23 = vmul.f32 %v4190_v35, %v103_v15  ;;  %v234_v15 = vadd.f32 %v230_v17, %v224_v11  ;;  %59 = vst [vmem:[#allocation2 + $0x38] sm:$0xff] %v7529_v37 }
  0x85   :  { %v241_v43 = vrot.slane %v237_v19, 1  ;;  %v4337_v11 = vmul.f32 %v4240_v52, %v4200_v39  ;;  %v4345_v13 = vmul.f32 %v4198_v38, %v4200_v39  ;;  %60 = vst [vmem:[#allocation2 + $0x40] sm:$0xff] %v7529_v37 }
  0x86   :  { %v123_v58 = vadd.f32 %v121_v14, %v107_v20  ;;  %v131_v59 = vrot.slane %v127_v22, 1  ;;  %v231_v61 = vrot.slane %v227_v23, 1  ;;  %v4373_v14 = vmul.f32 %v4245_v53, %v345_v8  ;;  %61 = vst [vmem:[#allocation2 + $0x48] sm:$0xff] %v7529_v37 }
  0x87   :  { %7642 = vst [vmem:[#allocation12_spill] sm:$0xff] %v4345_v13  ;;  %v7645_v13 = vrot.slane %v4222_v46, 1 }
  0x88   :  { %1273 = vperm.xlu1 %3851, %v4304_v24   ;;  %v235_v30 = vadd.f32 %v231_v61, %v225_v18  ;;  %v4353_v61 = vld [vmem:[%s7520_s2 + $0x2] ss:$0 sm:$0xff]  ;;  %v4362_v18 = vmul.f32 %v4240_v52, %v345_v8 }
  0x89   :  { %1322 = vperm.xlu2 %3852, %v4309_v25   ;;  %1231 = vperm.xlu0 %3850, %v4174_v32   ;;  %v135_v32 = vadd.f32 %v131_v59, %v123_v58  ;;  %v150_v58 = vadd.f32 %v4248_v54, %v134_v7  ;;  %v244_v59 = vadd.f32 %v240_v62, %v234_v15  ;;  %v4384_v15 = vld [vmem:[%s7519_s1 + $0xc0] sm:$0xff] }
  0x8a   :  { %v161_v16 = vpop.permute.xlu1 %160  ;;  %v245_v22 = vadd.f32 %v241_v43, %v235_v30  ;;  %7643 = vst [vmem:[#allocation13_spill] sm:$0xff] %v4362_v18  ;;  %v4367_v43 = vmul.f32 %v4179_v33, %v4200_v39  ;;  %v4370_v30 = vmul.f32 %v4275_v4, %v345_v8 }
  0x8b   :  { %v481_v17 = vpop.permute.xlu2 %480  ;;  %v247_v23 = vmul.f32 %v4198_v38, %v161_v16  ;;  %v156_v19 = vpop.permute.xlu0 %155  ;;  %v165_v20 = vmul.f32 %v4184_v34, %v161_v16  ;;  %v151_v54 = vadd.f32 %v4265_v63, %v135_v32  ;;  %v261_v62 = vmul.f32 %v4179_v33, %v161_v16 }
  0x8c   :  { %v164_v7 = vmul.f32 %v4184_v34, %v156_v19  ;;  %v246_v39 = vmul.f32 %v4198_v38, %v156_v19  ;;  %v297_v8 = vmul.f32 %v4190_v35, %v161_v16  ;;  %v4392_v63 = vmul.f32 %v4353_v61, %v481_v17 }
  0x8d   :  { %v249_v27 = vadd.f32 %v247_v23, %v245_v22  ;;  %v4389_v22 = vmul.f32 %v4205_v40, %v161_v16  ;;  %v260_v32 = vmul.f32 %v4179_v33, %v156_v19  ;;  %v4399_v23 = vld [vmem:[%s7520_s2] ss:$0 sm:$0xff]  ;;  %v366_v56 = vmul.f32 %v4205_v40, %v156_v19 }
  0x8e   :  { %7644 = vst [vmem:[#allocation14_spill] sm:$0xff] %v4392_v63  ;;  %v166_v0 = vadd.f32 %v164_v7, %v150_v58  ;;  %v248_v60 = vadd.f32 %v246_v39, %v244_v59  ;;  %v167_v1 = vadd.f32 %v165_v20, %v151_v54  ;;  %v378_v24 = vmul.f32 %v4210_v41, %v156_v19 }
  0x8f   :  { %v259_v18 = vadd.f32 %v7645_v13, %v249_v27  ;;  %v7646_v58 = vmov 0.0   ;;  %v265_v59 = vrot.slane %v261_v62, 1  ;;  %v4417_v40 = vmul.f32 %v4210_v41, %v161_v16 }
  0x90   :  { %708 = vperm.xlu1 %3851, %v4142_v21   ;;  %62 = vst [vmem:[#allocation2 + $0x50] sm:$0xff] %v7646_v58  ;;  %v7648_v20 = vrot.slane %v4213_v42, 1  ;;  %v264_v27 = vrot.slane %v260_v32, 1  ;;  %v7649_v13 = vrot.slane %v4216_v44, 1  ;;  %v382_v62 = vrot.slane %v378_v24, 1 }
  0x91   :  { %722 = vperm.xlu2 %3852, %v4163_v29   ;;  %1338 = vperm.xlu0 %3850, %v4384_v15   ;;  %v7647_v29 = vrot.slane %v4193_v36, 1  ;;  %63 = vst [vmem:[#allocation2 + $0x58] sm:$0xff] %v7646_v58  ;;  %v4435_v36 = vld [vmem:[%s7520_s2 + $0x5] ss:$0 sm:$0xff]  ;;  %v4439_v42 = vmul.f32 %v4399_v23, %v481_v17  ;;  %v4443_v44 = vmul.f32 %v4404_v3, %v481_v17 }
  0x92   :  { %v4419_v21 = vpop.permute.xlu1 %199  ;;  %v258_v54 = vadd.f32 %v7648_v20, %v248_v60  ;;  %v376_v39 = vadd.f32 %v7649_v13, %v366_v56  ;;  %7650 = vst [vmem:[#allocation15_spill] sm:$0xff] %v4435_v36  ;;  %v4446_v56 = vmul.f32 %v4190_v35, %v156_v19  ;;  %v269_v24 = vadd.f32 %v265_v59, %v259_v18  ;;  %v4458_v13 = vld [vmem:[%s7519_s1 + $0x38] sm:$0xff] }
  0x93   :  { %v178_v7 = vadd.f32 %v7647_v29, %v166_v0  ;;  %v4425_v46 = vpop.permute.xlu2 %517  ;;  %v270_v41 = vmul.f32 %v4275_v4, %v4419_v21  ;;  %v189_v0 = vpop.permute.xlu0 %188  ;;  %64 = vst [vmem:[#allocation2 + $0x60] sm:$0xff] %v7646_v58  ;;  %v4451_v32 = vmul.f32 %v4245_v53, %v4419_v21  ;;  %v7651_v29 = vrot.slane %v4219_v45, 1  ;;  %v4469_v45 = vld [vmem:[%s7520_s2 + $0x4] ss:$0 sm:$0xff] }
  0x94   :  { %65 = vst [vmem:[#allocation2 + $0x68] sm:$0xff] %v7646_v58  ;;  %v268_v16 = vadd.f32 %v264_v27, %v258_v54  ;;  %v208_v19 = vmul.f32 %v4240_v52, %v4419_v21  ;;  %v388_v17 = vmul.f32 %v4198_v38, %v4419_v21  ;;  %v386_v59 = vadd.f32 %v382_v62, %v376_v39 }
  0x95   :  { %v179_v20 = vadd.f32 %v7651_v29, %v167_v1  ;;  %66 = vst [vmem:[#allocation2 + $0x70] sm:$0xff] %v7646_v58  ;;  %v194_v35 = vadd.f32 %v4313_v26, %v178_v7  ;;  %v299_v1 = vadd.f32 %v297_v8, %v4257_v57  ;;  %v4475_v26 = vmul.f32 %v4179_v33, %v4419_v21 }
  0x96   :  { %67 = vst [vmem:[#allocation2 + $0x78] sm:$0xff] %v7646_v58  ;;  %v272_v18 = vadd.f32 %v270_v41, %v268_v16  ;;  %v4479_v7 = vmul.f32 %v4435_v36, %v4425_v46  ;;  %v4485_v27 = vmul.f32 %v4353_v61, %v4425_v46  ;;  %v4489_v57 = vmul.f32 %v4404_v3, %v4425_v46 }
  0x97   :  { %68 = vst [vmem:[#allocation4] sm:$0xff] %v7646_v58  ;;  %v193_v8 = vmul.f32 %v4275_v4, %v189_v0  ;;  %v288_v39 = vrot.slane %v4451_v32, 1  ;;  %v4496_v62 = vmul.f32 %v4245_v53, %v189_v0  ;;  %v275_v41 = vmul.f32 %v4240_v52, %v189_v0 }
  0x98   :  { %7652 = vst [vmem:[#allocation16_spill] sm:$0xff] %v4479_v7  ;;  %1289 = vperm.xlu1 %3851, %v4458_v13   ;;  %v311_v16 = vmul.f32 %v4198_v38, %v189_v0  ;;  %v210_v29 = vadd.f32 %v208_v19, %v194_v35  ;;  %v4504_v60 = vmul.f32 %v4469_v45, %v4425_v46  ;;  %v7654_v32 = vrot.slane %v4225_v47, 1 }
  0x99   :  { %7653 = vst [vmem:[#allocation17_spill] sm:$0xff] %v4485_v27  ;;  %1614 = vperm.xlu2 %3852, %v4309_v25   ;;  %1245 = vperm.xlu0 %3850, %v4253_v55   ;;  %v195_v54 = vadd.f32 %v193_v8, %v179_v20  ;;  %v390_v63 = vadd.f32 %v388_v17, %v386_v59  ;;  %v4518_v20 = vld [vmem:[%s7520_s2] ss:$0 sm:$0xff]  ;;  %v7655_v47 = vrot.slane %v4283_v6, 1  ;;  %v219_v6 = vrot.slane %v4496_v62, 1 }
  0x9a   :  { %69 = vst [vmem:[#allocation4 + $0x8] sm:$0xff] %v7646_v58  ;;  %v336_v25 = vpop.permute.xlu1 %335  ;;  %v309_v49 = vadd.f32 %v7654_v32, %v299_v1  ;;  %v4512_v55 = vmul.f32 %v4399_v23, %v4425_v46  ;;  %v319_v35 = vmul.f32 %v4179_v33, %v189_v0  ;;  %v273_v59 = vadd.f32 %v4341_v12, %v269_v24  ;;  %v4528_v33 = vld [vmem:[%s7520_s2 + $0x1] ss:$0 sm:$0xff]  ;;  %v4533_v32 = vld [vmem:[%s7520_s2 + $0x2] ss:$0 sm:$0xff] }
  0x9b   :  { %v859_v37 = vpop.permute.xlu2 %858  ;;  %70 = vst [vmem:[#allocation4 + $0x10] sm:$0xff] %v7646_v58  ;;  %v331_v19 = vpop.permute.xlu0 %330  ;;  %v282_v1 = vadd.f32 %v7655_v47, %v272_v18  ;;  %v279_v18 = vrot.slane %v275_v41, 1  ;;  %v4538_v47 = vmul.f32 %v4184_v34, %v189_v0  ;;  %v211_v12 = vadd.f32 %v4337_v11, %v195_v54  ;;  %v4556_v0 = vld [vmem:[%s7518_s0 + $0xc8] sm:$0xff] }
  0x9c   :  { %71 = vst [vmem:[#allocation4 + $0x18] sm:$0xff] %v7646_v58  ;;  %v313_v8 = vadd.f32 %v311_v16, %v309_v49  ;;  %v4543_v49 = vld [vmem:[%s7519_s1 + $0xc8] sm:$0xff]  ;;  %v339_v24 = vmul.f32 %v4275_v4, %v336_v25  ;;  %v4548_v16 = vmul.f32 %v4245_v53, %v336_v25  ;;  %v4551_v17 = vmul.f32 %v4240_v52, %v336_v25 }
  0x9d   :  { %v323_v41 = vrot.slane %v319_v35, 1  ;;  %v298_v38 = vadd.f32 %v4446_v56, %v4232_v50  ;;  %v7656_v11 = vrot.slane %v4291_v10, 1  ;;  %v4564_v58 = vmul.f32 %v4518_v20, %v859_v37 }
  0x9e   :  { %v317_v62 = vadd.f32 %v4357_v2, %v313_v8  ;;  %v4567_v25 = vmul.f32 %v4533_v32, %v859_v37  ;;  %v4570_v27 = vmul.f32 %v4528_v33, %v859_v37  ;;  %v406_v7 = vrot.slane %v4475_v26, 1 }
  0x9f   :  { %v400_v54 = vadd.f32 %v7656_v11, %v390_v63  ;;  %v4575_v2 = vadd.f32 %v288_v39, %v282_v1  ;;  %v7657_v50 = vrot.slane %v4235_v51, 1  ;;  %v314_v63 = vmul.f32 %v4184_v34, %v4419_v21 }
  0xa0   :  { %1628 = vperm.xlu1 %3851, %v4384_v15   ;;  %v416_v56 = vmul.f32 %v4240_v52, %v331_v19  ;;  %v283_v37 = vadd.f32 %v279_v18, %v273_v59  ;;  %v7658_v26 = vrot.slane %v4279_v5, 1  ;;  %v327_v51 = vadd.f32 %v323_v41, %v317_v62 }
  0xa1   :  { %1672 = vperm.xlu2 %3852, %v4543_v49   ;;  %v308_v10 = vadd.f32 %v7657_v50, %v298_v38  ;;  %1656 = vperm.xlu0 %3850, %v4556_v0   ;;  %v410_v8 = vadd.f32 %v406_v7, %v400_v54  ;;  %v356_v34 = vmul.f32 %v4245_v53, %v331_v19  ;;  %v4599_v7 = vld [vmem:[%s7520_s2 + $0x8] ss:$0 sm:$0xff]  ;;  %v4607_v54 = vld [vmem:[%s7520_s2 + $0x7] ss:$0 sm:$0xff] }
  0xa2   :  { %v4586_v15 = vadd.f32 %v7658_v26, %v210_v29  ;;  %v476_v39 = vpop.permute.xlu1 %475  ;;  %v420_v21 = vrot.slane %v416_v56, 1  ;;  %v341_v29 = vadd.f32 %v339_v24, %v327_v51  ;;  %v338_v41 = vmul.f32 %v4275_v4, %v331_v19  ;;  %v4615_v56 = vld [vmem:[%s7520_s2 + $0x6] ss:$0 sm:$0xff] }
  0xa3   :  { %v4588_v1 = vpop.permute.xlu2 %582  ;;  %v312_v38 = vadd.f32 %v4322_v31, %v308_v10  ;;  %v350_v11 = vpop.permute.xlu0 %349  ;;  %v414_v5 = vadd.f32 %v4370_v30, %v410_v8  ;;  %v4610_v30 = vmul.f32 %v4353_v61, %v476_v39  ;;  %v4617_v24 = vadd.f32 %v219_v6, %v211_v12 }
  0xa4   :  { %v436_v31 = vmax.f32 %v4586_v15, %v4575_v2  ;;  %v7659_v2 = vrot.slane %v4228_v48, 1  ;;  %v7660_v26 = vrot.slane %v4287_v9, 1  ;;  %v360_v8 = vrot.slane %v356_v34, 1 }
  0xa5   :  { %v316_v62 = vadd.f32 %v314_v63, %v312_v38  ;;  %v424_v10 = vadd.f32 %v420_v21, %v414_v5  ;;  %v4625_v63 = vld [vmem:[%s7518_s0 + $0x40] sm:$0xff]  ;;  %v7661_v51 = vrot.slane %v4318_v28, 1  ;;  %v383_v6 = vrot.slane %v4417_v40, 1  ;;  %v7663_v21 = vld [vmem:[#allocation11_spill] sm:$0xff] }
  0xa6   :  { %v377_v19 = vadd.f32 %v7659_v2, %v4389_v22  ;;  %v484_v12 = vmul.f32 %v4399_v23, %v476_v39  ;;  %v4636_v48 = vmul.f32 %v4404_v3, %v476_v39  ;;  %v4641_v22 = vld [vmem:[%s7520_s2 + $0x3] ss:$0 sm:$0xff]  ;;  %v4645_v9 = vmul.f32 %v4599_v7, %v4588_v1 }
  0xa7   :  { %v326_v15 = vadd.f32 %v7660_v26, %v316_v62  ;;  %v4631_v38 = vadd.f32 %v7661_v51, %v283_v37  ;;  %v353_v28 = vmul.f32 %v4240_v52, %v350_v11  ;;  %v4651_v40 = vmul.f32 %v4607_v54, %v4588_v1 }
  0xa8   :  { %7662 = vst [vmem:[#allocation18_spill] sm:$0xff] %v4645_v9  ;;  %1100 = vperm.xlu1 %3851, %v4458_v13   ;;  %v387_v39 = vadd.f32 %v383_v6, %v377_v19  ;;  %v397_v34 = vrot.slane %v4538_v47, 1  ;;  %v7664_v5 = vrot.slane %v4373_v14, 1  ;;  %v508_v2 = vrot.slane %v4610_v30, 1  ;;  %v7666_v47 = vld [vmem:[#allocation13_spill] sm:$0xff] }
  0xa9   :  { %v340_v37 = vadd.f32 %v338_v41, %v326_v15  ;;  %1317 = vperm.xlu2 %3852, %v4625_v63   ;;  %1086 = vperm.xlu0 %3850, %v7663_v21   ;;  %v4661_v52 = vmul.f32 %v4615_v56, %v4588_v1  ;;  %v4665_v13 = vmul.f32 %v4641_v22, %v4588_v1  ;;  %v7667_v15 = vld [vmem:[#allocation12_spill] sm:$0xff]  ;;  %v608_v30 = vrot.slane %v4636_v48, 1 }
  0xaa   :  { %v434_v62 = vadd.f32 %v7664_v5, %v424_v10  ;;  %v495_v41 = vpop.permute.xlu1 %494  ;;  %v391_v51 = vadd.f32 %v7667_v15, %v387_v39  ;;  %v427_v6 = vmul.f32 %v4245_v53, %v350_v11  ;;  %v355_v5 = vadd.f32 %v353_v28, %v341_v29  ;;  %v4688_v29 = vld [vmem:[%s7521_s3] ss:$0 sm:$0xff] }
  0xab   :  { %7665 = vst [vmem:[#allocation11_spill] sm:$0xff] %v4665_v13  ;;  %v534_v19 = vpop.permute.xlu2 %533  ;;  %v354_v26 = vadd.f32 %v7666_v47, %v340_v37  ;;  %v499_v14 = vmul.f32 %v4404_v3, %v495_v41  ;;  %v490_v10 = vpop.permute.xlu0 %489  ;;  %v603_v59 = vmul.f32 %v4399_v23, %v495_v41  ;;  %v413_v35 = vmul.f32 %v4275_v4, %v350_v11 }
  0xac   :  { %v401_v50 = vadd.f32 %v397_v34, %v391_v51  ;;  %v615_v37 = vmul.f32 %v4353_v61, %v495_v41  ;;  %v437_v39 = vmax.f32 %v4617_v24, %v4631_v38  ;;  %v526_v53 = vmul.f32 %v4641_v22, %v4425_v46  ;;  %v4696_v46 = vld [vmem:[%s7519_s1 + $0x40] sm:$0xff] }
  0xad   :  { %v364_v18 = vadd.f32 %v360_v8, %v354_v26  ;;  %v632_v47 = vrot.slane %v4504_v60, 1  ;;  %v4683_v48 = vmul.f32 %v4469_v45, %v4588_v1  ;;  %v7668_v11 = vrot.slane %v4367_v43, 1 }
  0xae   :  { %v431_v28 = vrot.slane %v427_v6, 1  ;;  %v501_v24 = vadd.f32 %v499_v14, %v4439_v42  ;;  %v7669_v60 = vrot.slane %v4548_v16, 1  ;;  %v7670_v34 = vrot.slane %v4443_v44, 1  ;;  %v7673_v14 = vld [vmem:[#allocation14_spill] sm:$0xff] }
  0xaf   :  { %v438_v4 = vmax.f32 %v364_v18, %v434_v62  ;;  %v411_v8 = vadd.f32 %v7668_v11, %v401_v50  ;;  %v542_v26 = vmul.f32 %v4469_v45, %v534_v19  ;;  %v4704_v18 = vmul.f32 %v4435_v36, %v534_v19 }
  0xb0   :  { %v365_v38 = vadd.f32 %v7669_v60, %v355_v5  ;;  %v613_v41 = vadd.f32 %v7670_v34, %v603_v59  ;;  %1469 = vperm.xlu1 %3851, %v4556_v0   ;;  %v619_v50 = vrot.slane %v615_v37, 1  ;;  %v498_v62 = vmul.f32 %v4404_v3, %v490_v10 }
  0xb1   :  { %v440_v43 = vmax.f32 %v436_v31, %v438_v4  ;;  %v415_v42 = vadd.f32 %v413_v35, %v411_v8  ;;  %1483 = vperm.xlu2 %3852, %v4543_v49   ;;  %v674_v16 = vmul.f32 %v4404_v3, %v534_v19  ;;  %v744_v15 = vmul.f32 %v4399_v23, %v534_v19 }
  0xb2   :  { %v602_v44 = vmul.f32 %v4399_v23, %v490_v10  ;;  %v614_v59 = vmul.f32 %v4353_v61, %v490_v10  ;;  %1333 = vperm.xlu0 %3850, %v4696_v46   ;;  %v539_v51 = vpop.permute.xlu1 %538  ;;  %v7672_v35 = vrot.slane %v4551_v17, 1  ;;  %v7674_v49 = vrot.slane %v7673_v14, 1  ;;  %v4731_v17 = vld [vmem:[%s7518_s0 + $0x48] sm:$0xff] }
  0xb3   :  { %v4714_v6 = vpop.permute.xlu2 %944  ;;  %v446_v0 = vadd.f32 %v4688_v29, %v440_v43  ;;  %v500_v37 = vadd.f32 %v498_v62, %v484_v12  ;;  %v4721_v4 = vpop.permute.xlu0 %522  ;;  %v642_v11 = vrot.slane %v4704_v18, 1  ;;  %v4725_v10 = vmul.f32 %v4353_v61, %v534_v19 }
  0xb4   :  { %7671 = vst [vmem:[#allocation13_spill] sm:$0xff] %v4714_v6  ;;  %v425_v31 = vadd.f32 %v7672_v35, %v415_v42  ;;  %v513_v5 = vadd.f32 %v7674_v49, %v501_v24  ;;  %v612_v8 = vadd.f32 %v608_v30, %v602_v44  ;;  %v618_v60 = vrot.slane %v614_v59, 1  ;;  %v4740_v30 = vld [vmem:[%s7518_s0 + $0xd0] sm:$0xff]  ;;  %v4754_v35 = vld [vmem:[%s7520_s2 + $0x6] ss:$0 sm:$0xff] }
  0xb5   :  { %7675 = vst [vmem:[#allocation12_spill] sm:$0xff] %v4725_v10  ;;  %v448_v34 = vmax.f32 %v446_v0, 0.0  ;;  %v512_v13 = vadd.f32 %v508_v2, %v500_v37  ;;  %v625_v43 = vmul.f32 %v4641_v22, %v539_v51  ;;  %v623_v12 = vadd.f32 %v619_v50, %v613_v41  ;;  %v7681_v37 = vld [vmem:[#allocation16_spill] sm:$0xff] }
  0xb6   :  { %v435_v21 = vadd.f32 %v431_v28, %v425_v31  ;;  %v624_v24 = vmul.f32 %v4641_v22, %v534_v19  ;;  %v622_v42 = vadd.f32 %v618_v60, %v612_v8  ;;  %v4735_v62 = vmul.f32 %v4435_v36, %v539_v51 }
  0xb7   :  { %450 = vst [vmem:[#allocation2] sm:$0x7f] %v448_v34  ;;  %v4743_v28 = vadd.f32 %v674_v16, %v4512_v55  ;;  %v7677_v44 = vrot.slane %v4489_v57, 1  ;;  %v528_v41 = vadd.f32 %v526_v53, %v512_v13  ;;  %v543_v0 = vmul.f32 %v4469_v45, %v539_v51  ;;  %v4759_v55 = vld [vmem:[%s7520_s2 + $0x8] ss:$0 sm:$0xff] }
  0xb8   :  { %v439_v2 = vmax.f32 %v365_v38, %v435_v21  ;;  %v626_v50 = vadd.f32 %v624_v24, %v622_v42  ;;  %1651 = vperm.xlu1 %3851, %v4731_v17   ;;  %v4764_v57 = vmul.f32 %v4435_v36, %v4588_v1  ;;  %v627_v53 = vadd.f32 %v625_v43, %v623_v12  ;;  %v4770_v16 = vld [vmem:[%s7520_s2 + $0x7] ss:$0 sm:$0xff] }
  0xb9   :  { %7676 = vst [vmem:[#allocation14_spill] sm:$0xff] %v4743_v28  ;;  %v4747_v59 = vadd.f32 %v7677_v44, %v744_v15  ;;  %v544_v21 = vadd.f32 %v542_v26, %v528_v41  ;;  %v675_v38 = vmul.f32 %v4404_v3, %v539_v51  ;;  %1700 = vperm.xlu2 %3852, %v4740_v30   ;;  %v643_v31 = vrot.slane %v4735_v62, 1 }
  0xba   :  { %7679 = vst [vmem:[#allocation20_spill] sm:$0xff] %v4764_v57  ;;  %v441_v13 = vmax.f32 %v437_v39, %v439_v2  ;;  %v636_v15 = vadd.f32 %v632_v47, %v626_v50  ;;  %v745_v14 = vmul.f32 %v4399_v23, %v539_v51  ;;  %v527_v1 = vmul.f32 %v4641_v22, %v4721_v4  ;;  %v4778_v39 = vpop.permute.xlu1 %566  ;;  %v4790_v47 = vld [vmem:[%s7520_s2 + $0x3] ss:$0 sm:$0xff]  ;;  %v4812_v2 = vld [vmem:[%s7520_s2 + $0x4] ss:$0 sm:$0xff] }
  0xbb   :  { %7678 = vst [vmem:[#allocation19_spill] sm:$0xff] %v4747_v59  ;;  %1609 = vperm.xlu0 %3850, %v4625_v63   ;;  %v4780_v26 = vpop.permute.xlu2 %1278  ;;  %v7682_v8 = vrot.slane %v7681_v37, 1  ;;  %v549_v34 = vmul.f32 %v4435_v36, %v4721_v4  ;;  %v629_v63 = vmul.f32 %v4469_v45, %v4721_v4  ;;  %v4796_v43 = vpop.permute.xlu0 %900  ;;  %v4799_v12 = vmul.f32 %v4353_v61, %v539_v51  ;;  %v4823_v50 = vld [vmem:[%s7520_s2 + $0x5] ss:$0 sm:$0xff] }
  0xbc   :  { %7680 = vst [vmem:[#allocation21_spill] sm:$0xff] %v4780_v26  ;;  %v447_v49 = vadd.f32 %v4688_v29, %v441_v13  ;;  %v4803_v29 = vmul.f32 %v4754_v35, %v4714_v6  ;;  %v4807_v24 = vmul.f32 %v4759_v55, %v4714_v6  ;;  %v529_v42 = vadd.f32 %v527_v1, %v513_v5 }
  0xbd   :  { %v4785_v60 = vadd.f32 %v7682_v8, %v544_v21  ;;  %v4816_v44 = vmul.f32 %v4770_v16, %v4714_v6  ;;  %v633_v51 = vrot.slane %v629_v63, 1  ;;  %v747_v41 = vmul.f32 %v4404_v3, %v4721_v4  ;;  %7684 = vst [vmem:[#allocation22_spill] sm:$0xff] %v4823_v50  ;;  %v4845_v8 = vld [vmem:[%s7519_s1 + $0xd0] sm:$0xff] }
  0xbe   :  { %7683 = vst [vmem:[#allocation16_spill] sm:$0xff] %v4807_v24  ;;  %v449_v62 = vmax.f32 %v447_v49, 0.0  ;;  %v545_v5 = vadd.f32 %v543_v0, %v529_v42  ;;  %v553_v13 = vrot.slane %v549_v34, 1  ;;  %v673_v21 = vmul.f32 %v4399_v23, %v4721_v4  ;;  %v4832_v49 = vld [vmem:[%s7519_s1 + $0x48] sm:$0xff] }
  0xbf   :  { %v571_v1 = vmul.f32 %v4615_v56, %v4778_v39  ;;  %v4836_v3 = vmul.f32 %v4790_v47, %v4714_v6  ;;  %v637_v37 = vadd.f32 %v633_v51, %v627_v53  ;;  %v679_v0 = vmul.f32 %v4353_v61, %v4721_v4  ;;  %v4855_v61 = vld [vmem:[%s7520_s2 + $0x1] ss:$0 sm:$0xff]  ;;  %v4860_v4 = vld [vmem:[%s7520_s2 + $0x2] ss:$0 sm:$0xff] }
  0xc0   :  { %451 = vst [vmem:[#allocation2 + $0x38] sm:$0x7f] %v449_v62  ;;  %v653_v23 = vmul.f32 %v4607_v54, %v4778_v39  ;;  %v557_v63 = vadd.f32 %v553_v13, %v545_v5  ;;  %v751_v42 = vrot.slane %v747_v41, 1  ;;  %v4850_v62 = vmul.f32 %v4599_v7, %v4778_v39  ;;  %1623 = vperm.xlu1 %3851, %v4696_v46   ;;  %v4871_v5 = vld [vmem:[%s7520_s2 + $0x4] ss:$0 sm:$0xff] }
  0xc1   :  { %7685 = vst [vmem:[#allocation23_spill] sm:$0xff] %v4836_v3  ;;  %v4866_v51 = vmul.f32 %v4812_v2, %v4714_v6  ;;  %v647_v41 = vadd.f32 %v643_v31, %v637_v37  ;;  %v4875_v13 = vmul.f32 %v4823_v50, %v4780_v26  ;;  %1667 = vperm.xlu2 %3852, %v4832_v49   ;;  %v4886_v31 = vld [vmem:[%s7520_s2] ss:$0 sm:$0xff]  ;;  %v683_v24 = vrot.slane %v679_v0, 1 }
  0xc2   :  { %7686 = vst [vmem:[#allocation24_spill] sm:$0xff] %v4871_v5  ;;  %v4880_v46 = vadd.f32 %v642_v11, %v636_v15  ;;  %v677_v19 = vadd.f32 %v675_v38, %v673_v21  ;;  %v573_v34 = vadd.f32 %v571_v1, %v557_v63  ;;  %v4889_v37 = vpop.permute.xlu1 %916  ;;  %v657_v3 = vrot.slane %v653_v23, 1  ;;  %v4900_v38 = vld [vmem:[%s7520_s2 + $0x5] ss:$0 sm:$0xff] }
  0xc3   :  { %7687 = vst [vmem:[#allocation25_spill] sm:$0xff] %v4875_v13  ;;  %1716 = vperm.xlu0 %3850, %v4845_v8   ;;  %v714_v28 = vpop.permute.xlu2 %713  ;;  %v689_v18 = vmul.f32 %v4641_v22, %v4778_v39  ;;  %v4895_v11 = vmul.f32 %v4469_v45, %v4778_v39  ;;  %v873_v15 = vpop.permute.xlu0 %872  ;;  %v4902_v21 = vadd.f32 %v751_v42, %v745_v14  ;;  %v4926_v42 = vld [vmem:[%s7518_s0 + $0xd8] sm:$0xff] }
  0xc4   :  { %7688 = vst [vmem:[#allocation26_spill] sm:$0xff] %v4900_v38  ;;  %v4907_v0 = vmul.f32 %v4860_v4, %v4780_v26  ;;  %v4911_v23 = vmul.f32 %v4855_v61, %v4780_v26  ;;  %v651_v63 = vadd.f32 %v4661_v52, %v647_v41  ;;  %v4917_v6 = vmul.f32 %v4871_v5, %v4780_v26 }
  0xc5   :  { %v4921_v14 = vmul.f32 %v4900_v38, %v4796_v43  ;;  %v4929_v1 = vadd.f32 %v4651_v40, %v573_v34  ;;  %v4933_v52 = vmul.f32 %v4886_v31, %v4780_v26  ;;  %v4937_v41 = vmul.f32 %v4533_v32, %v4796_v43 }
  0xc6   :  { %7689 = vst [vmem:[#allocation27_spill] sm:$0xff] %v4907_v0  ;;  %v1125_v53 = vmul.f32 %v4528_v33, %v4796_v43  ;;  %v4941_v13 = vadd.f32 %v657_v3, %v651_v63  ;;  %v1051_v40 = vmul.f32 %v4518_v20, %v4796_v43  ;;  %v4951_v34 = vmul.f32 %v4900_v38, %v4889_v37 }
  0xc7   :  { %7690 = vst [vmem:[#allocation28_spill] sm:$0xff] %v4911_v23  ;;  %v1053_v10 = vmul.f32 %v4528_v33, %v4889_v37  ;;  %v687_v3 = vadd.f32 %v683_v24, %v677_v19  ;;  %v1123_v59 = vmul.f32 %v4518_v20, %v4889_v37  ;;  %v4963_v50 = vmul.f32 %v4533_v32, %v4889_v37 }
  0xc8   :  { %7691 = vst [vmem:[#allocation29_spill] sm:$0xff] %v4917_v6  ;;  %v4945_v6 = vmul.f32 %v4812_v2, %v4796_v43  ;;  %2034 = vperm.xlu1 %3851, %v4926_v42   ;;  %v697_v26 = vmul.f32 %v4435_v36, %v4778_v39  ;;  %v1129_v0 = vrot.slane %v1125_v53, 1  ;;  %v921_v19 = vmul.f32 %v4812_v2, %v4889_v37 }
  0xc9   :  { %7692 = vst [vmem:[#allocation30_spill] sm:$0xff] %v4933_v52  ;;  %1464 = vperm.xlu2 %3852, %v4731_v17   ;;  %v691_v24 = vadd.f32 %v689_v18, %v687_v3  ;;  %v1021_v57 = vrot.slane %v4951_v34, 1  ;;  %v717_v5 = vmul.f32 %v4615_v56, %v714_v28  ;;  %v4979_v39 = vmul.f32 %v4599_v7, %v714_v28 }
  0xca   :  { %7693 = vst [vmem:[#allocation31_spill] sm:$0xff] %v4937_v41  ;;  %v4972_v63 = vpop.permute.xlu1 %895  ;;  %v877_v17 = vmul.f32 %v4528_v33, %v873_v15  ;;  %v4982_v52 = vadd.f32 %v1053_v10, %v1051_v40  ;;  %v4985_v18 = vmul.f32 %v4607_v54, %v714_v28  ;;  %v993_v3 = vmul.f32 %v4533_v32, %v873_v15 }
  0xcb   :  { %7694 = vst [vmem:[#allocation32_spill] sm:$0xff] %v4941_v13  ;;  %1992 = vperm.xlu0 %3850, %v4740_v30   ;;  %v4974_v23 = vpop.permute.xlu2 %911  ;;  %v854_v53 = vpop.permute.xlu0 %853  ;;  %v981_v30 = vmul.f32 %v4518_v20, %v873_v15  ;;  %v4989_v41 = vadd.f32 %v1129_v0, %v1123_v59  ;;  %v701_v36 = vrot.slane %v697_v26, 1  ;;  %v695_v13 = vadd.f32 %v4683_v48, %v691_v24  ;;  %v5001_v15 = vld [vmem:[%s7519_s1 + $0xd8] sm:$0xff] }
  0xcc   :  { %7695 = vst [vmem:[#allocation33_spill] sm:$0xff] %v4982_v52  ;;  %v879_v9 = vadd.f32 %v877_v17, %v4564_v58  ;;  %v905_v10 = vmul.f32 %v4790_v47, %v4796_v43  ;;  %v7697_v40 = vrot.slane %v4570_v27, 1  ;;  %v997_v52 = vrot.slane %v993_v3, 1 }
  0xcd   :  { %7696 = vst [vmem:[#allocation34_spill] sm:$0xff] %v4985_v18  ;;  %v7698_v26 = vrot.slane %v4567_v25, 1  ;;  %v5008_v58 = vmul.f32 %v4900_v38, %v4972_v63  ;;  %v1124_v48 = vmul.f32 %v4528_v33, %v4972_v63  ;;  %v1003_v43 = vmul.f32 %v4790_v47, %v4889_v37 }
  0xce   :  { %v991_v28 = vadd.f32 %v7697_v40, %v981_v30  ;;  %v1011_v24 = vrot.slane %v4945_v6, 1  ;;  %v5019_v25 = vmul.f32 %v4812_v2, %v4972_v63  ;;  %v5027_v3 = vmul.f32 %v4900_v38, %v4974_v23 }
  0xcf   :  { %v891_v0 = vadd.f32 %v7698_v26, %v879_v9  ;;  %v5023_v9 = vmul.f32 %v4533_v32, %v4972_v63  ;;  %v705_v37 = vadd.f32 %v701_v36, %v695_v13  ;;  %v5040_v27 = vmul.f32 %v4533_v32, %v4974_v23 }
  0xd0   :  { %v1001_v17 = vadd.f32 %v997_v52, %v991_v28  ;;  %2006 = vperm.xlu1 %3851, %v4845_v8   ;;  %v1050_v8 = vmul.f32 %v4518_v20, %v4972_v63  ;;  %v1052_v52 = vmul.f32 %v4528_v33, %v4974_v23  ;;  %v1122_v59 = vmul.f32 %v4518_v20, %v4974_v23 }
  0xd1   :  { %v907_v30 = vadd.f32 %v905_v10, %v891_v0  ;;  %7699 = vst [vmem:[#allocation35_spill] sm:$0xff] %v5023_v9  ;;  %2050 = vperm.xlu2 %3852, %v5001_v15   ;;  %v1128_v0 = vrot.slane %v1124_v48, 1 }
  0xd2   :  { %v1005_v6 = vadd.f32 %v1003_v43, %v1001_v17  ;;  %v1237_v10 = vpop.permute.xlu1 %1236  ;;  %7701 = vst [vmem:[#allocation37_spill] sm:$0xff] %v5040_v27  ;;  %v5046_v43 = vmul.f32 %v4812_v2, %v4974_v23  ;;  %v5052_v17 = vmul.f32 %v4528_v33, %v854_v53  ;;  %v5067_v34 = vadd.f32 %v1052_v52, %v1050_v8 }
  0xd3   :  { %1478 = vperm.xlu0 %3850, %v4832_v49   ;;  %v5035_v40 = vpop.permute.xlu2 %939  ;;  %v923_v28 = vadd.f32 %v921_v19, %v907_v30  ;;  %v5042_v36 = vpop.permute.xlu0 %960  ;;  %v5049_v49 = vmul.f32 %v4533_v32, %v854_v53  ;;  %v5054_v19 = vadd.f32 %v717_v5, %v705_v37  ;;  %v5070_v5 = vmul.f32 %v4518_v20, %v854_v53 }
  0xd4   :  { %7700 = vst [vmem:[#allocation36_spill] sm:$0xff] %v5035_v40  ;;  %v1015_v13 = vadd.f32 %v1011_v24, %v1005_v6  ;;  %v5063_v24 = vld [vmem:[%s7519_s1 + $0x50] sm:$0xff]  ;;  %v7702_v6 = vrot.slane %v4921_v14, 1  ;;  %v5073_v37 = vmul.f32 %v4860_v4, %v1237_v10  ;;  %v5075_v48 = vadd.f32 %v1128_v0, %v1122_v59 }
  0xd5   :  { %7703 = vst [vmem:[#allocation38_spill] sm:$0xff] %v5067_v34  ;;  %v5079_v9 = vmul.f32 %v4855_v61, %v1237_v10  ;;  %v5083_v18 = vmul.f32 %v4759_v55, %v5035_v40  ;;  %v3768_v14 = vld [vmem:[%s7518_s0 + $0x50] sm:$0xff]  ;;  %v5091_v59 = vmul.f32 %v4886_v31, %v1237_v10  ;;  %v5100_v0 = vmul.f32 %v4770_v16, %v5035_v40 }
  0xd6   :  { %v935_v26 = vadd.f32 %v7702_v6, %v923_v28  ;;  %7704 = vst [vmem:[#allocation39_spill] sm:$0xff] %v5073_v37  ;;  %v1025_v53 = vadd.f32 %v1021_v57, %v1015_v13  ;;  %v5096_v28 = vmul.f32 %v4754_v35, %v5035_v40  ;;  %v1027_v57 = vmul.f32 %v4754_v35, %v5042_v36 }
  0xd7   :  { %7705 = vst [vmem:[#allocation40_spill] sm:$0xff] %v5075_v48  ;;  %v1145_v13 = vmul.f32 %v4790_v47, %v5042_v36  ;;  %v965_v30 = vmul.f32 %v4770_v16, %v5042_v36  ;;  %v7711_v34 = vrot.slane %v4963_v50, 1  ;;  %v1153_v37 = vrot.slane %v4866_v51, 1 }
  0xd8   :  { %7706 = vst [vmem:[#allocation41_spill] sm:$0xff] %v5083_v18  ;;  %1711 = vperm.xlu1 %3851, %v5063_v24   ;;  %v951_v10 = vadd.f32 %v4803_v29, %v935_v26  ;;  %v5120_v29 = vmul.f32 %v4790_v47, %v5035_v40  ;;  %v1029_v6 = vadd.f32 %v1027_v57, %v1025_v53 }
  0xd9   :  { %7707 = vst [vmem:[#allocation42_spill] sm:$0xff] %v5091_v59  ;;  %1847 = vperm.xlu2 %3852, %v4926_v42   ;;  %v1143_v27 = vadd.f32 %v7711_v34, %v4989_v41  ;;  %v5124_v42 = vmul.f32 %v4759_v55, %v5042_v36  ;;  %v1159_v50 = vmul.f32 %v4900_v38, %v5042_v36 }
  0xda   :  { %7708 = vst [vmem:[#allocation43_spill] sm:$0xff] %v5096_v28  ;;  %v5111_v8 = vpop.permute.xlu1 %577  ;;  %v5134_v34 = vmul.f32 %v4812_v2, %v5035_v40  ;;  %v5142_v53 = vadd.f32 %v965_v30, %v951_v10 }
  0xdb   :  { %7709 = vst [vmem:[#allocation44_spill] sm:$0xff] %v5100_v0  ;;  %1695 = vperm.xlu0 %3850, %v3768_v14   ;;  %v1106_v52 = vpop.permute.xlu2 %1105  ;;  %v5126_v26 = vpop.permute.xlu0 %561  ;;  %v1147_v28 = vadd.f32 %v1145_v13, %v1143_v27  ;;  %v648_v59 = vmul.f32 %v4615_v56, %v5111_v8  ;;  %v5140_v48 = vmul.f32 %v4599_v7, %v5111_v8  ;;  %v5152_v13 = vld [vmem:[%s7518_s0 + $0x58] sm:$0xff]  ;;  %v1163_v40 = vrot.slane %v1159_v50, 1 }
  0xdc   :  { %7710 = vst [vmem:[#allocation45_spill] sm:$0xff] %v5111_v8  ;;  %v5145_v27 = vmul.f32 %v4759_v55, %v1106_v52  ;;  %v570_v57 = vmul.f32 %v4615_v56, %v5126_v26  ;;  %v5159_v30 = vmul.f32 %v4641_v22, %v5111_v8  ;;  %v5170_v18 = vmul.f32 %v4599_v7, %v5126_v26 }
  0xdd   :  { %7712 = vst [vmem:[#allocation46_spill] sm:$0xff] %v5120_v29  ;;  %v1157_v51 = vadd.f32 %v1153_v37, %v1147_v28  ;;  %v586_v29 = vmul.f32 %v4607_v54, %v5111_v8  ;;  %v5162_v37 = vmul.f32 %v4770_v16, %v1106_v52  ;;  %v7717_v28 = vrot.slane %v4816_v44, 1 }
  0xde   :  { %7713 = vst [vmem:[#allocation47_spill] sm:$0xff] %v5126_v26  ;;  %v652_v41 = vmul.f32 %v4607_v54, %v5126_v26  ;;  %v5179_v44 = vmul.f32 %v4641_v22, %v5126_v26  ;;  %v904_v22 = vmul.f32 %v4790_v47, %v4972_v63  ;;  %v1010_v0 = vrot.slane %v5019_v25, 1  ;;  %v5218_v25 = vld [vmem:[%s7520_s2 + $0x6] ss:$0 sm:$0xff] }
  0xdf   :  { %7714 = vst [vmem:[#allocation48_spill] sm:$0xff] %v5134_v34  ;;  %v5166_v10 = vadd.f32 %v7717_v28, %v1029_v6  ;;  %v650_v34 = vadd.f32 %v648_v59, %v4880_v46  ;;  %v1167_v6 = vadd.f32 %v1163_v40, %v1157_v51  ;;  %v572_v28 = vadd.f32 %v570_v57, %v4785_v60  ;;  %v5199_v60 = vld [vmem:[%s7520_s2 + $0x8] ss:$0 sm:$0xff] }
  0xe0   :  { %7715 = vst [vmem:[#allocation49_spill] sm:$0xff] %v5140_v48  ;;  %1987 = vperm.xlu1 %3851, %v3768_v14   ;;  %v5186_v14 = vmul.f32 %v4469_v45, %v5126_v26  ;;  %v656_v57 = vrot.slane %v652_v41, 1  ;;  %v1002_v63 = vmul.f32 %v4790_v47, %v4974_v23  ;;  %v5223_v23 = vld [vmem:[%s7519_s1 + $0xe0] sm:$0xff] }
  0xe1   :  { %7716 = vst [vmem:[#allocation50_spill] sm:$0xff] %v5142_v53  ;;  %v1169_v53 = vmul.f32 %v4754_v35, %v1106_v52  ;;  %2029 = vperm.xlu2 %3852, %v5152_v13   ;;  %v5225_v41 = vadd.f32 %v586_v29, %v572_v28  ;;  %v5241_v29 = vld [vmem:[%s7520_s2 + $0x3] ss:$0 sm:$0xff]  ;;  %v7729_v28 = vld [vmem:[#allocation18_spill] sm:$0xff] }
  0xe2   :  { %7718 = vst [vmem:[#allocation51_spill] sm:$0xff] %v5179_v44  ;;  %v868_v46 = vpop.permute.xlu1 %867 }
  0xe3   :  { %1861 = vperm.xlu0 %3850, %v5001_v15   ;;  %v5189_v59 = vpop.permute.xlu2 %1322  ;;  %v876_v52 = vmul.f32 %v4528_v33, %v868_v46  ;;  %v980_v40 = vmul.f32 %v4518_v20, %v868_v46  ;;  %v992_v51 = vmul.f32 %v4533_v32, %v868_v46  ;;  %7720 = vst [vmem:[#allocation53_spill] sm:$0xff] %v5199_v60  ;;  %v728_v45 = vpop.permute.xlu0 %727  ;;  %v5208_v20 = vld [vmem:[%s7520_s2 + $0x7] ss:$0 sm:$0xff]  ;;  %v7722_v46 = vrot.slane %v5052_v17, 1 }
  0xe4   :  { %7719 = vst [vmem:[#allocation52_spill] sm:$0xff] %v5189_v59  ;;  %v5210_v33 = vadd.f32 %v1169_v53, %v1167_v6  ;;  %v7724_v53 = vrot.slane %v4850_v62, 1  ;;  %v7725_v17 = vrot.slane %v4799_v12, 1  ;;  %v5245_v62 = vmul.f32 %v5199_v60, %v5189_v59 }
  0xe5   :  { %7721 = vst [vmem:[#allocation54_spill] sm:$0xff] %v5208_v20  ;;  %v878_v32 = vadd.f32 %v876_v52, %v5070_v5  ;;  %v990_v50 = vadd.f32 %v7722_v46, %v980_v40  ;;  %v996_v44 = vrot.slane %v992_v51, 1  ;;  %v775_v52 = vrot.slane %v4895_v11, 1  ;;  %v3785_v11 = vld [vmem:[%s7518_s0 + $0xe0] sm:$0xff] }
  0xe6   :  { %7723 = vst [vmem:[#allocation55_spill] sm:$0xff] %v5218_v25  ;;  %v5230_v5 = vadd.f32 %v7724_v53, %v4929_v1  ;;  %v765_v6 = vadd.f32 %v7725_v17, %v4902_v21  ;;  %v7726_v40 = vrot.slane %v5049_v49, 1  ;;  %v7728_v1 = vld [vmem:[#allocation32_spill] sm:$0xff]  ;;  %v7730_v53 = vrot.slane %v7729_v28, 1 }
  0xe7   :  { %v1000_v46 = vadd.f32 %v996_v44, %v990_v50  ;;  %7727 = vst [vmem:[#allocation56_spill] sm:$0xff] %v5245_v62  ;;  %v5255_v21 = vadd.f32 %v656_v57, %v650_v34  ;;  %v5259_v49 = vmul.f32 %v5208_v20, %v5189_v59  ;;  %v7732_v44 = vld [vmem:[#allocation11_spill] sm:$0xff]  ;;  %v5270_v34 = vmul.f32 %v5241_v29, %v5189_v59  ;;  %v7734_v57 = vld [vmem:[#allocation24_spill] sm:$0xff] }
  0xe8   :  { %v890_v51 = vadd.f32 %v7726_v40, %v878_v32  ;;  %v5250_v12 = vadd.f32 %v7730_v53, %v7728_v1  ;;  %v769_v50 = vadd.f32 %v7732_v44, %v765_v6  ;;  %v731_v32 = vmul.f32 %v4607_v54, %v728_v45  ;;  %2094 = vperm.xlu1 %3851, %v5223_v23   ;;  %v7736_v53 = vld [vmem:[#allocation20_spill] sm:$0xff] }
  0xe9   :  { %7731 = vst [vmem:[#allocation32_spill] sm:$0xff] %v5259_v49  ;;  %v1004_v40 = vadd.f32 %v1002_v63, %v1000_v46  ;;  %v5266_v1 = vmul.f32 %v5218_v25, %v5189_v59  ;;  %2001 = vperm.xlu2 %3852, %v5063_v24   ;;  %v5275_v28 = vmul.f32 %v7734_v57, %v5189_v59  ;;  %v785_v44 = vrot.slane %v7736_v53, 1 }
  0xea   :  { %v906_v17 = vadd.f32 %v904_v22, %v890_v51  ;;  %7733 = vst [vmem:[#allocation18_spill] sm:$0xff] %v5270_v34  ;;  %v779_v6 = vadd.f32 %v775_v52, %v769_v50  ;;  %v791_v22 = vmul.f32 %v4615_v56, %v728_v45  ;;  %v1295_v63 = vpop.permute.xlu1 %1294  ;;  %v805_v24 = vmul.f32 %v4599_v7, %v728_v45  ;;  %v7737_v50 = vld [vmem:[#allocation22_spill] sm:$0xff] }
  0xeb   :  { %7735 = vst [vmem:[#allocation11_spill] sm:$0xff] %v5275_v28  ;;  %2078 = vperm.xlu0 %3850, %v3785_v11   ;;  %v5279_v51 = vpop.permute.xlu2 %722  ;;  %v1014_v15 = vadd.f32 %v1010_v0, %v1004_v40  ;;  %v1251_v20 = vpop.permute.xlu0 %1250  ;;  %v733_v52 = vadd.f32 %v731_v32, %v5054_v19  ;;  %v5287_v53 = vmul.f32 %v7737_v50, %v1295_v63  ;;  %v7738_v25 = vrot.slane %v5008_v58, 1  ;;  %v7739_v0 = vld [vmem:[#allocation19_spill] sm:$0xff]  ;;  %v5306_v58 = vld [vmem:[%s7518_s0 + $0xe8] sm:$0xff] }
  0xec   :  { %v922_v46 = vadd.f32 %v5046_v43, %v906_v17  ;;  %v789_v28 = vadd.f32 %v785_v44, %v779_v6  ;;  %v1431_v26 = vmul.f32 %v4855_v61, %v1295_v63  ;;  %v1501_v43 = vmul.f32 %v4886_v31, %v1295_v63  ;;  %v7740_v17 = vld [vmem:[#allocation12_spill] sm:$0xff]  ;;  %v7743_v32 = vld [vmem:[#allocation15_spill] sm:$0xff] }
  0xed   :  { %v7741_v40 = vrot.slane %v7740_v17, 1  ;;  %v815_v34 = vmax.f32 %v5230_v5, %v5250_v12  ;;  %v5299_v19 = vmul.f32 %v4860_v4, %v1295_v63  ;;  %v780_v44 = vmul.f32 %v7743_v32, %v5111_v8  ;;  %v3790_v5 = vld [vmem:[%s7519_s1 + $0x58] sm:$0xff]  ;;  %v7746_v32 = vld [vmem:[#allocation34_spill] sm:$0xff] }
  0xee   :  { %v934_v60 = vadd.f32 %v7738_v25, %v922_v46  ;;  %v793_v6 = vadd.f32 %v791_v22, %v789_v28  ;;  %v809_v25 = vrot.slane %v805_v24, 1  ;;  %v1299_v46 = vmul.f32 %v7734_v57, %v1295_v63  ;;  %v7751_v8 = vld [vmem:[#allocation28_spill] sm:$0xff] }
  0xef   :  { %v764_v45 = vadd.f32 %v7741_v40, %v7739_v0  ;;  %7742 = vst [vmem:[#allocation24_spill] sm:$0xff] %v5299_v19  ;;  %v774_v17 = vrot.slane %v5186_v14, 1  ;;  %v7744_v12 = vrot.slane %v5027_v3, 1  ;;  %v7745_v22 = vrot.slane %v4979_v39, 1  ;;  %v7749_v14 = vld [vmem:[#allocation30_spill] sm:$0xff] }
  0xf0   :  { %v7747_v59 = vrot.slane %v7746_v32, 1  ;;  %2370 = vperm.xlu1 %3851, %v3785_v11   ;;  %v5327_v49 = vadd.f32 %v1431_v26, %v7749_v14  ;;  %v7752_v48 = vrot.slane %v7751_v8, 1  ;;  %v1359_v11 = vmul.f32 %v4886_v31, %v1251_v20  ;;  %v7756_v32 = vld [vmem:[#allocation21_spill] sm:$0xff]  ;;  %v7759_v14 = vld [vmem:[#allocation31_spill] sm:$0xff] }
  0xf1   :  { %v768_v0 = vadd.f32 %v5159_v30, %v764_v45  ;;  %v5316_v28 = vadd.f32 %v7744_v12, %v1014_v15  ;;  %v743_v40 = vadd.f32 %v7745_v22, %v733_v52  ;;  %v7748_v30 = vld [vmem:[#allocation43_spill] sm:$0xff]  ;;  %v1255_v15 = vmul.f32 %v4855_v61, %v1251_v20  ;;  %2412 = vperm.xlu2 %3852, %v5306_v58  }
  0xf2   :  { %v803_v24 = vadd.f32 %v7747_v59, %v793_v6  ;;  %v5324_v45 = vadd.f32 %v7748_v30, %v934_v60  ;;  %7750 = vst [vmem:[#allocation20_spill] sm:$0xff] %v5327_v49  ;;  %v5331_v3 = vadd.f32 %v7752_v48, %v1501_v43  ;;  %v784_v52 = vrot.slane %v780_v44, 1  ;;  %v1092_v60 = vpop.permute.xlu1 %1091  ;;  %v7754_v48 = vld [vmem:[#allocation42_spill] sm:$0xff]  ;;  %v5348_v44 = vld [vmem:[%s7521_s3] ss:$0 sm:$0xff]  ;;  %v7758_v30 = vld [vmem:[#allocation33_spill] sm:$0xff] }
  0xf3   :  { %2045 = vperm.xlu0 %3850, %v3790_v5   ;;  %v5337_v6 = vpop.permute.xlu2 %1614  ;;  %v778_v26 = vadd.f32 %v774_v17, %v768_v0  ;;  %v790_v8 = vmul.f32 %v4615_v56, %v5279_v51  ;;  %v1257_v43 = vadd.f32 %v1255_v15, %v7754_v48  ;;  %v1371_v12 = vmul.f32 %v4860_v4, %v1251_v20  ;;  %v5343_v22 = vpop.permute.xlu0 %955  ;;  %v7761_v48 = vld [vmem:[#allocation39_spill] sm:$0xff] }
  0xf4   :  { %7753 = vst [vmem:[#allocation22_spill] sm:$0xff] %v5331_v3  ;;  %v813_v39 = vadd.f32 %v809_v25, %v803_v24  ;;  %v1283_v24 = vmul.f32 %v5241_v29, %v7756_v32  ;;  %v7757_v0 = vrot.slane %v5079_v9, 1  ;;  %v7760_v59 = vrot.slane %v7759_v14, 1  ;;  %v7763_v3 = vld [vmem:[#allocation13_spill] sm:$0xff] }
  0xf5   :  { %7755 = vst [vmem:[#allocation19_spill] sm:$0xff] %v5343_v22  ;;  %v7762_v20 = vrot.slane %v7761_v48, 1  ;;  %v1375_v49 = vrot.slane %v1371_v12, 1  ;;  %v1071_v19 = vmul.f32 %v4812_v2, %v5042_v36  ;;  %v5365_v32 = vmul.f32 %v4599_v7, %v5279_v51  ;;  %v5376_v7 = vld [vmem:[%s7520_s2 + $0x1] ss:$0 sm:$0xff] }
  0xf6   :  { %v817_v25 = vmax.f32 %v743_v40, %v813_v39  ;;  %v1369_v17 = vadd.f32 %v7757_v0, %v1359_v11  ;;  %v1065_v15 = vadd.f32 %v7760_v59, %v7758_v30  ;;  %v1075_v40 = vmul.f32 %v4900_v38, %v7763_v3  ;;  %v7764_v11 = vld [vmem:[#allocation23_spill] sm:$0xff]  ;;  %v7765_v59 = vld [vmem:[#allocation29_spill] sm:$0xff] }
  0xf7   :  { %v1269_v62 = vadd.f32 %v7762_v20, %v1257_v43  ;;  %v1381_v9 = vmul.f32 %v5241_v29, %v1295_v63  ;;  %v1389_v30 = vrot.slane %v7765_v59, 1  ;;  %v1173_v12 = vmul.f32 %v4770_v16, %v1092_v60  ;;  %v5381_v63 = vld [vmem:[%s7520_s2 + $0x2] ss:$0 sm:$0xff] }
  0xf8   :  { %v819_v39 = vmax.f32 %v815_v34, %v817_v25  ;;  %v1069_v0 = vadd.f32 %v7764_v11, %v1065_v15  ;;  %v1379_v43 = vadd.f32 %v1375_v49, %v1369_v17  ;;  %v1079_v48 = vrot.slane %v1075_v40, 1  ;;  %1856 = vperm.xlu1 %3851, %v3790_v5   ;;  %v7767_v5 = vld [vmem:[#allocation25_spill] sm:$0xff] }
  0xf9   :  { %v1285_v14 = vadd.f32 %v1283_v24, %v1269_v62  ;;  %v1095_v34 = vmul.f32 %v4754_v35, %v1092_v60  ;;  %v788_v62 = vadd.f32 %v784_v52, %v778_v26  ;;  %v1177_v25 = vrot.slane %v1173_v12, 1  ;;  %2384 = vperm.xlu2 %3852, %v5223_v23   ;;  %v7770_v23 = vld [vmem:[#allocation16_spill] sm:$0xff] }
  0xfa   :  { %v825_v2 = vadd.f32 %v5348_v44, %v819_v39  ;;  %v1073_v36 = vadd.f32 %v1071_v19, %v1069_v0  ;;  %v1383_v3 = vadd.f32 %v1381_v9, %v1379_v43  ;;  %v7766_v24 = vrot.slane %v5124_v42, 1  ;;  %v5389_v40 = vpop.permute.xlu1 %1273  ;;  %v7769_v9 = vld [vmem:[#allocation50_spill] sm:$0xff] }
  0xfb   :  { %v1301_v49 = vadd.f32 %v1299_v46, %v1285_v14  ;;  %v1113_v20 = vmul.f32 %v4759_v55, %v1092_v60  ;;  %1842 = vperm.xlu0 %3850, %v5152_v13   ;;  %v5391_v39 = vpop.permute.xlu2 %1672  ;;  %v7768_v46 = vrot.slane %v7767_v5, 1  ;;  %v7771_v11 = vrot.slane %v7770_v23, 1  ;;  %v5404_v13 = vld [vmem:[%s7520_s2] ss:$0 sm:$0xff] }
  0xfc   :  { %v827_v19 = vmax.f32 %v825_v2, 0.0  ;;  %v1049_v17 = vadd.f32 %v7766_v24, %v5166_v10  ;;  %v1083_v15 = vadd.f32 %v1079_v48, %v1073_v36  ;;  %v1393_v26 = vadd.f32 %v1389_v30, %v1383_v3  ;;  %v5399_v10 = vpop.permute.xlu0 %1231  ;;  %v5428_v36 = vld [vmem:[%s7518_s0 + $0x60] sm:$0xff] }
  0xfd   :  { %v1313_v52 = vadd.f32 %v7768_v46, %v1301_v49  ;;  %v979_v0 = vadd.f32 %v7771_v11, %v7769_v9  ;;  %v1181_v42 = vadd.f32 %v1177_v25, %v5210_v33  ;;  %v5408_v59 = vmul.f32 %v5381_v63, %v5337_v6  ;;  %v5463_v24 = vld [vmem:[%s7520_s2 + $0x4] ss:$0 sm:$0xff]  ;;  %v5489_v9 = vld [vmem:[%s7521_s3] ss:$0 sm:$0xff] }
  0xfe   :  { %829 = vst [vmem:[#allocation2 + $0x3f] sm:$0x7f] %v827_v19  ;;  %v1097_v60 = vadd.f32 %v1095_v34, %v1083_v15  ;;  %v5412_v30 = vmul.f32 %v5376_v7, %v5337_v6  ;;  %v1026_v33 = vmul.f32 %v4754_v35, %v5343_v22  ;;  %v5418_v14 = vmul.f32 %v4607_v54, %v5279_v51  ;;  %v7779_v23 = vld [vmem:[#allocation44_spill] sm:$0xff] }
  0xff   :  { %v5420_v43 = vadd.f32 %v790_v8, %v788_v62  ;;  %v964_v2 = vmul.f32 %v4770_v16, %v5343_v22  ;;  %v1117_v34 = vrot.slane %v1113_v20, 1  ;;  %v7772_v35 = vrot.slane %v5145_v27, 1  ;;  %v5436_v8 = vld [vmem:[%s7519_s1 + $0x60] sm:$0xff]  ;;  %7777 = vst [vmem:[#allocation43_spill] sm:$0xff] %v5489_v9 }
 0x100   :  { %v1111_v48 = vadd.f32 %v5162_v37, %v1097_v60  ;;  %v1193_v51 = vmax.f32 %v979_v0, %v1049_v17  ;;  %v1028_v62 = vadd.f32 %v1026_v33, %v5316_v28  ;;  %v5441_v16 = vmul.f32 %v4759_v55, %v5343_v22  ;;  %v3807_v37 = vld [vmem:[%s7519_s1 + $0xe8] sm:$0xff]  ;;  %v5468_v17 = vld [vmem:[%s7520_s2 + $0x5] ss:$0 sm:$0xff]  ;;  %2073 = vperm.xlu1 %3851, %v5428_v36  }
 0x101   :  { %v1191_v49 = vadd.f32 %v7772_v35, %v1181_v42  ;;  %v5445_v3 = vmul.f32 %v7737_v50, %v5389_v40  ;;  %v5449_v27 = vmul.f32 %v4860_v4, %v5389_v40  ;;  %v5456_v28 = vmul.f32 %v5404_v13, %v5337_v6  ;;  %2089 = vperm.xlu2 %3852, %v5436_v8  }
 0x102   :  { %7773 = vst [vmem:[#allocation12_spill] sm:$0xff] %v5441_v16  ;;  %v1121_v25 = vadd.f32 %v1117_v34, %v1111_v48  ;;  %v5472_v15 = vadd.f32 %v5266_v1, %v1313_v52  ;;  %v7775_v6 = vrot.slane %v5287_v53, 1  ;;  %v5479_v5 = vadd.f32 %v964_v2, %v5324_v45 }
 0x103   :  { %7774 = vst [vmem:[#allocation15_spill] sm:$0xff] %v5449_v27  ;;  %v5483_v46 = vmul.f32 %v4855_v61, %v5389_v40  ;;  %v5493_v53 = vmul.f32 %v4790_v47, %v5343_v22  ;;  %v5497_v45 = vmul.f32 %v7734_v57, %v5389_v40  ;;  %v5501_v52 = vmul.f32 %v4886_v31, %v5389_v40  ;;  %v5510_v33 = vpop.permute.xlu2 %1317  ;;  %v7788_v47 = vld [vmem:[#allocation17_spill] sm:$0xff] }
 0x104   :  { %v5476_v20 = vadd.f32 %v7775_v6, %v1393_v26  ;;  %7776 = vst [vmem:[#allocation34_spill] sm:$0xff] %v5479_v5  ;;  %v1195_v1 = vmax.f32 %v1121_v25, %v1191_v49  ;;  %2428 = vperm.xlu0 %3850, %v3807_v37   ;;  %v709_v26 = vpop.permute.xlu1 %708  ;;  %v7780_v11 = vrot.slane %v7779_v23, 1  ;;  %v5512_v2 = vpop.permute.xlu0 %1338  ;;  %v5516_v34 = vmul.f32 %v5463_v24, %v5391_v39  ;;  %v7795_v25 = vld [vmem:[#allocation55_spill] sm:$0xff] }
 0x105   :  { %7778 = vst [vmem:[#allocation30_spill] sm:$0xff] %v5493_v53  ;;  %v5520_v35 = vmul.f32 %v5468_v17, %v5391_v39  ;;  %v7783_v49 = vrot.slane %v5170_v18, 1  ;;  %v5530_v6 = vmul.f32 %v5381_v63, %v5391_v39  ;;  %v7789_v42 = vrot.slane %v7788_v47, 1  ;;  %v7791_v47 = vld [vmem:[#allocation45_spill] sm:$0xff] }
 0x106   :  { %v5505_v0 = vadd.f32 %v7780_v11, %v1028_v62  ;;  %v1197_v48 = vmax.f32 %v1193_v51, %v1195_v1  ;;  %v7785_v51 = vld [vmem:[#allocation49_spill] sm:$0xff]  ;;  %v7787_v11 = vld [vmem:[#allocation14_spill] sm:$0xff]  ;;  %v5543_v18 = vmul.f32 %v4860_v4, %v5399_v10  ;;  %v794_v19 = vmul.f32 %v4607_v54, %v709_v26 }
 0x107   :  { %7782 = vst [vmem:[#allocation42_spill] sm:$0xff] %v5520_v35  ;;  %v5525_v62 = vadd.f32 %v7783_v49, %v5225_v41  ;;  %v7786_v1 = vrot.slane %v7785_v51, 1  ;;  %v686_v60 = vadd.f32 %v7789_v42, %v7787_v11  ;;  %v5547_v41 = vmul.f32 %v4855_v61, %v5399_v10  ;;  %v3930_v49 = vld [vmem:[%s7520_s2 + $0x5] ss:$0 sm:$0xff]  ;;  %v3931_v42 = vld [vmem:[%s7520_s2 + $0x4] ss:$0 sm:$0xff] }
 0x108   :  { %7781 = vst [vmem:[#allocation28_spill] sm:$0xff] %v5505_v0  ;;  %v1203_v55 = vadd.f32 %v5489_v9, %v1197_v48  ;;  %v692_v48 = vmul.f32 %v3931_v42, %v7791_v47  ;;  %v5563_v27 = vmul.f32 %v5376_v7, %v5391_v39  ;;  %2239 = vperm.xlu1 %3851, %v3807_v37   ;;  %v798_v47 = vrot.slane %v794_v19, 1  ;;  %v7793_v54 = vld [vmem:[#allocation53_spill] sm:$0xff] }
 0x109   :  { %7784 = vst [vmem:[#allocation21_spill] sm:$0xff] %v5530_v6  ;;  %v5535_v23 = vadd.f32 %v7786_v1, %v5255_v21  ;;  %v7790_v21 = vld [vmem:[#allocation47_spill] sm:$0xff]  ;;  %2365 = vperm.xlu2 %3852, %v5428_v36   ;;  %v1240_v37 = vmul.f32 %v4886_v31, %v5399_v10  ;;  %v1364_v36 = vrot.slane %v5547_v41, 1  ;;  %v7797_v10 = vld [vmem:[#allocation54_spill] sm:$0xff]  ;;  %v7800_v35 = vrot.slane %v5365_v32, 1 }
 0x10a   :  { %v696_v51 = vmul.f32 %v3930_v49, %v7790_v21  ;;  %v7792_v1 = vld [vmem:[#allocation51_spill] sm:$0xff]  ;;  %v1205_v12 = vmax.f32 %v1203_v55, 0.0  ;;  %v716_v49 = vmul.f32 %v4615_v56, %v709_v26  ;;  %v3932_v21 = vld [vmem:[%s7520_s2 + $0x8] ss:$0 sm:$0xff]  ;;  %v5577_v56 = vmul.f32 %v5404_v13, %v5391_v39 }
 0x10b   :  { %v690_v11 = vadd.f32 %v7792_v1, %v686_v60  ;;  %v734_v9 = vmul.f32 %v3932_v21, %v709_v26  ;;  %v5571_v1 = vmul.f32 %v7793_v54, %v5510_v33  ;;  %v5592_v55 = vmul.f32 %v7795_v25, %v5510_v33  ;;  %v3809_v41 = vld [vmem:[%s7519_s1 + $0xf0] sm:$0xff] }
 0x10c   :  { %v700_v60 = vrot.slane %v696_v51, 1  ;;  %1207 = vst [vmem:[#allocation2 + $0x46] sm:$0x7f] %v1205_v12  ;;  %2225 = vperm.xlu0 %3850, %v5306_v58   ;;  %v5583_v19 = vpop.permute.xlu1 %1289  ;;  %v802_v51 = vadd.f32 %v798_v47, %v5420_v43  ;;  %v5596_v58 = vmul.f32 %v7797_v10, %v5510_v33  ;;  %v1405_v26 = vmul.f32 %v7795_v25, %v5512_v2 }
 0x10d   :  { %v694_v42 = vadd.f32 %v692_v48, %v690_v11  ;;  %7794 = vst [vmem:[#allocation33_spill] sm:$0xff] %v5571_v1  ;;  %v5588_v48 = vpop.permute.xlu2 %1483  ;;  %v1246_v11 = vpop.permute.xlu0 %1245  ;;  %v738_v21 = vrot.slane %v734_v9, 1  ;;  %v1343_v43 = vmul.f32 %v7797_v10, %v5512_v2  ;;  %v5605_v9 = vmul.f32 %v7793_v54, %v5512_v2 }
 0x10e   :  { %7796 = vst [vmem:[#allocation31_spill] sm:$0xff] %v5592_v55  ;;  %v1407_v47 = vadd.f32 %v1405_v26, %v5476_v20  ;;  %v812_v16 = vadd.f32 %v7800_v35, %v802_v51  ;;  %v1500_v20 = vmul.f32 %v4886_v31, %v5583_v19  ;;  %v3798_v26 = vld [vmem:[%s7518_s0 + $0x68] sm:$0xff]  ;;  %v5637_v5 = vmul.f32 %v7737_v50, %v5510_v33  ;;  %v7803_v35 = vld [vmem:[#allocation24_spill] sm:$0xff] }
 0x10f   :  { %v704_v12 = vadd.f32 %v700_v60, %v694_v42  ;;  %7798 = vst [vmem:[#allocation39_spill] sm:$0xff] %v5596_v58  ;;  %v3801_v42 = vld [vmem:[%s7518_s0 + $0xf0] sm:$0xff]  ;;  %v5612_v60 = vmul.f32 %v5241_v29, %v5510_v33  ;;  %v5641_v32 = vmul.f32 %v7734_v57, %v5510_v33  ;;  %v5647_v53 = vadd.f32 %v1343_v43, %v5472_v15 }
 0x110   :  { %7801 = vst [vmem:[#allocation23_spill] sm:$0xff] %v5637_v5  ;;  %2456 = vperm.xlu1 %3851, %v3801_v42   ;;  %v1298_v0 = vmul.f32 %v7734_v57, %v5583_v19  ;;  %v7805_v5 = vld [vmem:[#allocation32_spill] sm:$0xff]  ;;  %v7807_v57 = vrot.slane %v5483_v46, 1  ;;  %v7809_v46 = vmax.f32 %v5525_v62, %v5535_v23 }
 0x111   :  { %v718_v6 = vadd.f32 %v716_v49, %v704_v12  ;;  %7799 = vst [vmem:[#allocation13_spill] sm:$0xff] %v5612_v60  ;;  %v1523_v49 = vmul.f32 %v5241_v29, %v5512_v2  ;;  %v5619_v12 = vmul.f32 %v7737_v50, %v5583_v19  ;;  %v1430_v60 = vmul.f32 %v4855_v61, %v5583_v19 }
 0x112   :  { %2472 = vperm.xlu2 %3852, %v3809_v41   ;;  %v7806_v58 = vrot.slane %v7805_v5, 1  ;;  %v5666_v41 = vadd.f32 %v7807_v57, %v1500_v20  ;;  %v7808_v5 = vld [vmem:[#allocation11_spill] sm:$0xff] }
 0x113   :  { %v732_v1 = vadd.f32 %v5418_v14, %v718_v6  ;;  %v7802_v14 = vld [vmem:[#allocation22_spill] sm:$0xff]  ;;  %v7804_v6 = vrot.slane %v7803_v35, 1  ;;  %v1398_v33 = vrot.slane %v5619_v12, 1  ;;  %v5662_v43 = vadd.f32 %v1430_v60, %v5501_v52  ;;  %v3933_v12 = vld [vmem:[%s7520_s2 + $0x6] ss:$0 sm:$0xff] }
 0x114   :  { %v5654_v22 = vadd.f32 %v7806_v58, %v1407_v47  ;;  %2407 = vperm.xlu0 %3850, %v3798_v26   ;;  %v1629_v15 = vpop.permute.xlu1 %1628  ;;  %v1531_v58 = vrot.slane %v7808_v5, 1  ;;  %v1537_v35 = vmul.f32 %v7737_v50, %v5512_v2  ;;  %v1358_v52 = vmul.f32 %v4886_v31, %v1246_v11  ;;  %v5686_v50 = vld [vmem:[%s7519_s1 + $0x68] sm:$0xff]  ;;  %v5691_v31 = vld [vmem:[%s7520_s2 + $0x3] ss:$0 sm:$0xff] }
 0x115   :  { %v1521_v51 = vadd.f32 %v7804_v6, %v7802_v14  ;;  %v742_v55 = vadd.f32 %v738_v21, %v732_v1  ;;  %v5659_v14 = vmul.f32 %v4860_v4, %v5583_v19  ;;  %v5669_v42 = vpop.permute.xlu2 %1700  ;;  %v1657_v47 = vpop.permute.xlu0 %1656  ;;  %v1370_v60 = vmul.f32 %v4860_v4, %v1246_v11 }
 0x116   :  { %v1633_v20 = vmul.f32 %v5376_v7, %v1629_v15  ;;  %v1737_v6 = vmul.f32 %v5404_v13, %v1629_v15  ;;  %v1749_v62 = vmul.f32 %v5381_v63, %v1629_v15 }
 0x117   :  { %v1525_v1 = vadd.f32 %v1523_v49, %v1521_v51  ;;  %v816_v21 = vmax.f32 %v742_v55, %v812_v16  ;;  %v1547_v49 = vmul.f32 %v7795_v25, %v5588_v48  ;;  %v1254_v16 = vmul.f32 %v4855_v61, %v1246_v11 }
 0x118   :  { %v1368_v61 = vadd.f32 %v1364_v36, %v1358_v52  ;;  %v1374_v23 = vrot.slane %v1370_v60, 1  ;;  %v1635_v11 = vadd.f32 %v1633_v20, %v5456_v28  ;;  %v7811_v36 = vrot.slane %v5543_v18, 1  ;;  %2423 = vperm.xlu1 %3851, %v5686_v50  }
 0x119   :  { %v818_v55 = vmax.f32 %v7809_v46, %v816_v21  ;;  %v1535_v51 = vadd.f32 %v1531_v58, %v1525_v1  ;;  %v1256_v57 = vadd.f32 %v1254_v16, %v1240_v37  ;;  %v7810_v21 = vrot.slane %v5412_v30, 1  ;;  %v5710_v30 = vld [vmem:[%s7520_s2 + $0x6] ss:$0 sm:$0xff] }
 0x11a   :  { %v1541_v46 = vrot.slane %v1537_v35, 1  ;;  %v1282_v37 = vmul.f32 %v5241_v29, %v5389_v40  ;;  %v1753_v58 = vrot.slane %v1749_v62, 1  ;;  %v1378_v15 = vadd.f32 %v1374_v23, %v1368_v61  ;;  %2220 = vperm.xlu2 %3852, %v3798_v26  }
 0x11b   :  { %v824_v4 = vadd.f32 %v5348_v44, %v818_v55  ;;  %v1747_v5 = vadd.f32 %v7810_v21, %v1737_v6  ;;  %v1268_v1 = vadd.f32 %v7811_v36, %v1256_v57  ;;  %v1380_v44 = vmul.f32 %v5241_v29, %v5583_v19  ;;  %v5717_v19 = vld [vmem:[%s7520_s2 + $0x8] ss:$0 sm:$0xff]  ;;  %v5734_v6 = vld [vmem:[%s7520_s2 + $0x7] ss:$0 sm:$0xff] }
 0x11c   :  { %v7812_v28 = vrot.slane %v5408_v59, 1  ;;  %v1545_v40 = vadd.f32 %v1541_v46, %v1535_v51  ;;  %v1759_v55 = vmul.f32 %v5691_v31, %v5391_v39  ;;  %2379 = vperm.xlu0 %3850, %v5436_v8   ;;  %v5720_v59 = vpop.permute.xlu1 %1100  ;;  %v5725_v26 = vmul.f32 %v7797_v10, %v5588_v48 }
 0x11d   :  { %v826_v16 = vmax.f32 %v824_v4, 0.0  ;;  %v1284_v18 = vadd.f32 %v1282_v37, %v1268_v1  ;;  %v1757_v35 = vadd.f32 %v1753_v58, %v1747_v5  ;;  %v5729_v20 = vmul.f32 %v7793_v54, %v5588_v48  ;;  %v5736_v8 = vpop.permute.xlu2 %1667  ;;  %v5748_v21 = vpop.permute.xlu0 %1086  ;;  %v3808_v37 = vld [vmem:[%s7519_s1 + $0x70] sm:$0xff] }
 0x11e   :  { %v1647_v52 = vadd.f32 %v7812_v28, %v1635_v11  ;;  %v1382_v39 = vadd.f32 %v1380_v44, %v1378_v15  ;;  %v5738_v51 = vadd.f32 %v1547_v49, %v1545_v40  ;;  %v1388_v57 = vrot.slane %v5497_v45, 1  ;;  %v3800_v49 = vld [vmem:[%s7518_s0 + $0x70] sm:$0xff] }
 0x11f   :  { %828 = vst [vmem:[#allocation2 + $0x7] sm:$0x7f] %v826_v16  ;;  %v1300_v61 = vadd.f32 %v1298_v0, %v1284_v18  ;;  %v1761_v62 = vadd.f32 %v1759_v55, %v1757_v35  ;;  %v5743_v4 = vmul.f32 %v5710_v30, %v5669_v42  ;;  %v1661_v48 = vmul.f32 %v5691_v31, %v1657_v47 }
 0x120   :  { %v1683_v23 = vmul.f32 %v5468_v17, %v1657_v47  ;;  %v1763_v11 = vmul.f32 %v5463_v24, %v1657_v47  ;;  %v5755_v45 = vmul.f32 %v5717_v19, %v5669_v42  ;;  %v1807_v0 = vmul.f32 %v5404_v13, %v1657_v47  ;;  %2451 = vperm.xlu1 %3851, %v3800_v49  }
 0x121   :  { %v1813_v5 = vmul.f32 %v5381_v63, %v1657_v47  ;;  %v1881_v46 = vmul.f32 %v5376_v7, %v1657_v47  ;;  %v1392_v36 = vadd.f32 %v1388_v57, %v1382_v39  ;;  %v5765_v1 = vmul.f32 %v5734_v6, %v5669_v42  ;;  %v3107_v47 = vld [vmem:[%s7522_s4 + $0x78] sm:$0xff] }
 0x122   :  { %7813 = vst [vmem:[#allocation29_spill] sm:$0xff] %v5755_v45  ;;  %v1663_v58 = vadd.f32 %v1661_v48, %v1647_v52  ;;  %v1767_v16 = vrot.slane %v1763_v11, 1  ;;  %v7814_v44 = vrot.slane %v5445_v3, 1  ;;  %v1811_v28 = vadd.f32 %v5563_v27, %v1807_v0  ;;  %v7815_v57 = vld [vmem:[#allocation40_spill] sm:$0xff]  ;;  %v7816_v52 = vld [vmem:[#allocation37_spill] sm:$0xff]  ;;  %2467 = vperm.xlu2 %3852, %v3808_v37   ;;  %v3106_v3 = vld [vmem:[%s7522_s4 + $0x70] sm:$0xff]  ;;  %3821 = vmatpush.msra.mxu3 %v3107_v47 }
 0x123   :  { %v1817_v40 = vrot.slane %v1813_v5, 1  ;;  %v1885_v18 = vrot.slane %v1881_v46, 1  ;;  %v1687_v55 = vrot.slane %v1683_v23, 1  ;;  %v7817_v48 = vrot.slane %v7816_v52, 1  ;;  %v7823_v37 = vld [vmem:[#allocation30_spill] sm:$0xff]  ;;  %3112 = vmatpush.msra.mxu0 %v3107_v47  ;;  %v3811_v52 = vld [vmem:[%s7519_s1 + $0xf8] sm:$0xff] }
 0x124   :  { %v1312_v15 = vadd.f32 %v7814_v44, %v1300_v61  ;;  %v1679_v35 = vadd.f32 %v5516_v34, %v1663_v58  ;;  %v5774_v39 = vadd.f32 %v1767_v16, %v1761_v62  ;;  %v7820_v34 = vld [vmem:[#allocation19_spill] sm:$0xff]  ;;  %v7821_v23 = vmov %v4900_v38  ;;  %2234 = vperm.xlu0 %3850, %v5686_v50   ;;  %v5791_v0 = vpop.permute.xlu1 %1469  ;;  %v7824_v16 = vld [vmem:[#allocation48_spill] sm:$0xff] }
 0x125   :  { %v1142_v11 = vadd.f32 %v7817_v48, %v7815_v57  ;;  %v5783_v61 = vadd.f32 %v1817_v40, %v1811_v28  ;;  %v5786_v49 = vadd.f32 %v1885_v18, %v5577_v56  ;;  %v1158_v62 = vmul.f32 %v7821_v23, %v7820_v34  ;;  %v3105_v56 = vld [vmem:[%s7522_s4 + $0x68] sm:$0xff]  ;;  %3822 = vmatpush.msra.mxu3 %v3106_v3  ;;  %v7835_v28 = vld [vmem:[#allocation35_spill] sm:$0xff]  ;;  %v5866_v38 = vpop.permute.xlu0 %1333 }
 0x126   :  { %v5795_v5 = vmul.f32 %v5691_v31, %v5669_v42  ;;  %v5797_v46 = vadd.f32 %v1687_v55, %v1679_v35  ;;  %v1152_v44 = vrot.slane %v7824_v16, 1  ;;  %v5806_v50 = vadd.f32 %v1398_v33, %v1392_v36  ;;  %v7827_v35 = vld [vmem:[#allocation31_spill] sm:$0xff]  ;;  %v5824_v36 = vpop.permute.xlu2 %1464  ;;  %3113 = vmatpush.msra.mxu0 %v3106_v3  ;;  %v7828_v48 = vld [vmem:[#allocation34_spill] sm:$0xff] }
 0x127   :  { %7818 = vst [vmem:[#allocation25_spill] sm:$0xff] %v5783_v61  ;;  %v1146_v58 = vadd.f32 %v7823_v37, %v1142_v11  ;;  %v5811_v40 = vmul.f32 %v5468_v17, %v5669_v42  ;;  %v5815_v18 = vmul.f32 %v5463_v24, %v5669_v42  ;;  %v5818_v55 = vadd.f32 %v7827_v35, %v1312_v15  ;;  %v3934_v42 = vld [vmem:[%s7520_s2 + $0x7] ss:$0 sm:$0xff]  ;;  %v7831_v37 = vld [vmem:[#allocation28_spill] sm:$0xff]  ;;  %v7834_v35 = vld [vmem:[#allocation38_spill] sm:$0xff] }
 0x128   :  { %7819 = vst [vmem:[#allocation50_spill] sm:$0xff] %v5786_v49  ;;  %v1162_v47 = vrot.slane %v1158_v62, 1  ;;  %v1168_v33 = vmul.f32 %v3933_v12, %v5720_v59  ;;  %v5833_v15 = vmul.f32 %v3934_v42, %v5720_v59  ;;  %v7829_v11 = vld [vmem:[#allocation41_spill] sm:$0xff]  ;;  %v7836_v3 = vrot.slane %v7835_v28, 1  ;;  %3823 = vmatpush.msra.mxu3 %v3105_v56  ;;  %v3802_v27 = vld [vmem:[%s7518_s0 + $0x78] sm:$0xff]  ;;  %3114 = vmatpush.msra.mxu0 %v3105_v56 }
 0x129   :  { %7822 = vst [vmem:[#allocation16_spill] sm:$0xff] %v5795_v5  ;;  %v1156_v57 = vadd.f32 %v1152_v44, %v1146_v58  ;;  %v7830_v23 = vrot.slane %v7829_v11, 1  ;;  %v7832_v58 = vld [vmem:[#allocation12_spill] sm:$0xff]  ;;  %v3936_v28 = vld [vmem:[%s7520_s2 + $0x4] ss:$0 sm:$0xff]  ;;  %2617 = vperm.xlu1 %3851, %v3811_v52   ;;  %v1172_v49 = vmul.f32 %v3934_v42, %v5748_v21  ;;  %v7841_v5 = vld [vmem:[#allocation27_spill] sm:$0xff] }
 0x12a   :  { %7825 = vst [vmem:[#allocation44_spill] sm:$0xff] %v5811_v40  ;;  %v7833_v16 = vrot.slane %v7832_v58, 1  ;;  %v1064_v60 = vadd.f32 %v7836_v3, %v7834_v35  ;;  %v3104_v11 = vld [vmem:[%s7522_s4 + $0x60] sm:$0xff]  ;;  %v1070_v58 = vmul.f32 %v3936_v28, %v7820_v34  ;;  %v1094_v28 = vmul.f32 %v3933_v12, %v5748_v21  ;;  %2598 = vperm.xlu2 %3852, %v3802_v27  }
 0x12b   :  { %7826 = vst [vmem:[#allocation49_spill] sm:$0xff] %v5815_v18  ;;  %v5838_v62 = vadd.f32 %v7830_v23, %v7828_v48  ;;  %v1166_v48 = vadd.f32 %v1162_v47, %v1156_v57  ;;  %v3935_v23 = vld [vmem:[%s7520_s2 + $0x8] ss:$0 sm:$0xff]  ;;  %v7837_v35 = vld [vmem:[#allocation36_spill] sm:$0xff]  ;;  %v7838_v47 = vld [vmem:[#allocation46_spill] sm:$0xff]  ;;  %3824 = vmatpush.msra.mxu3 %v3104_v11  ;;  %v7839_v34 = vrot.slane %v5605_v9, 1  ;;  %3115 = vmatpush.msra.mxu0 %v3104_v11 }
 0x12c   :  { %v5843_v44 = vadd.f32 %v7833_v16, %v7831_v37  ;;  %v1182_v37 = vmul.f32 %v3935_v23, %v5720_v59  ;;  %v3937_v16 = vld [vmem:[%s7520_s2 + $0x5] ss:$0 sm:$0xff]  ;;  %v3803_v57 = vld [vmem:[%s7518_s0 + $0xf8] sm:$0xff]  ;;  %v5873_v59 = vmul.f32 %v5463_v24, %v5736_v8  ;;  %v1068_v18 = vadd.f32 %v7838_v47, %v1064_v60  ;;  %s4015_s0 = smov 48  }
 0x12d   :  { %v1074_v3 = vmul.f32 %v3937_v16, %v7837_v35  ;;  %v3103_v16 = vld [vmem:[%s7522_s4 + $0x58] sm:$0xff]  ;;  %v1170_v40 = vadd.f32 %v1168_v33, %v1166_v48  ;;  %v1112_v56 = vmul.f32 %v3935_v23, %v5748_v21  ;;  %v5888_v12 = vadd.f32 %v7839_v34, %v5654_v22  ;;  %2603 = vperm.xlu0 %3850, %v3803_v57   ;;  %v5893_v35 = vpop.permute.xlu1 %1651  ;;  %v3102_v21 = vld [vmem:[%s7522_s4 + $0x50] sm:$0xff]  ;;  %v5906_v22 = vld [vmem:[%s7520_s2 + $0x4] ss:$0 sm:$0xff] }
 0x12e   :  { %v1072_v60 = vadd.f32 %v1070_v58, %v1068_v18  ;;  %v7840_v52 = vld [vmem:[#allocation20_spill] sm:$0xff]  ;;  %v7842_v61 = vrot.slane %v7841_v5, 1  ;;  %v1176_v27 = vrot.slane %v1172_v49, 1  ;;  %v1449_v9 = vmul.f32 %v5906_v22, %v5512_v2  ;;  %3825 = vmatpush.msra.mxu3 %v3103_v16  ;;  %v7846_v48 = vld [vmem:[#allocation18_spill] sm:$0xff]  ;;  %3116 = vmatpush.msra.mxu0 %v3103_v16 }
 0x12f   :  { %v1078_v47 = vrot.slane %v1074_v3, 1  ;;  %v7843_v18 = vld [vmem:[#allocation56_spill] sm:$0xff]  ;;  %v1551_v58 = vmul.f32 %v7797_v10, %v5791_v0  ;;  %v3101_v2 = vld [vmem:[%s7522_s4 + $0x48] sm:$0xff]  ;;  %v1186_v3 = vrot.slane %v1182_v37, 1  ;;  %v1473_v34 = vmul.f32 %v7795_v25, %v5791_v0 }
 0x130   :  { %v1443_v45 = vadd.f32 %v7842_v61, %v7840_v52  ;;  %v7844_v33 = vrot.slane %v7843_v18, 1  ;;  %v5913_v61 = vld [vmem:[%s7520_s2 + $0x5] ss:$0 sm:$0xff]  ;;  %v7845_v5 = vld [vmem:[#allocation52_spill] sm:$0xff]  ;;  %v1180_v57 = vadd.f32 %v1176_v27, %v1170_v40  ;;  %3826 = vmatpush.msra.mxu3 %v3102_v21  ;;  %3117 = vmatpush.msra.mxu0 %v3102_v21  ;;  %v5936_v37 = vmul.f32 %v5381_v63, %v5736_v8 }
 0x131   :  { %v1453_v49 = vmul.f32 %v5913_v61, %v7845_v5  ;;  %v1082_v11 = vadd.f32 %v1078_v47, %v1072_v60  ;;  %v1555_v18 = vrot.slane %v1551_v58, 1  ;;  %v1116_v40 = vrot.slane %v1112_v56, 1  ;;  %v5940_v5 = vpop.permute.xlu2 %2050  ;;  %v3099_v56 = vld [vmem:[%s7522_s4 + $0x38] sm:$0xff] }
 0x132   :  { %v5901_v42 = vadd.f32 %v7844_v33, %v5647_v53  ;;  %v5919_v53 = vmul.f32 %v5468_v17, %v5736_v8  ;;  %v1447_v23 = vadd.f32 %v7846_v48, %v1443_v45  ;;  %v3100_v33 = vld [vmem:[%s7522_s4 + $0x40] sm:$0xff]  ;;  %7847 = vst [vmem:[#allocation14_spill] sm:$0xff] %v5936_v37  ;;  %v1190_v16 = vadd.f32 %v1186_v3, %v1180_v57 }
 0x133   :  { %v1096_v60 = vadd.f32 %v1094_v28, %v1082_v11  ;;  %v1457_v45 = vrot.slane %v1453_v49, 1  ;;  %v1491_v27 = vmul.f32 %v7793_v54, %v5791_v0  ;;  %3827 = vmatpush.msra.mxu3 %v3101_v2  ;;  %v3810_v28 = vld [vmem:[%s7519_s1 + $0x78] sm:$0xff]  ;;  %v1559_v21 = vadd.f32 %v1555_v18, %v5738_v51  ;;  %3118 = vmatpush.msra.mxu0 %v3101_v2 }
 0x134   :  { %v1571_v52 = vmax.f32 %v5901_v42, %v5888_v12  ;;  %v1451_v47 = vadd.f32 %v1449_v9, %v1447_v23  ;;  %v1404_v11 = vmul.f32 %v7795_v25, %v5866_v38  ;;  %v1808_v0 = vmul.f32 %v5376_v7, %v5736_v8  ;;  %v1610_v23 = vpop.permute.xlu0 %1609 }
 0x135   :  { %v1110_v9 = vadd.f32 %v5833_v15, %v1096_v60  ;;  %v5956_v48 = vmul.f32 %v7793_v54, %v5824_v36  ;;  %v5960_v15 = vmul.f32 %v7797_v10, %v5824_v36  ;;  %v1342_v51 = vmul.f32 %v7797_v10, %v5866_v38  ;;  %3828 = vmatpush.msra.mxu3 %v3100_v33  ;;  %v3098_v60 = vld [vmem:[%s7522_s4 + $0x30] sm:$0xff]  ;;  %v1624_v58 = vpop.permute.xlu1 %1623 }
 0x136   :  { %v1461_v49 = vadd.f32 %v1457_v45, %v1451_v47  ;;  %v5967_v2 = vmul.f32 %v5404_v13, %v5736_v8  ;;  %2612 = vperm.xlu0 %3850, %v3810_v28   ;;  %v1495_v45 = vrot.slane %v1491_v27, 1  ;;  %v5975_v10 = vmul.f32 %v7795_v25, %v5824_v36  ;;  %3119 = vmatpush.msra.mxu0 %v3100_v33  ;;  %v3097_v25 = vld [vmem:[%s7522_s4 + $0x28] sm:$0xff] }
 0x137   :  { %7848 = vst [vmem:[#allocation17_spill] sm:$0xff] %v5956_v48  ;;  %v1120_v3 = vadd.f32 %v1116_v40, %v1110_v9  ;;  %v5979_v18 = vmul.f32 %v7793_v54, %v5866_v38  ;;  %3829 = vmatpush.msra.mxu3 %v3099_v56  ;;  %v7850_v28 = vrot.slane %v5729_v20, 1  ;;  %v5991_v27 = vadd.f32 %v1342_v51, %v5818_v55  ;;  %v6005_v20 = vld [vmem:[%s7520_s2 + $0x5] ss:$0 sm:$0xff]  ;;  %v3094_v51 = vld [vmem:[%s7522_s4 + $0x10] sm:$0xff] }
 0x138   :  { %7849 = vst [vmem:[#allocation47_spill] sm:$0xff] %v5960_v15  ;;  %v1475_v57 = vadd.f32 %v1473_v34, %v1461_v49  ;;  %v1406_v49 = vadd.f32 %v1404_v11, %v5806_v50  ;;  %v5995_v33 = vmul.f32 %v5468_v17, %v5893_v35  ;;  %3120 = vmatpush.msra.mxu0 %v3099_v56  ;;  %v3096_v11 = vld [vmem:[%s7522_s4 + $0x20] sm:$0xff] }
 0x139   :  { %v1194_v34 = vmax.f32 %v1120_v3, %v1190_v16  ;;  %v1569_v9 = vadd.f32 %v7850_v28, %v1559_v21  ;;  %7852 = vst [vmem:[#allocation51_spill] sm:$0xff] %v6005_v20  ;;  %3830 = vmatpush.msra.mxu3 %v3098_v60  ;;  %v7853_v50 = vmax.f32 %v5838_v62, %v5843_v44 }
 0x13a   :  { %v1489_v40 = vadd.f32 %v5725_v26, %v1475_v57  ;;  %v6000_v26 = vld [vmem:[%s7520_s2 + $0x4] ss:$0 sm:$0xff]  ;;  %v6012_v17 = vmul.f32 %v5906_v22, %v5866_v38  ;;  %v1806_v21 = vmul.f32 %v5404_v13, %v5893_v35  ;;  %v6022_v56 = vmul.f32 %v5241_v29, %v5866_v38  ;;  %3121 = vmatpush.msra.mxu0 %v3098_v60  ;;  %v7855_v22 = vld [vmem:[#allocation43_spill] sm:$0xff]  ;;  %v6034_v57 = vld [vmem:[%s7521_s3] ss:$0 sm:$0xff] }
 0x13b   :  { %7851 = vst [vmem:[#allocation45_spill] sm:$0xff] %v6000_v26  ;;  %v1196_v55 = vmax.f32 %v7853_v50, %v1194_v34  ;;  %v6026_v62 = vmul.f32 %v5381_v63, %v5893_v35  ;;  %v1880_v44 = vmul.f32 %v5376_v7, %v5893_v35  ;;  %3831 = vmatpush.msra.mxu3 %v3097_v25  ;;  %v7856_v34 = vld [vmem:[#allocation39_spill] sm:$0xff] }
 0x13c   :  { %v1499_v16 = vadd.f32 %v1495_v45, %v1489_v40  ;;  %v7857_v29 = vrot.slane %v7856_v34, 1  ;;  %v6042_v28 = vmul.f32 %v5463_v24, %v5893_v35  ;;  %v3095_v60 = vld [vmem:[%s7522_s4 + $0x18] sm:$0xff]  ;;  %v1848_v34 = vpop.permute.xlu2 %1847  ;;  %v6070_v36 = vadd.f32 %v1808_v0, %v1806_v21  ;;  %3122 = vmatpush.msra.mxu0 %v3097_v25  ;;  %v6079_v15 = vpop.permute.xlu0 %1716  ;;  %v3093_v25 = vld [vmem:[%s7522_s4 + $0x8] sm:$0xff] }
 0x13d   :  { %7854 = vst [vmem:[#allocation53_spill] sm:$0xff] %v6026_v62  ;;  %v1202_v3 = vadd.f32 %v7855_v22, %v1196_v55  ;;  %v6051_v55 = vld [vmem:[%s7520_s2 + $0x1] ss:$0 sm:$0xff]  ;;  %v1638_v22 = vmul.f32 %v5381_v63, %v1610_v23  ;;  %3832 = vmatpush.msra.mxu3 %v3096_v11  ;;  %v1738_v54 = vmul.f32 %v5376_v7, %v1610_v23  ;;  %v1884_v37 = vrot.slane %v1880_v44, 1 }
 0x13e   :  { %v1573_v45 = vmax.f32 %v1499_v16, %v1569_v9  ;;  %v6038_v40 = vadd.f32 %v7857_v29, %v1406_v49  ;;  %v6056_v9 = vld [vmem:[%s7520_s2 + $0x2] ss:$0 sm:$0xff]  ;;  %v6060_v49 = vmul.f32 %v6000_v26, %v5940_v5  ;;  %v6064_v16 = vmul.f32 %v6005_v20, %v5940_v5  ;;  %7858 = vst [vmem:[#allocation55_spill] sm:$0xff] %v6070_v36 }
 0x13f   :  { %v1204_v29 = vmax.f32 %v1202_v3, 0.0  ;;  %v1618_v48 = vmul.f32 %v5404_v13, %v1610_v23  ;;  %v1632_v3 = vmul.f32 %v5376_v7, %v1624_v58  ;;  %3833 = vmatpush.msra.mxu3 %v3095_v60  ;;  %v1742_v42 = vrot.slane %v1738_v54, 1  ;;  %3123 = vmatpush.msra.mxu0 %v3096_v11  ;;  %v6090_v7 = vld [vmem:[%s7520_s2] ss:$0 sm:$0xff] }
 0x140   :  { %v1575_v47 = vmax.f32 %v1571_v52, %v1573_v45  ;;  %v1736_v52 = vmul.f32 %v5404_v13, %v1624_v58  ;;  %v1748_v0 = vmul.f32 %v5381_v63, %v1624_v58  ;;  %v2187_v23 = vmul.f32 %v6051_v55, %v5940_v5  ;;  %v6098_v63 = vpop.permute.xlu1 %2034  ;;  %v3092_v45 = vld [vmem:[%s7522_s4] sm:$0xff] }
 0x141   :  { %1206 = vst [vmem:[#allocation2 + $0xe] sm:$0x7f] %v1204_v29  ;;  %v1642_v13 = vrot.slane %v1638_v22, 1  ;;  %v1634_v54 = vadd.f32 %v1632_v3, %v1618_v48  ;;  %3834 = vmatpush.msra.mxu3 %v3094_v51  ;;  %v1660_v21 = vmul.f32 %v5691_v31, %v5893_v35  ;;  %3124 = vmatpush.msra.mxu0 %v3095_v60  ;;  %v7860_v22 = vld [vmem:[#allocation42_spill] sm:$0xff] }
 0x142   :  { %v1581_v12 = vadd.f32 %v6034_v57, %v1575_v47  ;;  %v6096_v47 = vmul.f32 %v6056_v9, %v5940_v5  ;;  %v1746_v11 = vadd.f32 %v1742_v42, %v1736_v52  ;;  %v1752_v44 = vrot.slane %v1748_v0, 1 }
 0x143   :  { %v1646_v29 = vadd.f32 %v1642_v13, %v1634_v54  ;;  %v1758_v50 = vmul.f32 %v5691_v31, %v5736_v8  ;;  %v6108_v48 = vmul.f32 %v5717_v19, %v1848_v34  ;;  %v7861_v3 = vrot.slane %v7860_v22, 1  ;;  %3835 = vmatpush.msra.mxu3 %v3093_v25  ;;  %3125 = vmatpush.msra.mxu0 %v3094_v51 }
 0x144   :  { %7859 = vst [vmem:[#allocation54_spill] sm:$0xff] %v6096_v47  ;;  %v1583_v58 = vmax.f32 %v1581_v12, 0.0  ;;  %v1756_v42 = vadd.f32 %v1752_v44, %v1746_v11  ;;  %v6115_v52 = vmul.f32 %v5734_v6, %v1848_v34  ;;  %v1783_v60 = vmul.f32 %v5710_v30, %v6079_v15 }
 0x145   :  { %v1781_v12 = vadd.f32 %v7861_v3, %v5774_v39  ;;  %v6120_v8 = vadd.f32 %v1884_v37, %v5967_v2  ;;  %v2257_v0 = vmul.f32 %v6090_v7, %v5940_v5  ;;  %v1662_v13 = vadd.f32 %v1660_v21, %v1646_v29  ;;  %3836 = vmatpush.msra.mxu3 %v3092_v45 }
 0x146   :  { %1585 = vst [vmem:[#allocation2 + $0x4d] sm:$0x7f] %v1583_v58  ;;  %v1766_v54 = vrot.slane %v6042_v28, 1  ;;  %v1760_v58 = vadd.f32 %v1758_v50, %v1756_v42  ;;  %v6127_v11 = vmul.f32 %v5710_v30, %v1848_v34  ;;  %v1721_v44 = vmul.f32 %v5734_v6, %v6079_v15  ;;  %3126 = vmatpush.msra.mxu0 %v3093_v25  ;;  %v6140_v28 = vpop.permute.xlu2 %2029  ;;  %v1993_v42 = vpop.permute.xlu0 %1992 }
 0x147   :  { %7862 = vst [vmem:[#allocation22_spill] sm:$0xff] %v6120_v8  ;;  %v1678_v37 = vadd.f32 %v5873_v59, %v1662_v13  ;;  %v1785_v2 = vadd.f32 %v1783_v60, %v1781_v12  ;;  %v6134_v51 = vmul.f32 %v5717_v19, %v6079_v15  ;;  %v6138_v21 = vmul.f32 %v6005_v20, %v6098_v63 }
 0x148   :  { %v1770_v50 = vadd.f32 %v1766_v54, %v1760_v58  ;;  %v1707_v25 = vadd.f32 %v5743_v4, %v5797_v46  ;;  %3127 = vmatpush.msra.mxu0 %v3092_v45  ;;  %v6148_v59 = vmul.f32 %v5463_v24, %v6079_v15  ;;  %v2185_v22 = vmul.f32 %v6090_v7, %v6098_v63 }
 0x149   :  { %v6154_v3 = vmul.f32 %v6056_v9, %v6098_v63  ;;  %v2259_v12 = vmul.f32 %v6051_v55, %v6098_v63  ;;  %v7864_v60 = vrot.slane %v5919_v53, 1  ;;  %v6166_v24 = vmul.f32 %v5691_v31, %v6079_v15 }
 0x14a   :  { %v6162_v4 = vadd.f32 %v1721_v44, %v1707_v25  ;;  %v6170_v46 = vmul.f32 %v6005_v20, %v6140_v28  ;;  %v7866_v45 = vrot.slane %v5765_v1, 1  ;;  %v2065_v53 = vrot.slane %v6138_v21, 1 }
 0x14b   :  { %7863 = vst [vmem:[#allocation24_spill] sm:$0xff] %v6154_v3  ;;  %v6160_v13 = vadd.f32 %v7864_v60, %v1770_v50  ;;  %v2141_v44 = vmul.f32 %v6000_v26, %v6098_v63  ;;  %v2007_v50 = vpop.permute.xlu1 %2006  ;;  %v2263_v25 = vrot.slane %v2259_v12, 1  ;;  %v6182_v60 = vmul.f32 %v6000_v26, %v6140_v28 }
 0x14c   :  { %7865 = vst [vmem:[#allocation32_spill] sm:$0xff] %v6170_v46  ;;  %v6174_v54 = vadd.f32 %v7866_v45, %v1785_v2  ;;  %v2017_v39 = vmul.f32 %v6056_v9, %v1993_v42  ;;  %v2117_v34 = vmul.f32 %v6051_v55, %v1993_v42  ;;  %v7867_v1 = vrot.slane %v5995_v33, 1 }
 0x14d   :  { %v6190_v45 = vadd.f32 %v2187_v23, %v2185_v22  ;;  %v6195_v29 = vmul.f32 %v6056_v9, %v6140_v28  ;;  %v6200_v58 = vmul.f32 %v6090_v7, %v6140_v28  ;;  %v1997_v35 = vmul.f32 %v6090_v7, %v1993_v42  ;;  %v6211_v22 = vld [vmem:[%s7520_s2 + $0x3] ss:$0 sm:$0xff] }
 0x14e   :  { %v6188_v2 = vadd.f32 %v7867_v1, %v1678_v37  ;;  %v2011_v33 = vmul.f32 %v6051_v55, %v2007_v50  ;;  %v6206_v23 = vmul.f32 %v6051_v55, %v6140_v28  ;;  %v2121_v37 = vrot.slane %v2117_v34, 1  ;;  %v7872_v34 = vld [vmem:[#allocation15_spill] sm:$0xff] }
 0x14f   :  { %7868 = vst [vmem:[#allocation11_spill] sm:$0xff] %v6190_v45  ;;  %v2115_v1 = vmul.f32 %v6090_v7, %v2007_v50  ;;  %v2127_v21 = vmul.f32 %v6056_v9, %v2007_v50  ;;  %v6215_v12 = vadd.f32 %v2263_v25, %v2257_v0  ;;  %v2021_v3 = vrot.slane %v2017_v39, 1  ;;  %v7875_v39 = vld [vmem:[#allocation13_spill] sm:$0xff] }
 0x150   :  { %7869 = vst [vmem:[#allocation40_spill] sm:$0xff] %v6195_v29  ;;  %v2013_v45 = vadd.f32 %v2011_v33, %v1997_v35  ;;  %v7873_v36 = vrot.slane %v7872_v34, 1  ;;  %v2145_v20 = vrot.slane %v2141_v44, 1  ;;  %v7874_v0 = vrot.slane %v5659_v14, 1 }
 0x151   :  { %7870 = vst [vmem:[#allocation37_spill] sm:$0xff] %v6200_v58  ;;  %v2125_v46 = vadd.f32 %v2121_v37, %v2115_v1  ;;  %v2131_v62 = vrot.slane %v2127_v21, 1  ;;  %v2039_v58 = vmul.f32 %v6211_v22, %v6098_v63  ;;  %v2137_v35 = vmul.f32 %v6211_v22, %v5940_v5  ;;  %v1479_v37 = vpop.permute.xlu0 %1478 }
 0x152   :  { %7871 = vst [vmem:[#allocation19_spill] sm:$0xff] %v6215_v12  ;;  %v1442_v8 = vadd.f32 %v7873_v36, %v5662_v43  ;;  %v2025_v26 = vadd.f32 %v2021_v3, %v2013_v45  ;;  %v1520_v50 = vadd.f32 %v7874_v0, %v5666_v41  ;;  %v1536_v21 = vmul.f32 %v5913_v61, %v5866_v38  ;;  %v6232_v36 = vpop.permute.xlu2 %2001 }
 0x153   :  { %v2135_v25 = vadd.f32 %v2131_v62, %v2125_v46  ;;  %v7876_v63 = vrot.slane %v5979_v18, 1  ;;  %v1530_v41 = vrot.slane %v5641_v32, 1  ;;  %v2010_v47 = vmul.f32 %v6051_v55, %v6232_v36 }
 0x154   :  { %v1446_v33 = vadd.f32 %v7875_v39, %v1442_v8  ;;  %v2041_v43 = vadd.f32 %v2039_v58, %v2025_v26  ;;  %v1524_v14 = vadd.f32 %v6022_v56, %v1520_v50  ;;  %v7877_v8 = vld [vmem:[#allocation23_spill] sm:$0xff]  ;;  %v1540_v44 = vrot.slane %v1536_v21, 1  ;;  %v3940_v26 = vld [vmem:[%s7520_s2 + $0x6] ss:$0 sm:$0xff]  ;;  %v3942_v50 = vld [vmem:[%s7520_s2 + $0x8] ss:$0 sm:$0xff] }
 0x155   :  { %v6237_v3 = vadd.f32 %v7876_v63, %v6038_v40  ;;  %v2139_v62 = vadd.f32 %v2137_v35, %v2135_v25  ;;  %v1456_v46 = vrot.slane %v7877_v8, 1  ;;  %v1546_v18 = vmul.f32 %v3940_v26, %v1479_v37  ;;  %v7878_v56 = vld [vmem:[#allocation33_spill] sm:$0xff]  ;;  %v6272_v63 = vpop.permute.xlu1 %1711 }
 0x156   :  { %v1450_v5 = vadd.f32 %v6012_v17, %v1446_v33  ;;  %v2057_v38 = vadd.f32 %v6060_v49, %v2041_v43  ;;  %v1534_v61 = vadd.f32 %v1530_v41, %v1524_v14  ;;  %v2720_v40 = vlaneseq  ;;  %v3941_v17 = vld [vmem:[%s7520_s2 + $0x7] ss:$0 sm:$0xff]  ;;  %v6274_v41 = vld [vmem:[#allocation2 + $0x18] sm:$0xff] }
 0x157   :  { %v6247_v58 = vadd.f32 %v2145_v20, %v2139_v62  ;;  %v7879_v32 = vrot.slane %v7878_v56, 1  ;;  %v1486_v34 = vmul.f32 %v3941_v17, %v1479_v37  ;;  %v1560_v25 = vmul.f32 %v3942_v50, %v1479_v37  ;;  %v2735_v43 = vld [vmem:[#allocation2 + $0x40] sm:$0xff] }
 0x158   :  { %v1460_v1 = vadd.f32 %v1456_v46, %v1450_v5  ;;  %v6255_v49 = vadd.f32 %v2065_v53, %v2057_v38  ;;  %v1544_v0 = vadd.f32 %v1540_v44, %v1534_v61  ;;  %v6260_v20 = vand.u32 127, %v2720_v40  ;;  %v2734_v53 = vld [vmem:[#allocation2 + $0x38] sm:$0xff]  ;;  %v7885_v26 = vld [vmem:[#allocation17_spill] sm:$0xff] }
 0x159   :  { %v1356_v45 = vadd.f32 %v7879_v32, %v5991_v27  ;;  %v6265_v27 = vmul.f32 %v6056_v9, %v6232_v36  ;;  %v2767_v37 = vld [vmem:[#allocation2 + $0x39] sm:$0xff]  ;;  %v1564_v46 = vrot.slane %v1560_v25, 1 }
 0x15a   :  { %7880 = vst [vmem:[#allocation26_spill] sm:$0xff] %v6260_v20  ;;  %v1474_v39 = vadd.f32 %v5975_v10, %v1460_v1  ;;  %v1548_v21 = vadd.f32 %v1546_v18, %v1544_v0  ;;  %vm2723_vm0 = vcmp.lt.s32.totalorder %v6260_v20, 6  ;;  %vm2755_vm1 = vcmp.ge.s32.totalorder %v6260_v20, 6  ;;  %v2768_v10 = vld [vmem:[#allocation2 + $0x41] sm:$0xff]  ;;  %v6300_v50 = vpop.permute.xlu2 %2412 }
 0x15b   :  { %v1570_v33 = vmax.f32 %v1356_v45, %v6237_v3  ;;  %vm2756_vm2 = vcmp.lt.s32.totalorder %v6260_v20, 12  ;;  %v6277_v62 = vsel %vm2723_vm0, 1.0, %v6274_v41  ;;  %vm2802_vm4 = vcmp.ge.s32.totalorder %v6260_v20, 12  ;;  %v7882_v3 = vld [vmem:[#allocation47_spill] sm:$0xff]  ;;  %v2814_v61 = vld [vmem:[#allocation2 + $0x3a] sm:$0xff]  ;;  %v2815_v0 = vld [vmem:[#allocation2 + $0x42] sm:$0xff] }
 0x15c   :  { %v1488_v14 = vadd.f32 %v1486_v34, %v1474_v39  ;;  %7881 = vst [vmem:[#allocation30_spill] sm:$0xff] %v6277_v62  ;;  %vm2757_vm3 = vmand %vm2755_vm1, %vm2756_vm2  ;;  %vm2803_vm5 = vcmp.lt.s32.totalorder %v6260_v20, 18  ;;  %v7883_v5 = vrot.slane %v7882_v3, 1  ;;  %v2748_v44 = vmul.f32 %v6277_v62, %v2734_v53  ;;  %v2861_v53 = vld [vmem:[#allocation2 + $0x3f] sm:$0xff] }
 0x15d   :  { %v6285_v38 = vsel %vm2757_vm3, 1.0, %v6274_v41  ;;  %vm2804_vm6 = vmand %vm2802_vm4, %vm2803_vm5  ;;  %v7886_v18 = vrot.slane %v7885_v26, 1  ;;  %v2749_v56 = vmul.f32 %v6277_v62, %v2735_v43  ;;  %v6293_v45 = vmul.f32 %v5710_v30, %v6272_v63 }
 0x15e   :  { %v1558_v8 = vadd.f32 %v7883_v5, %v1548_v21  ;;  %7884 = vst [vmem:[#allocation48_spill] sm:$0xff] %v6285_v38  ;;  %v2781_v32 = vmul.f32 %v6285_v38, %v2767_v37  ;;  %v2782_v17 = vmul.f32 %v6285_v38, %v2768_v10  ;;  %v6297_v34 = vsel %vm2804_vm6, 1.0, %v6274_v41  ;;  %v6305_v21 = vpop.permute.xlu0 %1695 }
 0x15f   :  { %v1498_v40 = vadd.f32 %v7886_v18, %v1488_v14  ;;  %vm2849_vm7 = vcmp.ge.s32.totalorder %v6260_v20, 18  ;;  %v2828_v39 = vmul.f32 %v6297_v34, %v2814_v61  ;;  %vm2850_vm8 = vcmp.lt.s32.totalorder %v6260_v20, 24  ;;  %7887 = vst [vmem:[#allocation31_spill] sm:$0xff] %v6305_v21  ;;  %v2862_v14 = vld [vmem:[#allocation2 + $0x47] sm:$0xff] }
 0x160   :  { %v1568_v1 = vadd.f32 %v1564_v46, %v1558_v8  ;;  %v2795_v25 = vadd.f32 %v2781_v32, %v2748_v44  ;;  %vm2896_vm9 = vcmp.ge.s32.totalorder %v6260_v20, 24  ;;  %vm2851_vm10 = vmand %vm2849_vm7, %vm2850_vm8  ;;  %vm2897_vm11 = vcmp.lt.s32.totalorder %v6260_v20, 30  ;;  %v2976_v32 = vld [vmem:[#allocation2 + $0x46] sm:$0xff] }
 0x161   :  { %vm2930_vm12 = vcmp.ge.s32.totalorder %v6260_v20, 30  ;;  %vm2931_vm13 = vcmp.lt.s32.totalorder %v6260_v20, 36  ;;  %v2829_v3 = vmul.f32 %v6297_v34, %v2815_v0  ;;  %v6312_v5 = vsel %vm2851_vm10, 1.0, %v6274_v41  ;;  %vm2898_vm14 = vmand %vm2896_vm9, %vm2897_vm11 }
 0x162   :  { %v1572_v37 = vmax.f32 %v1498_v40, %v1568_v1  ;;  %vm2964_vm15 = vcmp.ge.s32.totalorder %v6260_v20, 36  ;;  %v6317_v8 = vmul.f32 %v5717_v19, %v6272_v63  ;;  %v2796_v44 = vadd.f32 %v2782_v17, %v2749_v56  ;;  %vm2932_vm0 = vmand %vm2930_vm12, %vm2931_vm13  ;;  %v6336_v17 = vld [vmem:[%s7520_s2 + $0x5] ss:$0 sm:$0xff] }
 0x163   :  { %v2842_v61 = vadd.f32 %v2828_v39, %v2795_v25  ;;  %v2875_v26 = vmul.f32 %v6312_v5, %v2861_v53  ;;  %v2876_v18 = vmul.f32 %v6312_v5, %v2862_v14  ;;  %v6322_v40 = vsel %vm2898_vm14, 1.0, %v6274_v41  ;;  %7889 = vst [vmem:[#allocation41_spill] sm:$0xff] %v6336_v17 }
 0x164   :  { %7888 = vst [vmem:[#allocation34_spill] sm:$0xff] %v6317_v8  ;;  %v1574_v46 = vmax.f32 %v1570_v33, %v1572_v37  ;;  %vm2965_vm1 = vcmp.lt.s32.totalorder %v6260_v20, 42  ;;  %vm3011_vm2 = vcmp.ge.s32.totalorder %v6260_v20, 42  ;;  %v2909_v33 = vmul.f32 %v6322_v40, %v2735_v43  ;;  %v1988_v43 = vpop.permute.xlu1 %1987 }
 0x165   :  { %v2889_v0 = vadd.f32 %v2875_v26, %v2842_v61  ;;  %v6329_v56 = vsel %vm2932_vm0, 1.0, %v6274_v41  ;;  %vm2966_vm3 = vmand %vm2964_vm15, %vm2965_vm1  ;;  %vm3012_vm4 = vcmp.lt.s32.totalorder %v6260_v20, 48  ;;  %vm3045_vm5 = vcmp.ge.s32.totalorder %v6260_v20, 48  ;;  %v6360_v26 = vld [vmem:[%s7520_s2 + $0x2] ss:$0 sm:$0xff] }
 0x166   :  { %v1580_v1 = vadd.f32 %v6034_v57, %v1574_v46  ;;  %v6339_v25 = vsel %vm2966_vm3, 1.0, %v6274_v41  ;;  %vm3046_vm6 = vcmp.lt.s32.totalorder %v6260_v20, 54  ;;  %v6347_v57 = vld [vmem:[%s7520_s2 + $0x4] ss:$0 sm:$0xff]  ;;  %v2943_v37 = vmul.f32 %v6329_v56, %v2768_v10  ;;  %vm6353_vm7 = vmand %vm3011_vm2, %vm3012_vm4  ;;  %7893 = vst [vmem:[#allocation12_spill] sm:$0xff] %v6360_v26  ;;  %v6413_v10 = vpop.permute.xlu0 %1861 }
 0x167   :  { %7890 = vst [vmem:[#allocation28_spill] sm:$0xff] %v6347_v57  ;;  %v2923_v53 = vadd.f32 %v2909_v33, %v2889_v0  ;;  %v2990_v46 = vmul.f32 %v6339_v25, %v2976_v32  ;;  %v2843_v32 = vadd.f32 %v2829_v3, %v2796_v44  ;;  %v6372_v0 = vld [vmem:[%s7520_s2 + $0x1] ss:$0 sm:$0xff]  ;;  %v7894_v33 = vrot.slane %v6064_v16, 1  ;;  %vm3047_vm8 = vmand %vm3045_vm5, %vm3046_vm6  ;;  %v6390_v3 = vld [vmem:[%s7520_s2] ss:$0 sm:$0xff] }
 0x168   :  { %v1582_v39 = vmax.f32 %v1580_v1, 0.0  ;;  %v6366_v1 = vmul.f32 %v6090_v7, %v6232_v36  ;;  %v6385_v36 = vmul.f32 %v5734_v6, %v6272_v63  ;;  %7895 = vst [vmem:[#allocation38_spill] sm:$0xff] %v6390_v3  ;;  %v6394_v16 = vmul.f32 %v6336_v17, %v6300_v50 }
 0x169   :  { %v6377_v35 = vadd.f32 %v7894_v33, %v6247_v58  ;;  %v2957_v42 = vadd.f32 %v2943_v37, %v2923_v53  ;;  %v6396_v58 = vpop.permute.xlu2 %2384  ;;  %v6398_v44 = vadd.f32 %v2876_v18, %v2843_v32  ;;  %v6405_v53 = vld [vmem:[#allocation2 + $0x48] sm:$0xff]  ;;  %v1784_v37 = vadd.f32 %v6293_v45, %v6160_v13 }
 0x16a   :  { %1584 = vst [vmem:[#allocation2 + $0x15] sm:$0x7f] %v1582_v39  ;;  %v6403_v39 = vsel %vm6353_vm7, 1.0, %v6274_v41  ;;  %v6411_v33 = vmul.f32 %v6347_v57, %v6300_v50  ;;  %v6419_v61 = vmul.f32 %v6360_v26, %v6300_v50  ;;  %v6422_v12 = vsel %vm3047_vm8, 1.0, %v6274_v41 }
 0x16b   :  { %7896 = vst [vmem:[#allocation35_spill] sm:$0xff] %v6394_v16  ;;  %v3004_v20 = vadd.f32 %v2990_v46, %v2957_v42  ;;  %v3024_v18 = vmul.f32 %v6403_v39, %v2862_v14  ;;  %v6426_v13 = vmul.f32 %v5691_v31, %v6272_v63  ;;  %v6430_v45 = vmul.f32 %v6372_v0, %v6300_v50 }
 0x16c   :  { %7897 = vst [vmem:[#allocation36_spill] sm:$0xff] %v6398_v44  ;;  %v1704_v42 = vmul.f32 %v5710_v30, %v6305_v21  ;;  %v3071_v46 = vmul.f32 %v6422_v12, %v6405_v53  ;;  %v6439_v41 = vmul.f32 %v6390_v3, %v6300_v50  ;;  %v6444_v17 = vmul.f32 %v5717_v19, %v6305_v21 }
 0x16d   :  { %7898 = vst [vmem:[#allocation46_spill] sm:$0xff] %v6405_v53  ;;  %v3038_v14 = vadd.f32 %v3024_v18, %v3004_v20  ;;  %v1996_v57 = vmul.f32 %v6090_v7, %v1988_v43  ;;  %v2016_v29 = vmul.f32 %v6056_v9, %v1988_v43  ;;  %v1786_v32 = vmul.f32 %v5734_v6, %v6305_v21  ;;  %v6461_v53 = vld [vmem:[%s7520_s2 + $0x4] ss:$0 sm:$0xff] }
 0x16e   :  { %7899 = vst [vmem:[#allocation20_spill] sm:$0xff] %v6411_v33  ;;  %v2116_v16 = vmul.f32 %v6051_v55, %v1988_v43  ;;  %v1706_v44 = vadd.f32 %v1704_v42, %v6188_v2  ;;  %v6456_v33 = vmul.f32 %v5691_v31, %v6305_v21  ;;  %v7908_v2 = vrot.slane %v6134_v51, 1 }
 0x16f   :  { %7900 = vst [vmem:[#allocation27_spill] sm:$0xff] %v6419_v61  ;;  %v3085_v20 = vadd.f32 %v3071_v46, %v3038_v14  ;;  %v6465_v14 = vmul.f32 %v6461_v53, %v6305_v21  ;;  %v6467_v46 = vpop.permute.xlu1 %2094  ;;  %v2012_v43 = vadd.f32 %v2010_v47, %v1996_v57  ;;  %v2020_v18 = vrot.slane %v2016_v29, 1  ;;  %v7909_v61 = vld [vmem:[#allocation29_spill] sm:$0xff]  ;;  %v7912_v21 = vld [vmem:[#allocation16_spill] sm:$0xff] }
 0x170   :  { %7901 = vst [vmem:[#allocation56_spill] sm:$0xff] %v6422_v12  ;;  %v6472_v31 = vadd.f32 %v7908_v2, %v6174_v54  ;;  %v1790_v57 = vrot.slane %v1786_v32, 1  ;;  %v2038_v51 = vmul.f32 %v6211_v22, %v6140_v28  ;;  %v7916_v54 = vld [vmem:[#allocation44_spill] sm:$0xff]  ;;  %v6491_v2 = vld [vmem:[%s7520_s2 + $0x5] ss:$0 sm:$0xff]  ;;  %vm3200_vm9 = vcmask 122880  }
 0x171   :  { %7902 = vst [vmem:[#allocation52_spill] sm:$0xff] %v6426_v13  ;;  %3149 = vmatmul.f32.vlgmr.msra.gmra.mxu3 %v3085_v20  ;;  %v7913_v13 = vld [vmem:[#allocation50_spill] sm:$0xff]  ;;  %v7914_v20 = vld [vmem:[#allocation21_spill] sm:$0xff]  ;;  %vm3209_vm10 = vcmask 254080   ;;  %vm3222_vm11 = vcmask 385280   ;;  %vm3235_vm12 = vcmask 516480  }
 0x172   :  { %7903 = vst [vmem:[#allocation18_spill] sm:$0xff] %v6430_v45  ;;  %v7910_v45 = vrot.slane %v7909_v61, 1  ;;  %v7915_v47 = vrot.slane %v7914_v20, 1  ;;  %v6495_v61 = vpop.permute.xlu2 %2089  ;;  %v7917_v32 = vld [vmem:[#allocation49_spill] sm:$0xff]  ;;  %v6507_v20 = vpop.permute.xlu0 %2078  ;;  %vm3261_vm13 = vcmask 778880   ;;  %vm3248_vm14 = vcmask 647680  }
 0x173   :  { %7904 = vst [vmem:[#allocation43_spill] sm:$0xff] %v6439_v41  ;;  %v2120_v41 = vrot.slane %v2116_v16, 1  ;;  %v1835_v16 = vrot.slane %v7916_v54, 1  ;;  %v2389_v54 = vmul.f32 %v6372_v0, %v6396_v58  ;;  %vm3274_vm15 = vcmask 910080  }
 0x174   :  { %7905 = vst [vmem:[#allocation39_spill] sm:$0xff] %v6456_v33  ;;  %v6478_v33 = vadd.f32 %v7910_v45, %v6162_v4  ;;  %v1899_v29 = vadd.f32 %v7915_v47, %v7913_v13  ;;  %v1915_v4 = vmul.f32 %v6491_v2, %v6079_v15  ;;  %v1909_v13 = vrot.slane %v7917_v32, 1  ;;  %v6505_v45 = vld [vmem:[%s7520_s2 + $0x6] ss:$0 sm:$0xff] }
 0x175   :  { %7906 = vst [vmem:[#allocation42_spill] sm:$0xff] %v6461_v53  ;;  %v7911_v53 = vld [vmem:[#allocation25_spill] sm:$0xff]  ;;  %v2024_v47 = vadd.f32 %v2020_v18, %v2012_v43  ;;  %v2124_v15 = vadd.f32 %v2120_v41, %v6366_v1  ;;  %v1925_v18 = vmul.f32 %v5710_v30, %v6413_v10  ;;  %v6529_v41 = vadd.f32 %v6385_v36, %v1706_v44 }
 0x176   :  { %7907 = vst [vmem:[#allocation15_spill] sm:$0xff] %v6467_v46  ;;  %v1825_v8 = vadd.f32 %v7912_v21, %v7911_v53  ;;  %v1903_v53 = vadd.f32 %v6166_v24, %v1899_v29  ;;  %v1949_v28 = vmax.f32 %v6478_v33, %v6472_v31  ;;  %v1919_v24 = vrot.slane %v1915_v4, 1  ;;  %v6526_v1 = vld [vmem:[%s7520_s2 + $0x7] ss:$0 sm:$0xff] }
 0x177   :  { %7918 = vst [vmem:[#allocation13_spill] sm:$0xff] %v6507_v20  ;;  %v1865_v29 = vmul.f32 %v5734_v6, %v6413_v10  ;;  %v6531_v43 = vadd.f32 %v1790_v57, %v1784_v37  ;;  %v1939_v30 = vmul.f32 %v5717_v19, %v6413_v10  ;;  %v7919_v36 = vrot.slane %v6265_v27, 1  ;;  %v2371_v10 = vpop.permute.xlu1 %2370 }
 0x178   :  { %v1829_v21 = vadd.f32 %v6148_v59, %v1825_v8  ;;  %v6512_v59 = vmul.f32 %v6360_v26, %v6396_v58  ;;  %v6517_v8 = vld [vmem:[%s7520_s2 + $0x8] ss:$0 sm:$0xff]  ;;  %v1913_v31 = vadd.f32 %v1909_v13, %v1903_v53  ;;  %v6542_v53 = vadd.f32 %v2038_v51, %v2024_v47 }
 0x179   :  { %v2134_v44 = vadd.f32 %v7919_v36, %v2124_v15  ;;  %v6549_v57 = vmul.f32 %v6517_v8, %v6467_v46  ;;  %v2099_v32 = vmul.f32 %v6526_v1, %v6467_v46  ;;  %v2083_v19 = vmul.f32 %v6505_v45, %v6507_v20 }
 0x17a   :  { %v1839_v33 = vadd.f32 %v1835_v16, %v1829_v21  ;;  %v2493_v16 = vmul.f32 %v6390_v3, %v6396_v58  ;;  %v1923_v4 = vadd.f32 %v1919_v24, %v1913_v31  ;;  %v2161_v21 = vmul.f32 %v6505_v45, %v6467_v46  ;;  %v2366_v42 = vpop.permute.xlu2 %2365 }
 0x17b   :  { %7920 = vst [vmem:[#allocation23_spill] sm:$0xff] %v6549_v57  ;;  %v6557_v51 = vmul.f32 %v6211_v22, %v6467_v46  ;;  %v6561_v27 = vmul.f32 %v6526_v1, %v6495_v61  ;;  %v6565_v13 = vmul.f32 %v6517_v8, %v6495_v61  ;;  %v2165_v47 = vmul.f32 %v6526_v1, %v6507_v20  ;;  %v2761_v46 = vld [vmem:[#allocation2 + $0x9] sm:$0xff] }
 0x17c   :  { %v1853_v6 = vadd.f32 %v6127_v11, %v1839_v33  ;;  %v1927_v11 = vadd.f32 %v1925_v18, %v1923_v4  ;;  %v7923_v15 = vrot.slane %v6115_v52, 1  ;;  %v1943_v33 = vrot.slane %v1939_v30, 1  ;;  %v2046_v18 = vpop.permute.xlu0 %2045 }
 0x17d   :  { %7921 = vst [vmem:[#allocation33_spill] sm:$0xff] %v6557_v51  ;;  %v2163_v31 = vadd.f32 %v2161_v21, %v6377_v35  ;;  %v2375_v4 = vmul.f32 %v6390_v3, %v2371_v10  ;;  %v2395_v36 = vmul.f32 %v6360_v26, %v2371_v10  ;;  %v7925_v52 = vrot.slane %v6108_v48, 1  ;;  %v6589_v21 = vld [vmem:[%s7520_s2 + $0x3] ss:$0 sm:$0xff] }
 0x17e   :  { %v1867_v58 = vadd.f32 %v1865_v29, %v1853_v6  ;;  %7922 = vst [vmem:[#allocation47_spill] sm:$0xff] %v6565_v13  ;;  %v1937_v24 = vadd.f32 %v7923_v15, %v1927_v11  ;;  %v6574_v29 = vmul.f32 %v6505_v45, %v6495_v61  ;;  %v6579_v6 = vmul.f32 %v6517_v8, %v6507_v20 }
 0x17f   :  { %v2085_v35 = vadd.f32 %v2083_v19, %v6255_v49  ;;  %v2495_v15 = vmul.f32 %v6372_v0, %v2371_v10  ;;  %v6595_v57 = vmul.f32 %v6211_v22, %v6495_v61  ;;  %v2169_v51 = vrot.slane %v2165_v47, 1  ;;  %v6604_v49 = vld [vmem:[%s7521_s3] ss:$0 sm:$0xff] }
 0x180   :  { %7924 = vst [vmem:[#allocation17_spill] sm:$0xff] %v6579_v6  ;;  %v1877_v30 = vadd.f32 %v7925_v52, %v1867_v58  ;;  %v1947_v11 = vadd.f32 %v1943_v33, %v1937_v24  ;;  %v6599_v48 = vmul.f32 %v6211_v22, %v6507_v20  ;;  %v2391_v19 = vadd.f32 %v2389_v54, %v2375_v4  ;;  %v7929_v52 = vld [vmem:[#allocation45_spill] sm:$0xff] }
 0x181   :  { %7926 = vst [vmem:[#allocation29_spill] sm:$0xff] %v6595_v57  ;;  %v2399_v10 = vrot.slane %v2395_v36, 1  ;;  %v6607_v24 = vmul.f32 %v6360_v26, %v2366_v42  ;;  %v6612_v47 = vmul.f32 %v7929_v52, %v6507_v20  ;;  %v2499_v37 = vrot.slane %v2495_v15, 1  ;;  %v2727_v4 = vld [vmem:[#allocation2] sm:$0xff]  ;;  %v7934_v20 = vld [vmem:[#allocation51_spill] sm:$0xff] }
 0x182   :  { %7927 = vst [vmem:[#allocation25_spill] sm:$0xff] %v6599_v48  ;;  %v1951_v58 = vmax.f32 %v1877_v30, %v1947_v11  ;;  %v2136_v57 = vmul.f32 %v6211_v22, %v2046_v18  ;;  %v6615_v48 = vadd.f32 %v2099_v32, %v2085_v35  ;;  %v2417_v30 = vmul.f32 %v6589_v21, %v6300_v50  ;;  %v2760_v6 = vld [vmem:[#allocation2 + $0x1] sm:$0xff] }
 0x183   :  { %7928 = vst [vmem:[#allocation16_spill] sm:$0xff] %v6607_v24  ;;  %v6620_v54 = vmul.f32 %v6390_v3, %v2366_v42  ;;  %v6623_v36 = vmul.f32 %v6372_v0, %v2366_v42  ;;  %v2054_v11 = vmul.f32 %v7929_v52, %v2046_v18  ;;  %v2150_v15 = vmul.f32 %v7934_v20, %v2046_v18 }
 0x184   :  { %7930 = vst [vmem:[#allocation50_spill] sm:$0xff] %v6612_v47  ;;  %v1953_v13 = vmax.f32 %v1949_v28, %v1951_v58  ;;  %v2138_v33 = vadd.f32 %v2136_v57, %v2134_v44  ;;  %v6628_v32 = vadd.f32 %v2169_v51, %v2163_v31  ;;  %v2403_v35 = vadd.f32 %v2399_v10, %v2391_v19  ;;  %v2728_v58 = vld [vmem:[#allocation2 + $0x8] sm:$0xff]  ;;  %v1857_v10 = vpop.permute.xlu1 %1856 }
 0x185   :  { %7931 = vst [vmem:[#allocation21_spill] sm:$0xff] %v6615_v48  ;;  %v2503_v48 = vadd.f32 %v2499_v37, %v2493_v16  ;;  %v2256_v42 = vmul.f32 %v6090_v7, %v2046_v18  ;;  %v2741_v47 = vmul.f32 %v6277_v62, %v2727_v4  ;;  %v2807_v44 = vld [vmem:[#allocation2 + $0x2] sm:$0xff]  ;;  %v7936_v3 = vrot.slane %v6182_v60, 1  ;;  %v2808_v19 = vld [vmem:[#allocation2 + $0xa] sm:$0xff]  ;;  %v7946_v16 = vld [vmem:[#allocation52_spill] sm:$0xff] }
 0x186   :  { %7932 = vst [vmem:[#allocation44_spill] sm:$0xff] %v6620_v54  ;;  %v1959_v28 = vadd.f32 %v6604_v49, %v1953_v13  ;;  %v2186_v54 = vmul.f32 %v6051_v55, %v2046_v18  ;;  %v2854_v57 = vld [vmem:[#allocation2 + $0x7] sm:$0xff]  ;;  %v6637_v51 = vmul.f32 %v6056_v9, %v2046_v18  ;;  %v2774_v31 = vmul.f32 %v6285_v38, %v2760_v6  ;;  %v2855_v9 = vld [vmem:[#allocation2 + $0xf] sm:$0xff] }
 0x187   :  { %7933 = vst [vmem:[#allocation49_spill] sm:$0xff] %v6623_v36  ;;  %v2148_v13 = vadd.f32 %v7936_v3, %v2138_v33  ;;  %v6642_v55 = vadd.f32 %v2054_v11, %v6542_v53  ;;  %v2154_v7 = vrot.slane %v2150_v15, 1  ;;  %v2742_v37 = vmul.f32 %v6277_v62, %v2728_v58  ;;  %v7939_v11 = vld [vmem:[#allocation37_spill] sm:$0xff] }
 0x188   :  { %7935 = vst [vmem:[#allocation45_spill] sm:$0xff] %v6628_v32  ;;  %v1961_v26 = vmax.f32 %v1959_v28, 0.0  ;;  %v2775_v4 = vmul.f32 %v6285_v38, %v2761_v46  ;;  %v2788_v60 = vadd.f32 %v2774_v31, %v2741_v47  ;;  %v2821_v3 = vmul.f32 %v6297_v34, %v2807_v44  ;;  %v7944_v31 = vld [vmem:[#allocation14_spill] sm:$0xff] }
 0x189   :  { %7937 = vst [vmem:[#allocation51_spill] sm:$0xff] %v6637_v51  ;;  %v2868_v18 = vmul.f32 %v6312_v5, %v2854_v57  ;;  %v6648_v6 = vadd.f32 %v2417_v30, %v2403_v35  ;;  %v7938_v33 = vrot.slane %v6512_v59, 1  ;;  %v6655_v15 = vadd.f32 %v2186_v54, %v7939_v11  ;;  %v2969_v30 = vld [vmem:[#allocation2 + $0xe] sm:$0xff] }
 0x18a   :  { %1963 = vst [vmem:[#allocation2 + $0x54] sm:$0x7f] %v1961_v26  ;;  %v7940_v28 = vrot.slane %v6206_v23, 1  ;;  %v6661_v50 = vadd.f32 %v2154_v7, %v2148_v13  ;;  %v2822_v44 = vmul.f32 %v6297_v34, %v2808_v19  ;;  %v2835_v57 = vadd.f32 %v2821_v3, %v2788_v60  ;;  %v6665_v35 = vld [vmem:[#allocation2 + $0x10] sm:$0xff]  ;;  %v1843_v60 = vpop.permute.xlu0 %1842 }
 0x18b   :  { %v6652_v53 = vadd.f32 %v7938_v33, %v2503_v48  ;;  %7942 = vst [vmem:[#allocation57_spill] sm:$0xff] %v6665_v35  ;;  %v2869_v59 = vmul.f32 %v6312_v5, %v2855_v9  ;;  %v1914_v48 = vmul.f32 %v6491_v2, %v6272_v63  ;;  %v7943_v54 = vld [vmem:[#allocation22_spill] sm:$0xff]  ;;  %v7945_v23 = vrot.slane %v7944_v31, 1 }
 0x18c   :  { %v6659_v26 = vadd.f32 %v7940_v28, %v2256_v42  ;;  %v1908_v13 = vrot.slane %v6465_v14, 1  ;;  %v2789_v7 = vadd.f32 %v2775_v4, %v2742_v37  ;;  %v2882_v33 = vadd.f32 %v2868_v18, %v2835_v57  ;;  %v3946_v14 = vld [vmem:[%s7520_s2 + $0x7] ss:$0 sm:$0xff] }
 0x18d   :  { %v1898_v42 = vadd.f32 %v7945_v23, %v7943_v54  ;;  %v2902_v11 = vmul.f32 %v6322_v40, %v2728_v58  ;;  %v2936_v19 = vmul.f32 %v6329_v56, %v2761_v46  ;;  %v2983_v3 = vmul.f32 %v6339_v25, %v2969_v30  ;;  %v3947_v46 = vld [vmem:[%s7520_s2 + $0x6] ss:$0 sm:$0xff]  ;;  %v6690_v4 = vld [vmem:[%s7520_s2 + $0x7] ss:$0 sm:$0xff]  ;;  %v7949_v23 = vld [vmem:[#allocation34_spill] sm:$0xff] }
 0x18e   :  { %7941 = vst [vmem:[#allocation37_spill] sm:$0xff] %v6659_v26  ;;  %v3017_v28 = vmul.f32 %v6403_v39, %v2855_v9  ;;  %v3064_v47 = vmul.f32 %v6422_v12, %v6665_v35  ;;  %v1864_v37 = vmul.f32 %v3946_v14, %v1857_v10  ;;  %v1924_v58 = vmul.f32 %v3947_v46, %v1857_v10  ;;  %v6697_v9 = vpop.permute.xlu2 %2472  ;;  %v7952_v26 = vld [vmem:[#allocation53_spill] sm:$0xff] }
 0x18f   :  { %v1902_v51 = vadd.f32 %v7946_v16, %v1898_v42  ;;  %v2916_v31 = vadd.f32 %v2902_v11, %v2882_v33  ;;  %v6695_v16 = vld [vmem:[%s7520_s2 + $0x8] ss:$0 sm:$0xff]  ;;  %7947 = vst [vmem:[#allocation22_spill] sm:$0xff] %v6697_v9  ;;  %v7948_v18 = vrot.slane %v6444_v17, 1  ;;  %v1918_v30 = vrot.slane %v1914_v48, 1  ;;  %v7951_v11 = vld [vmem:[#allocation55_spill] sm:$0xff] }
 0x190   :  { %v7950_v42 = vrot.slane %v7949_v23, 1  ;;  %v7953_v24 = vrot.slane %v7952_v26, 1  ;;  %v2836_v35 = vadd.f32 %v2822_v44, %v2789_v7  ;;  %v3948_v12 = vld [vmem:[%s7520_s2 + $0x8] ss:$0 sm:$0xff]  ;;  %v6724_v7 = vmul.f32 %v6690_v4, %v6697_v9 }
 0x191   :  { %v6702_v57 = vadd.f32 %v7948_v18, %v6529_v41  ;;  %v1912_v54 = vadd.f32 %v1908_v13, %v1902_v51  ;;  %v2950_v32 = vadd.f32 %v2936_v19, %v2916_v31  ;;  %v1938_v17 = vmul.f32 %v3948_v12, %v1857_v10  ;;  %v7954_v41 = vld [vmem:[#allocation31_spill] sm:$0xff] }
 0x192   :  { %v6707_v33 = vadd.f32 %v7950_v42, %v6531_v43  ;;  %v1820_v36 = vadd.f32 %v7953_v24, %v7951_v11  ;;  %v1830_v48 = vmul.f32 %v6491_v2, %v7954_v41  ;;  %v7955_v13 = vld [vmem:[#allocation39_spill] sm:$0xff]  ;;  %v7956_v43 = vld [vmem:[#allocation42_spill] sm:$0xff]  ;;  %v2074_v24 = vpop.permute.xlu1 %2073  ;;  %v6728_v10 = vmul.f32 %v6695_v16, %v6697_v9  ;;  %v7958_v11 = vld [vmem:[#allocation32_spill] sm:$0xff] }
 0x193   :  { %v1922_v51 = vadd.f32 %v1918_v30, %v1912_v54  ;;  %v1826_v23 = vmul.f32 %v7956_v43, %v6272_v63  ;;  %v2997_v44 = vadd.f32 %v2983_v3, %v2950_v32  ;;  %v1928_v2 = vmul.f32 %v3946_v14, %v1843_v60 }
 0x194   :  { %v1824_v18 = vadd.f32 %v7955_v13, %v1820_v36  ;;  %v1948_v26 = vmax.f32 %v6702_v57, %v6707_v33  ;;  %7957 = vst [vmem:[#allocation14_spill] sm:$0xff] %v6728_v10  ;;  %v6733_v36 = vld [vmem:[%s7520_s2 + $0x6] ss:$0 sm:$0xff]  ;;  %v1834_v31 = vrot.slane %v1830_v48, 1  ;;  %v1850_v57 = vmul.f32 %v3947_v46, %v1843_v60 }
 0x195   :  { %v1926_v19 = vadd.f32 %v1924_v58, %v1922_v51  ;;  %v3031_v30 = vadd.f32 %v3017_v28, %v2997_v44  ;;  %v1868_v32 = vmul.f32 %v3948_v12, %v1843_v60  ;;  %v1932_v3 = vrot.slane %v1928_v2, 1  ;;  %v2429_v12 = vpop.permute.xlu0 %2428 }
 0x196   :  { %v1828_v63 = vadd.f32 %v1826_v23, %v1824_v18  ;;  %v2082_v54 = vmul.f32 %v6505_v45, %v2074_v24  ;;  %v6736_v42 = vadd.f32 %v2869_v59, %v2836_v35  ;;  %v7959_v14 = vrot.slane %v7958_v11, 1  ;;  %v2221_v43 = vpop.permute.xlu2 %2220  ;;  %v7961_v23 = vld [vmem:[#allocation40_spill] sm:$0xff] }
 0x197   :  { %v6742_v41 = vmul.f32 %v6517_v8, %v2074_v24  ;;  %v3078_v51 = vadd.f32 %v3064_v47, %v3031_v30  ;;  %v1936_v13 = vadd.f32 %v1932_v3, %v1926_v19  ;;  %v2164_v48 = vmul.f32 %v6526_v1, %v2074_v24 }
 0x198   :  { %v1838_v33 = vadd.f32 %v1834_v31, %v1828_v63  ;;  %v2068_v58 = vadd.f32 %v7959_v14, %v6642_v55  ;;  %v2200_v28 = vmul.f32 %v6211_v22, %v2074_v24  ;;  %v1942_v60 = vrot.slane %v1938_v17, 1  ;;  %v7966_v14 = vld [vmem:[#allocation41_spill] sm:$0xff] }
 0x199   :  { %v6748_v35 = vmul.f32 %v6733_v36, %v6697_v9  ;;  %v6752_v59 = vmul.f32 %v6589_v21, %v6697_v9  ;;  %3128 = vmatmul.f32.vlgmr.msra.gmra.mxu0 %v3078_v51  ;;  %v1872_v47 = vrot.slane %v1868_v32, 1  ;;  %v7962_v22 = vrot.slane %v7961_v23, 1  ;;  %v2769_v51 = vld [vmem:[#allocation2 + $0x49] sm:$0xff] }
 0x19a   :  { %v1852_v55 = vadd.f32 %v1850_v57, %v1838_v33  ;;  %v2084_v18 = vadd.f32 %v2082_v54, %v2068_v58  ;;  %v1946_v2 = vadd.f32 %v1942_v60, %v1936_v13  ;;  %v2162_v63 = vadd.f32 %v6574_v29, %v6661_v50  ;;  %v7965_v50 = vld [vmem:[#allocation28_spill] sm:$0xff]  ;;  %v7987_v9 = vld [vmem:[#allocation33_spill] sm:$0xff] }
 0x19b   :  { %7960 = vst [vmem:[#allocation52_spill] sm:$0xff] %v6752_v59  ;;  %v2198_v44 = vadd.f32 %v7962_v22, %v6655_v15  ;;  %v2168_v31 = vrot.slane %v2164_v48, 1  ;;  %v6762_v57 = vmul.f32 %v7929_v52, %v2074_v24  ;;  %v2515_v32 = vmul.f32 %v6589_v21, %v2429_v12  ;;  %v2816_v22 = vld [vmem:[#allocation2 + $0x4a] sm:$0xff] }
 0x19c   :  { %v1866_v17 = vadd.f32 %v1864_v37, %v1852_v55  ;;  %v2204_v54 = vmul.f32 %v7929_v52, %v6495_v61  ;;  %v2208_v15 = vmul.f32 %v7934_v20, %v2074_v24  ;;  %v6769_v37 = vmul.f32 %v6517_v8, %v2221_v43  ;;  %v7968_v55 = vld [vmem:[#allocation46_spill] sm:$0xff] }
 0x19d   :  { %v2202_v30 = vadd.f32 %v2200_v28, %v2198_v44  ;;  %v6772_v33 = vadd.f32 %v6561_v27, %v2084_v18  ;;  %v6775_v29 = vmul.f32 %v6526_v1, %v2221_v43  ;;  %v2433_v11 = vmul.f32 %v7965_v50, %v2429_v12  ;;  %v7967_v27 = vld [vmem:[#allocation38_spill] sm:$0xff] }
 0x19e   :  { %v1876_v3 = vadd.f32 %v1872_v47, %v1866_v17  ;;  %7963 = vst [vmem:[#allocation34_spill] sm:$0xff] %v6769_v37  ;;  %v2529_v58 = vmul.f32 %v7966_v14, %v2429_v12  ;;  %v2228_v52 = vmul.f32 %v6505_v45, %v2221_v43  ;;  %v2517_v20 = vadd.f32 %v2515_v32, %v6652_v53  ;;  %v2240_v17 = vpop.permute.xlu1 %2239  ;;  %v2226_v32 = vpop.permute.xlu0 %2225  ;;  %v7973_v43 = vld [vmem:[#allocation43_spill] sm:$0xff] }
 0x19f   :  { %7964 = vst [vmem:[#allocation55_spill] sm:$0xff] %v6775_v29  ;;  %v2206_v48 = vadd.f32 %v2204_v54, %v2202_v30  ;;  %v6781_v24 = vadd.f32 %v2168_v31, %v2162_v63  ;;  %v2565_v28 = vmul.f32 %v6372_v0, %v2429_v12  ;;  %v2635_v60 = vmul.f32 %v7967_v27, %v2429_v12  ;;  %v7969_v63 = vld [vmem:[#allocation12_spill] sm:$0xff]  ;;  %v2977_v30 = vld [vmem:[#allocation2 + $0x4e] sm:$0xff] }
 0x1a0   :  { %v1950_v13 = vmax.f32 %v1876_v3, %v1946_v2  ;;  %v2750_v47 = vmul.f32 %v6277_v62, %v7968_v55  ;;  %v2212_v23 = vrot.slane %v2208_v15, 1  ;;  %v2783_v44 = vmul.f32 %v6285_v38, %v2769_v51  ;;  %v7971_v54 = vld [vmem:[#allocation20_spill] sm:$0xff]  ;;  %v2863_v37 = vld [vmem:[#allocation2 + $0x4f] sm:$0xff] }
 0x1a1   :  { %v6791_v53 = vadd.f32 %v2433_v11, %v6648_v6  ;;  %v2533_v2 = vrot.slane %v2529_v58, 1  ;;  %v6794_v31 = vmul.f32 %v7969_v63, %v2429_v12  ;;  %v7972_v15 = vrot.slane %v7971_v54, 1  ;;  %v7975_v6 = vld [vmem:[#allocation18_spill] sm:$0xff] }
 0x1a2   :  { %v1952_v18 = vmax.f32 %v1948_v26, %v1950_v13  ;;  %v2216_v26 = vadd.f32 %v2212_v23, %v2206_v48  ;;  %v2910_v46 = vmul.f32 %v6322_v40, %v7968_v55  ;;  %v6802_v19 = vadd.f32 %v2565_v28, %v7973_v43  ;;  %v7977_v48 = vld [vmem:[#allocation36_spill] sm:$0xff]  ;;  %v6811_v23 = vld [vmem:[#allocation2 + $0x50] sm:$0xff]  ;;  %v6816_v28 = vld [vmem:[%s7520_s2 + $0x5] ss:$0 sm:$0xff] }
 0x1a3   :  { %7970 = vst [vmem:[#allocation53_spill] sm:$0xff] %v6794_v31  ;;  %v2527_v13 = vadd.f32 %v7972_v15, %v2517_v20  ;;  %v7976_v11 = vrot.slane %v7975_v6, 1  ;;  %v2797_v12 = vadd.f32 %v2783_v44, %v2750_v47  ;;  %v2944_v10 = vmul.f32 %v6329_v56, %v2769_v51  ;;  %v7979_v55 = vld [vmem:[#allocation15_spill] sm:$0xff]  ;;  %v7981_v43 = vld [vmem:[#allocation54_spill] sm:$0xff]  ;;  %v6826_v15 = vpop.permute.xlu2 %2467  ;;  %v7988_v31 = vld [vmem:[#allocation21_spill] sm:$0xff] }
 0x1a4   :  { %v1958_v3 = vadd.f32 %v6604_v49, %v1952_v18  ;;  %7974 = vst [vmem:[#allocation31_spill] sm:$0xff] %v6802_v19  ;;  %v2924_v18 = vadd.f32 %v2910_v46, %v7977_v48  ;;  %v2991_v20 = vmul.f32 %v6339_v25, %v2977_v30  ;;  %v2830_v44 = vmul.f32 %v6297_v34, %v2816_v22  ;;  %v7980_v51 = vld [vmem:[#allocation19_spill] sm:$0xff]  ;;  %v7983_v54 = vld [vmem:[#allocation50_spill] sm:$0xff]  ;;  %v7986_v22 = vld [vmem:[#allocation56_spill] sm:$0xff] }
 0x1a5   :  { %v6806_v58 = vadd.f32 %v7976_v11, %v2635_v60  ;;  %7978 = vst [vmem:[#allocation39_spill] sm:$0xff] %v6811_v23  ;;  %v2293_v60 = vmul.f32 %v6816_v28, %v7979_v55  ;;  %v2287_v30 = vrot.slane %v7983_v54, 1  ;;  %v6828_v6 = vadd.f32 %v2228_v52, %v2216_v26 }
 0x1a6   :  { %v1960_v49 = vmax.f32 %v1958_v3, 0.0  ;;  %v7982_v3 = vrot.slane %v7981_v43, 1  ;;  %7984 = vst [vmem:[#allocation42_spill] sm:$0xff] %v6826_v15  ;;  %v2537_v11 = vadd.f32 %v2533_v2, %v2527_v13  ;;  %v2877_v48 = vmul.f32 %v6312_v5, %v2863_v37  ;;  %v7991_v13 = vld [vmem:[#allocation45_spill] sm:$0xff] }
 0x1a7   :  { %7985 = vst [vmem:[#allocation32_spill] sm:$0xff] %v6828_v6  ;;  %v2958_v29 = vadd.f32 %v2944_v10, %v2924_v18  ;;  %v2844_v19 = vadd.f32 %v2830_v44, %v2797_v12  ;;  %v3025_v47 = vmul.f32 %v6403_v39, %v2863_v37  ;;  %v3072_v59 = vmul.f32 %v7986_v22, %v6811_v23  ;;  %v7992_v12 = vld [vmem:[#allocation23_spill] sm:$0xff]  ;;  %v7995_v23 = vld [vmem:[#allocation24_spill] sm:$0xff] }
 0x1a8   :  { %v2277_v46 = vadd.f32 %v7982_v3, %v7980_v51  ;;  %1962 = vst [vmem:[#allocation2 + $0x1c] sm:$0x7f] %v1960_v49  ;;  %v2297_v3 = vrot.slane %v2293_v60, 1  ;;  %v2243_v54 = vmul.f32 %v6526_v1, %v2240_v17  ;;  %v7989_v49 = vld [vmem:[#allocation17_spill] sm:$0xff]  ;;  %v2303_v10 = vmul.f32 %v6505_v45, %v2240_v17  ;;  %v7994_v44 = vld [vmem:[#allocation11_spill] sm:$0xff] }
 0x1a9   :  { %v3005_v51 = vadd.f32 %v2991_v20, %v2958_v29  ;;  %v7990_v52 = vrot.slane %v7989_v49, 1  ;;  %v7993_v37 = vrot.slane %v7992_v12, 1  ;;  %v6850_v20 = vadd.f32 %v2877_v48, %v2844_v19  ;;  %v7998_v49 = vld [vmem:[#allocation13_spill] sm:$0xff] }
 0x1aa   :  { %v2281_v43 = vadd.f32 %v7987_v9, %v2277_v46  ;;  %v7996_v9 = vrot.slane %v7995_v23, 1  ;;  %v2317_v46 = vmul.f32 %v6517_v8, %v2240_v17  ;;  %v6868_v48 = vmul.f32 %v6695_v16, %v6826_v15 }
 0x1ab   :  { %v6839_v26 = vadd.f32 %v7990_v52, %v7988_v31  ;;  %v6845_v18 = vadd.f32 %v7993_v37, %v7991_v13  ;;  %7997 = vst [vmem:[#allocation40_spill] sm:$0xff] %v6850_v20  ;;  %v3039_v60 = vadd.f32 %v3025_v47, %v3005_v51  ;;  %v2209_v31 = vmul.f32 %v6816_v28, %v7998_v49  ;;  %v8000_v52 = vld [vmem:[#allocation25_spill] sm:$0xff]  ;;  %v6864_v47 = vpop.permute.xlu0 %2407 }
 0x1ac   :  { %v2291_v2 = vadd.f32 %v2287_v30, %v2281_v43  ;;  %v2199_v29 = vadd.f32 %v7996_v9, %v7994_v44  ;;  %v6855_v30 = vpop.permute.xlu1 %2456  ;;  %v3950_v13 = vld [vmem:[%s7520_s2 + $0x4] ss:$0 sm:$0xff]  ;;  %8001 = vst [vmem:[#allocation41_spill] sm:$0xff] %v6868_v48  ;;  %v2229_v51 = vmul.f32 %v6505_v45, %v2226_v32  ;;  %v6883_v9 = vmul.f32 %v6733_v36, %v6826_v15 }
 0x1ad   :  { %7999 = vst [vmem:[#allocation28_spill] sm:$0xff] %v6855_v30  ;;  %v2205_v23 = vmul.f32 %v3950_v13, %v7979_v55  ;;  %v2327_v19 = vmax.f32 %v6839_v26, %v6845_v18  ;;  %v3086_v17 = vadd.f32 %v3072_v59, %v3039_v60  ;;  %v2213_v37 = vrot.slane %v2209_v31, 1  ;;  %v2599_v31 = vpop.permute.xlu2 %2598 }
 0x1ae   :  { %v2301_v43 = vadd.f32 %v2297_v3, %v2291_v2  ;;  %v2203_v6 = vadd.f32 %v8000_v52, %v2199_v29  ;;  %v2307_v3 = vmul.f32 %v6526_v1, %v2226_v32  ;;  %v2461_v55 = vmul.f32 %v6733_v36, %v6855_v30  ;;  %v8003_v29 = vld [vmem:[#allocation35_spill] sm:$0xff] }
 0x1af   :  { %3152 = vmatmul.f32.gmra.mxu3 %v3086_v17  ;;  %v6876_v26 = vmul.f32 %v6690_v4, %v6826_v15  ;;  %v2247_v59 = vmul.f32 %v6517_v8, %v2226_v32  ;;  %v2543_v44 = vmul.f32 %v6690_v4, %v6855_v30  ;;  %v8004_v60 = vrot.slane %v8003_v29, 1  ;;  %v2970_v20 = vld [vmem:[#allocation2 + $0x16] sm:$0xff] }
 0x1b0   :  { %v2305_v2 = vadd.f32 %v2303_v10, %v2301_v43  ;;  %v2207_v12 = vadd.f32 %v2205_v23, %v2203_v6  ;;  %v2311_v18 = vrot.slane %v2307_v3, 1  ;;  %v6887_v6 = vmul.f32 %v7965_v50, %v6826_v15 }
 0x1b1   :  { %v2447_v49 = vadd.f32 %v8004_v60, %v6791_v53  ;;  %v2321_v43 = vrot.slane %v2317_v46, 1  ;;  %v6894_v32 = vmul.f32 %v6589_v21, %v6826_v15  ;;  %v6898_v13 = vmul.f32 %v6695_v16, %v6855_v30 }
 0x1b2   :  { %8002 = vst [vmem:[#allocation38_spill] sm:$0xff] %v6887_v6  ;;  %v2217_v10 = vadd.f32 %v2213_v37, %v2207_v12  ;;  %v2315_v52 = vadd.f32 %v2311_v18, %v2305_v2  ;;  %v2547_v12 = vrot.slane %v2543_v44, 1  ;;  %v2251_v37 = vrot.slane %v2247_v59, 1 }
 0x1b3   :  { %8005 = vst [vmem:[#allocation46_spill] sm:$0xff] %v6894_v32  ;;  %v2463_v3 = vadd.f32 %v2461_v55, %v2447_v49  ;;  %v2541_v29 = vadd.f32 %v6748_v35, %v2537_v11  ;;  %v6903_v53 = vmul.f32 %v6695_v16, %v2599_v31  ;;  %v6907_v46 = vmul.f32 %v7966_v14, %v6864_v47 }
 0x1b4   :  { %8006 = vst [vmem:[#allocation12_spill] sm:$0xff] %v6898_v13  ;;  %v2231_v17 = vadd.f32 %v2229_v51, %v2217_v10  ;;  %v2325_v18 = vadd.f32 %v2321_v43, %v2315_v52  ;;  %v6911_v60 = vmul.f32 %v6589_v21, %v6855_v30  ;;  %v6915_v51 = vmul.f32 %v7965_v50, %v6855_v30  ;;  %v2424_v59 = vpop.permute.xlu1 %2423  ;;  %v2380_v52 = vpop.permute.xlu0 %2379 }
 0x1b5   :  { %8007 = vst [vmem:[#allocation20_spill] sm:$0xff] %v6903_v53  ;;  %v6919_v35 = vmul.f32 %v6733_v36, %v2599_v31  ;;  %v6923_v11 = vmul.f32 %v7969_v63, %v6864_v47  ;;  %v6928_v10 = vadd.f32 %v6724_v7, %v2463_v3  ;;  %v6930_v49 = vadd.f32 %v2547_v12, %v2541_v29  ;;  %v6944_v7 = vld [vmem:[%s7521_s3] ss:$0 sm:$0xff]  ;;  %v2762_v29 = vld [vmem:[#allocation2 + $0x11] sm:$0xff] }
 0x1b6   :  { %v2245_v2 = vadd.f32 %v2243_v54, %v2231_v17  ;;  %8008 = vst [vmem:[#allocation43_spill] sm:$0xff] %v6911_v60  ;;  %v2636_v54 = vmul.f32 %v6372_v0, %v6864_v47  ;;  %v6933_v43 = vmul.f32 %v6690_v4, %v2599_v31  ;;  %v2442_v23 = vrot.slane %v6907_v46, 1  ;;  %v8015_v46 = vld [vmem:[#allocation44_spill] sm:$0xff]  ;;  %v2809_v60 = vld [vmem:[#allocation2 + $0x12] sm:$0xff] }
 0x1b7   :  { %8009 = vst [vmem:[#allocation18_spill] sm:$0xff] %v6919_v35  ;;  %v2518_v55 = vmul.f32 %v7965_v50, %v6864_v47  ;;  %v2562_v35 = vmul.f32 %v7967_v27, %v6864_v47  ;;  %v2432_v31 = vmul.f32 %v7965_v50, %v2424_v59  ;;  %v6948_v12 = vmul.f32 %v7966_v14, %v2424_v59 }
 0x1b8   :  { %8010 = vst [vmem:[#allocation36_spill] sm:$0xff] %v6923_v11  ;;  %v2255_v44 = vadd.f32 %v2251_v37, %v2245_v2  ;;  %v2564_v37 = vmul.f32 %v6372_v0, %v2424_v59  ;;  %v2640_v2 = vrot.slane %v2636_v54, 1  ;;  %v2634_v17 = vmul.f32 %v7967_v27, %v2424_v59 }
 0x1b9   :  { %8011 = vst [vmem:[#allocation15_spill] sm:$0xff] %v6928_v10  ;;  %v2388_v53 = vmul.f32 %v6372_v0, %v2380_v52  ;;  %v6959_v32 = vmul.f32 %v7969_v63, %v2424_v59  ;;  %v2416_v15 = vmul.f32 %v6589_v21, %v6864_v47  ;;  %v2776_v11 = vmul.f32 %v6285_v38, %v2762_v29 }
 0x1ba   :  { %8012 = vst [vmem:[#allocation19_spill] sm:$0xff] %v6930_v49  ;;  %v2329_v3 = vmax.f32 %v2255_v44, %v2325_v18  ;;  %v2504_v18 = vmul.f32 %v7969_v63, %v2380_v52  ;;  %v8014_v44 = vld [vmem:[#allocation57_spill] sm:$0xff]  ;;  %v2514_v63 = vmul.f32 %v6589_v21, %v2424_v59  ;;  %v8018_v49 = vld [vmem:[#allocation16_spill] sm:$0xff]  ;;  %vm3287_vm0 = vcmask 1041280  }
 0x1bb   :  { %8013 = vst [vmem:[#allocation54_spill] sm:$0xff] %v6933_v43  ;;  %v2492_v43 = vmul.f32 %v7967_v27, %v2380_v52  ;;  %v2743_v6 = vmul.f32 %v6277_v62, %v8014_v44  ;;  %v2390_v54 = vadd.f32 %v2388_v53, %v8015_v46  ;;  %v2903_v62 = vmul.f32 %v6322_v40, %v8014_v44  ;;  %v2856_v53 = vld [vmem:[#allocation2 + $0x17] sm:$0xff] }
 0x1bc   :  { %v2331_v48 = vmax.f32 %v2327_v19, %v2329_v3  ;;  %v8016_v19 = vld [vmem:[#allocation49_spill] sm:$0xff]  ;;  %v2508_v52 = vrot.slane %v2504_v18, 1  ;;  %v8019_v13 = vrot.slane %v8018_v49, 1  ;;  %v2937_v46 = vmul.f32 %v6329_v56, %v2762_v29 }
 0x1bd   :  { %v8017_v27 = vrot.slane %v8016_v19, 1  ;;  %v2790_v47 = vadd.f32 %v2776_v11, %v2743_v6  ;;  %v2532_v18 = vrot.slane %v6948_v12, 1  ;;  %v6977_v19 = vadd.f32 %v2564_v37, %v2562_v35  ;;  %v2235_v35 = vpop.permute.xlu0 %2234 }
 0x1be   :  { %v2337_v0 = vadd.f32 %v6944_v7, %v2331_v48  ;;  %v2402_v10 = vadd.f32 %v8019_v13, %v2390_v54  ;;  %v2917_v48 = vadd.f32 %v2903_v62, %v6736_v42  ;;  %v2522_v44 = vrot.slane %v2518_v55, 1  ;;  %v2452_v13 = vpop.permute.xlu1 %2451 }
 0x1bf   :  { %v2502_v3 = vadd.f32 %v8017_v27, %v2492_v43  ;;  %v2984_v43 = vmul.f32 %v6339_v25, %v2970_v20  ;;  %v6979_v27 = vld [vmem:[#allocation2 + $0x18] sm:$0xff]  ;;  %v2823_v11 = vmul.f32 %v6297_v34, %v2809_v60  ;;  %v2870_v49 = vmul.f32 %v6312_v5, %v2856_v53 }
 0x1c0   :  { %v2339_v38 = vmax.f32 %v2337_v0, 0.0  ;;  %v2418_v59 = vadd.f32 %v2416_v15, %v2402_v10  ;;  %v2951_v29 = vadd.f32 %v2937_v46, %v2917_v48  ;;  %v6983_v54 = vadd.f32 %v2640_v2, %v2634_v17  ;;  %v8020_v2 = vld [vmem:[#allocation37_spill] sm:$0xff]  ;;  %v8021_v0 = vld [vmem:[#allocation51_spill] sm:$0xff] }
 0x1c1   :  { %v2512_v30 = vadd.f32 %v2508_v52, %v2502_v3  ;;  %v2650_v62 = vrot.slane %v6959_v32, 1  ;;  %v3018_v20 = vmul.f32 %v6403_v39, %v2856_v53  ;;  %v2837_v15 = vadd.f32 %v2823_v11, %v2790_v47  ;;  %v8024_v46 = vld [vmem:[#allocation47_spill] sm:$0xff]  ;;  %v7094_v32 = vld [vmem:[%s7521_s3] ss:$0 sm:$0xff] }
 0x1c2   :  { %2341 = vst [vmem:[#allocation2 + $0x5b] sm:$0x7f] %v2339_v38  ;;  %v2434_v42 = vadd.f32 %v2432_v31, %v2418_v59  ;;  %v2998_v10 = vadd.f32 %v2984_v43, %v2951_v29  ;;  %v3065_v38 = vmul.f32 %v7986_v22, %v6979_v27  ;;  %v2460_v60 = vmul.f32 %v6733_v36, %v2452_v13 }
 0x1c3   :  { %v2516_v6 = vadd.f32 %v2514_v63, %v2512_v30  ;;  %v6991_v12 = vmul.f32 %v6695_v16, %v2452_v13  ;;  %v2542_v17 = vmul.f32 %v6690_v4, %v2452_v13  ;;  %v6994_v37 = vadd.f32 %v2870_v49, %v2837_v15  ;;  %v8027_v15 = vld [vmem:[#allocation53_spill] sm:$0xff] }
 0x1c4   :  { %v2446_v30 = vadd.f32 %v2442_v23, %v2434_v42  ;;  %v3032_v31 = vadd.f32 %v3018_v20, %v2998_v10  ;;  %v8022_v3 = vrot.slane %v8021_v0, 1  ;;  %v2286_v63 = vrot.slane %v6762_v57, 1  ;;  %v8026_v57 = vld [vmem:[#allocation29_spill] sm:$0xff]  ;;  %v8032_v0 = vld [vmem:[#allocation31_spill] sm:$0xff] }
 0x1c5   :  { %v2526_v55 = vadd.f32 %v2522_v44, %v2516_v6  ;;  %v7001_v47 = vmul.f32 %v6589_v21, %v2452_v13  ;;  %v8023_v23 = vrot.slane %v6742_v41, 1  ;;  %v8025_v48 = vrot.slane %v8024_v46, 1  ;;  %v8035_v46 = vld [vmem:[#allocation28_spill] sm:$0xff] }
 0x1c6   :  { %v2276_v52 = vadd.f32 %v8022_v3, %v8020_v2  ;;  %v2292_v44 = vmul.f32 %v6816_v28, %v6495_v61  ;;  %v3079_v6 = vadd.f32 %v3065_v38, %v3032_v31  ;;  %v2462_v11 = vadd.f32 %v2460_v60, %v2446_v30  ;;  %v8029_v30 = vld [vmem:[#allocation22_spill] sm:$0xff]  ;;  %v8031_v31 = vld [vmem:[#allocation52_spill] sm:$0xff]  ;;  %v8033_v3 = vld [vmem:[#allocation27_spill] sm:$0xff] }
 0x1c7   :  { %v7006_v53 = vadd.f32 %v8023_v23, %v6772_v33  ;;  %v7011_v43 = vadd.f32 %v8025_v48, %v6781_v24  ;;  %v2536_v59 = vadd.f32 %v2532_v18, %v2526_v55  ;;  %v2486_v21 = vrot.slane %v6991_v12, 1  ;;  %v2618_v55 = vpop.permute.xlu1 %2617 }
 0x1c8   :  { %v2280_v49 = vadd.f32 %v8026_v57, %v2276_v52  ;;  %v7018_v29 = vmul.f32 %v7966_v14, %v2452_v13  ;;  %v2242_v41 = vmul.f32 %v6526_v1, %v2235_v35  ;;  %v2316_v33 = vmul.f32 %v6517_v8, %v2235_v35  ;;  %3131 = vmatmul.f32.gmra.mxu0 %v3079_v6 }
 0x1c9   :  { %v2546_v24 = vrot.slane %v2542_v17, 1  ;;  %v2296_v20 = vrot.slane %v2292_v44, 1  ;;  %v2302_v61 = vmul.f32 %v6505_v45, %v2235_v35  ;;  %v7024_v28 = vmul.f32 %v7965_v50, %v2452_v13  ;;  %v8030_v13 = vld [vmem:[#allocation32_spill] sm:$0xff] }
 0x1ca   :  { %v2290_v42 = vadd.f32 %v2286_v63, %v2280_v49  ;;  %v2665_v18 = vrot.slane %v6915_v51, 1  ;;  %v8028_v10 = vrot.slane %v8027_v15, 1  ;;  %v2671_v1 = vmul.f32 %v7966_v14, %v8029_v30  ;;  %v2604_v63 = vpop.permute.xlu0 %2603  ;;  %v8043_v15 = vld [vmem:[#allocation14_spill] sm:$0xff] }
 0x1cb   :  { %v2540_v8 = vadd.f32 %v6883_v9, %v2536_v59  ;;  %v7034_v60 = vadd.f32 %v6876_v26, %v2462_v11  ;;  %v2326_v45 = vmax.f32 %v7006_v53, %v7011_v43  ;;  %v2244_v35 = vadd.f32 %v2242_v41, %v8030_v13  ;;  %v8036_v43 = vld [vmem:[#allocation43_spill] sm:$0xff] }
 0x1cc   :  { %v2655_v38 = vadd.f32 %v8028_v10, %v6806_v58  ;;  %v2300_v17 = vadd.f32 %v2296_v20, %v2290_v42  ;;  %v2320_v51 = vrot.slane %v2316_v33, 1  ;;  %v8034_v58 = vrot.slane %v8033_v3, 1  ;;  %v8037_v11 = vld [vmem:[#allocation55_spill] sm:$0xff]  ;;  %v8040_v33 = vld [vmem:[#allocation12_spill] sm:$0xff] }
 0x1cd   :  { %v2681_v9 = vmul.f32 %v6733_v36, %v2618_v55  ;;  %v2695_v26 = vmul.f32 %v6695_v16, %v2618_v55  ;;  %v2587_v48 = vmul.f32 %v7966_v14, %v8035_v46  ;;  %v2675_v53 = vrot.slane %v2671_v1, 1  ;;  %v8039_v41 = vld [vmem:[#allocation15_spill] sm:$0xff] }
 0x1ce   :  { %v2659_v2 = vadd.f32 %v8031_v31, %v2655_v38  ;;  %v2577_v52 = vadd.f32 %v8034_v58, %v8032_v0  ;;  %v2304_v23 = vadd.f32 %v2302_v61, %v2300_v17  ;;  %v2583_v6 = vmul.f32 %v7965_v50, %v8029_v30  ;;  %v8042_v61 = vld [vmem:[#allocation19_spill] sm:$0xff]  ;;  %v8045_v30 = vld [vmem:[#allocation34_spill] sm:$0xff] }
 0x1cf   :  { %v8038_v57 = vrot.slane %v8037_v11, 1  ;;  %v8041_v42 = vrot.slane %v8040_v33, 1  ;;  %v8044_v10 = vrot.slane %v8043_v15, 1  ;;  %v2685_v14 = vmul.f32 %v6690_v4, %v2604_v63  ;;  %v2770_v31 = vld [vmem:[#allocation2 + $0x51] sm:$0xff] }
 0x1d0   :  { %v2669_v44 = vadd.f32 %v2665_v18, %v2659_v2  ;;  %v2581_v59 = vadd.f32 %v8036_v43, %v2577_v52  ;;  %v2591_v17 = vrot.slane %v2587_v48, 1  ;;  %v2607_v13 = vmul.f32 %v6733_v36, %v2604_v63  ;;  %v2978_v11 = vld [vmem:[#allocation2 + $0x56] sm:$0xff]  ;;  %v8048_v48 = vld [vmem:[#allocation30_spill] sm:$0xff] }
 0x1d1   :  { %v2314_v49 = vadd.f32 %v8038_v57, %v2304_v23  ;;  %v2491_v20 = vadd.f32 %v8041_v42, %v8039_v41  ;;  %v2561_v38 = vadd.f32 %v8044_v10, %v8042_v61  ;;  %v7060_v50 = vadd.f32 %v2546_v24, %v2540_v8  ;;  %v2817_v24 = vld [vmem:[#allocation2 + $0x52] sm:$0xff] }
 0x1d2   :  { %v2679_v18 = vadd.f32 %v2675_v53, %v2669_v44  ;;  %v2585_v1 = vadd.f32 %v2583_v6, %v2581_v59  ;;  %v8046_v2 = vrot.slane %v8045_v30, 1  ;;  %v2689_v58 = vrot.slane %v2685_v14, 1  ;;  %v8047_v53 = vld [vmem:[#allocation39_spill] sm:$0xff]  ;;  %v8049_v6 = vld [vmem:[#allocation48_spill] sm:$0xff] }
 0x1d3   :  { %v2324_v3 = vadd.f32 %v2320_v51, %v2314_v49  ;;  %v2621_v52 = vmul.f32 %v6690_v4, %v2618_v55  ;;  %v2625_v43 = vmul.f32 %v6695_v16, %v2604_v63  ;;  %v2751_v59 = vmul.f32 %v8048_v48, %v8047_v53 }
 0x1d4   :  { %v2254_v0 = vadd.f32 %v8046_v2, %v2244_v35  ;;  %v2683_v23 = vadd.f32 %v2681_v9, %v2679_v18  ;;  %v2595_v46 = vadd.f32 %v2591_v17, %v2585_v1  ;;  %v2784_v57 = vmul.f32 %v8049_v6, %v2770_v31  ;;  %v8050_v9 = vld [vmem:[#allocation40_spill] sm:$0xff] }
 0x1d5   :  { %v2911_v8 = vmul.f32 %v6322_v40, %v8047_v53  ;;  %v2699_v35 = vrot.slane %v2695_v26, 1  ;;  %v2705_v51 = vmax.f32 %v2491_v20, %v2561_v38  ;;  %v2945_v63 = vmul.f32 %v6329_v56, %v2770_v31  ;;  %v2864_v18 = vld [vmem:[#allocation2 + $0x57] sm:$0xff]  ;;  %v8055_v53 = vld [vmem:[#allocation38_spill] sm:$0xff] }
 0x1d6   :  { %v2328_v44 = vmax.f32 %v2254_v0, %v2324_v3  ;;  %v2609_v49 = vadd.f32 %v2607_v13, %v2595_v46  ;;  %v2693_v41 = vadd.f32 %v2689_v58, %v2683_v23  ;;  %v2992_v42 = vmul.f32 %v6339_v25, %v2978_v11  ;;  %v7076_v20 = vld [vmem:[#allocation2 + $0x58] sm:$0xff]  ;;  %v3951_v0 = vld [vmem:[%s7520_s2 + $0x5] ss:$0 sm:$0xff] }
 0x1d7   :  { %v2925_v33 = vadd.f32 %v2911_v8, %v8050_v9  ;;  %v2629_v15 = vrot.slane %v2625_v43, 1  ;;  %v2831_v14 = vmul.f32 %v6297_v34, %v2817_v24  ;;  %v2798_v17 = vadd.f32 %v2784_v57, %v2751_v59  ;;  %v8054_v43 = vld [vmem:[#allocation46_spill] sm:$0xff]  ;;  %v2763_v24 = vld [vmem:[#allocation2 + $0x19] sm:$0xff] }
 0x1d8   :  { %v2330_v55 = vmax.f32 %v2326_v45, %v2328_v44  ;;  %v2623_v61 = vadd.f32 %v2621_v52, %v2609_v49  ;;  %v2703_v10 = vadd.f32 %v2699_v35, %v2693_v41  ;;  %v8051_v45 = vld [vmem:[#allocation36_spill] sm:$0xff]  ;;  %v2654_v31 = vadd.f32 %v2650_v62, %v6983_v54 }
 0x1d9   :  { %v2959_v26 = vadd.f32 %v2945_v63, %v2925_v33  ;;  %v8052_v38 = vrot.slane %v8051_v45, 1  ;;  %v2664_v2 = vrot.slane %v7024_v28, 1  ;;  %v3026_v23 = vmul.f32 %v6403_v39, %v2864_v18 }
 0x1da   :  { %v2336_v1 = vadd.f32 %v6944_v7, %v2330_v55  ;;  %v2633_v30 = vadd.f32 %v2629_v15, %v2623_v61  ;;  %v8053_v7 = vld [vmem:[#allocation42_spill] sm:$0xff]  ;;  %v2878_v62 = vmul.f32 %v6312_v5, %v2864_v18  ;;  %v3073_v28 = vmul.f32 %v7986_v22, %v7076_v20  ;;  %v2771_v15 = vld [vmem:[#allocation2 + $0x59] sm:$0xff] }
 0x1db   :  { %v2576_v13 = vadd.f32 %v8052_v38, %v6977_v19  ;;  %v2670_v3 = vmul.f32 %v3951_v0, %v8053_v7  ;;  %v3006_v52 = vadd.f32 %v2992_v42, %v2959_v26  ;;  %v2613_v19 = vpop.permute.xlu0 %2612  ;;  %v2658_v11 = vadd.f32 %v8054_v43, %v2654_v31  ;;  %v8059_v26 = vld [vmem:[#allocation18_spill] sm:$0xff] }
 0x1dc   :  { %v2338_v58 = vmax.f32 %v2336_v1, 0.0  ;;  %v2707_v54 = vmax.f32 %v2633_v30, %v2703_v10  ;;  %v2620_v49 = vmul.f32 %v6690_v4, %v2613_v19  ;;  %v2680_v41 = vmul.f32 %v6733_v36, %v2613_v19  ;;  %v8056_v10 = vld [vmem:[#allocation54_spill] sm:$0xff] }
 0x1dd   :  { %v2580_v46 = vadd.f32 %v7001_v47, %v2576_v13  ;;  %v3040_v44 = vadd.f32 %v3026_v23, %v3006_v52  ;;  %v2590_v47 = vrot.slane %v7018_v29, 1  ;;  %v2674_v57 = vrot.slane %v2670_v3, 1  ;;  %v2818_v23 = vld [vmem:[#allocation2 + $0x5a] sm:$0xff] }
 0x1de   :  { %2340 = vst [vmem:[#allocation2 + $0x23] sm:$0x7f] %v2338_v58  ;;  %v2709_v8 = vmax.f32 %v2705_v51, %v2707_v54  ;;  %v2668_v35 = vadd.f32 %v2664_v2, %v2658_v11  ;;  %v2694_v33 = vmul.f32 %v6695_v16, %v2613_v19  ;;  %v2744_v63 = vmul.f32 %v8048_v48, %v6979_v27  ;;  %v8057_v16 = vld [vmem:[#allocation41_spill] sm:$0xff]  ;;  %v2810_v2 = vld [vmem:[#allocation2 + $0x1a] sm:$0xff] }
 0x1df   :  { %v2584_v59 = vadd.f32 %v8055_v53, %v2580_v46  ;;  %v3087_v55 = vadd.f32 %v3073_v28, %v3040_v44  ;;  %v2777_v29 = vmul.f32 %v8049_v6, %v2763_v24  ;;  %v2904_v51 = vmul.f32 %v6322_v40, %v6979_v27  ;;  %v8060_v46 = vld [vmem:[#allocation20_spill] sm:$0xff] }
 0x1e0   :  { %v2715_v42 = vadd.f32 %v7094_v32, %v2709_v8  ;;  %v2678_v61 = vadd.f32 %v2674_v57, %v2668_v35  ;;  %v2688_v4 = vrot.slane %v8056_v10, 1  ;;  %v2490_v36 = vadd.f32 %v2486_v21, %v7034_v60 }
 0x1e1   :  { %v2594_v9 = vadd.f32 %v2590_v47, %v2584_v59  ;;  %3155 = vmatmul.f32.gmra.mxu3 %v3087_v55  ;;  %v8058_v18 = vrot.slane %v8057_v16, 1  ;;  %v2845_v13 = vadd.f32 %v2831_v14, %v2798_v17  ;;  %v2918_v31 = vadd.f32 %v2904_v51, %v6994_v37 }
 0x1e2   :  { %v2717_v38 = vmax.f32 %v2715_v42, 0.0  ;;  %v2682_v30 = vadd.f32 %v2680_v41, %v2678_v61  ;;  %v2938_v0 = vmul.f32 %v6329_v56, %v2763_v24  ;;  %v2752_v7 = vmul.f32 %v8048_v48, %v7076_v20  ;;  %v7135_v41 = vld [vmem:[#allocation2 + $0x31] sm:$0xff] }
 0x1e3   :  { %v2560_v1 = vadd.f32 %v8058_v18, %v7060_v50  ;;  %v2608_v45 = vadd.f32 %v8059_v26, %v2594_v9  ;;  %v2785_v12 = vmul.f32 %v8049_v6, %v2771_v15  ;;  %v2892_v21 = vadd.f32 %v2878_v62, %v2845_v13 }
 0x1e4   :  { %2719 = vst [vmem:[#allocation2 + $0x62] sm:$0x7f] %v2717_v38  ;;  %v2692_v60 = vadd.f32 %v2688_v4, %v2682_v30  ;;  %v2698_v50 = vrot.slane %v2694_v33, 1  ;;  %v2791_v3 = vadd.f32 %v2777_v29, %v2744_v63  ;;  %v2952_v17 = vadd.f32 %v2938_v0, %v2918_v31 }
 0x1e5   :  { %v2622_v27 = vadd.f32 %v2620_v49, %v2608_v45  ;;  %v2857_v58 = vld [vmem:[#allocation2 + $0x1f] sm:$0xff]  ;;  %v2704_v14 = vmax.f32 %v2490_v36, %v2560_v1  ;;  %v8061_v19 = vrot.slane %v8060_v46, 1  ;;  %v2824_v43 = vmul.f32 %v6297_v34, %v2810_v2 }
 0x1e6   :  { %v2971_v52 = vld [vmem:[#allocation2 + $0x1e] sm:$0xff]  ;;  %v2702_v28 = vadd.f32 %v2698_v50, %v2692_v60  ;;  %v2912_v62 = vmul.f32 %v6322_v40, %v7076_v20  ;;  %v2871_v53 = vmul.f32 %v6312_v5, %v2857_v58  ;;  %v3019_v47 = vmul.f32 %v6403_v39, %v2857_v58 }
 0x1e7   :  { %v2985_v37 = vmul.f32 %v6339_v25, %v2971_v52  ;;  %v2632_v54 = vadd.f32 %v8061_v19, %v2622_v27  ;;  %v3052_v11 = vld [vmem:[#allocation2 + $0x20] sm:$0xff]  ;;  %v2799_v57 = vadd.f32 %v2785_v12, %v2752_v7  ;;  %v2838_v8 = vadd.f32 %v2824_v43, %v2791_v3  ;;  %v2820_v7 = vld [vmem:[#allocation2 + $0x6a] sm:$0xff] }
 0x1e8   :  { %v7130_v44 = vld [vmem:[#allocation2 + $0x21] sm:$0xff]  ;;  %v2832_v35 = vmul.f32 %v6297_v34, %v2818_v23  ;;  %v2926_v49 = vadd.f32 %v2912_v62, %v2892_v21  ;;  %v3066_v9 = vmul.f32 %v7986_v22, %v3052_v11  ;;  %v2745_v20 = vmul.f32 %v8048_v48, %v3052_v11 }
 0x1e9   :  { %v2999_v59 = vadd.f32 %v2985_v37, %v2952_v17  ;;  %v2706_v24 = vmax.f32 %v2632_v54, %v2702_v28  ;;  %v2778_v33 = vmul.f32 %v8049_v6, %v7130_v44  ;;  %v2946_v42 = vmul.f32 %v6329_v56, %v2771_v15  ;;  %v2773_v15 = vld [vmem:[#allocation2 + $0x69] sm:$0xff] }
 0x1ea   :  { %v2885_v61 = vadd.f32 %v2871_v53, %v2838_v8  ;;  %v2846_v51 = vadd.f32 %v2832_v35, %v2799_v57  ;;  %v7144_v16 = vmul.f32 %v8049_v6, %v7135_v41  ;;  %v2905_v31 = vmul.f32 %v6322_v40, %v3052_v11  ;;  %v2811_v3 = vld [vmem:[#allocation2 + $0x22] sm:$0xff]  ;;  %v2867_v53 = vld [vmem:[#allocation2 + $0x6f] sm:$0xff] }
 0x1eb   :  { %v3033_v55 = vadd.f32 %v3019_v47, %v2999_v59  ;;  %v2708_v63 = vmax.f32 %v2704_v14, %v2706_v24  ;;  %v2865_v10 = vld [vmem:[#allocation2 + $0x5f] sm:$0xff]  ;;  %v2960_v26 = vadd.f32 %v2946_v42, %v2926_v49  ;;  %v2792_v30 = vadd.f32 %v2778_v33, %v2745_v20  ;;  %v2866_v0 = vld [vmem:[#allocation2 + $0x67] sm:$0xff] }
 0x1ec   :  { %v2979_v4 = vld [vmem:[#allocation2 + $0x5e] sm:$0xff]  ;;  %v2879_v1 = vmul.f32 %v6312_v5, %v2865_v10  ;;  %v3027_v60 = vmul.f32 %v6403_v39, %v2865_v10  ;;  %v3061_v50 = vld [vmem:[#allocation2 + $0x68] sm:$0xff]  ;;  %v2787_v37 = vmul.f32 %v8049_v6, %v2773_v15  ;;  %v2880_v19 = vmul.f32 %v6312_v5, %v2866_v0 }
 0x1ed   :  { %v3080_v29 = vadd.f32 %v3066_v9, %v3033_v55  ;;  %v3060_v36 = vld [vmem:[#allocation2 + $0x60] sm:$0xff]  ;;  %v2714_v18 = vadd.f32 %v7094_v32, %v2708_v63  ;;  %v2993_v45 = vmul.f32 %v6339_v25, %v2979_v4  ;;  %v2834_v54 = vmul.f32 %v6297_v34, %v2820_v7  ;;  %v2981_v9 = vld [vmem:[#allocation2 + $0x6e] sm:$0xff] }
 0x1ee   :  { %v2772_v38 = vld [vmem:[#allocation2 + $0x61] sm:$0xff]  ;;  %v2753_v27 = vmul.f32 %v8048_v48, %v3060_v36  ;;  %v2893_v32 = vadd.f32 %v2879_v1, %v2846_v51  ;;  %v2913_v14 = vmul.f32 %v6322_v40, %v3060_v36  ;;  %v3074_v46 = vmul.f32 %v7986_v22, %v3060_v36  ;;  %v2982_v36 = vld [vmem:[#allocation2 + $0x76] sm:$0xff] }
 0x1ef   :  { %v2819_v13 = vld [vmem:[#allocation2 + $0x62] sm:$0xff]  ;;  %3134 = vmatmul.f32.gmra.mxu0 %v3080_v29  ;;  %v2786_v2 = vmul.f32 %v8049_v6, %v2772_v38  ;;  %v2716_v12 = vmax.f32 %v2714_v18, 0.0  ;;  %v3007_v21 = vadd.f32 %v2993_v45, %v2960_v26  ;;  %v2947_v11 = vmul.f32 %v6329_v56, %v2772_v38  ;;  %v2935_v29 = vld [vmem:[#allocation2 + $0x71] sm:$0xff]  ;;  %v7173_v26 = vld [vmem:[%s7523_s5] ss:$0 sm:$0xff]  ;;  %s4013_s5 = smov 16  }
 0x1f0   :  { %v2833_v52 = vmul.f32 %v6297_v34, %v2819_v13  ;;  %v2980_v17 = vld [vmem:[#allocation2 + $0x66] sm:$0xff]  ;;  %v2927_v43 = vadd.f32 %v2913_v14, %v2893_v32  ;;  %v2754_v62 = vmul.f32 %v8048_v48, %v3061_v50  ;;  %v2825_v47 = vmul.f32 %v6297_v34, %v2811_v3 }
 0x1f1   :  { %v2800_v58 = vadd.f32 %v2786_v2, %v2753_v27  ;;  %2718 = vst [vmem:[#allocation2 + $0x2a] sm:$0x7f] %v2716_v12  ;;  %v3041_v23 = vadd.f32 %v3027_v60, %v3007_v21  ;;  %v2919_v57 = vadd.f32 %v2905_v31, %v2885_v61  ;;  %v2994_v24 = vmul.f32 %v6339_v25, %v2980_v17  ;;  %v3952_v31 = vld [vmem:[#allocation2 + $0x70] sm:$0xff] }
 0x1f2   :  { %v2961_v35 = vadd.f32 %v2947_v11, %v2927_v43  ;;  %v2801_v49 = vadd.f32 %v2787_v37, %v2754_v62  ;;  %v2914_v55 = vmul.f32 %v6322_v40, %v3061_v50  ;;  %v2839_v20 = vadd.f32 %v2825_v47, %v2792_v30 }
 0x1f3   :  { %v2847_v28 = vadd.f32 %v2833_v52, %v2800_v58  ;;  %v3088_v59 = vadd.f32 %v3074_v46, %v3041_v23  ;;  %v2939_v33 = vmul.f32 %v6329_v56, %v7130_v44  ;;  %v2881_v63 = vmul.f32 %v6312_v5, %v2867_v53 }
 0x1f4   :  { %v2948_v42 = vmul.f32 %v6329_v56, %v2773_v15  ;;  %v3008_v51 = vadd.f32 %v2994_v24, %v2961_v35  ;;  %v3028_v61 = vmul.f32 %v6403_v39, %v2866_v0  ;;  %v2848_v10 = vadd.f32 %v2834_v54, %v2801_v49  ;;  %v3150_v58 = vpop.f32.mrf.mxu3 }
 0x1f5   :  { %v2894_v8 = vadd.f32 %v2880_v19, %v2847_v28  ;;  %3158 = vmatmul.f32.gmra.mxu3 %v3088_v59  ;;  %v2953_v18 = vadd.f32 %v2939_v33, %v2919_v57  ;;  %v3075_v1 = vmul.f32 %v7986_v22, %v3061_v50  ;;  %v2995_v44 = vmul.f32 %v6339_v25, %v2981_v9  ;;  %v3016_v9 = vld [vmem:[#allocation2 + $0x77] sm:$0xff] }
 0x1f6   :  { %v3029_v45 = vmul.f32 %v6403_v39, %v2867_v53  ;;  %v3042_v30 = vadd.f32 %v3028_v61, %v3008_v51  ;;  %v7178_v27 = vmul.f32 %v3952_v31, %v7986_v22  ;;  %v2915_v2 = vmul.f32 %v3952_v31, %v6322_v40 }
 0x1f7   :  { %v2928_v4 = vadd.f32 %v2914_v55, %v2894_v8  ;;  %v2949_v0 = vmul.f32 %v6329_v56, %v2935_v29  ;;  %v2895_v60 = vadd.f32 %v2881_v63, %v2848_v10  ;;  %v2996_v50 = vmul.f32 %v6339_v25, %v2982_v36  ;;  %v2860_v36 = vld [vmem:[#allocation2 + $0x37] sm:$0xff] }
 0x1f8   :  { %v2858_v38 = vld [vmem:[#allocation2 + $0x27] sm:$0xff]  ;;  %v2859_v17 = vld [vmem:[#allocation2 + $0x2f] sm:$0xff]  ;;  %v3089_v19 = vadd.f32 %v3075_v1, %v3042_v30  ;;  %v3151_v54 = vadd.f32 %v7173_v26, %v3150_v58  ;;  %vm3671_vm2 = vcmask 1041408  }
 0x1f9   :  { %v2972_v13 = vld [vmem:[#allocation2 + $0x26] sm:$0xff]  ;;  %v2872_v7 = vmul.f32 %v6312_v5, %v2858_v38  ;;  %v3020_v3 = vmul.f32 %v6403_v39, %v2858_v38  ;;  %v2962_v37 = vadd.f32 %v2948_v42, %v2928_v4  ;;  %v2973_v53 = vld [vmem:[#allocation2 + $0x2e] sm:$0xff]  ;;  %v2929_v55 = vadd.f32 %v2915_v2, %v2895_v60  ;;  %v2974_v30 = vld [vmem:[#allocation2 + $0x36] sm:$0xff] }
 0x1fa   :  { %v3053_v15 = vld [vmem:[#allocation2 + $0x28] sm:$0xff]  ;;  %v2986_v12 = vmul.f32 %v6339_v25, %v2972_v13  ;;  %v3054_v59 = vld [vmem:[#allocation2 + $0x30] sm:$0xff]  ;;  %v3178_v57 = vmax.f32 %v3151_v54, 0.0  ;;  %v2987_v63 = vmul.f32 %v6339_v25, %v2973_v53  ;;  %v3021_v13 = vmul.f32 %v6403_v39, %v2859_v17  ;;  %v3955_v53 = vld [vmem:[#allocation2 + $0x3f] sm:$0xff] }
 0x1fb   :  { %v2765_v32 = vld [vmem:[#allocation2 + $0x29] sm:$0xff]  ;;  %v2746_v52 = vmul.f32 %v8048_v48, %v3053_v15  ;;  %v2886_v23 = vadd.f32 %v2872_v7, %v2839_v20  ;;  %v3067_v28 = vmul.f32 %v7986_v22, %v3053_v15  ;;  %v2906_v62 = vmul.f32 %v6322_v40, %v3053_v15  ;;  %v2813_v20 = vld [vmem:[#allocation2 + $0x32] sm:$0xff] }
 0x1fc   :  { %v2812_v21 = vld [vmem:[#allocation2 + $0x2a] sm:$0xff]  ;;  %v2779_v14 = vmul.f32 %v8049_v6, %v2765_v32  ;;  %v3000_v46 = vadd.f32 %v2986_v12, %v2953_v18  ;;  %v2873_v6 = vmul.f32 %v6312_v5, %v2859_v17  ;;  %v2940_v24 = vmul.f32 %v6329_v56, %v2765_v32  ;;  %3192 = vst [vmem:[#allocation3 + $0x38] sm:$0xff] %v3178_v57 }
 0x1fd   :  { %v2826_v11 = vmul.f32 %v6297_v34, %v2812_v21  ;;  %3161 = vmatmul.f32.gmra.mxu3 %v3089_v19  ;;  %v2920_v35 = vadd.f32 %v2906_v62, %v2886_v23  ;;  %v3009_v49 = vadd.f32 %v2995_v44, %v2962_v37  ;;  %v2747_v42 = vmul.f32 %v8048_v48, %v3054_v59  ;;  %v3953_v21 = vld [vmem:[#allocation2 + $0x38] sm:$0xff] }
 0x1fe   :  { %v2793_v43 = vadd.f32 %v2779_v14, %v2746_v52  ;;  %v3034_v47 = vadd.f32 %v3020_v3, %v3000_v46  ;;  %v2907_v29 = vmul.f32 %v6322_v40, %v3054_v59  ;;  %v2963_v4 = vadd.f32 %v2949_v0, %v2929_v55  ;;  %v3954_v14 = vld [vmem:[#allocation2 + $0x39] sm:$0xff] }
 0x1ff   :  { %v2954_v61 = vadd.f32 %v2940_v24, %v2920_v35  ;;  %v3043_v10 = vadd.f32 %v3029_v45, %v3009_v49  ;;  %v3030_v18 = vmul.f32 %v6403_v39, %v3016_v9  ;;  %v2794_v1 = vadd.f32 %v7144_v16, %v2747_v42  ;;  %v3055_v37 = vld [vmem:[#allocation2 + $0x38] sm:$0xff] }
 0x200   :  { %v2840_v8 = vadd.f32 %v2826_v11, %v2793_v43  ;;  %v3081_v33 = vadd.f32 %v3067_v28, %v3034_v47  ;;  %v2827_v44 = vmul.f32 %v6297_v34, %v2813_v20  ;;  %v2941_v48 = vmul.f32 %v6329_v56, %v7135_v41  ;;  %v2975_v23 = vld [vmem:[#allocation2 + $0x3e] sm:$0xff] }
 0x201   :  { %v3001_v38 = vadd.f32 %v2987_v63, %v2954_v61  ;;  %v3090_v31 = vadd.f32 %v7178_v27, %v3043_v10  ;;  %v3010_v45 = vadd.f32 %v2996_v50, %v2963_v4  ;;  %v2874_v0 = vmul.f32 %v6312_v5, %v2860_v36 }
 0x202   :  { %v2887_v51 = vadd.f32 %v2873_v6, %v2840_v8  ;;  %3137 = vmatmul.f32.gmra.mxu0 %v3081_v33  ;;  %v2841_v2 = vadd.f32 %v2827_v44, %v2794_v1  ;;  %v3068_v16 = vmul.f32 %v7986_v22, %v3054_v59  ;;  %v2988_v32 = vmul.f32 %v6339_v25, %v2974_v30  ;;  %v3056_v59 = vld [vmem:[#allocation2 + $0x40] sm:$0xff] }
 0x203   :  { %v3035_v7 = vadd.f32 %v3021_v13, %v3001_v38  ;;  %v2908_v60 = vmul.f32 %v3953_v21, %v6322_v40  ;;  %v3211_v3 = vld [vmem:[#allocation3 + $0x39] sm:$0x1]  ;;  %v3044_v58 = vadd.f32 %v3030_v18, %v3010_v45  ;;  %v3022_v5 = vmul.f32 %v6403_v39, %v2860_v36  ;;  %v3224_v43 = vld [vmem:[#allocation3 + $0x3a] sm:$0x1]  ;;  %v3202_v1 = vld [vmem:[#allocation3 + $0x38] sm:$0x1] }
 0x204   :  { %v2921_v15 = vadd.f32 %v2907_v29, %v2887_v51  ;;  %v2888_v34 = vadd.f32 %v2874_v0, %v2841_v2  ;;  %3213 = vrot.lane.b32.xlu0 %v3211_v3, %s4013_s5  ;;  %v2942_v17 = vmul.f32 %v3954_v14, %v6329_v56  ;;  %v3069_v54 = vmul.f32 %v7986_v22, %v3055_v37 }
 0x205   :  { %3164 = vmatmul.f32.gmra.mxu3 %v3090_v31  ;;  %v3082_v41 = vadd.f32 %v3068_v16, %v3035_v7  ;;  %v3091_v46 = vadd.f32 %v7178_v27, %v3044_v58  ;;  %v2989_v28 = vmul.f32 %v6339_v25, %v2975_v23  ;;  %v3023_v56 = vmul.f32 %v3955_v53, %v6403_v39 }
 0x206   :  { %v2955_v12 = vadd.f32 %v2941_v48, %v2921_v15  ;;  %v2922_v52 = vadd.f32 %v2908_v60, %v2888_v34  ;;  %v3070_v27 = vmul.f32 %v7986_v22, %v3056_v59  ;;  %3203 = vst.msk [vmem:[#allocation4 + $0x1] sm:$0x1] %vm3200_vm9, %v3202_v1 }
 0x208   :  { %v3002_v50 = vadd.f32 %v2988_v32, %v2955_v12  ;;  %v2956_v40 = vadd.f32 %v2942_v17, %v2922_v52 }
 0x20a   :  { %3140 = vmatmul.f32.gmra.mxu0 %v3082_v41  ;;  %v3036_v19 = vadd.f32 %v3022_v5, %v3002_v50  ;;  %v3003_v62 = vadd.f32 %v2989_v28, %v2956_v40 }
 0x20c   :  { %v3083_v11 = vadd.f32 %v3069_v54, %v3036_v19  ;;  %3226 = vrot.lane.b32.xlu0 %v3224_v43, %s4014_s15  ;;  %v3037_v47 = vadd.f32 %v3023_v56, %v3003_v62  ;;  %v3237_v56 = vld [vmem:[#allocation3 + $0x3b] sm:$0x1] }
 0x20d   :  { %3167 = vmatmul.f32.gmra.mxu3 %v3091_v46 }
 0x20e   :  { %v3084_v57 = vadd.f32 %v3070_v27, %v3037_v47 }
 0x212   :  { %3143 = vmatmul.f32.gmra.mxu0 %v3083_v11 }
 0x216   :  { %v3129_v6 = vpop.f32.mrf.mxu0 }
 0x217   :  { %v3130_v24 = vadd.f32 %v7173_v26, %v3129_v6 }
 0x219   :  { %v3171_v25 = vmax.f32 %v3130_v24, 0.0 }
 0x21a   :  { %3146 = vmatmul.f32.gmra.mxu0 %v3084_v57 }
 0x21b   :  { %3185 = vst [vmem:[#allocation3] sm:$0xff] %v3171_v25 }
 0x222   :  { %v3204_v8 = vld [vmem:[#allocation3 + $0x1] sm:$0x1]  ;;  %v3217_v35 = vld [vmem:[#allocation3 + $0x2] sm:$0x1]  ;;  %v3230_v55 = vld [vmem:[#allocation3 + $0x3] sm:$0x1] }
 0x223   :  { %3206 = vrot.lane.b32.xlu2 %v3204_v8, %s4013_s5  ;;  %v3199_v13 = vld [vmem:[#allocation3] sm:$0x1]  ;;  %v3243_v60 = vld [vmem:[#allocation3 + $0x4] sm:$0x1]  ;;  %v3256_v62 = vld [vmem:[#allocation3 + $0x7] sm:$0x1] }
 0x224   :  { %3201 = vst.msk [vmem:[#allocation4] sm:$0x1] %vm3200_vm9, %v3199_v13 }
 0x22b   :  { %3219 = vrot.lane.b32.xlu2 %v3217_v35, %s4014_s15  ;;  %v3250_v35 = vld [vmem:[#allocation3 + $0x3c] sm:$0x1] }
 0x232   :  { %v3153_v49 = vpop.f32.mrf.mxu3 }
 0x233   :  { %v3154_v39 = vadd.f32 %v7173_v26, %v3153_v49  ;;  %3232 = vrot.lane.b32.xlu2 %v3230_v55, %s4015_s0 }
 0x235   :  { %v3179_v22 = vmax.f32 %v3154_v39, 0.0 }
 0x237   :  { %3193 = vst [vmem:[#allocation3 + $0x40] sm:$0xff] %v3179_v22 }
 0x23e   :  { %v3305_v9 = vld [vmem:[#allocation3 + $0x43] sm:$0x1]  ;;  %v3329_v63 = vld [vmem:[#allocation3 + $0x47] sm:$0x1]  ;;  %v3317_v4 = vld [vmem:[#allocation3 + $0x46] sm:$0x1] }
 0x23f   :  { %3307 = vrot.lane.b32.xlu2 %v3305_v9, %s4013_s5  ;;  %v3297_v5 = vld [vmem:[#allocation3 + $0x42] sm:$0x1] }
 0x240   :  { %3298 = vst.msk [vmem:[#allocation4 + $0x9] sm:$0x1] %vm3200_vm9, %v3297_v5  ;;  %v3506_v5 = vld [vmem:[%s7524_s6 + $0xd8] sm:$0xff] }
 0x245   :  { %v3132_v20 = vpop.f32.mrf.mxu0 }
 0x246   :  { %v3133_v33 = vadd.f32 %v7173_v26, %v3132_v20 }
 0x247   :  { %3331 = vrot.lane.b32.xlu2 %v3329_v63, %s4015_s0 }
 0x248   :  { %v3172_v42 = vmax.f32 %v3133_v33, 0.0  ;;  %v3263_v33 = vld [vmem:[#allocation3 + $0x3f] sm:$0x1] }
 0x24a   :  { %3186 = vst [vmem:[#allocation3 + $0x8] sm:$0xff] %v3172_v42 }
 0x251   :  { %v3311_v29 = vld [vmem:[#allocation3 + $0xe] sm:$0x1]  ;;  %v3299_v51 = vld [vmem:[#allocation3 + $0xb] sm:$0x1]  ;;  %v3323_v61 = vld [vmem:[#allocation3 + $0xf] sm:$0x1] }
 0x252   :  { %3313 = vrot.lane.b32.xlu0 %v3311_v29, %s4014_s15  ;;  %3301 = vrot.lane.b32.xlu1 %v3299_v51, %s4013_s5  ;;  %v3269_v8 = vld [vmem:[#allocation3 + $0x8] sm:$0x1]  ;;  %v3295_v22 = vld [vmem:[#allocation3 + $0xa] sm:$0x1]  ;;  %v3276_v51 = vld [vmem:[#allocation3 + $0x40] sm:$0x1] }
 0x253   :  { %3296 = vst.msk [vmem:[#allocation4 + $0x8] sm:$0x1] %vm3200_vm9, %v3295_v22  ;;  %v3497_v22 = vld [vmem:[%s7524_s6 + $0x90] sm:$0xff] }
 0x25a   :  { %3325 = vrot.lane.b32.xlu1 %v3323_v61, %s4015_s0 }
 0x262   :  { %3319 = vrot.lane.b32.xlu1 %v3317_v4, %s4014_s15 }
 0x264   :  { %v3156_v10 = vpop.f32.mrf.mxu3 }
 0x265   :  { %v3157_v36 = vadd.f32 %v7173_v26, %v3156_v10  ;;  %v3289_v10 = vld [vmem:[#allocation3 + $0x41] sm:$0x1] }
 0x267   :  { %v3180_v18 = vmax.f32 %v3157_v36, 0.0 }
 0x269   :  { %3194 = vst [vmem:[#allocation3 + $0x48] sm:$0xff] %v3180_v18  ;;  %v3282_v18 = vld [vmem:[#allocation3 + $0x9] sm:$0x1] }
 0x26c   :  { %v3135_v44 = vpop.f32.mrf.mxu0 }
 0x26d   :  { %v3136_v38 = vadd.f32 %v7173_v26, %v3135_v44 }
 0x26f   :  { %v3173_v15 = vmax.f32 %v3136_v38, 0.0 }
 0x270   :  { %v3341_v48 = vld [vmem:[#allocation3 + $0x48] sm:$0x1]  ;;  %v3353_v2 = vld [vmem:[#allocation3 + $0x49] sm:$0x1]  ;;  %v3393_v32 = vld [vmem:[#allocation3 + $0x4f] sm:$0x1] }
 0x271   :  { %3187 = vst [vmem:[#allocation3 + $0x10] sm:$0xff] %v3173_v15  ;;  %3343 = vrot.lane.b32.xlu2 %v3341_v48, %s4016_s16  ;;  %v3365_v46 = vld [vmem:[#allocation3 + $0x4a] sm:$0x1]  ;;  %v3377_v57 = vld [vmem:[#allocation3 + $0x4d] sm:$0x1] }
 0x276   :  { %v3214_v7 = vpop.permute.xlu0 %3213 }
 0x277   :  { %3216 = vst.msk [vmem:[#allocation4 + $0x1] sm:$0x1] %vm3209_vm10, %v3214_v7 }
 0x278   :  { %v3387_v30 = vld [vmem:[#allocation3 + $0x17] sm:$0x1]  ;;  %v3335_v31 = vld [vmem:[#allocation3 + $0x10] sm:$0x1]  ;;  %v3159_v45 = vpop.f32.mrf.mxu3  ;;  %v3347_v37 = vld [vmem:[#allocation3 + $0x11] sm:$0x1] }
 0x279   :  { %3389 = vrot.lane.b32.xlu0 %v3387_v30, %s4013_s5  ;;  %3337 = vrot.lane.b32.xlu1 %v3335_v31, %s4016_s16  ;;  %v3160_v0 = vadd.f32 %v7173_v26, %v3159_v45  ;;  %v3359_v25 = vld [vmem:[#allocation3 + $0x12] sm:$0x1]  ;;  %v3371_v9 = vld [vmem:[#allocation3 + $0x15] sm:$0x1]  ;;  %v3383_v15 = vld [vmem:[#allocation3 + $0x16] sm:$0x1] }
 0x27a   :  { %3355 = vrot.lane.b32.xlu2 %v3353_v2, %s4017_s17  ;;  %3384 = vst.msk [vmem:[#allocation4 + $0x10] sm:$0x1] %vm3200_vm9, %v3383_v15  ;;  %v3385_v31 = vld [vmem:[#allocation3 + $0x4e] sm:$0x1]  ;;  %v3517_v15 = vld [vmem:[%s7524_s6 + $0x130] sm:$0xff] }
 0x27b   :  { %v3181_v12 = vmax.f32 %v3160_v0, 0.0  ;;  %3386 = vst.msk [vmem:[#allocation4 + $0x11] sm:$0x1] %vm3200_vm9, %v3385_v31  ;;  %v3537_v31 = vld [vmem:[%s7524_s6 + $0x1d0] sm:$0xff] }
 0x27d   :  { %3195 = vst [vmem:[#allocation3 + $0x50] sm:$0xff] %v3181_v12  ;;  %v3207_v50 = vpop.permute.xlu2 %3206  ;;  %v3510_v12 = vld [vmem:[%s7524_s6 + $0xf8] sm:$0xff] }
 0x27e   :  { %v3227_v58 = vpop.permute.xlu0 %3226  ;;  %3210 = vst.msk [vmem:[#allocation4] sm:$0x1] %vm3209_vm10, %v3207_v50  ;;  %3567 = vmatpush.msra.mxu2 %v3510_v12  ;;  %v3491_v50 = vld [vmem:[%s7524_s6 + $0x60] sm:$0xff] }
 0x27f   :  { %v3138_v16 = vpop.f32.mrf.mxu0  ;;  %3229 = vst.msk [vmem:[#allocation4 + $0x1] sm:$0x1] %vm3222_vm11, %v3227_v58 }
 0x280   :  { %v3139_v34 = vadd.f32 %v7173_v26, %v3138_v16  ;;  %v3162_v21 = vpop.f32.mrf.mxu3  ;;  %v3494_v16 = vld [vmem:[%s7524_s6 + $0x78] sm:$0xff] }
 0x281   :  { %3395 = vrot.lane.b32.xlu1 %v3393_v32, %s4013_s5  ;;  %v3163_v41 = vadd.f32 %v7173_v26, %v3162_v21  ;;  %3547 = vmatpush.msra.mxu1 %v3494_v16  ;;  %v3493_v32 = vld [vmem:[%s7524_s6 + $0x70] sm:$0xff]  ;;  %v3508_v21 = vld [vmem:[%s7524_s6 + $0xe8] sm:$0xff]  ;;  %v3534_v16 = vld [vmem:[%s7524_s6 + $0x1b8] sm:$0xff] }
 0x282   :  { %v3174_v3 = vmax.f32 %v3139_v34, 0.0  ;;  %3245 = vrot.lane.b32.xlu2 %v3243_v60, %s4016_s16  ;;  %v3509_v34 = vld [vmem:[%s7524_s6 + $0xf0] sm:$0xff]  ;;  %v3492_v60 = vld [vmem:[%s7524_s6 + $0x68] sm:$0xff] }
 0x283   :  { %v3182_v52 = vmax.f32 %v3163_v41, 0.0  ;;  %3568 = vmatpush.msra.mxu2 %v3509_v34  ;;  %3548 = vmatpush.msra.mxu1 %v3493_v32  ;;  %v3507_v41 = vld [vmem:[%s7524_s6 + $0xe0] sm:$0xff]  ;;  %v3514_v34 = vld [vmem:[%s7524_s6 + $0x118] sm:$0xff]  ;;  %v3533_v32 = vld [vmem:[%s7524_s6 + $0x1b0] sm:$0xff] }
 0x284   :  { %3188 = vst [vmem:[#allocation3 + $0x18] sm:$0xff] %v3174_v3  ;;  %v3405_v43 = vld [vmem:[#allocation3 + $0x50] sm:$0x1]  ;;  %v3417_v27 = vld [vmem:[#allocation3 + $0x51] sm:$0x1] }
 0x285   :  { %3196 = vst [vmem:[#allocation3 + $0x58] sm:$0xff] %v3182_v52  ;;  %v3220_v54 = vpop.permute.xlu2 %3219  ;;  %v3429_v49 = vld [vmem:[#allocation3 + $0x54] sm:$0x1]  ;;  %v3453_v39 = vld [vmem:[#allocation3 + $0x56] sm:$0x1]  ;;  %3569 = vmatpush.msra.mxu2 %v3508_v21  ;;  %3549 = vmatpush.msra.mxu1 %v3492_v60  ;;  %v3526_v52 = vld [vmem:[%s7524_s6 + $0x178] sm:$0xff] }
 0x286   :  { %3223 = vst.msk [vmem:[#allocation4] sm:$0x1] %vm3222_vm11, %v3220_v54  ;;  %v3441_v63 = vld [vmem:[#allocation3 + $0x55] sm:$0x1]  ;;  %v3465_v38 = vld [vmem:[#allocation3 + $0x57] sm:$0x1]  ;;  %3587 = vmatpush.msrb.mxu3 %v3526_v52 }
 0x287   :  { %v3141_v14 = vpop.f32.mrf.mxu0  ;;  %3570 = vmatpush.msra.mxu2 %v3507_v41  ;;  %3550 = vmatpush.msra.mxu1 %v3491_v50  ;;  %v3488_v54 = vld [vmem:[%s7524_s6 + $0x48] sm:$0xff]  ;;  %v3513_v21 = vld [vmem:[%s7524_s6 + $0x110] sm:$0xff]  ;;  %v3531_v41 = vld [vmem:[%s7524_s6 + $0x1a0] sm:$0xff] }
 0x288   :  { %v3142_v17 = vadd.f32 %v7173_v26, %v3141_v14  ;;  %v3165_v23 = vpop.f32.mrf.mxu3  ;;  %v3490_v14 = vld [vmem:[%s7524_s6 + $0x58] sm:$0xff]  ;;  %v3532_v60 = vld [vmem:[%s7524_s6 + $0x1a8] sm:$0xff] }
 0x289   :  { %3349 = vrot.lane.b32.xlu1 %v3347_v37, %s4017_s17  ;;  %3571 = vmatpush.msra.mxu2 %v3506_v5  ;;  %v3489_v37 = vld [vmem:[%s7524_s6 + $0x50] sm:$0xff]  ;;  %v3512_v50 = vld [vmem:[%s7524_s6 + $0x108] sm:$0xff]  ;;  %v3530_v52 = vld [vmem:[%s7524_s6 + $0x198] sm:$0xff] }
 0x28a   :  { %v3175_v19 = vmax.f32 %v3142_v17, 0.0  ;;  %3367 = vrot.lane.b32.xlu2 %v3365_v46, %s4018_s18  ;;  %v3505_v17 = vld [vmem:[%s7524_s6 + $0xd0] sm:$0xff]  ;;  %3551 = vmatpush.msra.mxu1 %v3490_v14  ;;  %v3504_v46 = vld [vmem:[%s7524_s6 + $0xc8] sm:$0xff]  ;;  %v3511_v14 = vld [vmem:[%s7524_s6 + $0x100] sm:$0xff] }
 0x28b   :  { %v3399_v40 = vld [vmem:[#allocation3 + $0x18] sm:$0x1]  ;;  %v3411_v6 = vld [vmem:[#allocation3 + $0x19] sm:$0x1]  ;;  %v3423_v55 = vld [vmem:[#allocation3 + $0x1c] sm:$0x1]  ;;  %3572 = vmatpush.msra.mxu2 %v3505_v17 }
 0x28c   :  { %3189 = vst [vmem:[#allocation3 + $0x20] sm:$0xff] %v3175_v19  ;;  %3401 = vrot.lane.b32.xlu0 %v3399_v40, %s4014_s15  ;;  %v3473_v28 = vld [vmem:[#allocation3 + $0x58] sm:$0x1]  ;;  %v3459_v20 = vld [vmem:[#allocation3 + $0x1f] sm:$0x1]  ;;  %v3525_v23 = vld [vmem:[%s7524_s6 + $0x170] sm:$0xff]  ;;  %3552 = vmatpush.msra.mxu1 %v3489_v37 }
 0x28d   :  { %3474 = vst.msk [vmem:[#allocation4 + $0x19] sm:$0x1] %vm3200_vm9, %v3473_v28  ;;  %v3233_v59 = vpop.permute.xlu2 %3232  ;;  %v3435_v42 = vld [vmem:[#allocation3 + $0x1d] sm:$0x1]  ;;  %v3447_v29 = vld [vmem:[#allocation3 + $0x1e] sm:$0x1]  ;;  %3588 = vmatpush.msrb.mxu3 %v3525_v23  ;;  %3573 = vmatpush.msra.mxu2 %v3504_v46 }
 0x28e   :  { %3236 = vst.msk [vmem:[#allocation4] sm:$0x1] %vm3235_vm12, %v3233_v59  ;;  %v3524_v19 = vld [vmem:[%s7524_s6 + $0x168] sm:$0xff]  ;;  %v3503_v28 = vld [vmem:[%s7524_s6 + $0xc0] sm:$0xff]  ;;  %3553 = vmatpush.msra.mxu1 %v3488_v54  ;;  %v3529_v5 = vld [vmem:[%s7524_s6 + $0x190] sm:$0xff] }
 0x28f   :  { %v3144_v26 = vpop.f32.mrf.mxu0  ;;  %3589 = vmatpush.msrb.mxu3 %v3524_v19  ;;  %3574 = vmatpush.msra.mxu2 %v3503_v28  ;;  %v3523_v59 = vld [vmem:[%s7524_s6 + $0x160] sm:$0xff]  ;;  %v3528_v37 = vld [vmem:[%s7524_s6 + $0x188] sm:$0xff] }
 0x290   :  { %v3168_v11 = vpop.f32.mrf.mxu3  ;;  %v3527_v19 = vld [vmem:[%s7524_s6 + $0x180] sm:$0xff] }
 0x291   :  { %3407 = vrot.lane.b32.xlu1 %v3405_v43, %s4014_s15  ;;  %v3487_v11 = vld [vmem:[%s7524_s6 + $0x40] sm:$0xff]  ;;  %3590 = vmatpush.msrb.mxu3 %v3523_v59 }
 0x292   :  { %3258 = vrot.lane.b32.xlu2 %v3256_v62, %s4017_s17  ;;  %v3502_v62 = vld [vmem:[%s7524_s6 + $0xb8] sm:$0xff]  ;;  %3554 = vmatpush.msra.mxu1 %v3487_v11 }
 0x293   :  { %v3471_v53 = vld [vmem:[#allocation3 + $0x20] sm:$0x1]  ;;  %3575 = vmatpush.msra.mxu2 %v3502_v62 }
 0x294   :  { %3472 = vst.msk [vmem:[#allocation4 + $0x18] sm:$0x1] %vm3200_vm9, %v3471_v53  ;;  %3239 = vrot.lane.b32.xlu0 %v3237_v56, %s4015_s0  ;;  %v3486_v53 = vld [vmem:[%s7524_s6 + $0x38] sm:$0xff]  ;;  %v3501_v56 = vld [vmem:[%s7524_s6 + $0xb0] sm:$0xff] }
 0x295   :  { %3555 = vmatpush.msra.mxu1 %v3486_v53  ;;  %3576 = vmatpush.msra.mxu2 %v3501_v56 }
 0x297   :  { %v3147_v47 = vpop.f32.mrf.mxu0 }
 0x298   :  { %v3485_v47 = vld [vmem:[%s7524_s6 + $0x30] sm:$0xff] }
 0x299   :  { %3419 = vrot.lane.b32.xlu1 %v3417_v27, %s4015_s0  ;;  %v3308_v24 = vpop.permute.xlu2 %3307  ;;  %v3522_v27 = vld [vmem:[%s7524_s6 + $0x158] sm:$0xff]  ;;  %3556 = vmatpush.msra.mxu1 %v3485_v47  ;;  %v3642_v47 = vld [vmem:[#allocation5 + $0x78] sm:$0xff] }
 0x29a   :  { %3379 = vrot.lane.b32.xlu2 %v3377_v57, %s4019_s19  ;;  %3310 = vst.msk [vmem:[#allocation4 + $0x9] sm:$0x1] %vm3209_vm10, %v3308_v24  ;;  %v3500_v57 = vld [vmem:[%s7524_s6 + $0xa8] sm:$0xff]  ;;  %3591 = vmatpush.msrb.mxu3 %v3522_v27  ;;  %v3641_v27 = vld [vmem:[#allocation5 + $0x70] sm:$0xff] }
 0x29b   :  { %v3484_v24 = vld [vmem:[%s7524_s6 + $0x28] sm:$0xff]  ;;  %3577 = vmatpush.msra.mxu2 %v3500_v57  ;;  %v3640_v57 = vld [vmem:[#allocation5 + $0x68] sm:$0xff] }
 0x29c   :  { %3413 = vrot.lane.b32.xlu0 %v3411_v6, %s4015_s0  ;;  %3557 = vmatpush.msra.mxu1 %v3484_v24  ;;  %v3478_v59 = vld [vmem:[#allocation4 + $0x18] sm:$0x3] }
 0x29d   :  { %v3638_v24 = vld [vmem:[#allocation5 + $0x58] sm:$0xff] }
 0x2a1   :  { %3361 = vrot.lane.b32.xlu1 %v3359_v25, %s4018_s18  ;;  %v3332_v61 = vpop.permute.xlu2 %3331  ;;  %v3499_v25 = vld [vmem:[%s7524_s6 + $0xa0] sm:$0xff] }
 0x2a2   :  { %3271 = vrot.lane.b32.xlu2 %v3269_v8, %s4018_s18  ;;  %3578 = vmatpush.msra.mxu2 %v3499_v25  ;;  %v3637_v25 = vld [vmem:[#allocation5 + $0x50] sm:$0xff] }
 0x2a4   :  { %3252 = vrot.lane.b32.xlu0 %v3250_v35, %s4016_s16  ;;  %v3483_v35 = vld [vmem:[%s7524_s6 + $0x20] sm:$0xff] }
 0x2a5   :  { %3558 = vmatpush.msra.mxu1 %v3483_v35  ;;  %v3635_v35 = vld [vmem:[#allocation5 + $0x40] sm:$0xff] }
 0x2a9   :  { %3431 = vrot.lane.b32.xlu1 %v3429_v49, %s4016_s16  ;;  %v3498_v49 = vld [vmem:[%s7524_s6 + $0x98] sm:$0xff] }
 0x2aa   :  { %3455 = vrot.lane.b32.xlu2 %v3453_v39, %s4018_s18  ;;  %v3482_v39 = vld [vmem:[%s7524_s6 + $0x18] sm:$0xff]  ;;  %3579 = vmatpush.msra.mxu2 %v3498_v49  ;;  %v3634_v49 = vld [vmem:[#allocation5 + $0x38] sm:$0xff] }
 0x2ab   :  { %3559 = vmatpush.msra.mxu1 %v3482_v39  ;;  %v3633_v39 = vld [vmem:[#allocation5 + $0x30] sm:$0xff] }
 0x2ac   :  { %3425 = vrot.lane.b32.xlu0 %v3423_v55, %s4016_s16  ;;  %v3521_v55 = vld [vmem:[%s7524_s6 + $0x150] sm:$0xff]  ;;  %3580 = vmatpush.msra.mxu2 %v3497_v22 }
 0x2ad   :  { %3592 = vmatpush.msrb.mxu3 %v3521_v55  ;;  %v3632_v55 = vld [vmem:[#allocation5 + $0x28] sm:$0xff]  ;;  %v3631_v22 = vld [vmem:[#allocation5 + $0x20] sm:$0xff] }
 0x2b1   :  { %3373 = vrot.lane.b32.xlu1 %v3371_v9, %s4019_s19  ;;  %v3481_v9 = vld [vmem:[%s7524_s6 + $0x10] sm:$0xff] }
 0x2b2   :  { %3461 = vrot.lane.b32.xlu2 %v3459_v20, %s4019_s19  ;;  %v3520_v20 = vld [vmem:[%s7524_s6 + $0x148] sm:$0xff]  ;;  %3560 = vmatpush.msra.mxu1 %v3481_v9 }
 0x2b3   :  { %3593 = vmatpush.msrb.mxu3 %v3520_v20  ;;  %v3630_v9 = vld [vmem:[#allocation5 + $0x18] sm:$0xff]  ;;  %v3629_v20 = vld [vmem:[#allocation5 + $0x10] sm:$0xff] }
 0x2b4   :  { %3265 = vrot.lane.b32.xlu0 %v3263_v33, %s4017_s17  ;;  %v3496_v33 = vld [vmem:[%s7524_s6 + $0x88] sm:$0xff] }
 0x2b5   :  { %3581 = vmatpush.msra.mxu2 %v3496_v33  ;;  %v3628_v33 = vld [vmem:[#allocation5 + $0x8] sm:$0xff] }
 0x2b9   :  { %3443 = vrot.lane.b32.xlu1 %v3441_v63, %s4017_s17 }
 0x2bc   :  { %3437 = vrot.lane.b32.xlu0 %v3435_v42, %s4017_s17  ;;  %v3480_v42 = vld [vmem:[%s7524_s6 + $0x8] sm:$0xff] }
 0x2bd   :  { %3561 = vmatpush.msra.mxu1 %v3480_v42  ;;  %v3924_v42 = vld [vmem:[%s7525_s7] ss:$0 sm:$0xff]  ;;  %s4020_s7 = smov [#allocation8]  }
 0x2c1   :  { %3449 = vrot.lane.b32.xlu1 %v3447_v29, %s4018_s18  ;;  %v3495_v29 = vld [vmem:[%s7524_s6 + $0x80] sm:$0xff] }
 0x2c2   :  { %3582 = vmatpush.msra.mxu2 %v3495_v29 }
 0x2c4   :  { %3278 = vrot.lane.b32.xlu0 %v3276_v51, %s4018_s18  ;;  %v3314_v4 = vpop.permute.xlu0 %3313  ;;  %v3302_v36 = vpop.permute.xlu1 %3301  ;;  %3647 = vmatpush.msrb.mxu2 %v3642_v47  ;;  %s3694_s18 = sshll.u32 %s7528_s10, 4  ;;  %s3695_s18 = int_to_ptr.hbm [resolvable:$true] %s3694_s18 }
 0x2c5   :  { %3304 = vst.msk [vmem:[#allocation4 + $0x8] sm:$0x1] %vm3209_vm10, %v3302_v36  ;;  %v3541_v36 = vld [vmem:[%s7524_s6 + $0x1f0] sm:$0xff] }
 0x2c6   :  { %3316 = vst.msk [vmem:[#allocation4 + $0x8] sm:$0x1] %vm3222_vm11, %v3314_v4  ;;  %v3542_v4 = vld [vmem:[%s7524_s6 + $0x1f8] sm:$0xff]  ;;  %3648 = vmatpush.msrb.mxu2 %v3641_v27 }
 0x2c8   :  { %3649 = vmatpush.msrb.mxu2 %v3640_v57 }
 0x2c9   :  { %3291 = vrot.lane.b32.xlu1 %v3289_v10, %s4019_s19  ;;  %v3519_v10 = vld [vmem:[%s7524_s6 + $0x140] sm:$0xff] }
 0x2ca   :  { %3594 = vmatpush.msrb.mxu3 %v3519_v10 }
 0x2cb   :  { %v3344_v1 = vpop.permute.xlu2 %3343 }
 0x2cc   :  { %3284 = vrot.lane.b32.xlu0 %v3282_v18, %s4019_s19  ;;  %v3326_v44 = vpop.permute.xlu1 %3325  ;;  %v3518_v18 = vld [vmem:[%s7524_s6 + $0x138] sm:$0xff] }
 0x2cd   :  { %3328 = vst.msk [vmem:[#allocation4 + $0x8] sm:$0x1] %vm3235_vm12, %v3326_v44  ;;  %3595 = vmatpush.msrb.mxu3 %v3518_v18 }
 0x2cf   :  { %3596 = vmatpush.msrb.mxu3 %v3517_v15 }
 0x2d4   :  { %3467 = vrot.lane.b32.xlu0 %v3465_v38, %s4019_s19  ;;  %v3356_v13 = vpop.permute.xlu2 %3355  ;;  %v3320_v48 = vpop.permute.xlu1 %3319  ;;  %v3539_v38 = vld [vmem:[%s7524_s6 + $0x1e0] sm:$0xff] }
 0x2d5   :  { %3322 = vst.msk [vmem:[#allocation4 + $0x9] sm:$0x1] %vm3222_vm11, %v3320_v48  ;;  %v3538_v48 = vld [vmem:[%s7524_s6 + $0x1d8] sm:$0xff] }
 0x2d6   :  { %3334 = vst.msk [vmem:[#allocation4 + $0x9] sm:$0x1] %vm3235_vm12, %v3332_v61  ;;  %v3479_v61 = vld [vmem:[%s7524_s6] sm:$0xff] }
 0x2d7   :  { %3346 = vst.msk [vmem:[#allocation4 + $0x9] sm:$0x1] %vm3248_vm14, %v3344_v1  ;;  %3562 = vmatpush.msra.mxu1 %v3479_v61  ;;  %v3540_v1 = vld [vmem:[%s7524_s6 + $0x1e8] sm:$0xff] }
 0x2d8   :  { %3358 = vst.msk [vmem:[#allocation4 + $0x9] sm:$0x1] %vm3261_vm13, %v3356_v13 }
 0x2d9   :  { %3607 = vmatpush.msrb.mxu1 %v3542_v4 }
 0x2db   :  { %3608 = vmatpush.msrb.mxu1 %v3541_v36 }
 0x2dc   :  { %v3246_v30 = vpop.permute.xlu2 %3245 }
 0x2dd   :  { %3249 = vst.msk [vmem:[#allocation4] sm:$0x1] %vm3248_vm14, %v3246_v30  ;;  %3609 = vmatpush.msrb.mxu1 %v3540_v1  ;;  %v3516_v30 = vld [vmem:[%s7524_s6 + $0x128] sm:$0xff] }
 0x2de   :  { %3597 = vmatpush.msrb.mxu3 %v3516_v30 }
 0x2df   :  { %3610 = vmatpush.msrb.mxu1 %v3539_v38 }
 0x2e1   :  { %3611 = vmatpush.msrb.mxu1 %v3538_v48 }
 0x2e3   :  { %3612 = vmatpush.msrb.mxu1 %v3537_v31 }
 0x2e4   :  { %v3368_v45 = vpop.permute.xlu2 %3367 }
 0x2e5   :  { %3370 = vst.msk [vmem:[#allocation4 + $0x9] sm:$0x1] %vm3274_vm15, %v3368_v45  ;;  %v3515_v45 = vld [vmem:[%s7524_s6 + $0x120] sm:$0xff] }
 0x2e6   :  { %3598 = vmatpush.msrb.mxu3 %v3515_v45 }
 0x2e8   :  { %3599 = vmatpush.msrb.mxu3 %v3514_v34 }
 0x2ea   :  { %3600 = vmatpush.msrb.mxu3 %v3513_v21 }
 0x2eb   :  { %v3390_v2 = vpop.permute.xlu0 %3389  ;;  %v3338_v0 = vpop.permute.xlu1 %3337 }
 0x2ec   :  { %3392 = vst.msk [vmem:[#allocation4 + $0x10] sm:$0x1] %vm3209_vm10, %v3390_v2  ;;  %v3259_v7 = vpop.permute.xlu2 %3258  ;;  %v3536_v2 = vld [vmem:[%s7524_s6 + $0x1c8] sm:$0xff]  ;;  %3601 = vmatpush.msrb.mxu3 %v3512_v50 }
 0x2ed   :  { %3340 = vst.msk [vmem:[#allocation4 + $0x8] sm:$0x1] %vm3248_vm14, %v3338_v0  ;;  %3613 = vmatpush.msrb.mxu1 %v3536_v2 }
 0x2ee   :  { %3262 = vst.msk [vmem:[#allocation4] sm:$0x1] %vm3261_vm13, %v3259_v7  ;;  %v3535_v7 = vld [vmem:[%s7524_s6 + $0x1c0] sm:$0xff]  ;;  %3602 = vmatpush.msrb.mxu3 %v3511_v14 }
 0x2ef   :  { %3614 = vmatpush.msrb.mxu1 %v3535_v7 }
 0x2f1   :  { %3615 = vmatpush.msrb.mxu1 %v3534_v16 }
 0x2f3   :  { %v3396_v3 = vpop.permute.xlu1 %3395  ;;  %3616 = vmatpush.msrb.mxu1 %v3533_v32 }
 0x2f4   :  { %3398 = vst.msk [vmem:[#allocation4 + $0x11] sm:$0x1] %vm3209_vm10, %v3396_v3  ;;  %v3380_v58 = vpop.permute.xlu2 %3379 }
 0x2f5   :  { %3382 = vst.msk [vmem:[#allocation4 + $0x9] sm:$0x1] %vm3287_vm0, %v3380_v58  ;;  %3617 = vmatpush.msrb.mxu1 %v3532_v60 }
 0x2f7   :  { %3618 = vmatpush.msrb.mxu1 %v3531_v41 }
 0x2f9   :  { %3619 = vmatpush.msrb.mxu1 %v3530_v52 }
 0x2fb   :  { %v3350_v40 = vpop.permute.xlu1 %3349  ;;  %3620 = vmatpush.msrb.mxu1 %v3529_v5 }
 0x2fc   :  { %3352 = vst.msk [vmem:[#allocation4 + $0x8] sm:$0x1] %vm3261_vm13, %v3350_v40  ;;  %v3272_v26 = vpop.permute.xlu2 %3271 }
 0x2fd   :  { %3275 = vst.msk [vmem:[#allocation4] sm:$0x1] %vm3274_vm15, %v3272_v26  ;;  %3621 = vmatpush.msrb.mxu1 %v3528_v37 }
 0x2fe   :  { %v3402_v43 = vpop.permute.xlu0 %3401 }
 0x2ff   :  { %3404 = vst.msk [vmem:[#allocation4 + $0x10] sm:$0x1] %vm3222_vm11, %v3402_v43  ;;  %3622 = vmatpush.msrb.mxu1 %v3527_v19 }
 0x303   :  { %v3408_v6 = vpop.permute.xlu1 %3407 }
 0x304   :  { %3410 = vst.msk [vmem:[#allocation4 + $0x11] sm:$0x1] %vm3222_vm11, %v3408_v6  ;;  %v3456_v17 = vpop.permute.xlu2 %3455  ;;  %v3639_v6 = vld [vmem:[#allocation5 + $0x60] sm:$0xff] }
 0x305   :  { %3650 = vmatpush.msrb.mxu2 %v3639_v6 }
 0x306   :  { %v3240_v8 = vpop.permute.xlu0 %3239 }
 0x307   :  { %3242 = vst.msk [vmem:[#allocation4 + $0x1] sm:$0x1] %vm3235_vm12, %v3240_v8  ;;  %3651 = vmatpush.msrb.mxu2 %v3638_v24  ;;  %v3636_v8 = vld [vmem:[#allocation5 + $0x48] sm:$0xff] }
 0x309   :  { %3652 = vmatpush.msrb.mxu2 %v3637_v25 }
 0x30b   :  { %v3420_v63 = vpop.permute.xlu1 %3419  ;;  %3653 = vmatpush.msrb.mxu2 %v3636_v8 }
 0x30c   :  { %3422 = vst.msk [vmem:[#allocation4 + $0x11] sm:$0x1] %vm3235_vm12, %v3420_v63  ;;  %v3462_v28 = vpop.permute.xlu2 %3461  ;;  %v3627_v63 = vld [vmem:[#allocation5] sm:$0xff] }
 0x30d   :  { %3654 = vmatpush.msrb.mxu2 %v3635_v35 }
 0x30e   :  { %v3414_v51 = vpop.permute.xlu0 %3413 }
 0x30f   :  { %3416 = vst.msk [vmem:[#allocation4 + $0x10] sm:$0x1] %vm3235_vm12, %v3414_v51  ;;  %3655 = vmatpush.msrb.mxu2 %v3634_v49 }
 0x311   :  { %3656 = vmatpush.msrb.mxu2 %v3633_v39 }
 0x313   :  { %v3362_v44 = vpop.permute.xlu1 %3361  ;;  %3657 = vmatpush.msrb.mxu2 %v3632_v55 }
 0x314   :  { %3364 = vst.msk [vmem:[#allocation4 + $0x8] sm:$0x1] %vm3274_vm15, %v3362_v44  ;;  %v3925_v44 = vld [vmem:[%s7527_s9] ss:$0 sm:$0xff]  ;;  %s3692_s9 = sshll.u32 %s4020_s7, 4  ;;  %s3693_s9 = int_to_ptr.vmem [resolvable:$true] %s3692_s9 }
 0x315   :  { %3658 = vmatpush.msrb.mxu2 %v3631_v22 }
 0x316   :  { %v3253_v13 = vpop.permute.xlu0 %3252 }
 0x317   :  { %3255 = vst.msk [vmem:[#allocation4 + $0x1] sm:$0x1] %vm3248_vm14, %v3253_v13  ;;  %3659 = vmatpush.msrb.mxu2 %v3630_v9  ;;  %v8062_v13 = vld [vmem:[#allocation26_spill] sm:$0xff] }
 0x318   :  { %vm3667_vm1 = vcmp.lt.s32.totalorder %v8062_v13, 10 }
 0x319   :  { %3660 = vmatpush.msrb.mxu2 %v3629_v20 }
 0x31b   :  { %v3432_v0 = vpop.permute.xlu1 %3431  ;;  %3661 = vmatpush.msrb.mxu2 %v3628_v33 }
 0x31c   :  { %3434 = vst.msk [vmem:[#allocation4 + $0x11] sm:$0x1] %vm3248_vm14, %v3432_v0 }
 0x31d   :  { %3662 = vmatpush.msrb.mxu2 %v3627_v63 }
 0x31e   :  { %v3426_v12 = vpop.permute.xlu0 %3425 }
 0x31f   :  { %3428 = vst.msk [vmem:[#allocation4 + $0x10] sm:$0x1] %vm3248_vm14, %v3426_v12 }
 0x323   :  { %v3374_v3 = vpop.permute.xlu1 %3373 }
 0x324   :  { %3376 = vst.msk [vmem:[#allocation4 + $0x8] sm:$0x1] %vm3287_vm0, %v3374_v3 }
 0x326   :  { %v3266_v58 = vpop.permute.xlu0 %3265 }
 0x327   :  { %3268 = vst.msk [vmem:[#allocation4 + $0x1] sm:$0x1] %vm3261_vm13, %v3266_v58 }
 0x32b   :  { %v3444_v23 = vpop.permute.xlu1 %3443  ;;  %v3476_v46 = vld [vmem:[#allocation4 + $0x8] sm:$0x3] }
 0x32c   :  { %3446 = vst.msk [vmem:[#allocation4 + $0x11] sm:$0x1] %vm3261_vm13, %v3444_v23  ;;  %3583 = vmatmul.f32.vlgmr.msra.gmra.mxu2 %v3476_v46 }
 0x32d   :  { %3458 = vst.msk [vmem:[#allocation4 + $0x11] sm:$0x1] %vm3274_vm15, %v3456_v17 }
 0x32e   :  { %v3438_v40 = vpop.permute.xlu0 %3437 }
 0x32f   :  { %3440 = vst.msk [vmem:[#allocation4 + $0x10] sm:$0x1] %vm3261_vm13, %v3438_v40 }
 0x333   :  { %v3450_v54 = vpop.permute.xlu1 %3449 }
 0x334   :  { %3452 = vst.msk [vmem:[#allocation4 + $0x10] sm:$0x1] %vm3274_vm15, %v3450_v54 }
 0x335   :  { %3464 = vst.msk [vmem:[#allocation4 + $0x10] sm:$0x1] %vm3287_vm0, %v3462_v28 }
 0x336   :  { %v3279_v26 = vpop.permute.xlu0 %3278 }
 0x337   :  { %3281 = vst.msk [vmem:[#allocation4 + $0x1] sm:$0x1] %vm3274_vm15, %v3279_v26 }
 0x33b   :  { %v3292_v43 = vpop.permute.xlu1 %3291 }
 0x33c   :  { %3294 = vst.msk [vmem:[#allocation4 + $0x1] sm:$0x1] %vm3287_vm0, %v3292_v43 }
 0x33e   :  { %v3285_v11 = vpop.permute.xlu0 %3284 }
 0x33f   :  { %3288 = vst.msk [vmem:[#allocation4] sm:$0x1] %vm3287_vm0, %v3285_v11 }
 0x346   :  { %v3468_v62 = vpop.permute.xlu0 %3467  ;;  %v3475_v53 = vld [vmem:[#allocation4] sm:$0x3] }
 0x347   :  { %3470 = vst.msk [vmem:[#allocation4 + $0x11] sm:$0x1] %vm3287_vm0, %v3468_v62  ;;  %3563 = vmatmul.f32.vlgmr.msra.gmra.mxu1 %v3475_v53 }
 0x34e   :  { %v3477_v56 = vld [vmem:[#allocation4 + $0x10] sm:$0x3] }
 0x34f   :  { %3603 = vmatmul.f32.vlgmr.msrb.gmra.mxu3 %v3477_v56  ;;  %3623 = vmatmul.f32.vlgmr.msrb.gmra.mxu1 %v3478_v59 }
 0x3af   :  { %v3584_v61 = vpop.f32.mrf.mxu2 }
 0x3c4   :  { %v3564_v29 = vpop.f32.mrf.mxu1 }
 0x3c5   :  { %v3565_v51 = vadd.f32 %v3924_v42, %v3564_v29 }
 0x3c7   :  { %v3585_v10 = vadd.f32 %v3584_v61, %v3565_v51 }
 0x3cc   :  { %v3624_v18 = vpop.f32.mrf.mxu1 }
 0x3d2   :  { %v3604_v4 = vpop.f32.mrf.mxu3 }
 0x3d3   :  { %v3605_v36 = vadd.f32 %v3604_v4, %v3585_v10 }
 0x3d5   :  { %v3625_v1 = vadd.f32 %v3624_v18, %v3605_v36 }
 0x3d7   :  { %3663 = vmatmul.f32.vlgmr.msrb.gmra.mxu2 %v3625_v1 }
 0x45a   :  { %v3664_v38 = vpop.f32.mrf.mxu2 }
 0x45b   :  { %v3665_v15 = vadd.f32 %v3925_v44, %v3664_v38 }
 0x45d   :  { %v3670_v48 = vsel %vm3667_vm1, %v3665_v15, -1e+30 }
 0x45e   :  { %v3672_v30 = vsel %vm3671_vm2, %v3670_v48, -inf }
 0x45f   :  { %3673 = vmax.xlane.f32.xlu1 %v3672_v30 }
 0x4d2   :  { %v3674_v31 = vpop.xlane.xlu1 %3673 }
 0x4d3   :  { %v3675_v45 = vsub.f32 %v3670_v48, %v3674_v31  ;;  %v3684_v32 = vsub.f32 %v3665_v15, %v3674_v31 }
 0x4d5   :  { %v3676_v2 = vmul.f32 1.442695, %v3675_v45 }
 0x4d7   :  { %3926 = vpow2.f32 %v3676_v2 }
 0x4dd   :  { %v3927_v0 = vpop.eup %3926 }
 0x4de   :  { %v3678_v7 = vsel %vm3667_vm1, %v3927_v0, 0.0 }
 0x4df   :  { %v3679_v12 = vsel %vm3671_vm2, %v3678_v7, 0.0 }
 0x4e0   :  { %3680 = vadd.xlane.f32.xlu2 %v3679_v12 }
 0x553   :  { %v3681_v16 = vpop.xlane.xlu2 %3680 }
 0x554   :  { %3928 = vlog2.f32 %v3681_v16 }
 0x55a   :  { %v3929_v34 = vpop.eup %3928 }
 0x55b   :  { %v3683_v21 = vmul.f32 0.6931472, %v3929_v34 }
 0x55d   :  { %v3685_v60 = vsub.f32 %v3684_v32, %v3683_v21 }
 0x55f   :  { %3686 = vst [vmem:[#allocation8] sm:$0x3] %v3685_v60 }
 0x560   :  { %3697 = dma.vmem_to_hbm [thread:$0]  %s3693_s9, 32, %s3695_s18, [#allocation7]  }
 0x561   :  { %4006 = dma.done.wait [#allocation7], 32  }
 0x562   :  { %4007 = vsyncadd [#allocation7], 4294967264 }
 0x563   :  { %3702 = vsyncpa [#allocation6], 1 }
 0x564   :  { %3703 = vsyncpa [#allocation7], 1 }

</bundles_post_ra>
